<compile_context>
chip_gen: v7x
topology: tpu7x:2x2x1
jax: 0.10.0
libtpu: 0.0.40
codegen_flags: <defaults>
</compile_context>

<pallas_src>
import math

import jax
import jax.numpy as jnp
from jax.experimental import pallas as pl
from jax.experimental.pallas import tpu as pltpu

LN_EPS = 1e-5


def _layernorm(x, gamma, beta):
    # x: (M, D) f32, gamma/beta: (1, D) f32
    mu = jnp.mean(x, axis=-1, keepdims=True)
    xc = x - mu
    var = jnp.mean(xc * xc, axis=-1, keepdims=True)
    inv = jax.lax.rsqrt(var + LN_EPS)
    return xc * inv * gamma + beta


def _make_layer_kernel(batch_blk, seq, n_head, layer_axis):
    """One grid step == one encoder layer applied to `batch_blk` sequences.

    Refs (layer dim already squeezed by the BlockSpecs):
      x_ref:   (M, D)  f32          (M = batch_blk * seq)
      wqkv:    (D, 3D) bf16   bqkv: (1, 3D) f32   (scale folded into Q third)
      wo:      (D, D)  bf16   bo:   (1, D)  f32
      g1/be1/g2/be2 (LayerNorm affine): (1, D) f32
      w1: (D, F) bf16  b1: (1, F) f32   w2: (F, D) bf16  b2: (1, D) f32
      o_ref:   (M, D)  f32   -- VMEM-resident carry across the layer axis
      scratch: qkv_sc (M, 3D) bf16; q/k/v_sc (B*H, S, hd) bf16; ctx_sc (M, D) bf16
    """

    def kernel(x_ref, wqkv_ref, bqkv_ref, wo_ref, bo_ref,
               g1_ref, be1_ref, g2_ref, be2_ref,
               w1_ref, b1_ref, w2_ref, b2_ref,
               o_ref, qkv_sc, q_sc, k_sc, v_sc, ctx_sc):
        D = x_ref.shape[-1]
        hd = D // n_head
        l = pl.program_id(layer_axis)

        # Layer 0: seed the VMEM-resident carry (o_ref keeps the same block
        # index across the layer axis, so it never round-trips HBM per layer).
        @pl.when(l == 0)
        def _():
            o_ref[...] = x_ref[...]

        x = o_ref[...]                                   # (M, D) f32
        xb = x.astype(jnp.bfloat16)

        # ---- fused QKV projection:  (M, D) @ (D, 3D) -----------------------
        qkv = jnp.dot(xb, wqkv_ref[...],
                      preferred_element_type=jnp.float32) + bqkv_ref[...]
        qkv_sc[...] = qkv.astype(jnp.bfloat16)

        # Scatter into per-(sequence, head) (S, hd) tiles (128-lane aligned,
        # unmasked stores) so attention runs as one batched dot_general.
        for b in range(batch_blk):
            r0 = b * seq
            for h in range(n_head):
                c0 = h * hd
                i = b * n_head + h
                q_sc[i] = qkv_sc[r0:r0 + seq, c0:c0 + hd]
                k_sc[i] = qkv_sc[r0:r0 + seq, D + c0:D + c0 + hd]
                v_sc[i] = qkv_sc[r0:r0 + seq, 2 * D + c0:2 * D + c0 + hd]

        q = q_sc[...]                                    # (B*H, S, hd) bf16
        k = k_sc[...]
        v = v_sc[...]

        # ---- batched attention over (batch, head) ---------------------------
        # scores: contract over hd, batch over dim 0 -> (B*H, S, S) f32
        # (1/sqrt(hd) already folded into Wq/bq at packing time)
        s = jax.lax.dot_general(q, k, (((2,), (2,)), ((0,), (0,))),
                                preferred_element_type=jnp.float32)
        m = jnp.max(s, axis=-1, keepdims=True)
        p = jnp.exp(s - m)
        denom = jnp.sum(p, axis=-1, keepdims=True)
        p = p * pl.reciprocal(denom, approx=True)
        ctx_h = jax.lax.dot_general(p.astype(jnp.bfloat16), v,
                                    (((2,), (1,)), ((0,), (0,))),
                                    preferred_element_type=jnp.float32)

        # Write each head's output straight into its lane-aligned ctx slot.
        for b in range(batch_blk):
            r0 = b * seq
            for h in range(n_head):
                c0 = h * hd
                ctx_sc[r0:r0 + seq, c0:c0 + hd] = (
                    ctx_h[b * n_head + h].astype(jnp.bfloat16))

        # ---- output projection + residual + post-LayerNorm ------------------
        attn = jnp.dot(ctx_sc[...], wo_ref[...],
                       preferred_element_type=jnp.float32) + bo_ref[...]
        x1 = _layernorm(x + attn, g1_ref[...], be1_ref[...])

        # ---- position-wise feed-forward (ReLU) -------------------------------
        h1 = jnp.dot(x1.astype(jnp.bfloat16), w1_ref[...],
                     preferred_element_type=jnp.float32) + b1_ref[...]
        h1 = jnp.maximum(h1, 0.0)
        ff = jnp.dot(h1.astype(jnp.bfloat16), w2_ref[...],
                     preferred_element_type=jnp.float32) + b2_ref[...]

        o_ref[...] = _layernorm(x1 + ff, g2_ref[...], be2_ref[...])

    return kernel


def transformer_encoder(x, params, n_head, *, batch_blocks=1):
    """x: (B, S, d_model) f32 -> (B, S, d_model) f32.

    batch_blocks: leading "parallel" grid axis (set 2 on v7x to use both
    TensorCores; keep 1 on single-core chips where it would only duplicate
    the per-layer weight DMA).
    """
    B, S, D = x.shape
    L = params['wqkv'].shape[0]
    F = params['w1'].shape[-1]
    assert B % batch_blocks == 0
    bb = B // batch_blocks              # sequences handled per grid block
    M = bb * S

    x2d = x.reshape(B * S, D).astype(jnp.float32)   # fold batch into matmul M

    xmap = lambda i, l: (i, 0)                       # noqa: E731
    wmap = lambda i, l: (l, 0, 0)                    # noqa: E731

    in_specs = [
        pl.BlockSpec((M, D), xmap),                  # x
        pl.BlockSpec((None, D, 3 * D), wmap),        # wqkv
        pl.BlockSpec((None, 1, 3 * D), wmap),        # bqkv
        pl.BlockSpec((None, D, D), wmap),            # wo
        pl.BlockSpec((None, 1, D), wmap),            # bo
        pl.BlockSpec((None, 1, D), wmap),            # ln1 gamma
        pl.BlockSpec((None, 1, D), wmap),            # ln1 beta
        pl.BlockSpec((None, 1, D), wmap),            # ln2 gamma
        pl.BlockSpec((None, 1, D), wmap),            # ln2 beta
        pl.BlockSpec((None, D, F), wmap),            # w1
        pl.BlockSpec((None, 1, F), wmap),            # b1
        pl.BlockSpec((None, F, D), wmap),            # w2
        pl.BlockSpec((None, 1, D), wmap),            # b2
    ]
    out_spec = pl.BlockSpec((M, D), xmap)

    hd = D // n_head
    scratch = [
        pltpu.VMEM((M, 3 * D), jnp.bfloat16),            # qkv
        pltpu.VMEM((bb * n_head, S, hd), jnp.bfloat16),  # q heads
        pltpu.VMEM((bb * n_head, S, hd), jnp.bfloat16),  # k heads
        pltpu.VMEM((bb * n_head, S, hd), jnp.bfloat16),  # v heads
        pltpu.VMEM((M, D), jnp.bfloat16),                # ctx
    ]

    kernel = _make_layer_kernel(bb, S, n_head, layer_axis=1)

    out2d = pl.pallas_call(
        kernel,
        out_shape=jax.ShapeDtypeStruct((B * S, D), jnp.float32),
        grid_spec=pltpu.PrefetchScalarGridSpec(
            num_scalar_prefetch=0,
            grid=(batch_blocks, L),
            in_specs=in_specs,
            out_specs=out_spec,
            scratch_shapes=scratch,
        ),
        compiler_params=pltpu.CompilerParams(
            dimension_semantics=("parallel", "arbitrary"),
            vmem_limit_bytes=32 * 1024 * 1024,
        ),
    )(x2d,
      params['wqkv'], params['bqkv'], params['wo'], params['bo'],
      params['ln1_g'], params['ln1_b'], params['ln2_g'], params['ln2_b'],
      params['w1'], params['b1'], params['w2'], params['b2'])
    return out2d.reshape(B, S, D)


def init_params(key, num_layers, d_model, d_ff, n_head):
    """Deterministic synthetic encoder parameters.

    Wq/Wk/Wv are packed into one (L, D, 3D) bf16 tensor; the 1/sqrt(head_dim)
    attention scale is folded into the Q third of the packed weight & bias.
    """
    ks = jax.random.split(key, 12)
    L, D, F = num_layers, d_model, d_ff
    scale = 1.0 / math.sqrt(D // n_head)

    def nrm(k, shape, s=0.02):
        return jax.random.normal(k, shape, jnp.float32) * s

    wq = nrm(ks[0], (L, D, D)) * scale
    wk = nrm(ks[1], (L, D, D))
    wv = nrm(ks[2], (L, D, D))
    bq = nrm(ks[3], (L, 1, D)) * scale
    bk = nrm(ks[4], (L, 1, D))
    bv = nrm(ks[5], (L, 1, D))

    return dict(
        wqkv=jnp.concatenate([wq, wk, wv], axis=-1).astype(jnp.bfloat16),
        bqkv=jnp.concatenate([bq, bk, bv], axis=-1),
        wo=nrm(ks[6], (L, D, D)).astype(jnp.bfloat16),
        bo=nrm(ks[7], (L, 1, D)),
        ln1_g=jnp.ones((L, 1, D), jnp.float32),
        ln1_b=jnp.zeros((L, 1, D), jnp.float32),
        ln2_g=jnp.ones((L, 1, D), jnp.float32),
        ln2_b=jnp.zeros((L, 1, D), jnp.float32),
        w1=nrm(ks[8], (L, D, F)).astype(jnp.bfloat16),
        b1=nrm(ks[9], (L, 1, F)),
        w2=nrm(ks[10], (L, F, D)).astype(jnp.bfloat16),
        b2=nrm(ks[11], (L, 1, D)),
    )


if __name__ == "__main__":
    # Small shapes consistent with the module: d_model token features per
    # epoch, a sequence of epochs per subject, multi-head attention encoder.
    D_MODEL = 512      # EncoderParam.d_model
    N_HEAD = 4         # EncoderParam.n_head -> head_dim = 128 (lane aligned)
    LAYER_NUM = 2      # EncoderParam.layer_num
    D_FF = 1024        # FFN hidden width
    BATCH, SEQ = 2, 16

    key = jax.random.PRNGKey(0)
    k_params, k_x = jax.random.split(key)

    params = init_params(k_params, LAYER_NUM, D_MODEL, D_FF, N_HEAD)
    x = jax.random.normal(k_x, (BATCH, SEQ, D_MODEL), jnp.float32)

    out = transformer_encoder(x, params, N_HEAD, batch_blocks=1)
    out = jax.block_until_ready(out)

    assert out.shape == (BATCH, SEQ, D_MODEL), out.shape
    assert bool(jnp.all(jnp.isfinite(out)))
    print("KERNEL_OK")
</pallas_src>

<mosaic_0001>
module attributes {stable_mosaic.version = 11 : i64} {
  func.func @kernel(%arg0: i32, %arg1: i32, %arg2: memref<32x512xf32, #tpu.memory_space<vmem>>, %arg3: memref<1x512x1536xbf16, #tpu.memory_space<vmem>>, %arg4: memref<1x1x1536xf32, #tpu.memory_space<vmem>>, %arg5: memref<1x512x512xbf16, #tpu.memory_space<vmem>>, %arg6: memref<1x1x512xf32, #tpu.memory_space<vmem>>, %arg7: memref<1x1x512xf32, #tpu.memory_space<vmem>>, %arg8: memref<1x1x512xf32, #tpu.memory_space<vmem>>, %arg9: memref<1x1x512xf32, #tpu.memory_space<vmem>>, %arg10: memref<1x1x512xf32, #tpu.memory_space<vmem>>, %arg11: memref<1x512x1024xbf16, #tpu.memory_space<vmem>>, %arg12: memref<1x1x1024xf32, #tpu.memory_space<vmem>>, %arg13: memref<1x1024x512xbf16, #tpu.memory_space<vmem>>, %arg14: memref<1x1x512xf32, #tpu.memory_space<vmem>>, %arg15: memref<32x512xf32, #tpu.memory_space<vmem>>, %arg16: memref<32x1536xbf16, #tpu.memory_space<vmem>>, %arg17: memref<8x16x128xbf16, #tpu.memory_space<vmem>>, %arg18: memref<8x16x128xbf16, #tpu.memory_space<vmem>>, %arg19: memref<8x16x128xbf16, #tpu.memory_space<vmem>>, %arg20: memref<32x512xbf16, #tpu.memory_space<vmem>>) attributes {dimension_semantics = [#tpu.dimension_semantics<parallel>, #tpu.dimension_semantics<arbitrary>], iteration_bounds = array<i64: 1, 2>, scalar_prefetch = 0 : i64, scratch_operands = 5 : i64, tpu.core_type = #tpu.core_type<tc>, window_params = [{transform_indices = @transform_0, window_bounds = array<i64: 32, 512>}, {transform_indices = @transform_1, window_bounds = array<i64: 1, 512, 1536>}, {transform_indices = @transform_2, window_bounds = array<i64: 1, 1, 1536>}, {transform_indices = @transform_3, window_bounds = array<i64: 1, 512, 512>}, {transform_indices = @transform_4, window_bounds = array<i64: 1, 1, 512>}, {transform_indices = @transform_5, window_bounds = array<i64: 1, 1, 512>}, {transform_indices = @transform_6, window_bounds = array<i64: 1, 1, 512>}, {transform_indices = @transform_7, window_bounds = array<i64: 1, 1, 512>}, {transform_indices = @transform_8, window_bounds = array<i64: 1, 1, 512>}, {transform_indices = @transform_9, window_bounds = array<i64: 1, 512, 1024>}, {transform_indices = @transform_10, window_bounds = array<i64: 1, 1, 1024>}, {transform_indices = @transform_11, window_bounds = array<i64: 1, 1024, 512>}, {transform_indices = @transform_12, window_bounds = array<i64: 1, 1, 512>}, {transform_indices = @transform_13, window_bounds = array<i64: 32, 512>}]} {
    %c0_i32 = arith.constant 0 : i32
    %0 = arith.cmpi eq, %arg1, %c0_i32 : i32
    %1 = arith.extui %0 : i1 to i32
    %c0_i32_0 = arith.constant 0 : i32
    %2 = arith.cmpi ne, %1, %c0_i32_0 : i32
    scf.if %2 {
      %c0_188 = arith.constant 0 : index
      %c0_189 = arith.constant 0 : index
      %235 = vector.load %arg2[%c0_188, %c0_189] : memref<32x512xf32, #tpu.memory_space<vmem>>, vector<32x512xf32>
      %c0_190 = arith.constant 0 : index
      %c0_191 = arith.constant 0 : index
      %236 = vector.load %arg15[%c0_190, %c0_191] : memref<32x512xf32, #tpu.memory_space<vmem>>, vector<32x512xf32>
      tpu.vector_store %arg15[%c0_190, %c0_191], %235 {strides = array<i32>} : memref<32x512xf32, #tpu.memory_space<vmem>>, vector<32x512xf32>,
    } else {
    }
    %c0 = arith.constant 0 : index
    %c0_1 = arith.constant 0 : index
    %3 = vector.load %arg15[%c0, %c0_1] : memref<32x512xf32, #tpu.memory_space<vmem>>, vector<32x512xf32>
    %4 = arith.truncf %3 : vector<32x512xf32> to vector<32x512xbf16>
    %c0_2 = arith.constant 0 : index
    %c0_3 = arith.constant 0 : index
    %c0_4 = arith.constant 0 : index
    %5 = vector.load %arg3[%c0_2, %c0_3, %c0_4] : memref<1x512x1536xbf16, #tpu.memory_space<vmem>>, vector<1x512x1536xbf16>
    %6 = vector.shape_cast %5 : vector<1x512x1536xbf16> to vector<512x1536xbf16>
    %cst = arith.constant dense<0.000000e+00> : vector<32x1536xf32>
    %7 = tpu.matmul %4, %6, %cst {dimension_numbers = #tpu.dot_dimension_numbers<[1], [0], [0], [1], [0, 0, 1, 1], [], []>} : vector<32x512xbf16>, vector<512x1536xbf16>, vector<32x1536xf32> -> vector<32x1536xf32>
    %c0_5 = arith.constant 0 : index
    %c0_6 = arith.constant 0 : index
    %c0_7 = arith.constant 0 : index
    %8 = vector.load %arg4[%c0_5, %c0_6, %c0_7] : memref<1x1x1536xf32, #tpu.memory_space<vmem>>, vector<1x1x1536xf32>
    %9 = vector.shape_cast %8 : vector<1x1x1536xf32> to vector<1x1536xf32>
    %10 = vector.broadcast %9 : vector<1x1536xf32> to vector<32x1536xf32>
    %11 = arith.addf %7, %10 : vector<32x1536xf32>
    %12 = arith.truncf %11 : vector<32x1536xf32> to vector<32x1536xbf16>
    %c0_8 = arith.constant 0 : index
    %c0_9 = arith.constant 0 : index
    %13 = vector.load %arg16[%c0_8, %c0_9] : memref<32x1536xbf16, #tpu.memory_space<vmem>>, vector<32x1536xbf16>
    tpu.vector_store %arg16[%c0_8, %c0_9], %12 {strides = array<i32>} : memref<32x1536xbf16, #tpu.memory_space<vmem>>, vector<32x1536xbf16>,
    %c0_10 = arith.constant 0 : index
    %c0_11 = arith.constant 0 : index
    %14 = vector.load %arg16[%c0_10, %c0_11] : memref<32x1536xbf16, #tpu.memory_space<vmem>>, vector<16x128xbf16>
    %c0_12 = arith.constant 0 : index
    %c0_13 = arith.constant 0 : index
    %c0_14 = arith.constant 0 : index
    %15 = vector.load %arg17[%c0_12, %c0_13, %c0_14] : memref<8x16x128xbf16, #tpu.memory_space<vmem>>, vector<1x16x128xbf16>
    %16 = vector.shape_cast %15 : vector<1x16x128xbf16> to vector<16x128xbf16>
    %17 = vector.shape_cast %14 : vector<16x128xbf16> to vector<1x16x128xbf16>
    tpu.vector_store %arg17[%c0_12, %c0_13, %c0_14], %17 {strides = array<i32>} : memref<8x16x128xbf16, #tpu.memory_space<vmem>>, vector<1x16x128xbf16>,
    %c0_15 = arith.constant 0 : index
    %c512 = arith.constant 512 : index
    %18 = vector.load %arg16[%c0_15, %c512] : memref<32x1536xbf16, #tpu.memory_space<vmem>>, vector<16x128xbf16>
    %c0_16 = arith.constant 0 : index
    %c0_17 = arith.constant 0 : index
    %c0_18 = arith.constant 0 : index
    %19 = vector.load %arg18[%c0_16, %c0_17, %c0_18] : memref<8x16x128xbf16, #tpu.memory_space<vmem>>, vector<1x16x128xbf16>
    %20 = vector.shape_cast %19 : vector<1x16x128xbf16> to vector<16x128xbf16>
    %21 = vector.shape_cast %18 : vector<16x128xbf16> to vector<1x16x128xbf16>
    tpu.vector_store %arg18[%c0_16, %c0_17, %c0_18], %21 {strides = array<i32>} : memref<8x16x128xbf16, #tpu.memory_space<vmem>>, vector<1x16x128xbf16>,
    %c0_19 = arith.constant 0 : index
    %c1024 = arith.constant 1024 : index
    %22 = vector.load %arg16[%c0_19, %c1024] : memref<32x1536xbf16, #tpu.memory_space<vmem>>, vector<16x128xbf16>
    %c0_20 = arith.constant 0 : index
    %c0_21 = arith.constant 0 : index
    %c0_22 = arith.constant 0 : index
    %23 = vector.load %arg19[%c0_20, %c0_21, %c0_22] : memref<8x16x128xbf16, #tpu.memory_space<vmem>>, vector<1x16x128xbf16>
    %24 = vector.shape_cast %23 : vector<1x16x128xbf16> to vector<16x128xbf16>
    %25 = vector.shape_cast %22 : vector<16x128xbf16> to vector<1x16x128xbf16>
    tpu.vector_store %arg19[%c0_20, %c0_21, %c0_22], %25 {strides = array<i32>} : memref<8x16x128xbf16, #tpu.memory_space<vmem>>, vector<1x16x128xbf16>,
    %c0_23 = arith.constant 0 : index
    %c128 = arith.constant 128 : index
    %26 = vector.load %arg16[%c0_23, %c128] : memref<32x1536xbf16, #tpu.memory_space<vmem>>, vector<16x128xbf16>
    %c1 = arith.constant 1 : index
    %c0_24 = arith.constant 0 : index
    %c0_25 = arith.constant 0 : index
    %27 = vector.load %arg17[%c1, %c0_24, %c0_25] : memref<8x16x128xbf16, #tpu.memory_space<vmem>>, vector<1x16x128xbf16>
    %28 = vector.shape_cast %27 : vector<1x16x128xbf16> to vector<16x128xbf16>
    %29 = vector.shape_cast %26 : vector<16x128xbf16> to vector<1x16x128xbf16>
    tpu.vector_store %arg17[%c1, %c0_24, %c0_25], %29 {strides = array<i32>} : memref<8x16x128xbf16, #tpu.memory_space<vmem>>, vector<1x16x128xbf16>,
    %c0_26 = arith.constant 0 : index
    %c640 = arith.constant 640 : index
    %30 = vector.load %arg16[%c0_26, %c640] : memref<32x1536xbf16, #tpu.memory_space<vmem>>, vector<16x128xbf16>
    %c1_27 = arith.constant 1 : index
    %c0_28 = arith.constant 0 : index
    %c0_29 = arith.constant 0 : index
    %31 = vector.load %arg18[%c1_27, %c0_28, %c0_29] : memref<8x16x128xbf16, #tpu.memory_space<vmem>>, vector<1x16x128xbf16>
    %32 = vector.shape_cast %31 : vector<1x16x128xbf16> to vector<16x128xbf16>
    %33 = vector.shape_cast %30 : vector<16x128xbf16> to vector<1x16x128xbf16>
    tpu.vector_store %arg18[%c1_27, %c0_28, %c0_29], %33 {strides = array<i32>} : memref<8x16x128xbf16, #tpu.memory_space<vmem>>, vector<1x16x128xbf16>,
    %c0_30 = arith.constant 0 : index
    %c1152 = arith.constant 1152 : index
    %34 = vector.load %arg16[%c0_30, %c1152] : memref<32x1536xbf16, #tpu.memory_space<vmem>>, vector<16x128xbf16>
    %c1_31 = arith.constant 1 : index
    %c0_32 = arith.constant 0 : index
    %c0_33 = arith.constant 0 : index
    %35 = vector.load %arg19[%c1_31, %c0_32, %c0_33] : memref<8x16x128xbf16, #tpu.memory_space<vmem>>, vector<1x16x128xbf16>
    %36 = vector.shape_cast %35 : vector<1x16x128xbf16> to vector<16x128xbf16>
    %37 = vector.shape_cast %34 : vector<16x128xbf16> to vector<1x16x128xbf16>
    tpu.vector_store %arg19[%c1_31, %c0_32, %c0_33], %37 {strides = array<i32>} : memref<8x16x128xbf16, #tpu.memory_space<vmem>>, vector<1x16x128xbf16>,
    %c0_34 = arith.constant 0 : index
    %c256 = arith.constant 256 : index
    %38 = vector.load %arg16[%c0_34, %c256] : memref<32x1536xbf16, #tpu.memory_space<vmem>>, vector<16x128xbf16>
    %c2 = arith.constant 2 : index
    %c0_35 = arith.constant 0 : index
    %c0_36 = arith.constant 0 : index
    %39 = vector.load %arg17[%c2, %c0_35, %c0_36] : memref<8x16x128xbf16, #tpu.memory_space<vmem>>, vector<1x16x128xbf16>
    %40 = vector.shape_cast %39 : vector<1x16x128xbf16> to vector<16x128xbf16>
    %41 = vector.shape_cast %38 : vector<16x128xbf16> to vector<1x16x128xbf16>
    tpu.vector_store %arg17[%c2, %c0_35, %c0_36], %41 {strides = array<i32>} : memref<8x16x128xbf16, #tpu.memory_space<vmem>>, vector<1x16x128xbf16>,
    %c0_37 = arith.constant 0 : index
    %c768 = arith.constant 768 : index
    %42 = vector.load %arg16[%c0_37, %c768] : memref<32x1536xbf16, #tpu.memory_space<vmem>>, vector<16x128xbf16>
    %c2_38 = arith.constant 2 : index
    %c0_39 = arith.constant 0 : index
    %c0_40 = arith.constant 0 : index
    %43 = vector.load %arg18[%c2_38, %c0_39, %c0_40] : memref<8x16x128xbf16, #tpu.memory_space<vmem>>, vector<1x16x128xbf16>
    %44 = vector.shape_cast %43 : vector<1x16x128xbf16> to vector<16x128xbf16>
    %45 = vector.shape_cast %42 : vector<16x128xbf16> to vector<1x16x128xbf16>
    tpu.vector_store %arg18[%c2_38, %c0_39, %c0_40], %45 {strides = array<i32>} : memref<8x16x128xbf16, #tpu.memory_space<vmem>>, vector<1x16x128xbf16>,
    %c0_41 = arith.constant 0 : index
    %c1280 = arith.constant 1280 : index
    %46 = vector.load %arg16[%c0_41, %c1280] : memref<32x1536xbf16, #tpu.memory_space<vmem>>, vector<16x128xbf16>
    %c2_42 = arith.constant 2 : index
    %c0_43 = arith.constant 0 : index
    %c0_44 = arith.constant 0 : index
    %47 = vector.load %arg19[%c2_42, %c0_43, %c0_44] : memref<8x16x128xbf16, #tpu.memory_space<vmem>>, vector<1x16x128xbf16>
    %48 = vector.shape_cast %47 : vector<1x16x128xbf16> to vector<16x128xbf16>
    %49 = vector.shape_cast %46 : vector<16x128xbf16> to vector<1x16x128xbf16>
    tpu.vector_store %arg19[%c2_42, %c0_43, %c0_44], %49 {strides = array<i32>} : memref<8x16x128xbf16, #tpu.memory_space<vmem>>, vector<1x16x128xbf16>,
    %c0_45 = arith.constant 0 : index
    %c384 = arith.constant 384 : index
    %50 = vector.load %arg16[%c0_45, %c384] : memref<32x1536xbf16, #tpu.memory_space<vmem>>, vector<16x128xbf16>
    %c3 = arith.constant 3 : index
    %c0_46 = arith.constant 0 : index
    %c0_47 = arith.constant 0 : index
    %51 = vector.load %arg17[%c3, %c0_46, %c0_47] : memref<8x16x128xbf16, #tpu.memory_space<vmem>>, vector<1x16x128xbf16>
    %52 = vector.shape_cast %51 : vector<1x16x128xbf16> to vector<16x128xbf16>
    %53 = vector.shape_cast %50 : vector<16x128xbf16> to vector<1x16x128xbf16>
    tpu.vector_store %arg17[%c3, %c0_46, %c0_47], %53 {strides = array<i32>} : memref<8x16x128xbf16, #tpu.memory_space<vmem>>, vector<1x16x128xbf16>,
    %c0_48 = arith.constant 0 : index
    %c896 = arith.constant 896 : index
    %54 = vector.load %arg16[%c0_48, %c896] : memref<32x1536xbf16, #tpu.memory_space<vmem>>, vector<16x128xbf16>
    %c3_49 = arith.constant 3 : index
    %c0_50 = arith.constant 0 : index
    %c0_51 = arith.constant 0 : index
    %55 = vector.load %arg18[%c3_49, %c0_50, %c0_51] : memref<8x16x128xbf16, #tpu.memory_space<vmem>>, vector<1x16x128xbf16>
    %56 = vector.shape_cast %55 : vector<1x16x128xbf16> to vector<16x128xbf16>
    %57 = vector.shape_cast %54 : vector<16x128xbf16> to vector<1x16x128xbf16>
    tpu.vector_store %arg18[%c3_49, %c0_50, %c0_51], %57 {strides = array<i32>} : memref<8x16x128xbf16, #tpu.memory_space<vmem>>, vector<1x16x128xbf16>,
    %c0_52 = arith.constant 0 : index
    %c1408 = arith.constant 1408 : index
    %58 = vector.load %arg16[%c0_52, %c1408] : memref<32x1536xbf16, #tpu.memory_space<vmem>>, vector<16x128xbf16>
    %c3_53 = arith.constant 3 : index
    %c0_54 = arith.constant 0 : index
    %c0_55 = arith.constant 0 : index
    %59 = vector.load %arg19[%c3_53, %c0_54, %c0_55] : memref<8x16x128xbf16, #tpu.memory_space<vmem>>, vector<1x16x128xbf16>
    %60 = vector.shape_cast %59 : vector<1x16x128xbf16> to vector<16x128xbf16>
    %61 = vector.shape_cast %58 : vector<16x128xbf16> to vector<1x16x128xbf16>
    tpu.vector_store %arg19[%c3_53, %c0_54, %c0_55], %61 {strides = array<i32>} : memref<8x16x128xbf16, #tpu.memory_space<vmem>>, vector<1x16x128xbf16>,
    %c16 = arith.constant 16 : index
    %c0_56 = arith.constant 0 : index
    %62 = vector.load %arg16[%c16, %c0_56] : memref<32x1536xbf16, #tpu.memory_space<vmem>>, vector<16x128xbf16>
    %c4 = arith.constant 4 : index
    %c0_57 = arith.constant 0 : index
    %c0_58 = arith.constant 0 : index
    %63 = vector.load %arg17[%c4, %c0_57, %c0_58] : memref<8x16x128xbf16, #tpu.memory_space<vmem>>, vector<1x16x128xbf16>
    %64 = vector.shape_cast %63 : vector<1x16x128xbf16> to vector<16x128xbf16>
    %65 = vector.shape_cast %62 : vector<16x128xbf16> to vector<1x16x128xbf16>
    tpu.vector_store %arg17[%c4, %c0_57, %c0_58], %65 {strides = array<i32>} : memref<8x16x128xbf16, #tpu.memory_space<vmem>>, vector<1x16x128xbf16>,
    %c16_59 = arith.constant 16 : index
    %c512_60 = arith.constant 512 : index
    %66 = vector.load %arg16[%c16_59, %c512_60] : memref<32x1536xbf16, #tpu.memory_space<vmem>>, vector<16x128xbf16>
    %c4_61 = arith.constant 4 : index
    %c0_62 = arith.constant 0 : index
    %c0_63 = arith.constant 0 : index
    %67 = vector.load %arg18[%c4_61, %c0_62, %c0_63] : memref<8x16x128xbf16, #tpu.memory_space<vmem>>, vector<1x16x128xbf16>
    %68 = vector.shape_cast %67 : vector<1x16x128xbf16> to vector<16x128xbf16>
    %69 = vector.shape_cast %66 : vector<16x128xbf16> to vector<1x16x128xbf16>
    tpu.vector_store %arg18[%c4_61, %c0_62, %c0_63], %69 {strides = array<i32>} : memref<8x16x128xbf16, #tpu.memory_space<vmem>>, vector<1x16x128xbf16>,
    %c16_64 = arith.constant 16 : index
    %c1024_65 = arith.constant 1024 : index
    %70 = vector.load %arg16[%c16_64, %c1024_65] : memref<32x1536xbf16, #tpu.memory_space<vmem>>, vector<16x128xbf16>
    %c4_66 = arith.constant 4 : index
    %c0_67 = arith.constant 0 : index
    %c0_68 = arith.constant 0 : index
    %71 = vector.load %arg19[%c4_66, %c0_67, %c0_68] : memref<8x16x128xbf16, #tpu.memory_space<vmem>>, vector<1x16x128xbf16>
    %72 = vector.shape_cast %71 : vector<1x16x128xbf16> to vector<16x128xbf16>
    %73 = vector.shape_cast %70 : vector<16x128xbf16> to vector<1x16x128xbf16>
    tpu.vector_store %arg19[%c4_66, %c0_67, %c0_68], %73 {strides = array<i32>} : memref<8x16x128xbf16, #tpu.memory_space<vmem>>, vector<1x16x128xbf16>,
    %c16_69 = arith.constant 16 : index
    %c128_70 = arith.constant 128 : index
    %74 = vector.load %arg16[%c16_69, %c128_70] : memref<32x1536xbf16, #tpu.memory_space<vmem>>, vector<16x128xbf16>
    %c5 = arith.constant 5 : index
    %c0_71 = arith.constant 0 : index
    %c0_72 = arith.constant 0 : index
    %75 = vector.load %arg17[%c5, %c0_71, %c0_72] : memref<8x16x128xbf16, #tpu.memory_space<vmem>>, vector<1x16x128xbf16>
    %76 = vector.shape_cast %75 : vector<1x16x128xbf16> to vector<16x128xbf16>
    %77 = vector.shape_cast %74 : vector<16x128xbf16> to vector<1x16x128xbf16>
    tpu.vector_store %arg17[%c5, %c0_71, %c0_72], %77 {strides = array<i32>} : memref<8x16x128xbf16, #tpu.memory_space<vmem>>, vector<1x16x128xbf16>,
    %c16_73 = arith.constant 16 : index
    %c640_74 = arith.constant 640 : index
    %78 = vector.load %arg16[%c16_73, %c640_74] : memref<32x1536xbf16, #tpu.memory_space<vmem>>, vector<16x128xbf16>
    %c5_75 = arith.constant 5 : index
    %c0_76 = arith.constant 0 : index
    %c0_77 = arith.constant 0 : index
    %79 = vector.load %arg18[%c5_75, %c0_76, %c0_77] : memref<8x16x128xbf16, #tpu.memory_space<vmem>>, vector<1x16x128xbf16>
    %80 = vector.shape_cast %79 : vector<1x16x128xbf16> to vector<16x128xbf16>
    %81 = vector.shape_cast %78 : vector<16x128xbf16> to vector<1x16x128xbf16>
    tpu.vector_store %arg18[%c5_75, %c0_76, %c0_77], %81 {strides = array<i32>} : memref<8x16x128xbf16, #tpu.memory_space<vmem>>, vector<1x16x128xbf16>,
    %c16_78 = arith.constant 16 : index
    %c1152_79 = arith.constant 1152 : index
    %82 = vector.load %arg16[%c16_78, %c1152_79] : memref<32x1536xbf16, #tpu.memory_space<vmem>>, vector<16x128xbf16>
    %c5_80 = arith.constant 5 : index
    %c0_81 = arith.constant 0 : index
    %c0_82 = arith.constant 0 : index
    %83 = vector.load %arg19[%c5_80, %c0_81, %c0_82] : memref<8x16x128xbf16, #tpu.memory_space<vmem>>, vector<1x16x128xbf16>
    %84 = vector.shape_cast %83 : vector<1x16x128xbf16> to vector<16x128xbf16>
    %85 = vector.shape_cast %82 : vector<16x128xbf16> to vector<1x16x128xbf16>
    tpu.vector_store %arg19[%c5_80, %c0_81, %c0_82], %85 {strides = array<i32>} : memref<8x16x128xbf16, #tpu.memory_space<vmem>>, vector<1x16x128xbf16>,
    %c16_83 = arith.constant 16 : index
    %c256_84 = arith.constant 256 : index
    %86 = vector.load %arg16[%c16_83, %c256_84] : memref<32x1536xbf16, #tpu.memory_space<vmem>>, vector<16x128xbf16>
    %c6 = arith.constant 6 : index
    %c0_85 = arith.constant 0 : index
    %c0_86 = arith.constant 0 : index
    %87 = vector.load %arg17[%c6, %c0_85, %c0_86] : memref<8x16x128xbf16, #tpu.memory_space<vmem>>, vector<1x16x128xbf16>
    %88 = vector.shape_cast %87 : vector<1x16x128xbf16> to vector<16x128xbf16>
    %89 = vector.shape_cast %86 : vector<16x128xbf16> to vector<1x16x128xbf16>
    tpu.vector_store %arg17[%c6, %c0_85, %c0_86], %89 {strides = array<i32>} : memref<8x16x128xbf16, #tpu.memory_space<vmem>>, vector<1x16x128xbf16>,
    %c16_87 = arith.constant 16 : index
    %c768_88 = arith.constant 768 : index
    %90 = vector.load %arg16[%c16_87, %c768_88] : memref<32x1536xbf16, #tpu.memory_space<vmem>>, vector<16x128xbf16>
    %c6_89 = arith.constant 6 : index
    %c0_90 = arith.constant 0 : index
    %c0_91 = arith.constant 0 : index
    %91 = vector.load %arg18[%c6_89, %c0_90, %c0_91] : memref<8x16x128xbf16, #tpu.memory_space<vmem>>, vector<1x16x128xbf16>
    %92 = vector.shape_cast %91 : vector<1x16x128xbf16> to vector<16x128xbf16>
    %93 = vector.shape_cast %90 : vector<16x128xbf16> to vector<1x16x128xbf16>
    tpu.vector_store %arg18[%c6_89, %c0_90, %c0_91], %93 {strides = array<i32>} : memref<8x16x128xbf16, #tpu.memory_space<vmem>>, vector<1x16x128xbf16>,
    %c16_92 = arith.constant 16 : index
    %c1280_93 = arith.constant 1280 : index
    %94 = vector.load %arg16[%c16_92, %c1280_93] : memref<32x1536xbf16, #tpu.memory_space<vmem>>, vector<16x128xbf16>
    %c6_94 = arith.constant 6 : index
    %c0_95 = arith.constant 0 : index
    %c0_96 = arith.constant 0 : index
    %95 = vector.load %arg19[%c6_94, %c0_95, %c0_96] : memref<8x16x128xbf16, #tpu.memory_space<vmem>>, vector<1x16x128xbf16>
    %96 = vector.shape_cast %95 : vector<1x16x128xbf16> to vector<16x128xbf16>
    %97 = vector.shape_cast %94 : vector<16x128xbf16> to vector<1x16x128xbf16>
    tpu.vector_store %arg19[%c6_94, %c0_95, %c0_96], %97 {strides = array<i32>} : memref<8x16x128xbf16, #tpu.memory_space<vmem>>, vector<1x16x128xbf16>,
    %c16_97 = arith.constant 16 : index
    %c384_98 = arith.constant 384 : index
    %98 = vector.load %arg16[%c16_97, %c384_98] : memref<32x1536xbf16, #tpu.memory_space<vmem>>, vector<16x128xbf16>
    %c7 = arith.constant 7 : index
    %c0_99 = arith.constant 0 : index
    %c0_100 = arith.constant 0 : index
    %99 = vector.load %arg17[%c7, %c0_99, %c0_100] : memref<8x16x128xbf16, #tpu.memory_space<vmem>>, vector<1x16x128xbf16>
    %100 = vector.shape_cast %99 : vector<1x16x128xbf16> to vector<16x128xbf16>
    %101 = vector.shape_cast %98 : vector<16x128xbf16> to vector<1x16x128xbf16>
    tpu.vector_store %arg17[%c7, %c0_99, %c0_100], %101 {strides = array<i32>} : memref<8x16x128xbf16, #tpu.memory_space<vmem>>, vector<1x16x128xbf16>,
    %c16_101 = arith.constant 16 : index
    %c896_102 = arith.constant 896 : index
    %102 = vector.load %arg16[%c16_101, %c896_102] : memref<32x1536xbf16, #tpu.memory_space<vmem>>, vector<16x128xbf16>
    %c7_103 = arith.constant 7 : index
    %c0_104 = arith.constant 0 : index
    %c0_105 = arith.constant 0 : index
    %103 = vector.load %arg18[%c7_103, %c0_104, %c0_105] : memref<8x16x128xbf16, #tpu.memory_space<vmem>>, vector<1x16x128xbf16>
    %104 = vector.shape_cast %103 : vector<1x16x128xbf16> to vector<16x128xbf16>
    %105 = vector.shape_cast %102 : vector<16x128xbf16> to vector<1x16x128xbf16>
    tpu.vector_store %arg18[%c7_103, %c0_104, %c0_105], %105 {strides = array<i32>} : memref<8x16x128xbf16, #tpu.memory_space<vmem>>, vector<1x16x128xbf16>,
    %c16_106 = arith.constant 16 : index
    %c1408_107 = arith.constant 1408 : index
    %106 = vector.load %arg16[%c16_106, %c1408_107] : memref<32x1536xbf16, #tpu.memory_space<vmem>>, vector<16x128xbf16>
    %c7_108 = arith.constant 7 : index
    %c0_109 = arith.constant 0 : index
    %c0_110 = arith.constant 0 : index
    %107 = vector.load %arg19[%c7_108, %c0_109, %c0_110] : memref<8x16x128xbf16, #tpu.memory_space<vmem>>, vector<1x16x128xbf16>
    %108 = vector.shape_cast %107 : vector<1x16x128xbf16> to vector<16x128xbf16>
    %109 = vector.shape_cast %106 : vector<16x128xbf16> to vector<1x16x128xbf16>
    tpu.vector_store %arg19[%c7_108, %c0_109, %c0_110], %109 {strides = array<i32>} : memref<8x16x128xbf16, #tpu.memory_space<vmem>>, vector<1x16x128xbf16>,
    %c0_111 = arith.constant 0 : index
    %c0_112 = arith.constant 0 : index
    %c0_113 = arith.constant 0 : index
    %110 = vector.load %arg17[%c0_111, %c0_112, %c0_113] : memref<8x16x128xbf16, #tpu.memory_space<vmem>>, vector<8x16x128xbf16>
    %c0_114 = arith.constant 0 : index
    %c0_115 = arith.constant 0 : index
    %c0_116 = arith.constant 0 : index
    %111 = vector.load %arg18[%c0_114, %c0_115, %c0_116] : memref<8x16x128xbf16, #tpu.memory_space<vmem>>, vector<8x16x128xbf16>
    %c0_117 = arith.constant 0 : index
    %c0_118 = arith.constant 0 : index
    %c0_119 = arith.constant 0 : index
    %112 = vector.load %arg19[%c0_117, %c0_118, %c0_119] : memref<8x16x128xbf16, #tpu.memory_space<vmem>>, vector<8x16x128xbf16>
    %cst_120 = arith.constant dense<0.000000e+00> : vector<8x16x16xf32>
    %113 = tpu.matmul %110, %111, %cst_120 {dimension_numbers = #tpu.dot_dimension_numbers<[2], [2], [1], [1], [0, 0, 0, 1, 1, 1], [0], [0]>} : vector<8x16x128xbf16>, vector<8x16x128xbf16>, vector<8x16x16xf32> -> vector<8x16x16xf32>
    %cst_121 = arith.constant dense<0xFF800000> : vector<8x16xf32>
    %114 = vector.multi_reduction <maximumf>, %113, %cst_121 [2] : vector<8x16x16xf32> to vector<8x16xf32>
    %115 = vector.shape_cast %114 : vector<8x16xf32> to vector<8x16x1xf32>
    %116 = vector.broadcast %115 : vector<8x16x1xf32> to vector<8x16x16xf32>
    %117 = arith.subf %113, %116 : vector<8x16x16xf32>
    %118 = math.exp %117 : vector<8x16x16xf32>
    %cst_122 = arith.constant dense<0.000000e+00> : vector<8x16xf32>
    %119 = vector.multi_reduction <add>, %118, %cst_122 [2] : vector<8x16x16xf32> to vector<8x16xf32>
    %120 = vector.shape_cast %119 : vector<8x16xf32> to vector<8x16x1xf32>
    %121 = tpu.reciprocal %120 {approx = true} : vector<8x16x1xf32> -> vector<8x16x1xf32>
    %122 = vector.broadcast %121 : vector<8x16x1xf32> to vector<8x16x16xf32>
    %123 = arith.mulf %118, %122 : vector<8x16x16xf32>
    %124 = arith.truncf %123 : vector<8x16x16xf32> to vector<8x16x16xbf16>
    %cst_123 = arith.constant dense<0.000000e+00> : vector<8x16x128xf32>
    %125 = tpu.matmul %124, %112, %cst_123 {dimension_numbers = #tpu.dot_dimension_numbers<[2], [1], [1], [2], [0, 0, 0, 1, 1, 2], [0], [0]>} : vector<8x16x16xbf16>, vector<8x16x128xbf16>, vector<8x16x128xf32> -> vector<8x16x128xf32>
    %126 = vector.extract_strided_slice %125 {offsets = [0, 0, 0], sizes = [1, 16, 128], strides = [1, 1, 1]} : vector<8x16x128xf32> to vector<1x16x128xf32>
    %127 = vector.shape_cast %126 : vector<1x16x128xf32> to vector<16x128xf32>
    %128 = arith.truncf %127 : vector<16x128xf32> to vector<16x128xbf16>
    %c0_124 = arith.constant 0 : index
    %c0_125 = arith.constant 0 : index
    %129 = vector.load %arg20[%c0_124, %c0_125] : memref<32x512xbf16, #tpu.memory_space<vmem>>, vector<16x128xbf16>
    tpu.vector_store %arg20[%c0_124, %c0_125], %128 {strides = array<i32>} : memref<32x512xbf16, #tpu.memory_space<vmem>>, vector<16x128xbf16>,
    %130 = vector.extract_strided_slice %125 {offsets = [1, 0, 0], sizes = [1, 16, 128], strides = [1, 1, 1]} : vector<8x16x128xf32> to vector<1x16x128xf32>
    %131 = vector.shape_cast %130 : vector<1x16x128xf32> to vector<16x128xf32>
    %132 = arith.truncf %131 : vector<16x128xf32> to vector<16x128xbf16>
    %c0_126 = arith.constant 0 : index
    %c128_127 = arith.constant 128 : index
    %133 = vector.load %arg20[%c0_126, %c128_127] : memref<32x512xbf16, #tpu.memory_space<vmem>>, vector<16x128xbf16>
    tpu.vector_store %arg20[%c0_126, %c128_127], %132 {strides = array<i32>} : memref<32x512xbf16, #tpu.memory_space<vmem>>, vector<16x128xbf16>,
    %134 = vector.extract_strided_slice %125 {offsets = [2, 0, 0], sizes = [1, 16, 128], strides = [1, 1, 1]} : vector<8x16x128xf32> to vector<1x16x128xf32>
    %135 = vector.shape_cast %134 : vector<1x16x128xf32> to vector<16x128xf32>
    %136 = arith.truncf %135 : vector<16x128xf32> to vector<16x128xbf16>
    %c0_128 = arith.constant 0 : index
    %c256_129 = arith.constant 256 : index
    %137 = vector.load %arg20[%c0_128, %c256_129] : memref<32x512xbf16, #tpu.memory_space<vmem>>, vector<16x128xbf16>
    tpu.vector_store %arg20[%c0_128, %c256_129], %136 {strides = array<i32>} : memref<32x512xbf16, #tpu.memory_space<vmem>>, vector<16x128xbf16>,
    %138 = vector.extract_strided_slice %125 {offsets = [3, 0, 0], sizes = [1, 16, 128], strides = [1, 1, 1]} : vector<8x16x128xf32> to vector<1x16x128xf32>
    %139 = vector.shape_cast %138 : vector<1x16x128xf32> to vector<16x128xf32>
    %140 = arith.truncf %139 : vector<16x128xf32> to vector<16x128xbf16>
    %c0_130 = arith.constant 0 : index
    %c384_131 = arith.constant 384 : index
    %141 = vector.load %arg20[%c0_130, %c384_131] : memref<32x512xbf16, #tpu.memory_space<vmem>>, vector<16x128xbf16>
    tpu.vector_store %arg20[%c0_130, %c384_131], %140 {strides = array<i32>} : memref<32x512xbf16, #tpu.memory_space<vmem>>, vector<16x128xbf16>,
    %142 = vector.extract_strided_slice %125 {offsets = [4, 0, 0], sizes = [1, 16, 128], strides = [1, 1, 1]} : vector<8x16x128xf32> to vector<1x16x128xf32>
    %143 = vector.shape_cast %142 : vector<1x16x128xf32> to vector<16x128xf32>
    %144 = arith.truncf %143 : vector<16x128xf32> to vector<16x128xbf16>
    %c16_132 = arith.constant 16 : index
    %c0_133 = arith.constant 0 : index
    %145 = vector.load %arg20[%c16_132, %c0_133] : memref<32x512xbf16, #tpu.memory_space<vmem>>, vector<16x128xbf16>
    tpu.vector_store %arg20[%c16_132, %c0_133], %144 {strides = array<i32>} : memref<32x512xbf16, #tpu.memory_space<vmem>>, vector<16x128xbf16>,
    %146 = vector.extract_strided_slice %125 {offsets = [5, 0, 0], sizes = [1, 16, 128], strides = [1, 1, 1]} : vector<8x16x128xf32> to vector<1x16x128xf32>
    %147 = vector.shape_cast %146 : vector<1x16x128xf32> to vector<16x128xf32>
    %148 = arith.truncf %147 : vector<16x128xf32> to vector<16x128xbf16>
    %c16_134 = arith.constant 16 : index
    %c128_135 = arith.constant 128 : index
    %149 = vector.load %arg20[%c16_134, %c128_135] : memref<32x512xbf16, #tpu.memory_space<vmem>>, vector<16x128xbf16>
    tpu.vector_store %arg20[%c16_134, %c128_135], %148 {strides = array<i32>} : memref<32x512xbf16, #tpu.memory_space<vmem>>, vector<16x128xbf16>,
    %150 = vector.extract_strided_slice %125 {offsets = [6, 0, 0], sizes = [1, 16, 128], strides = [1, 1, 1]} : vector<8x16x128xf32> to vector<1x16x128xf32>
    %151 = vector.shape_cast %150 : vector<1x16x128xf32> to vector<16x128xf32>
    %152 = arith.truncf %151 : vector<16x128xf32> to vector<16x128xbf16>
    %c16_136 = arith.constant 16 : index
    %c256_137 = arith.constant 256 : index
    %153 = vector.load %arg20[%c16_136, %c256_137] : memref<32x512xbf16, #tpu.memory_space<vmem>>, vector<16x128xbf16>
    tpu.vector_store %arg20[%c16_136, %c256_137], %152 {strides = array<i32>} : memref<32x512xbf16, #tpu.memory_space<vmem>>, vector<16x128xbf16>,
    %154 = vector.extract_strided_slice %125 {offsets = [7, 0, 0], sizes = [1, 16, 128], strides = [1, 1, 1]} : vector<8x16x128xf32> to vector<1x16x128xf32>
    %155 = vector.shape_cast %154 : vector<1x16x128xf32> to vector<16x128xf32>
    %156 = arith.truncf %155 : vector<16x128xf32> to vector<16x128xbf16>
    %c16_138 = arith.constant 16 : index
    %c384_139 = arith.constant 384 : index
    %157 = vector.load %arg20[%c16_138, %c384_139] : memref<32x512xbf16, #tpu.memory_space<vmem>>, vector<16x128xbf16>
    tpu.vector_store %arg20[%c16_138, %c384_139], %156 {strides = array<i32>} : memref<32x512xbf16, #tpu.memory_space<vmem>>, vector<16x128xbf16>,
    %c0_140 = arith.constant 0 : index
    %c0_141 = arith.constant 0 : index
    %158 = vector.load %arg20[%c0_140, %c0_141] : memref<32x512xbf16, #tpu.memory_space<vmem>>, vector<32x512xbf16>
    %c0_142 = arith.constant 0 : index
    %c0_143 = arith.constant 0 : index
    %c0_144 = arith.constant 0 : index
    %159 = vector.load %arg5[%c0_142, %c0_143, %c0_144] : memref<1x512x512xbf16, #tpu.memory_space<vmem>>, vector<1x512x512xbf16>
    %160 = vector.shape_cast %159 : vector<1x512x512xbf16> to vector<512x512xbf16>
    %cst_145 = arith.constant dense<0.000000e+00> : vector<32x512xf32>
    %161 = tpu.matmul %158, %160, %cst_145 {dimension_numbers = #tpu.dot_dimension_numbers<[1], [0], [0], [1], [0, 0, 1, 1], [], []>} : vector<32x512xbf16>, vector<512x512xbf16>, vector<32x512xf32> -> vector<32x512xf32>
    %c0_146 = arith.constant 0 : index
    %c0_147 = arith.constant 0 : index
    %c0_148 = arith.constant 0 : index
    %162 = vector.load %arg6[%c0_146, %c0_147, %c0_148] : memref<1x1x512xf32, #tpu.memory_space<vmem>>, vector<1x1x512xf32>
    %163 = vector.shape_cast %162 : vector<1x1x512xf32> to vector<1x512xf32>
    %164 = vector.broadcast %163 : vector<1x512xf32> to vector<32x512xf32>
    %165 = arith.addf %161, %164 : vector<32x512xf32>
    %166 = arith.addf %3, %165 : vector<32x512xf32>
    %c0_149 = arith.constant 0 : index
    %c0_150 = arith.constant 0 : index
    %c0_151 = arith.constant 0 : index
    %167 = vector.load %arg7[%c0_149, %c0_150, %c0_151] : memref<1x1x512xf32, #tpu.memory_space<vmem>>, vector<1x1x512xf32>
    %168 = vector.shape_cast %167 : vector<1x1x512xf32> to vector<1x512xf32>
    %c0_152 = arith.constant 0 : index
    %c0_153 = arith.constant 0 : index
    %c0_154 = arith.constant 0 : index
    %169 = vector.load %arg8[%c0_152, %c0_153, %c0_154] : memref<1x1x512xf32, #tpu.memory_space<vmem>>, vector<1x1x512xf32>
    %170 = vector.shape_cast %169 : vector<1x1x512xf32> to vector<1x512xf32>
    %cst_155 = arith.constant dense<0.000000e+00> : vector<32xf32>
    %171 = vector.multi_reduction <add>, %166, %cst_155 [1] : vector<32x512xf32> to vector<32xf32>
    %172 = vector.shape_cast %171 : vector<32xf32> to vector<32x1xf32>
    %cst_156 = arith.constant 5.120000e+02 : f32
    %173 = vector.broadcast %cst_156 : f32 to vector<32x1xf32>
    %174 = arith.divf %172, %173 : vector<32x1xf32>
    %175 = vector.broadcast %174 : vector<32x1xf32> to vector<32x512xf32>
    %176 = arith.subf %166, %175 : vector<32x512xf32>
    %177 = arith.mulf %176, %176 : vector<32x512xf32>
    %cst_157 = arith.constant dense<0.000000e+00> : vector<32xf32>
    %178 = vector.multi_reduction <add>, %177, %cst_157 [1] : vector<32x512xf32> to vector<32xf32>
    %179 = vector.shape_cast %178 : vector<32xf32> to vector<32x1xf32>
    %cst_158 = arith.constant 5.120000e+02 : f32
    %180 = vector.broadcast %cst_158 : f32 to vector<32x1xf32>
    %181 = arith.divf %179, %180 : vector<32x1xf32>
    %cst_159 = arith.constant 9.99999974E-6 : f32
    %182 = vector.broadcast %cst_159 : f32 to vector<32x1xf32>
    %183 = arith.addf %181, %182 : vector<32x1xf32>
    %184 = math.rsqrt %183 : vector<32x1xf32>
    %185 = vector.broadcast %184 : vector<32x1xf32> to vector<32x512xf32>
    %186 = arith.mulf %176, %185 : vector<32x512xf32>
    %187 = vector.broadcast %168 : vector<1x512xf32> to vector<32x512xf32>
    %188 = arith.mulf %186, %187 : vector<32x512xf32>
    %189 = vector.broadcast %170 : vector<1x512xf32> to vector<32x512xf32>
    %190 = arith.addf %188, %189 : vector<32x512xf32>
    %191 = arith.truncf %190 : vector<32x512xf32> to vector<32x512xbf16>
    %c0_160 = arith.constant 0 : index
    %c0_161 = arith.constant 0 : index
    %c0_162 = arith.constant 0 : index
    %192 = vector.load %arg11[%c0_160, %c0_161, %c0_162] : memref<1x512x1024xbf16, #tpu.memory_space<vmem>>, vector<1x512x1024xbf16>
    %193 = vector.shape_cast %192 : vector<1x512x1024xbf16> to vector<512x1024xbf16>
    %cst_163 = arith.constant dense<0.000000e+00> : vector<32x1024xf32>
    %194 = tpu.matmul %191, %193, %cst_163 {dimension_numbers = #tpu.dot_dimension_numbers<[1], [0], [0], [1], [0, 0, 1, 1], [], []>} : vector<32x512xbf16>, vector<512x1024xbf16>, vector<32x1024xf32> -> vector<32x1024xf32>
    %c0_164 = arith.constant 0 : index
    %c0_165 = arith.constant 0 : index
    %c0_166 = arith.constant 0 : index
    %195 = vector.load %arg12[%c0_164, %c0_165, %c0_166] : memref<1x1x1024xf32, #tpu.memory_space<vmem>>, vector<1x1x1024xf32>
    %196 = vector.shape_cast %195 : vector<1x1x1024xf32> to vector<1x1024xf32>
    %197 = vector.broadcast %196 : vector<1x1024xf32> to vector<32x1024xf32>
    %198 = arith.addf %194, %197 : vector<32x1024xf32>
    %cst_167 = arith.constant 0.000000e+00 : f32
    %199 = vector.broadcast %cst_167 : f32 to vector<32x1024xf32>
    %200 = arith.maximumf %198, %199 : vector<32x1024xf32>
    %201 = arith.truncf %200 : vector<32x1024xf32> to vector<32x1024xbf16>
    %c0_168 = arith.constant 0 : index
    %c0_169 = arith.constant 0 : index
    %c0_170 = arith.constant 0 : index
    %202 = vector.load %arg13[%c0_168, %c0_169, %c0_170] : memref<1x1024x512xbf16, #tpu.memory_space<vmem>>, vector<1x1024x512xbf16>
    %203 = vector.shape_cast %202 : vector<1x1024x512xbf16> to vector<1024x512xbf16>
    %cst_171 = arith.constant dense<0.000000e+00> : vector<32x512xf32>
    %204 = tpu.matmul %201, %203, %cst_171 {dimension_numbers = #tpu.dot_dimension_numbers<[1], [0], [0], [1], [0, 0, 1, 1], [], []>} : vector<32x1024xbf16>, vector<1024x512xbf16>, vector<32x512xf32> -> vector<32x512xf32>
    %c0_172 = arith.constant 0 : index
    %c0_173 = arith.constant 0 : index
    %c0_174 = arith.constant 0 : index
    %205 = vector.load %arg14[%c0_172, %c0_173, %c0_174] : memref<1x1x512xf32, #tpu.memory_space<vmem>>, vector<1x1x512xf32>
    %206 = vector.shape_cast %205 : vector<1x1x512xf32> to vector<1x512xf32>
    %207 = vector.broadcast %206 : vector<1x512xf32> to vector<32x512xf32>
    %208 = arith.addf %204, %207 : vector<32x512xf32>
    %209 = arith.addf %190, %208 : vector<32x512xf32>
    %c0_175 = arith.constant 0 : index
    %c0_176 = arith.constant 0 : index
    %c0_177 = arith.constant 0 : index
    %210 = vector.load %arg9[%c0_175, %c0_176, %c0_177] : memref<1x1x512xf32, #tpu.memory_space<vmem>>, vector<1x1x512xf32>
    %211 = vector.shape_cast %210 : vector<1x1x512xf32> to vector<1x512xf32>
    %c0_178 = arith.constant 0 : index
    %c0_179 = arith.constant 0 : index
    %c0_180 = arith.constant 0 : index
    %212 = vector.load %arg10[%c0_178, %c0_179, %c0_180] : memref<1x1x512xf32, #tpu.memory_space<vmem>>, vector<1x1x512xf32>
    %213 = vector.shape_cast %212 : vector<1x1x512xf32> to vector<1x512xf32>
    %cst_181 = arith.constant dense<0.000000e+00> : vector<32xf32>
    %214 = vector.multi_reduction <add>, %209, %cst_181 [1] : vector<32x512xf32> to vector<32xf32>
    %215 = vector.shape_cast %214 : vector<32xf32> to vector<32x1xf32>
    %cst_182 = arith.constant 5.120000e+02 : f32
    %216 = vector.broadcast %cst_182 : f32 to vector<32x1xf32>
    %217 = arith.divf %215, %216 : vector<32x1xf32>
    %218 = vector.broadcast %217 : vector<32x1xf32> to vector<32x512xf32>
    %219 = arith.subf %209, %218 : vector<32x512xf32>
    %220 = arith.mulf %219, %219 : vector<32x512xf32>
    %cst_183 = arith.constant dense<0.000000e+00> : vector<32xf32>
    %221 = vector.multi_reduction <add>, %220, %cst_183 [1] : vector<32x512xf32> to vector<32xf32>
    %222 = vector.shape_cast %221 : vector<32xf32> to vector<32x1xf32>
    %cst_184 = arith.constant 5.120000e+02 : f32
    %223 = vector.broadcast %cst_184 : f32 to vector<32x1xf32>
    %224 = arith.divf %222, %223 : vector<32x1xf32>
    %cst_185 = arith.constant 9.99999974E-6 : f32
    %225 = vector.broadcast %cst_185 : f32 to vector<32x1xf32>
    %226 = arith.addf %224, %225 : vector<32x1xf32>
    %227 = math.rsqrt %226 : vector<32x1xf32>
    %228 = vector.broadcast %227 : vector<32x1xf32> to vector<32x512xf32>
    %229 = arith.mulf %219, %228 : vector<32x512xf32>
    %230 = vector.broadcast %211 : vector<1x512xf32> to vector<32x512xf32>
    %231 = arith.mulf %229, %230 : vector<32x512xf32>
    %232 = vector.broadcast %213 : vector<1x512xf32> to vector<32x512xf32>
    %233 = arith.addf %231, %232 : vector<32x512xf32>
    %c0_186 = arith.constant 0 : index
    %c0_187 = arith.constant 0 : index
    %234 = vector.load %arg15[%c0_186, %c0_187] : memref<32x512xf32, #tpu.memory_space<vmem>>, vector<32x512xf32>
    tpu.vector_store %arg15[%c0_186, %c0_187], %233 {strides = array<i32>} : memref<32x512xf32, #tpu.memory_space<vmem>>, vector<32x512xf32>,
    return
  }
  func.func @transform_0(%arg0: i32, %arg1: i32) -> (i32, i32) {
    %c0_i32 = arith.constant 0 : i32
    %c0_i32_0 = arith.constant 0 : i32
    return %arg0, %c0_i32 : i32, i32
  }
  func.func @transform_1(%arg0: i32, %arg1: i32) -> (i32, i32, i32) {
    %c0_i32 = arith.constant 0 : i32
    %c0_i32_0 = arith.constant 0 : i32
    %c0_i32_1 = arith.constant 0 : i32
    return %arg1, %c0_i32, %c0_i32_0 : i32, i32, i32
  }
  func.func @transform_2(%arg0: i32, %arg1: i32) -> (i32, i32, i32) {
    %c0_i32 = arith.constant 0 : i32
    %c0_i32_0 = arith.constant 0 : i32
    %c0_i32_1 = arith.constant 0 : i32
    return %arg1, %c0_i32, %c0_i32_0 : i32, i32, i32
  }
  func.func @transform_3(%arg0: i32, %arg1: i32) -> (i32, i32, i32) {
    %c0_i32 = arith.constant 0 : i32
    %c0_i32_0 = arith.constant 0 : i32
    %c0_i32_1 = arith.constant 0 : i32
    return %arg1, %c0_i32, %c0_i32_0 : i32, i32, i32
  }
  func.func @transform_4(%arg0: i32, %arg1: i32) -> (i32, i32, i32) {
    %c0_i32 = arith.constant 0 : i32
    %c0_i32_0 = arith.constant 0 : i32
    %c0_i32_1 = arith.constant 0 : i32
    return %arg1, %c0_i32, %c0_i32_0 : i32, i32, i32
  }
  func.func @transform_5(%arg0: i32, %arg1: i32) -> (i32, i32, i32) {
    %c0_i32 = arith.constant 0 : i32
    %c0_i32_0 = arith.constant 0 : i32
    %c0_i32_1 = arith.constant 0 : i32
    return %arg1, %c0_i32, %c0_i32_0 : i32, i32, i32
  }
  func.func @transform_6(%arg0: i32, %arg1: i32) -> (i32, i32, i32) {
    %c0_i32 = arith.constant 0 : i32
    %c0_i32_0 = arith.constant 0 : i32
    %c0_i32_1 = arith.constant 0 : i32
    return %arg1, %c0_i32, %c0_i32_0 : i32, i32, i32
  }
  func.func @transform_7(%arg0: i32, %arg1: i32) -> (i32, i32, i32) {
    %c0_i32 = arith.constant 0 : i32
    %c0_i32_0 = arith.constant 0 : i32
    %c0_i32_1 = arith.constant 0 : i32
    return %arg1, %c0_i32, %c0_i32_0 : i32, i32, i32
  }
  func.func @transform_8(%arg0: i32, %arg1: i32) -> (i32, i32, i32) {
    %c0_i32 = arith.constant 0 : i32
    %c0_i32_0 = arith.constant 0 : i32
    %c0_i32_1 = arith.constant 0 : i32
    return %arg1, %c0_i32, %c0_i32_0 : i32, i32, i32
  }
  func.func @transform_9(%arg0: i32, %arg1: i32) -> (i32, i32, i32) {
    %c0_i32 = arith.constant 0 : i32
    %c0_i32_0 = arith.constant 0 : i32
    %c0_i32_1 = arith.constant 0 : i32
    return %arg1, %c0_i32, %c0_i32_0 : i32, i32, i32
  }
  func.func @transform_10(%arg0: i32, %arg1: i32) -> (i32, i32, i32) {
    %c0_i32 = arith.constant 0 : i32
    %c0_i32_0 = arith.constant 0 : i32
    %c0_i32_1 = arith.constant 0 : i32
    return %arg1, %c0_i32, %c0_i32_0 : i32, i32, i32
  }
  func.func @transform_11(%arg0: i32, %arg1: i32) -> (i32, i32, i32) {
    %c0_i32 = arith.constant 0 : i32
    %c0_i32_0 = arith.constant 0 : i32
    %c0_i32_1 = arith.constant 0 : i32
    return %arg1, %c0_i32, %c0_i32_0 : i32, i32, i32
  }
  func.func @transform_12(%arg0: i32, %arg1: i32) -> (i32, i32, i32) {
    %c0_i32 = arith.constant 0 : i32
    %c0_i32_0 = arith.constant 0 : i32
    %c0_i32_1 = arith.constant 0 : i32
    return %arg1, %c0_i32, %c0_i32_0 : i32, i32, i32
  }
  func.func @transform_13(%arg0: i32, %arg1: i32) -> (i32, i32) {
    %c0_i32 = arith.constant 0 : i32
    %c0_i32_0 = arith.constant 0 : i32
    return %arg0, %c0_i32 : i32, i32
  }
}

</mosaic_0001>

<bundles_post_ra>
// kernel: tpu_custom_call.1
= control target key start
LH: loop header
LB: loop body
LE: loop exit
PB: predicated region body
PF: predicated region fallthrough
CT: control target
= control target key end

     0   :  { %s16867_s0 = inlined_call_operand.hbm [shape: f32[32,512], index: 0, kind: input, shape index: {}]   ;;  %s16868_s1 = inlined_call_operand.hbm [shape: bf16[2,512,1536], index: 1, kind: input, shape index: {}]   ;;  %s16869_s2 = inlined_call_operand.hbm [shape: f32[2,1,1536], index: 2, kind: input, shape index: {}]   ;;  %s16870_s3 = inlined_call_operand.hbm [shape: bf16[2,512,512], index: 3, kind: input, shape index: {}]   ;;  %s16871_s4 = inlined_call_operand.hbm [shape: f32[2,1,512], index: 4, kind: input, shape index: {}]   ;;  %s16872_s5 = inlined_call_operand.hbm [shape: f32[2,1,512], index: 5, kind: input, shape index: {}]   ;;  %s16873_s6 = inlined_call_operand.hbm [shape: f32[2,1,512], index: 6, kind: input, shape index: {}]   ;;  %s16874_s7 = inlined_call_operand.hbm [shape: f32[2,1,512], index: 7, kind: input, shape index: {}]   ;;  %s16875_s8 = inlined_call_operand.hbm [shape: f32[2,1,512], index: 8, kind: input, shape index: {}]   ;;  %s16876_s9 = inlined_call_operand.hbm [shape: bf16[2,512,1024], index: 9, kind: input, shape index: {}]   ;;  %s16877_s10 = inlined_call_operand.hbm [shape: f32[2,1,1024], index: 10, kind: input, shape index: {}]   ;;  %s16878_s11 = inlined_call_operand.hbm [shape: bf16[2,1024,512], index: 11, kind: input, shape index: {}]   ;;  %s16879_s12 = inlined_call_operand.hbm [shape: f32[2,1,512], index: 12, kind: input, shape index: {}]   ;;  %s16880_s13 = inlined_call_operand.hbm [shape: f32[32,512], index: 13, kind: output, shape index: {}]  }
   0x1   :  { %16907 = sst [smem:[#allocation43_spill]] %s16868_s1 }
   0x2   :  { %16908 = sst [smem:[#allocation44_spill]] %s16870_s3 }
   0x3   :  { %16909 = sst [smem:[#allocation45_spill]] %s16872_s5 }
   0x4   :  { %16910 = sst [smem:[#allocation46_spill]] %s16874_s7 }
   0x5   :  { %16911 = sst [smem:[#allocation47_spill]] %s16875_s8 }
   0x6   :  { %16912 = sst [smem:[#allocation48_spill]] %s16876_s9 }
   0x7   :  { %16913 = sst [smem:[#allocation49_spill]] %s16877_s10 }
   0x8   :  { %16914 = sst [smem:[#allocation50_spill]] %s16878_s11 }
   0x9   :  { %16915 = sst [smem:[#allocation51_spill]] %s16879_s12 }
   0xa   :  { %16916 = sst [smem:[#allocation52_spill]] %s16880_s13 }
   0xb   :  { %18 = vsyncpa [#allocation8], 0 }
   0xc   :  { %19 = vsyncpa [#allocation11], 0 }
   0xd   :  { %21 = vsyncpa [#allocation11 + $0x1], 0 }
   0xe   :  { %22 = vsyncpa [#allocation14], 0 }
   0xf   :  { %24 = vsyncpa [#allocation14 + $0x1], 0 }
  0x10   :  { %25 = vsyncpa [#allocation17], 0 }
  0x11   :  { %27 = vsyncpa [#allocation17 + $0x1], 0 }
  0x12   :  { %28 = vsyncpa [#allocation20], 0 }
  0x13   :  { %30 = vsyncpa [#allocation20 + $0x1], 0 }
  0x14   :  { %31 = vsyncpa [#allocation23], 0 }
  0x15   :  { %33 = vsyncpa [#allocation23 + $0x1], 0 }
  0x16   :  { %34 = vsyncpa [#allocation26], 0 }
  0x17   :  { %36 = vsyncpa [#allocation26 + $0x1], 0 }
  0x18   :  { %37 = vsyncpa [#allocation9], 0  ;;  %s14224_s25 = smov 0   ;;  %s14226_s26 = smov 0  }
  0x19   :  { %s14228_s27 = smov 0   ;;  %s14230_s28 = smov 0  }
  0x1a   :  { %s14232_s29 = smov 0   ;;  %s14234_s30 = smov 0  }
  0x1b LB: > { %16917 = sst [smem:[#allocation37_spill]] %s14116_s27  ;;  %s52_s14 = sadd.s32 1, %s14124_s29  ;;  %s14128_s30 = sphi %s14234_s30, %s43_s30   ;;  %s14124_s29 = sphi %s14232_s29, %s16971_s29   ;;  %s14120_s28 = sphi %s14230_s28, %s16970_s28   ;;  %s14116_s27 = sphi %s14228_s27, %s16966_s27   ;;  %s14112_s26 = sphi %s14226_s26, %s16969_s26   ;;  %s14108_s25 = sphi %s14224_s25, %s16968_s25  }
  0x1c   : > { %16918 = sst [smem:[#allocation38_spill]] %s14120_s28  ;;  %s88_s15 = sadd.s32 1, %s14116_s27 }
  0x1d   : > { %16919 = sst [smem:[#allocation39_spill]] %s14128_s30  ;;  %p53_p0 = scmp.ge.s32.totalorder %s52_s14, 2 }
  0x1e   : > { %p95_p1 = scmp.ne.s32.totalorder %s14116_s27, %s14112_s26  ;;  %p96_p2 = scmp.eq.s32.totalorder %s14128_s30, 0 }
  0x1f   : > { %s16973_s14 = smov (%p53_p0, %s52_s14), 0  ;;  %p12324_p4 = scmp.lt.s32.totalorder %s14128_s30, 2 }
  0x20   : > { %16920 = sst [smem:[#allocation40_spill]] %s16973_s14  ;;  %p97_p3 = por %p96_p2, %p95_p1 }
  0x21   : > { %s85_s16 = ssub.s32 %s14124_s29, %s16973_s14  ;;  %s14265_s17 = sand.u32 1, %s14128_s30  }
  0x22   : > { %p86_p5 = scmp.eq.s32.totalorder %s85_s16, 0  ;;  %s14268_s18 = sand.u32 1, %s14116_s27  }
  0x23   : > { %s12245_s19 = smul.u32 49152, %s14124_s29  ;;  %s16922_s1 = sld [smem:[#allocation43_spill]] }
  0x24   : > { %s14272_s20 = scalar_select %p86_p5, %s14116_s27, %s88_s15  }
  0x25   : > { %s12244_s21 = smul.u32 3072, %s14268_s18  ;;  %p14280_p6 = pnand %p12324_p4, %p97_p3 }
  0x26   : > { %16921 = sst [smem:[#allocation41_spill]] %s14272_s20 }
  0x27   : > { %s16923_s14 = scalar_select %p14280_p6, 1, 0 }
  0x28   : > { %s458_s16 = scalar_lea.vmem [#allocation10], %s12244_s21  ;;  %p14291_p8 = pneg %p14280_p6 }
  0x29   : > { %s14278_s24 = scalar_lea.hbm %s16922_s1, %s12245_s19  ;;  %s465_s13 = sshll.u32 %s458_s16, 4  ;;  %s14284_s13 = int_to_ptr.vmem [resolvable:$true] %s465_s13 }
  0x2a   : > { %s13636_s20 = scalar_lea.hbm %s14278_s24, 49152  ;;  %s13641_s27 = scalar_lea.hbm %s16922_s1, 98304 }
  0x2b   : > { %p13637_p7 = scmp.ne.s32.totalorder %s14278_s24, %s13636_s20  ;;  %p13642_p11 = scmp.lt.u32.totalorder %s14278_s24, %s16922_s1 }
  0x2c   : > { %s16924_s19 = scalar_select %p14291_p8, 1, 0 }
  0x2d   : > { %p13639_p9 = pnand %p14291_p8, %p13637_p7  ;;  %p13643_p12 = scmp.lt.u32.totalorder %s13641_s27, %s13636_s20 }
  0x2e   : > { %p13645_p0 = scmp.lt.u32.totalorder %s13636_s20, %s14278_s24 }
  0x2f   : > { %p13640_p10 = pneg %p13639_p9  ;;  %p13644_p13 = por %p13643_p12, %p13642_p11 }
  0x31   : > { %p13646_p1 = por %p13645_p0, %p13644_p13 }
  0x33   : > { %p13647_p2 = pnand %p13646_p1, %p13640_p10 }
  0x35   : > { %13650 = shalt.err (!%p13647_p2)
}
  0x36   : > { %s13651_s15 = scalar_lea.vmem %s14284_s13, 49152  ;;  %s14130_s22 = smov [#allocation10]  }
  0x37   : > { %p13652_p3 = scmp.ne.s32.totalorder %s14284_s13, %s13651_s15  ;;  %s13656_s23 = sshll.u32 %s14130_s22, 4  ;;  %s13657_s23 = int_to_ptr.vmem [resolvable:$false] %s13656_s23 }
  0x38   : > { %s13658_s21 = scalar_lea.vmem %s13657_s23, 98304  ;;  %p13659_p7 = scmp.lt.s32.totalorder %s14284_s13, %s13657_s23 }
  0x39   : > { %p13654_p4 = pnand %p13652_p3, %p14291_p8  ;;  %p13660_p9 = scmp.lt.s32.totalorder %s13658_s21, %s13651_s15 }
  0x3b   : > { %p13655_p5 = pneg %p13654_p4  ;;  %p13661_p11 = por %p13660_p9, %p13659_p7 }
  0x3d   : > { %p13662_p12 = pnand %p13661_p11, %p13655_p5 }
  0x3f   : > { %13665 = shalt.err (!%p13662_p12)
}
  0x40   : > { %s14131_s27 = smov 768   ;;  %s14132_s20 = smov 48  }
  0x41   : > { %s16925_s16 = scalar_lea.sflag [#allocation11], %s14265_s17  ;;  %s10771_s22 = sshll.u32 %s14268_s18, 10 }
  0x42   : > { %12289 = dma.hbm_to_vmem [thread:$0]  (!%p14280_p6), %s14278_s24, 49152, %s14284_s13, %s16925_s16, %s14131_s27, %s14131_s27, %s14132_s20  }
  0x43   : > { %s11850_s1 = sshll.u32 %s14124_s29, 14  ;;  %s16926_s3 = sld [smem:[#allocation44_spill]] }
  0x44   : > { %s498_s28 = scalar_lea.vmem [#allocation13], %s10771_s22  ;;  %s16887_s10 = scalar_lea.sflag [#allocation14], %s14265_s17 }
  0x45   : > { %s505_s12 = sshll.u32 %s498_s28, 4  ;;  %s14323_s12 = int_to_ptr.vmem [resolvable:$true] %s505_s12 }
  0x49   : > { %s14321_s21 = scalar_lea.hbm %s16926_s3, %s11850_s1  ;;  %s13671_s27 = scalar_lea.hbm %s16926_s3, 32768 }
  0x4a   : > { %s13666_s8 = scalar_lea.hbm %s14321_s21, 16384  ;;  %p13672_p1 = scmp.lt.u32.totalorder %s14321_s21, %s16926_s3 }
  0x4b   : > { %p13667_p10 = scmp.ne.s32.totalorder %s14321_s21, %s13666_s8  ;;  %p13673_p2 = scmp.lt.u32.totalorder %s13671_s27, %s13666_s8 }
  0x4c   : > { %p13675_p4 = scmp.lt.u32.totalorder %s13666_s8, %s14321_s21 }
  0x4d   : > { %p13669_p13 = pnand %p13667_p10, %p14291_p8  ;;  %p13674_p3 = por %p13673_p2, %p13672_p1 }
  0x4f   : > { %p13670_p0 = pneg %p13669_p13  ;;  %p13676_p5 = por %p13675_p4, %p13674_p3 }
  0x51   : > { %p13677_p7 = pnand %p13676_p5, %p13670_p0 }
  0x53   : > { %13680 = shalt.err (!%p13677_p7)
}
  0x54   : > { %s13681_s28 = scalar_lea.vmem %s14323_s12, 16384  ;;  %s14133_s16 = smov [#allocation13]  }
  0x55   : > { %p13682_p9 = scmp.ne.s32.totalorder %s14323_s12, %s13681_s28  ;;  %s13686_s22 = sshll.u32 %s14133_s16, 4  ;;  %s13687_s22 = int_to_ptr.vmem [resolvable:$false] %s13686_s22 }
  0x56   : > { %s13688_s23 = scalar_lea.vmem %s13687_s22, 32768  ;;  %p13689_p10 = scmp.lt.s32.totalorder %s14323_s12, %s13687_s22 }
  0x57   : > { %p13684_p11 = pnand %p13682_p9, %p14291_p8  ;;  %p13690_p13 = scmp.lt.s32.totalorder %s13688_s23, %s13681_s28 }
  0x59   : > { %p13685_p12 = pneg %p13684_p11  ;;  %p13691_p1 = por %p13690_p13, %p13689_p10 }
  0x5b   : > { %p13692_p2 = pnand %p13691_p1, %p13685_p12 }
  0x5d   : > { %13695 = shalt.err (!%p13692_p2)
}
  0x5e   : > { %s16888_s8 = smov 256   ;;  %s16889_s15 = smov 16  }
  0x5f   : > { %12295 = dma.hbm_to_vmem [thread:$0]  (!%p14280_p6), %s14321_s21, 16384, %s14323_s12, %s16887_s10, %s16888_s8, %s16888_s8, %s16889_s15  }
  0x60   : > { %s14353_s13 = sshll.u32 %s14268_s18, 2  ;;  %s14356_s24 = sshll.u32 %s14124_s29, 6 }
  0x61   : > { %s16927_s5 = sld [smem:[#allocation45_spill]]  ;;  %s538_s28 = scalar_lea.vmem [#allocation16], %s14353_s13 }
  0x62   : > { %s546_s16 = sshll.u32 %s538_s28, 4  ;;  %s16892_s22 = scalar_lea.sflag [#allocation17], %s14265_s17  ;;  %s547_s16 = int_to_ptr.vmem [resolvable:$true] %s546_s16 }
  0x67   : > { %s14362_s20 = scalar_lea.hbm %s16927_s5, %s14356_s24  ;;  %s13701_s10 = scalar_lea.hbm %s16927_s5, 128 }
  0x68   : > { %s13696_s12 = scalar_lea.hbm %s14362_s20, 64  ;;  %p13702_p5 = scmp.lt.u32.totalorder %s14362_s20, %s16927_s5 }
  0x69   : > { %p13697_p0 = scmp.ne.s32.totalorder %s14362_s20, %s13696_s12  ;;  %p13703_p7 = scmp.lt.u32.totalorder %s13701_s10, %s13696_s12 }
  0x6a   : > { %p13705_p11 = scmp.lt.u32.totalorder %s13696_s12, %s14362_s20 }
  0x6b   : > { %p13699_p3 = pnand %p13697_p0, %p14291_p8  ;;  %p13704_p9 = por %p13703_p7, %p13702_p5 }
  0x6d   : > { %p13700_p4 = pneg %p13699_p3  ;;  %p13706_p12 = por %p13705_p11, %p13704_p9 }
  0x6f   : > { %p13707_p10 = pnand %p13706_p12, %p13700_p4 }
  0x71   : > { %13710 = shalt.err (!%p13707_p10)
}
  0x72   : > { %s13711_s28 = scalar_lea.vmem %s547_s16, 64  ;;  %s14136_s8 = smov [#allocation16]  }
  0x73   : > { %p13712_p13 = scmp.ne.s32.totalorder %s547_s16, %s13711_s28  ;;  %s13716_s15 = sshll.u32 %s14136_s8, 4  ;;  %s13717_s15 = int_to_ptr.vmem [resolvable:$false] %s13716_s15 }
  0x74   : > { %s13718_s21 = scalar_lea.vmem %s13717_s15, 128  ;;  %p13719_p0 = scmp.lt.s32.totalorder %s547_s16, %s13717_s15 }
  0x75   : > { %p13714_p1 = pnand %p13712_p13, %p14291_p8  ;;  %p13720_p3 = scmp.lt.s32.totalorder %s13718_s21, %s13711_s28 }
  0x77   : > { %p13715_p2 = pneg %p13714_p1  ;;  %p13721_p6 = por %p13720_p3, %p13719_p0 }
  0x79   : > { %p13722_p5 = pnand %p13721_p6, %p13715_p2 }
  0x7b   : > { %13725 = shalt.err (!%p13722_p5)
}
  0x7c   : > { %p16928_p7 = scmp.ne.s32.totalorder %s16923_s14, 0  ;;  %s16929_s7 = sld [smem:[#allocation46_spill]] }
  0x7d   : > { %s576_s15 = scalar_lea.vmem [#allocation19], %s14353_s13  ;;  %s16893_s27 = scalar_lea.sflag [#allocation20], %s14265_s17 }
  0x7e   : > { %12301 = dma.hbm_to_vmem [thread:$0]  (!%p16928_p7), %s14362_s20, 64, %s547_s16, %s16892_s22  }
  0x7f   : > { %s584_s23 = sshll.u32 %s576_s15, 4  ;;  %s585_s23 = int_to_ptr.vmem [resolvable:$true] %s584_s23 }
  0x82   : > { %s14389_s8 = scalar_lea.hbm %s16929_s7, %s14356_s24  ;;  %s13731_s16 = scalar_lea.hbm %s16929_s7, 128 }
  0x83   : > { %s13726_s1 = scalar_lea.hbm %s14389_s8, 64  ;;  %p13732_p11 = scmp.lt.u32.totalorder %s14389_s8, %s16929_s7 }
  0x84   : > { %p13727_p6 = scmp.ne.s32.totalorder %s14389_s8, %s13726_s1  ;;  %p13733_p12 = scmp.lt.u32.totalorder %s13731_s16, %s13726_s1 }
  0x85   : > { %p13735_p13 = scmp.lt.u32.totalorder %s13726_s1, %s14389_s8 }
  0x86   : > { %p13729_p4 = pnand %p13727_p6, %p14291_p8  ;;  %p13734_p10 = por %p13733_p12, %p13732_p11 }
  0x88   : > { %p13730_p9 = pneg %p13729_p4  ;;  %p13736_p1 = por %p13735_p13, %p13734_p10 }
  0x8a   : > { %p13737_p2 = pnand %p13736_p1, %p13730_p9 }
  0x8c   : > { %13740 = shalt.err (!%p13737_p2)
}
  0x8d   : > { %s13741_s12 = scalar_lea.vmem %s585_s23, 64  ;;  %s14137_s15 = smov [#allocation19]  }
  0x8e   : > { %p13742_p0 = scmp.ne.s32.totalorder %s585_s23, %s13741_s12  ;;  %s13746_s22 = sshll.u32 %s14137_s15, 4  ;;  %s13747_s22 = int_to_ptr.vmem [resolvable:$false] %s13746_s22 }
  0x8f   : > { %s13748_s28 = scalar_lea.vmem %s13747_s22, 128  ;;  %p13749_p6 = scmp.lt.s32.totalorder %s585_s23, %s13747_s22 }
  0x90   : > { %p13744_p3 = pnand %p13742_p0, %p14291_p8  ;;  %p13750_p4 = scmp.lt.s32.totalorder %s13748_s28, %s13741_s12 }
  0x92   : > { %p13745_p5 = pneg %p13744_p3  ;;  %p13751_p7 = por %p13750_p4, %p13749_p6 }
  0x94   : > { %p13752_p11 = pnand %p13751_p7, %p13745_p5 }
  0x96   : > { %13755 = shalt.err (!%p13752_p11)
}
  0x97   : > { %p16930_p12 = scmp.ne.s32.totalorder %s16923_s14, 0  ;;  %s10789_s1 = sshll.u32 %s14268_s18, 11 }
  0x98   : > { %s11856_s20 = sshll.u32 %s14124_s29, 15  ;;  %s16931_s9 = sld [smem:[#allocation48_spill]] }
  0x99   : > { %12307 = dma.hbm_to_vmem [thread:$0]  (!%p16930_p12), %s14389_s8, 64, %s585_s23, %s16893_s27  }
  0x9a   : > { %s614_s10 = scalar_lea.vmem [#allocation22], %s10789_s1  ;;  %s16895_s15 = scalar_lea.sflag [#allocation23], %s14265_s17 }
  0x9b   : > { %s621_s12 = sshll.u32 %s614_s10, 4  ;;  %s14423_s12 = int_to_ptr.vmem [resolvable:$true] %s621_s12 }
  0x9e   : > { %s14419_s21 = scalar_lea.hbm %s16931_s9, %s11856_s20  ;;  %s13761_s22 = scalar_lea.hbm %s16931_s9, 65536 }
  0x9f   : > { %s13756_s28 = scalar_lea.hbm %s14419_s21, 32768  ;;  %p13762_p13 = scmp.lt.u32.totalorder %s14419_s21, %s16931_s9 }
  0xa0   : > { %p13757_p7 = scmp.ne.s32.totalorder %s14419_s21, %s13756_s28  ;;  %p13763_p1 = scmp.lt.u32.totalorder %s13761_s22, %s13756_s28 }
  0xa1   : > { %p13765_p0 = scmp.lt.u32.totalorder %s13756_s28, %s14419_s21 }
  0xa2   : > { %p13759_p9 = pnand %p13757_p7, %p14291_p8  ;;  %p13764_p2 = por %p13763_p1, %p13762_p13 }
  0xa4   : > { %p13760_p10 = pneg %p13759_p9  ;;  %p13766_p3 = por %p13765_p0, %p13764_p2 }
  0xa6   : > { %p13767_p5 = pnand %p13766_p3, %p13760_p10 }
  0xa8   : > { %13770 = shalt.err (!%p13767_p5)
}
  0xa9   : > { %s13771_s10 = scalar_lea.vmem %s14423_s12, 32768  ;;  %s14138_s8 = smov [#allocation22]  }
  0xaa   : > { %p13772_p6 = scmp.ne.s32.totalorder %s14423_s12, %s13771_s10  ;;  %s13776_s23 = sshll.u32 %s14138_s8, 4  ;;  %s13777_s23 = int_to_ptr.vmem [resolvable:$false] %s13776_s23 }
  0xab   : > { %s13778_s27 = scalar_lea.vmem %s13777_s23, 65536  ;;  %p13779_p7 = scmp.lt.s32.totalorder %s14423_s12, %s13777_s23 }
  0xac   : > { %p13774_p4 = pnand %p13772_p6, %p14291_p8  ;;  %p13780_p9 = scmp.lt.s32.totalorder %s13778_s27, %s13771_s10 }
  0xae   : > { %p13775_p11 = pneg %p13774_p4  ;;  %p13781_p13 = por %p13780_p9, %p13779_p7 }
  0xb0   : > { %p13782_p1 = pnand %p13781_p13, %p13775_p11 }
  0xb2   : > { %13785 = shalt.err (!%p13782_p1)
}
  0xb3   : > { %s16896_s28 = smov 512   ;;  %s16897_s22 = smov 32  }
  0xb4   : > { %12313 = dma.hbm_to_vmem [thread:$0]  (!%p16930_p12), %s14419_s21, 32768, %s14423_s12, %s16895_s15, %s16896_s28, %s16896_s28, %s16897_s22  }
  0xb5   : > { %s16932_s11 = sld [smem:[#allocation50_spill]]  ;;  %s654_s23 = scalar_lea.vmem [#allocation25], %s10789_s1 }
  0xb6   : > { %s661_s27 = sshll.u32 %s654_s23, 4  ;;  %s16894_s3 = scalar_lea.sflag [#allocation26], %s14265_s17  ;;  %s14461_s27 = int_to_ptr.vmem [resolvable:$true] %s661_s27 }
  0xbb   : > { %s14457_s8 = scalar_lea.hbm %s16932_s11, %s11856_s20  ;;  %s13791_s20 = scalar_lea.hbm %s16932_s11, 65536 }
  0xbc   : > { %s13786_s5 = scalar_lea.hbm %s14457_s8, 32768  ;;  %p13792_p3 = scmp.lt.u32.totalorder %s14457_s8, %s16932_s11 }
  0xbd   : > { %p13787_p10 = scmp.ne.s32.totalorder %s14457_s8, %s13786_s5  ;;  %p13793_p5 = scmp.lt.u32.totalorder %s13791_s20, %s13786_s5 }
  0xbe   : > { %p13795_p4 = scmp.lt.u32.totalorder %s13786_s5, %s14457_s8 }
  0xbf   : > { %p13789_p2 = pnand %p13787_p10, %p14291_p8  ;;  %p13794_p6 = por %p13793_p5, %p13792_p3 }
  0xc1   : > { %p13790_p0 = pneg %p13789_p2  ;;  %p13796_p11 = por %p13795_p4, %p13794_p6 }
  0xc3   : > { %p13797_p7 = pnand %p13796_p11, %p13790_p0 }
  0xc5   : > { %13800 = shalt.err (!%p13797_p7)
}
  0xc6   : > { %s13801_s1 = scalar_lea.vmem %s14461_s27, 32768  ;;  %s14141_s23 = smov [#allocation25]  }
  0xc7   : > { %p13802_p9 = scmp.ne.s32.totalorder %s14461_s27, %s13801_s1  ;;  %s13806_s21 = sshll.u32 %s14141_s23, 4  ;;  %s13807_s21 = int_to_ptr.vmem [resolvable:$false] %s13806_s21 }
  0xc8   : > { %s13808_s12 = scalar_lea.vmem %s13807_s21, 65536  ;;  %p13809_p10 = scmp.lt.s32.totalorder %s14461_s27, %s13807_s21 }
  0xc9   : > { %p13804_p13 = pnand %p13802_p9, %p14291_p8  ;;  %p13810_p2 = scmp.lt.s32.totalorder %s13808_s12, %s13801_s1 }
  0xcb   : > { %p13805_p1 = pneg %p13804_p13  ;;  %p13811_p3 = por %p13810_p2, %p13809_p10 }
  0xcd   : > { %p13812_p5 = pnand %p13811_p3, %p13805_p1 }
  0xcf   : > { %13815 = shalt.err (!%p13812_p5)
}
  0xd0   : > { %s16933_s5 = smov 16   ;;  %s16934_s20 = smov 256  }
  0xd1   : > { %12319 = dma.hbm_to_vmem [thread:$0]  (!%p16930_p12), %s14457_s8, 32768, %s14461_s27, %s16894_s3, %s16934_s20, %s16934_s20, %s16933_s5  }
  0xd2   : > { %s14491_s16 = sadd.s32 4294967295, %s14128_s30   ;;  %p101_p0 = scmp.ne.s32.totalorder %s14112_s26, %s14108_s25 }
  0xd3   : > { %p16901_p6 = scmp.eq.s32.totalorder %s14491_s16, 0  ;;  %p10766_p4 = scmp.ge.s32.totalorder %s14128_s30, 1 }
  0xd4   : > { %p424_p11 = scmp.lt.s32.totalorder %s14128_s30, 3  ;;  %s14142_s8 = smov [#allocation7]  }
  0xd5   : > { %p14500_p7 = por %p16901_p6, %p101_p0  ;;  %s440_s27 = sshll.u32 %s14142_s8, 4  ;;  %s14508_s27 = int_to_ptr.vmem [resolvable:$true] %s440_s27 }
  0xd6   : > { %p14504_p9 = pnand %p10766_p4, %p424_p11  ;;  %s12246_s23 = smul.u32 12, %s14268_s18 }
  0xd7   : > { %s16935_s10 = scalar_select %p14500_p7, 1, 0 }
  0xd8   : > { %s16937_s1 = scalar_select %p14504_p9, 1, 0 }
  0xd9   : > { %16936 = sst [smem:[#allocation42_spill]] %s16935_s10  ;;  %p12282_p13 = pneg %p14504_p9 }
  0xda   : > { %s12247_s25 = smul.u32 192, %s14124_s29  ;;  %s479_s3 = scalar_lea.vmem [#allocation12], %s12246_s23 }
  0xdb   : > { %p14516_p1 = pnand %p12282_p13, %p16901_p6  ;;  %s487_s15 = sshll.u32 %s479_s3, 4  ;;  %s14531_s15 = int_to_ptr.vmem [resolvable:$true] %s487_s15 }
  0xdc   : > { %s14523_s20 = scalar_lea.hbm %s16869_s2, %s12247_s25  ;;  %s14529_s22 = scalar_lea.hbm %s16871_s4, %s14356_s24 }
  0xdd   : > { %s13816_s11 = scalar_lea.hbm %s16867_s0, 2048  ;;  %p13818_p2 = pneg %p14516_p1 }
  0xde   : > { %p13817_p10 = scmp.ne.s32.totalorder %s16867_s0, %s13816_s11  ;;  %p13823_p0 = scmp.lt.u32.totalorder %s13816_s11, %s16867_s0 }
  0xe0   : > { %p13819_p3 = pnand %p13818_p2, %p13817_p10 }
  0xe2   : > { %p13820_p5 = pneg %p13819_p3 }
  0xe4   : > { %p13825_p4 = pnand %p13823_p0, %p13820_p5 }
  0xe6   : > { %13828 = shalt.err (!%p13825_p4)
}
  0xe7   : > { %s13829_s28 = scalar_lea.vmem %s14508_s27, 2048  ;;  %p13837_p7 = scmp.lt.s32.totalorder %s14508_s27, %s14508_s27 }
  0xe8   : > { %p13830_p11 = scmp.ne.s32.totalorder %s14508_s27, %s13829_s28  ;;  %p13838_p9 = scmp.lt.s32.totalorder %s13829_s28, %s13829_s28 }
  0xea   : > { %p13832_p13 = pnand %p13830_p11, %p13818_p2  ;;  %p13839_p12 = por %p13838_p9, %p13837_p7 }
  0xec   : > { %p13833_p6 = pneg %p13832_p13 }
  0xee   : > { %p13840_p8 = pnand %p13839_p12, %p13833_p6 }
  0xf0   : > { %13843 = shalt.err (!%p13840_p8)
}
  0xf1   : > { %s16939_s7 = smov 32   ;;  %s16940_s9 = smov 512  }
  0xf2   : > { %12285 = dma.hbm_to_vmem [thread:$0]  (!%p14516_p1), %s16867_s0, 2048, %s14508_s27, [#allocation8], %s16940_s9, %s16940_s9, %s16939_s7  }
  0xf3   : > { %s13844_s10 = scalar_lea.hbm %s14523_s20, 192  ;;  %p16941_p7 = scmp.ne.s32.totalorder %s16924_s19, 0 }
  0xf4   : > { %p13845_p10 = scmp.ne.s32.totalorder %s14523_s20, %s13844_s10  ;;  %s13849_s12 = scalar_lea.hbm %s16869_s2, 384 }
  0xf5   : > { %p13850_p6 = scmp.lt.u32.totalorder %s14523_s20, %s16869_s2  ;;  %p13851_p9 = scmp.lt.u32.totalorder %s13849_s12, %s13844_s10 }
  0xf6   : > { %p13847_p12 = pnand %p13845_p10, %p16941_p7  ;;  %p13853_p3 = scmp.lt.u32.totalorder %s13844_s10, %s14523_s20 }
  0xf7   : > { %p13852_p2 = por %p13851_p9, %p13850_p6 }
  0xf8   : > { %p13848_p8 = pneg %p13847_p12 }
  0xf9   : > { %p13854_p5 = por %p13853_p3, %p13852_p2 }
  0xfb   : > { %p13855_p0 = pnand %p13854_p5, %p13848_p8 }
  0xfd   : > { %13858 = shalt.err (!%p13855_p0)
}
  0xfe   : > { %s13859_s27 = scalar_lea.vmem %s14531_s15, 192  ;;  %s14143_s3 = smov [#allocation12]  }
  0xff   : > { %p13860_p1 = scmp.ne.s32.totalorder %s14531_s15, %s13859_s27  ;;  %s13864_s23 = sshll.u32 %s14143_s3, 4  ;;  %s13865_s23 = int_to_ptr.vmem [resolvable:$false] %s13864_s23 }
 0x100   : > { %s13866_s28 = scalar_lea.vmem %s13865_s23, 384  ;;  %p13867_p13 = scmp.lt.s32.totalorder %s14531_s15, %s13865_s23 }
 0x101   : > { %p13862_p4 = pnand %p13860_p1, %p16941_p7  ;;  %p13868_p10 = scmp.lt.s32.totalorder %s13866_s28, %s13859_s27 }
 0x103   : > { %p13863_p11 = pneg %p13862_p4  ;;  %p13869_p12 = por %p13868_p10, %p13867_p13 }
 0x105   : > { %p13870_p6 = pnand %p13869_p12, %p13863_p11 }
 0x107   : > { %13873 = shalt.err (!%p13870_p6)
}
 0x108   : > { %p16942_p8 = scmp.ne.s32.totalorder %s16923_s14, 0  ;;  %s16943_s7 = scalar_lea.sflag [#allocation11], %s14265_s17 }
 0x109   : > { %s519_s9 = scalar_lea.vmem [#allocation15], %s14353_s13  ;;  %s14585_s25 = scalar_lea.hbm %s16873_s6, %s14356_s24 }
 0x10a   : > { %12292 = dma.hbm_to_vmem [thread:$0]  (!%p16942_p8), %s14523_s20, 192, %s14531_s15, %s16943_s7  }
 0x10b   : > { %s527_s11 = sshll.u32 %s519_s9, 4  ;;  %s13874_s21 = scalar_lea.hbm %s14529_s22, 64  ;;  %s528_s11 = int_to_ptr.vmem [resolvable:$true] %s527_s11 }
 0x10c   : > { %p13875_p9 = scmp.ne.s32.totalorder %s14529_s22, %s13874_s21  ;;  %s13879_s8 = scalar_lea.hbm %s16871_s4, 128 }
 0x10d   : > { %p13880_p5 = scmp.lt.u32.totalorder %s14529_s22, %s16871_s4  ;;  %p13881_p0 = scmp.lt.u32.totalorder %s13879_s8, %s13874_s21 }
 0x10e   : > { %p13877_p2 = pnand %p13875_p9, %p16941_p7  ;;  %p13883_p4 = scmp.lt.u32.totalorder %s13874_s21, %s14529_s22 }
 0x10f   : > { %p13882_p1 = por %p13881_p0, %p13880_p5 }
 0x110   : > { %p13878_p3 = pneg %p13877_p2 }
 0x111   : > { %p13884_p11 = por %p13883_p4, %p13882_p1 }
 0x113   : > { %p13885_p13 = pnand %p13884_p11, %p13878_p3 }
 0x115   : > { %13888 = shalt.err (!%p13885_p13)
}
 0x116   : > { %s13889_s15 = scalar_lea.vmem %s528_s11, 64  ;;  %s14144_s20 = smov [#allocation15]  }
 0x117   : > { %p13890_p10 = scmp.ne.s32.totalorder %s528_s11, %s13889_s15  ;;  %s13894_s23 = sshll.u32 %s14144_s20, 4  ;;  %s13895_s23 = int_to_ptr.vmem [resolvable:$false] %s13894_s23 }
 0x118   : > { %s13896_s28 = scalar_lea.vmem %s13895_s23, 128  ;;  %p13897_p9 = scmp.lt.s32.totalorder %s528_s11, %s13895_s23 }
 0x119   : > { %p13892_p12 = pnand %p13890_p10, %p16941_p7  ;;  %p13898_p2 = scmp.lt.s32.totalorder %s13896_s28, %s13889_s15 }
 0x11b   : > { %p13893_p6 = pneg %p13892_p12  ;;  %p13899_p8 = por %p13898_p2, %p13897_p9 }
 0x11d   : > { %p13900_p0 = pnand %p13899_p8, %p13893_p6 }
 0x11f   : > { %13903 = shalt.err (!%p13900_p0)
}
 0x120   : > { %p16944_p5 = scmp.ne.s32.totalorder %s16923_s14, 0  ;;  %s16945_s7 = scalar_lea.sflag [#allocation14], %s14265_s17 }
 0x121   : > { %s557_s9 = scalar_lea.vmem [#allocation18], %s14353_s13  ;;  %s16946_s12 = sld [smem:[#allocation47_spill]] }
 0x122   : > { %12298 = dma.hbm_to_vmem [thread:$0]  (!%p16944_p5), %s14529_s22, 64, %s528_s11, %s16945_s7  }
 0x123   : > { %s565_s30 = sshll.u32 %s557_s9, 4  ;;  %s13904_s8 = scalar_lea.hbm %s14585_s25, 64  ;;  %s566_s30 = int_to_ptr.vmem [resolvable:$true] %s565_s30 }
 0x124   : > { %p13905_p8 = scmp.ne.s32.totalorder %s14585_s25, %s13904_s8  ;;  %s13909_s15 = scalar_lea.hbm %s16873_s6, 128 }
 0x125   : > { %p13910_p4 = scmp.lt.u32.totalorder %s14585_s25, %s16873_s6  ;;  %p13911_p11 = scmp.lt.u32.totalorder %s13909_s15, %s13904_s8 }
 0x126   : > { %p13907_p3 = pnand %p13905_p8, %p16941_p7  ;;  %p13913_p10 = scmp.lt.u32.totalorder %s13904_s8, %s14585_s25 }
 0x127   : > { %s14611_s5 = scalar_lea.hbm %s16946_s12, %s14356_s24  ;;  %p13912_p13 = por %p13911_p11, %p13910_p4 }
 0x128   : > { %p13908_p1 = pneg %p13907_p3 }
 0x129   : > { %p13914_p12 = por %p13913_p10, %p13912_p13 }
 0x12b   : > { %p13915_p6 = pnand %p13914_p12, %p13908_p1 }
 0x12d   : > { %13918 = shalt.err (!%p13915_p6)
}
 0x12e   : > { %s13919_s22 = scalar_lea.vmem %s566_s30, 64  ;;  %s14145_s11 = smov [#allocation18]  }
 0x12f   : > { %p13920_p9 = scmp.ne.s32.totalorder %s566_s30, %s13919_s22  ;;  %s13924_s28 = sshll.u32 %s14145_s11, 4  ;;  %s13925_s28 = int_to_ptr.vmem [resolvable:$false] %s13924_s28 }
 0x130   : > { %s13926_s7 = scalar_lea.vmem %s13925_s28, 128  ;;  %p13927_p8 = scmp.lt.s32.totalorder %s566_s30, %s13925_s28 }
 0x131   : > { %p13922_p2 = pnand %p13920_p9, %p16941_p7  ;;  %p13928_p3 = scmp.lt.s32.totalorder %s13926_s7, %s13919_s22 }
 0x133   : > { %p13923_p0 = pneg %p13922_p2  ;;  %p13929_p5 = por %p13928_p3, %p13927_p8 }
 0x135   : > { %p13930_p4 = pnand %p13929_p5, %p13923_p0 }
 0x137   : > { %13933 = shalt.err (!%p13930_p4)
}
 0x138   : > { %p16947_p11 = scmp.ne.s32.totalorder %s16923_s14, 0  ;;  %s16948_s9 = scalar_lea.sflag [#allocation17], %s14265_s17 }
 0x139   : > { %s595_s10 = scalar_lea.vmem [#allocation21], %s14353_s13  ;;  %s10792_s8 = sshll.u32 %s14268_s18, 3 }
 0x13a   : > { %12304 = dma.hbm_to_vmem [thread:$0]  (!%p16947_p11), %s14585_s25, 64, %s566_s30, %s16948_s9  }
 0x13b   : > { %s603_s21 = sshll.u32 %s595_s10, 4  ;;  %s13934_s27 = scalar_lea.hbm %s14611_s5, 64  ;;  %s604_s21 = int_to_ptr.vmem [resolvable:$true] %s603_s21 }
 0x13c   : > { %p13935_p5 = scmp.ne.s32.totalorder %s14611_s5, %s13934_s27  ;;  %s13939_s20 = scalar_lea.hbm %s16946_s12, 128 }
 0x13d   : > { %p13940_p10 = scmp.lt.u32.totalorder %s14611_s5, %s16946_s12  ;;  %p13941_p12 = scmp.lt.u32.totalorder %s13939_s20, %s13934_s27 }
 0x13e   : > { %p13937_p1 = pnand %p13935_p5, %p16941_p7  ;;  %p13943_p9 = scmp.lt.u32.totalorder %s13934_s27, %s14611_s5 }
 0x13f   : > { %p13942_p6 = por %p13941_p12, %p13940_p10 }
 0x140   : > { %p13938_p13 = pneg %p13937_p1 }
 0x141   : > { %p13944_p2 = por %p13943_p9, %p13942_p6 }
 0x143   : > { %p13945_p0 = pnand %p13944_p2, %p13938_p13 }
 0x145   : > { %13948 = shalt.err (!%p13945_p0)
}
 0x146   : > { %s13949_s25 = scalar_lea.vmem %s604_s21, 64  ;;  %s14146_s30 = smov [#allocation21]  }
 0x147   : > { %p13950_p8 = scmp.ne.s32.totalorder %s604_s21, %s13949_s25  ;;  %s13954_s11 = sshll.u32 %s14146_s30, 4  ;;  %s13955_s11 = int_to_ptr.vmem [resolvable:$false] %s13954_s11 }
 0x148   : > { %s13956_s28 = scalar_lea.vmem %s13955_s11, 128  ;;  %p13957_p5 = scmp.lt.s32.totalorder %s604_s21, %s13955_s11 }
 0x149   : > { %p13952_p3 = pnand %p13950_p8, %p16941_p7  ;;  %p13958_p1 = scmp.lt.s32.totalorder %s13956_s28, %s13949_s25 }
 0x14b   : > { %p13953_p4 = pneg %p13952_p3  ;;  %p13959_p11 = por %p13958_p1, %p13957_p5 }
 0x14d   : > { %p13960_p10 = pnand %p13959_p11, %p13953_p4 }
 0x14f   : > { %13963 = shalt.err (!%p13960_p10)
}
 0x150   : > { %p16949_p12 = scmp.ne.s32.totalorder %s16923_s14, 0  ;;  %s16950_s7 = scalar_lea.sflag [#allocation20], %s14265_s17 }
 0x151   : > { %s11857_s9 = sshll.u32 %s14124_s29, 7  ;;  %s635_s10 = scalar_lea.vmem [#allocation24], %s10792_s8 }
 0x152   : > { %12310 = dma.hbm_to_vmem [thread:$0]  (!%p16949_p12), %s14611_s5, 64, %s604_s21, %s16950_s7  }
 0x153   : > { %s643_s27 = sshll.u32 %s635_s10, 4  ;;  %s16951_s20 = sld [smem:[#allocation49_spill]]  ;;  %s644_s27 = int_to_ptr.vmem [resolvable:$true] %s643_s27 }
 0x159   : > { %s641_s23 = scalar_lea.hbm %s16951_s20, %s11857_s9  ;;  %s13969_s11 = scalar_lea.hbm %s16951_s20, 256 }
 0x15a   : > { %s13964_s22 = scalar_lea.hbm %s641_s23, 128  ;;  %p13970_p9 = scmp.lt.u32.totalorder %s641_s23, %s16951_s20 }
 0x15b   : > { %p13965_p11 = scmp.ne.s32.totalorder %s641_s23, %s13964_s22  ;;  %p13971_p2 = scmp.lt.u32.totalorder %s13969_s11, %s13964_s22 }
 0x15c   : > { %p13973_p8 = scmp.lt.u32.totalorder %s13964_s22, %s641_s23 }
 0x15d   : > { %p13967_p13 = pnand %p13965_p11, %p16941_p7  ;;  %p13972_p0 = por %p13971_p2, %p13970_p9 }
 0x15f   : > { %p13968_p6 = pneg %p13967_p13  ;;  %p13974_p3 = por %p13973_p8, %p13972_p0 }
 0x161   : > { %p13975_p4 = pnand %p13974_p3, %p13968_p6 }
 0x163   : > { %13978 = shalt.err (!%p13975_p4)
}
 0x164   : > { %s13979_s18 = scalar_lea.vmem %s644_s27, 128  ;;  %s14147_s21 = smov [#allocation24]  }
 0x165   : > { %p13980_p5 = scmp.ne.s32.totalorder %s644_s27, %s13979_s18  ;;  %s13984_s8 = sshll.u32 %s14147_s21, 4  ;;  %s13985_s8 = int_to_ptr.vmem [resolvable:$false] %s13984_s8 }
 0x166   : > { %s13986_s7 = scalar_lea.vmem %s13985_s8, 256  ;;  %p13987_p11 = scmp.lt.s32.totalorder %s644_s27, %s13985_s8 }
 0x167   : > { %p13982_p1 = pnand %p13980_p5, %p16941_p7  ;;  %p13988_p13 = scmp.lt.s32.totalorder %s13986_s7, %s13979_s18 }
 0x169   : > { %p13983_p10 = pneg %p13982_p1  ;;  %p13989_p12 = por %p13988_p13, %p13987_p11 }
 0x16b   : > { %p13990_p2 = pnand %p13989_p12, %p13983_p10 }
 0x16d   : > { %13993 = shalt.err (!%p13990_p2)
}
 0x16e   : > { %p16952_p9 = scmp.ne.s32.totalorder %s16923_s14, 0  ;;  %s16953_s9 = scalar_lea.sflag [#allocation23], %s14265_s17 }
 0x16f   : > { %s16954_s15 = sld [smem:[#allocation51_spill]]  ;;  %s675_s25 = scalar_lea.vmem [#allocation27], %s14353_s13 }
 0x170   : > { %12316 = dma.hbm_to_vmem [thread:$0]  (!%p16952_p9), %s641_s23, 128, %s644_s27, %s16953_s9  }
 0x171   : > { %s683_s30 = sshll.u32 %s675_s25, 4  ;;  %s684_s30 = int_to_ptr.vmem [resolvable:$true] %s683_s30 }
 0x175   : > { %s14677_s22 = scalar_lea.hbm %s16954_s15, %s14356_s24  ;;  %s13999_s27 = scalar_lea.hbm %s16954_s15, 128 }
 0x176   : > { %s13994_s11 = scalar_lea.hbm %s14677_s22, 64  ;;  %p14000_p8 = scmp.lt.u32.totalorder %s14677_s22, %s16954_s15 }
 0x177   : > { %p13995_p12 = scmp.ne.s32.totalorder %s14677_s22, %s13994_s11  ;;  %p14001_p3 = scmp.lt.u32.totalorder %s13999_s27, %s13994_s11 }
 0x178   : > { %p14003_p5 = scmp.lt.u32.totalorder %s13994_s11, %s14677_s22 }
 0x179   : > { %p13997_p6 = pnand %p13995_p12, %p16941_p7  ;;  %p14002_p4 = por %p14001_p3, %p14000_p8 }
 0x17b   : > { %p13998_p0 = pneg %p13997_p6  ;;  %p14004_p1 = por %p14003_p5, %p14002_p4 }
 0x17d   : > { %p14005_p10 = pnand %p14004_p1, %p13998_p0 }
 0x17f   : > { %14008 = shalt.err (!%p14005_p10)
}
 0x180   : > { %s14009_s13 = scalar_lea.vmem %s684_s30, 64  ;;  %s14148_s24 = smov [#allocation27]  }
 0x181   : > { %p14010_p11 = scmp.ne.s32.totalorder %s684_s30, %s14009_s13  ;;  %s14014_s21 = sshll.u32 %s14148_s24, 4  ;;  %s14015_s21 = int_to_ptr.vmem [resolvable:$false] %s14014_s21 }
 0x182   : > { %s14016_s8 = scalar_lea.vmem %s14015_s21, 128  ;;  %p14017_p12 = scmp.lt.s32.totalorder %s684_s30, %s14015_s21 }
 0x183   : > { %p14012_p13 = pnand %p14010_p11, %p16941_p7  ;;  %p14018_p6 = scmp.lt.s32.totalorder %s14016_s8, %s14009_s13 }
 0x185   : > { %p14013_p2 = pneg %p14012_p13  ;;  %p14019_p9 = por %p14018_p6, %p14017_p12 }
 0x187   : > { %p14020_p3 = pnand %p14019_p9, %p14013_p2 }
 0x189   : > { %14023 = shalt.err (!%p14020_p3)
}
 0x18a   : > { %p16955_p8 = scmp.ne.s32.totalorder %s16923_s14, 0  ;;  %s16956_s7 = scalar_lea.sflag [#allocation26], %s14265_s17 }
 0x18b   : > { %p16957_p0 = scmp.ne.s32.totalorder %s16937_s1, 0 }
 0x18c   : > { %12322 = dma.hbm_to_vmem [thread:$0]  (!%p16955_p8), %s14677_s22, 64, %s684_s30, %s16956_s7  }
 0x18d   : > { %692 = sbr.rel (%p16957_p0) target bundleno = 3388 (0xd3c), region = 72  ;;  %p16958_p7 = scmp.eq.s32.totalorder (!%p16957_p0), %s14491_s16, 0 }
 0x194   : > { %14075 = dma.done.wait (%p16958_p7), [#allocation8], 2048   ;;  %p16959_p4 = pmov %p16958_p7 }
 0x195   : > { %s16960_s19 = sld [smem:[#allocation42_spill]]  ;;  %s14706_s9 = sand.u32 1, %s14491_s16  }
 0x196   : > { %14077 = vsyncadd (%p16959_p4), [#allocation8], 4294965248  ;;  %s14709_s14 = sand.u32 1, %s14112_s26   ;;  %s699_s10 = scalar_lea.sflag [#allocation11], %s14706_s9 }
 0x197   : > { %s12248_s17 = smul.u32 3072, %s14709_s14 }
 0x199   : > { %s14713_s3 = scalar_lea.vmem [#allocation10], %s12248_s17 }
 0x19b   : > { %p16961_p9 = scmp.ne.s32.totalorder %s16960_s19, 0 }
 0x19d   : > { %14079 = dma.done.wait (%p16961_p9), %s699_s10, 49344  }
 0x19e   : > { %14081 = vsyncadd (%p16961_p9), %s699_s10, 4294917952  ;;  %s12249_s1 = smul.u32 12, %s14709_s14  ;;  %s10803_s22 = sshll.u32 %s14709_s14, 10 }
 0x19f   : > { %s717_s30 = scalar_lea.sflag [#allocation14], %s14706_s9  ;;  %s14724_s11 = scalar_lea.vmem [#allocation13], %s10803_s22 }
 0x1a0   : > { %s14721_s25 = scalar_lea.vmem [#allocation12], %s12249_s1 }
 0x1a1   : > { %14083 = dma.done.wait (%p16961_p9), %s717_s30, 16448  }
 0x1a2   : > { %14085 = vsyncadd (%p16961_p9), %s717_s30, 4294950848  ;;  %s14731_s28 = sshll.u32 %s14709_s14, 2  ;;  %s735_s27 = scalar_lea.sflag [#allocation17], %s14706_s9 }
 0x1a3   : > { %s729_s5 = scalar_lea.vmem [#allocation15], %s14731_s28  ;;  %s738_s23 = scalar_lea.vmem [#allocation16], %s14731_s28 }
 0x1a4   : > { %14087 = dma.done.wait (%p16961_p9), %s735_s27, 128  }
 0x1a5   : > { %14089 = vsyncadd (%p16961_p9), %s735_s27, 4294967168  ;;  %s747_s18 = scalar_lea.vmem [#allocation18], %s14731_s28  ;;  %s753_s13 = scalar_lea.sflag [#allocation20], %s14706_s9 }
 0x1a6   : > { %s756_s24 = scalar_lea.vmem [#allocation19], %s14731_s28 }
 0x1a7   : > { %14091 = dma.done.wait (%p16961_p9), %s753_s13, 128  }
 0x1a8   : > { %14093 = vsyncadd (%p16961_p9), %s753_s13, 4294967168  ;;  %s10809_s21 = sshll.u32 %s14709_s14, 11  ;;  %s765_s8 = scalar_lea.vmem [#allocation21], %s14731_s28 }
 0x1a9   : > { %s771_s7 = scalar_lea.sflag [#allocation23], %s14706_s9  ;;  %s14750_s17 = scalar_lea.vmem [#allocation22], %s10809_s21 }
 0x1aa   : > { %14095 = dma.done.wait (%p16961_p9), %s771_s7, 32896  }
 0x1ab   : > { %14097 = vsyncadd (%p16961_p9), %s771_s7, 4294934400  ;;  %s10810_s10 = sshll.u32 %s14709_s14, 3  ;;  %s789_s22 = scalar_lea.sflag [#allocation26], %s14706_s9 }
 0x1ac   : > { %s14757_s1 = scalar_lea.vmem [#allocation24], %s10810_s10  ;;  %s14760_s30 = scalar_lea.vmem [#allocation25], %s10809_s21 }
 0x1ad   : > { %14099 = dma.done.wait (%p16961_p9), %s789_s22, 32832  }
 0x1ae   : > { %14101 = vsyncadd (%p16961_p9), %s789_s22, 4294934464  ;;  %s801_s27 = scalar_lea.vmem [#allocation27], %s14731_s28  ;;  %s16962_s13 = sld [smem:[#allocation38_spill]] }
 0x1b4   : > { %p10813_p5 = scmp.ne.s32.totalorder %s16962_s13, 0 }
 0x1b5   : > { %v901_v0 = vld [vmem:[#allocation7] sm:$0xff] (!%p10813_p5)  ;;  %v902_v1 = vld [vmem:[#allocation7 + $0x8] sm:$0xff] (!%p10813_p5)  ;;  %v903_v2 = vld [vmem:[#allocation7 + $0x10] sm:$0xff] (!%p10813_p5) }
 0x1b6   : > { %900 = sbr.rel (%p10813_p5) target bundleno = 446 (0x1be), region = 128  ;;  %917 = vst [vmem:[#allocation28] sm:$0xff] (!%p10813_p5), %v901_v0  ;;  %918 = vst [vmem:[#allocation28 + $0x8] sm:$0xff] (!%p10813_p5), %v902_v1  ;;  %v904_v3 = vld [vmem:[#allocation7 + $0x18] sm:$0xff] (!%p10813_p5)  ;;  %v905_v4 = vld [vmem:[#allocation7 + $0x20] sm:$0xff] (!%p10813_p5) }
 0x1b7   : > { %919 = vst [vmem:[#allocation28 + $0x10] sm:$0xff] (!%p10813_p5), %v903_v2  ;;  %v906_v5 = vld [vmem:[#allocation7 + $0x28] sm:$0xff] (!%p10813_p5)  ;;  %920 = vst [vmem:[#allocation28 + $0x18] sm:$0xff] (!%p10813_p5), %v904_v3  ;;  %v907_v6 = vld [vmem:[#allocation7 + $0x30] sm:$0xff] (!%p10813_p5) }
 0x1b8   : > { %921 = vst [vmem:[#allocation28 + $0x20] sm:$0xff] (!%p10813_p5), %v905_v4  ;;  %922 = vst [vmem:[#allocation28 + $0x28] sm:$0xff] (!%p10813_p5), %v906_v5  ;;  %v908_v7 = vld [vmem:[#allocation7 + $0x38] sm:$0xff] (!%p10813_p5)  ;;  %v909_v8 = vld [vmem:[#allocation7 + $0x40] sm:$0xff] (!%p10813_p5) }
 0x1b9   : > { %923 = vst [vmem:[#allocation28 + $0x30] sm:$0xff] (!%p10813_p5), %v907_v6  ;;  %924 = vst [vmem:[#allocation28 + $0x38] sm:$0xff] (!%p10813_p5), %v908_v7  ;;  %v910_v9 = vld [vmem:[#allocation7 + $0x48] sm:$0xff] (!%p10813_p5)  ;;  %v911_v10 = vld [vmem:[#allocation7 + $0x50] sm:$0xff] (!%p10813_p5) }
 0x1ba   : > { %925 = vst [vmem:[#allocation28 + $0x40] sm:$0xff] (!%p10813_p5), %v909_v8  ;;  %v912_v11 = vld [vmem:[#allocation7 + $0x58] sm:$0xff] (!%p10813_p5)  ;;  %926 = vst [vmem:[#allocation28 + $0x48] sm:$0xff] (!%p10813_p5), %v910_v9  ;;  %v913_v12 = vld [vmem:[#allocation7 + $0x60] sm:$0xff] (!%p10813_p5) }
 0x1bb   : > { %927 = vst [vmem:[#allocation28 + $0x50] sm:$0xff] (!%p10813_p5), %v911_v10  ;;  %928 = vst [vmem:[#allocation28 + $0x58] sm:$0xff] (!%p10813_p5), %v912_v11  ;;  %v914_v13 = vld [vmem:[#allocation7 + $0x68] sm:$0xff] (!%p10813_p5)  ;;  %v915_v14 = vld [vmem:[#allocation7 + $0x70] sm:$0xff] (!%p10813_p5) }
 0x1bc   : > { %929 = vst [vmem:[#allocation28 + $0x60] sm:$0xff] (!%p10813_p5), %v913_v12  ;;  %930 = vst [vmem:[#allocation28 + $0x68] sm:$0xff] (!%p10813_p5), %v914_v13  ;;  %v916_v15 = vld [vmem:[#allocation7 + $0x78] sm:$0xff] (!%p10813_p5) }
 0x1bd   : > { %931 = vst [vmem:[#allocation28 + $0x70] sm:$0xff] %v915_v14  ;;  %932 = vst [vmem:[#allocation28 + $0x78] sm:$0xff] %v916_v15 }
 0x1be PF: > { %v12388_v16 = vld [vmem:[%s14713_s3 + $0x4] ss:$48 sps:$4 sm:$0xff]   ;;  %v12390_v17 = vld [vmem:[%s14713_s3] ss:$48 sps:$4 sm:$0xff]   ;;  %v12396_v21 = vld [vmem:[%s14713_s3 + $0xc] ss:$48 sps:$4 sm:$0xff]  }
 0x1bf   : > { %3325 = vmatprep.subr.bf16.mxu0 %v12388_v16  ;;  %v12391_v18 = vld [vmem:[%s14713_s3 + $0x64] ss:$48 sps:$4 sm:$0xff]   ;;  %v12393_v19 = vld [vmem:[%s14713_s3 + $0x60] ss:$48 sps:$4 sm:$0xff]   ;;  %v12399_v22 = vld [vmem:[%s14713_s3 + $0x8] ss:$48 sps:$4 sm:$0xff]   ;;  %3431 = vmatprep.subr.bf16.mxu1 %v12396_v21 }
 0x1c0   : > { %3326 = vmatpush1.bf16.msra.mxu0 %v12390_v17  ;;  %v12394_v20 = vld [vmem:[%s14713_s3 + $0xc4] ss:$48 sps:$4 sm:$0xff]   ;;  %v12398_v23 = vld [vmem:[%s14713_s3 + $0xc0] ss:$48 sps:$4 sm:$0xff]   ;;  %3432 = vmatpush1.bf16.msra.mxu1 %v12399_v22  ;;  %v12402_v24 = vld [vmem:[%s14713_s3 + $0x6c] ss:$48 sps:$4 sm:$0xff]  }
 0x1c1   : > { %3327 = vmatprep.subr.bf16.mxu0 %v12391_v18  ;;  %v12405_v25 = vld [vmem:[%s14713_s3 + $0x68] ss:$48 sps:$4 sm:$0xff]   ;;  %v12400_v26 = vld [vmem:[%s14713_s3 + $0x124] ss:$48 sps:$4 sm:$0xff]   ;;  %3433 = vmatprep.subr.bf16.mxu1 %v12402_v24  ;;  %v12408_v27 = vld [vmem:[%s14713_s3 + $0xcc] ss:$48 sps:$4 sm:$0xff]  }
 0x1c2   : > { %v12404_v28 = vld [vmem:[%s14713_s3 + $0x120] ss:$48 sps:$4 sm:$0xff]   ;;  %v12411_v29 = vld [vmem:[%s14713_s3 + $0xc8] ss:$48 sps:$4 sm:$0xff]   ;;  %v12406_v30 = vld [vmem:[%s14713_s3 + $0x184] ss:$48 sps:$4 sm:$0xff]  }
 0x1c3   : > { %v12414_v31 = vld [vmem:[%s14713_s3 + $0x12c] ss:$48 sps:$4 sm:$0xff]   ;;  %v12410_v32 = vld [vmem:[%s14713_s3 + $0x180] ss:$48 sps:$4 sm:$0xff]   ;;  %v12412_v33 = vld [vmem:[%s14713_s3 + $0x1e4] ss:$48 sps:$4 sm:$0xff]  }
 0x1c4   : > { %3328 = vmatpush1.bf16.msra.mxu0 %v12393_v19  ;;  %3434 = vmatpush1.bf16.msra.mxu1 %v12405_v25  ;;  %v12417_v34 = vld [vmem:[%s14713_s3 + $0x128] ss:$48 sps:$4 sm:$0xff]   ;;  %v12420_v35 = vld [vmem:[%s14713_s3 + $0x18c] ss:$48 sps:$4 sm:$0xff]   ;;  %v12416_v36 = vld [vmem:[%s14713_s3 + $0x1e0] ss:$48 sps:$4 sm:$0xff]  }
 0x1c5   : > { %3329 = vmatprep.subr.bf16.mxu0 %v12394_v20  ;;  %3435 = vmatprep.subr.bf16.mxu1 %v12408_v27  ;;  %v12423_v37 = vld [vmem:[%s14713_s3 + $0x188] ss:$48 sps:$4 sm:$0xff]   ;;  %v12418_v38 = vld [vmem:[%s14713_s3 + $0x244] ss:$48 sps:$4 sm:$0xff]   ;;  %v12426_v39 = vld [vmem:[%s14713_s3 + $0x1ec] ss:$48 sps:$4 sm:$0xff]  }
 0x1c6   : > { %v12422_v40 = vld [vmem:[%s14713_s3 + $0x240] ss:$48 sps:$4 sm:$0xff]   ;;  %v12424_v41 = vld [vmem:[%s14713_s3 + $0x2a4] ss:$48 sps:$4 sm:$0xff]   ;;  %v12429_v42 = vld [vmem:[%s14713_s3 + $0x1e8] ss:$48 sps:$4 sm:$0xff]  }
 0x1c7   : > { %v12432_v43 = vld [vmem:[%s14713_s3 + $0x24c] ss:$48 sps:$4 sm:$0xff]   ;;  %v12428_v44 = vld [vmem:[%s14713_s3 + $0x2a0] ss:$48 sps:$4 sm:$0xff]   ;;  %v12435_v45 = vld [vmem:[%s14713_s3 + $0x248] ss:$48 sps:$4 sm:$0xff]  }
 0x1c8   : > { %3330 = vmatpush1.bf16.msra.mxu0 %v12398_v23  ;;  %3436 = vmatpush1.bf16.msra.mxu1 %v12411_v29  ;;  %v12430_v46 = vld [vmem:[%s14713_s3 + $0x304] ss:$48 sps:$4 sm:$0xff]   ;;  %v12438_v47 = vld [vmem:[%s14713_s3 + $0x2ac] ss:$48 sps:$4 sm:$0xff]   ;;  %v12434_v48 = vld [vmem:[%s14713_s3 + $0x300] ss:$48 sps:$4 sm:$0xff]  }
 0x1c9   : > { %3331 = vmatprep.subr.bf16.mxu0 %v12400_v26  ;;  %3437 = vmatprep.subr.bf16.mxu1 %v12414_v31  ;;  %v12436_v49 = vld [vmem:[%s14713_s3 + $0x364] ss:$48 sps:$4 sm:$0xff]   ;;  %v12441_v50 = vld [vmem:[%s14713_s3 + $0x2a8] ss:$48 sps:$4 sm:$0xff]   ;;  %v12444_v51 = vld [vmem:[%s14713_s3 + $0x30c] ss:$48 sps:$4 sm:$0xff]  }
 0x1ca   : > { %v12440_v52 = vld [vmem:[%s14713_s3 + $0x360] ss:$48 sps:$4 sm:$0xff]   ;;  %v12447_v53 = vld [vmem:[%s14713_s3 + $0x308] ss:$48 sps:$4 sm:$0xff]   ;;  %v12442_v54 = vld [vmem:[%s14713_s3 + $0x3c4] ss:$48 sps:$4 sm:$0xff]  }
 0x1cb   : > { %v12450_v55 = vld [vmem:[%s14713_s3 + $0x36c] ss:$48 sps:$4 sm:$0xff]   ;;  %v12446_v56 = vld [vmem:[%s14713_s3 + $0x3c0] ss:$48 sps:$4 sm:$0xff]   ;;  %v12448_v57 = vld [vmem:[%s14713_s3 + $0x424] ss:$48 sps:$4 sm:$0xff]  }
 0x1cc   : > { %3332 = vmatpush1.bf16.msra.mxu0 %v12404_v28  ;;  %3438 = vmatpush1.bf16.msra.mxu1 %v12417_v34  ;;  %v12453_v58 = vld [vmem:[%s14713_s3 + $0x368] ss:$48 sps:$4 sm:$0xff]   ;;  %v12456_v59 = vld [vmem:[%s14713_s3 + $0x3cc] ss:$48 sps:$4 sm:$0xff]   ;;  %v934_v60 = vld [vmem:[#allocation28 + $0x8] sm:$0xff]  ;;  %vm14150_vm0 = vmmov 0  }
 0x1cd   : > { %3333 = vmatprep.subr.bf16.mxu0 %v12406_v30  ;;  %3439 = vmatprep.subr.bf16.mxu1 %v12420_v35  ;;  %v938_v61 = vld [vmem:[#allocation28 + $0x28] sm:$0xff]  ;;  %v12459_v1 = vld [vmem:[%s14713_s3 + $0x3c8] ss:$48 sps:$4 sm:$0xff]   ;;  %v12462_v2 = vld [vmem:[%s14713_s3 + $0x42c] ss:$48 sps:$4 sm:$0xff]   ;;  %vm4430_vm1 = vcmask 130048  }
 0x1ce   : > { %v14812_v62 = vpack.c.bf16 %v938_v61, %v934_v60  ;;  %v12452_v63 = vld [vmem:[%s14713_s3 + $0x420] ss:$48 sps:$4 sm:$0xff]   ;;  %v12454_v0 = vld [vmem:[%s14713_s3 + $0x484] ss:$48 sps:$4 sm:$0xff]   ;;  %v12465_v5 = vld [vmem:[%s14713_s3 + $0x428] ss:$48 sps:$4 sm:$0xff]  }
 0x1cf   : > { %v12458_v3 = vld [vmem:[%s14713_s3 + $0x480] ss:$48 sps:$4 sm:$0xff]   ;;  %v12460_v4 = vld [vmem:[%s14713_s3 + $0x4e4] ss:$48 sps:$4 sm:$0xff]   ;;  %v12468_v6 = vld [vmem:[%s14713_s3 + $0x48c] ss:$48 sps:$4 sm:$0xff]  }
 0x1d0   : > { %3334 = vmatpush1.bf16.msra.mxu0 %v12410_v32  ;;  %3440 = vmatpush1.bf16.msra.mxu1 %v12423_v37  ;;  %v12464_v7 = vld [vmem:[%s14713_s3 + $0x4e0] ss:$48 sps:$4 sm:$0xff]   ;;  %v12466_v8 = vld [vmem:[%s14713_s3 + $0x544] ss:$48 sps:$4 sm:$0xff]   ;;  %v12471_v9 = vld [vmem:[%s14713_s3 + $0x488] ss:$48 sps:$4 sm:$0xff]  }
 0x1d1   : > { %3335 = vmatprep.subr.bf16.mxu0 %v12412_v33  ;;  %3441 = vmatprep.subr.bf16.mxu1 %v12426_v39  ;;  %v12474_v10 = vld [vmem:[%s14713_s3 + $0x4ec] ss:$48 sps:$4 sm:$0xff]   ;;  %v12470_v11 = vld [vmem:[%s14713_s3 + $0x540] ss:$48 sps:$4 sm:$0xff]   ;;  %v12472_v12 = vld [vmem:[%s14713_s3 + $0x5a4] ss:$48 sps:$4 sm:$0xff]  }
 0x1d2   : > { %3357 = vmatprep.mubr.bf16.mxu0 %v14812_v62  ;;  %3463 = vmatprep.mubr.bf16.mxu1 %v14812_v62  ;;  %v12477_v13 = vld [vmem:[%s14713_s3 + $0x4e8] ss:$48 sps:$4 sm:$0xff]   ;;  %v12481_v14 = vld [vmem:[%s14713_s3 + $0x54c] ss:$48 sps:$4 sm:$0xff]   ;;  %v12476_v15 = vld [vmem:[%s14713_s3 + $0x5a0] ss:$48 sps:$4 sm:$0xff]  }
 0x1d3   : > { %v12480_v16 = vld [vmem:[%s14713_s3 + $0x604] ss:$48 sps:$4 sm:$0xff]   ;;  %v933_v17 = vld [vmem:[#allocation28] sm:$0xff]  ;;  %v12478_v21 = vld [vmem:[%s14713_s3 + $0x600] ss:$48 sps:$4 sm:$0xff]   ;;  %s14151_s19 = smov [#allocation28]  }
 0x1d4   : > { %3336 = vmatpush1.bf16.msra.mxu0 %v12416_v36  ;;  %3442 = vmatpush1.bf16.msra.mxu1 %v12429_v42  ;;  %v937_v18 = vld [vmem:[#allocation28 + $0x20] sm:$0xff]  ;;  %v12486_v23 = vld [vmem:[%s14713_s3 + $0x664] ss:$48 sps:$4 sm:$0xff]   ;;  %v12484_v26 = vld [vmem:[%s14713_s3 + $0x660] ss:$48 sps:$4 sm:$0xff]   ;;  %s10452_s9 = sshll.u32 %s14151_s19, 4  ;;  %s16816_s9 = int_to_ptr.vmem [resolvable:$true] %s10452_s9 }
 0x1d5   : > { %3337 = vmatprep.subr.bf16.mxu0 %v12418_v38  ;;  %3443 = vmatprep.subr.bf16.mxu1 %v12432_v43  ;;  %v12483_v19 = vld [vmem:[%s14713_s3 + $0x548] ss:$48 sps:$4 sm:$0xff]   ;;  %v12487_v20 = vld [vmem:[%s14713_s3 + $0x5ac] ss:$48 sps:$4 sm:$0xff]   ;;  %v14837_v22 = vpack.c.bf16 %v937_v18, %v933_v17  ;;  %v12492_v27 = vld [vmem:[%s14713_s3 + $0x6c4] ss:$48 sps:$4 sm:$0xff]   ;;  %p14031_p2 = scmp.lt.s32.totalorder %s16816_s9, %s16816_s9 }
 0x1d6   : > { %v12489_v24 = vld [vmem:[%s14713_s3 + $0x5a8] ss:$48 sps:$4 sm:$0xff]   ;;  %v12495_v25 = vld [vmem:[%s14713_s3 + $0x60c] ss:$48 sps:$4 sm:$0xff]   ;;  %v12490_v30 = vld [vmem:[%s14713_s3 + $0x6c0] ss:$48 sps:$4 sm:$0xff]  }
 0x1d7   : > { %v12493_v28 = vld [vmem:[%s14713_s3 + $0x608] ss:$48 sps:$4 sm:$0xff]   ;;  %v12501_v29 = vld [vmem:[%s14713_s3 + $0x66c] ss:$48 sps:$4 sm:$0xff]   ;;  %v12498_v31 = vld [vmem:[%s14713_s3 + $0x724] ss:$48 sps:$4 sm:$0xff]  }
 0x1d8   : > { %3338 = vmatpush1.bf16.msra.mxu0 %v12422_v40  ;;  %3444 = vmatpush1.bf16.msra.mxu1 %v12435_v45  ;;  %v12499_v32 = vld [vmem:[%s14713_s3 + $0x668] ss:$48 sps:$4 sm:$0xff]   ;;  %v12507_v33 = vld [vmem:[%s14713_s3 + $0x6cc] ss:$48 sps:$4 sm:$0xff]   ;;  %v12496_v34 = vld [vmem:[%s14713_s3 + $0x720] ss:$48 sps:$4 sm:$0xff]  }
 0x1d9   : > { %3339 = vmatprep.subr.bf16.mxu0 %v12424_v41  ;;  %3445 = vmatprep.subr.bf16.mxu1 %v12438_v47  ;;  %v12504_v35 = vld [vmem:[%s14713_s3 + $0x784] ss:$48 sps:$4 sm:$0xff]   ;;  %v12505_v36 = vld [vmem:[%s14713_s3 + $0x6c8] ss:$48 sps:$4 sm:$0xff]   ;;  %v12513_v37 = vld [vmem:[%s14713_s3 + $0x72c] ss:$48 sps:$4 sm:$0xff]  }
 0x1da   : > { %v12502_v38 = vld [vmem:[%s14713_s3 + $0x780] ss:$48 sps:$4 sm:$0xff]   ;;  %v12510_v39 = vld [vmem:[%s14713_s3 + $0x7e4] ss:$48 sps:$4 sm:$0xff]   ;;  %v12511_v40 = vld [vmem:[%s14713_s3 + $0x728] ss:$48 sps:$4 sm:$0xff]  }
 0x1db   : > { %v942_v41 = vld [vmem:[#allocation28 + $0x48] sm:$0xff]  ;;  %v941_v43 = vld [vmem:[#allocation28 + $0x40] sm:$0xff]  ;;  %p12326_p1 = scmp.eq.s32.totalorder %s14491_s16, 1  ;;  %s14024_s14 = scalar_lea.vmem %s16816_s9, 2048 }
 0x1dc   : > { %3340 = vmatpush1.bf16.msra.mxu0 %v12428_v44  ;;  %3446 = vmatpush1.bf16.msra.mxu1 %v12441_v50  ;;  %v946_v42 = vld [vmem:[#allocation28 + $0x68] sm:$0xff]  ;;  %v945_v44 = vld [vmem:[#allocation28 + $0x60] sm:$0xff]  ;;  %p14025_p10 = scmp.ne.s32.totalorder %s16816_s9, %s14024_s14  ;;  %p14032_p12 = scmp.lt.s32.totalorder %s14024_s14, %s14024_s14 }
 0x1dd   : > { %3341 = vmatprep.subr.bf16.mxu0 %v12430_v46  ;;  %3447 = vmatprep.subr.bf16.mxu1 %v12444_v51  ;;  %v12519_v45 = vld [vmem:[%s14713_s3 + $0x78c] ss:$48 sps:$4 sm:$0xff]   ;;  %v14860_v46 = vpack.c.bf16 %v946_v42, %v942_v41  ;;  %v14862_v47 = vpack.c.bf16 %v945_v44, %v941_v43  ;;  %v12517_v50 = vld [vmem:[%s14713_s3 + $0x788] ss:$48 sps:$4 sm:$0xff]   ;;  %v12528_v61 = vld [vmem:[%s14713_s3 + $0x904] ss:$48 sps:$4 sm:$0xff]  }
 0x1de   : > { %v12525_v51 = vld [vmem:[%s14713_s3 + $0x7ec] ss:$48 sps:$4 sm:$0xff]   ;;  %v12529_v60 = vld [vmem:[%s14713_s3 + $0x848] ss:$48 sps:$4 sm:$0xff]   ;;  %v12558_v17 = vld [vmem:[%s14713_s3 + $0xae4] ss:$48 sps:$4 sm:$0xff]   ;;  %p14026_p11 = pnand %p14025_p10, %p12326_p1  ;;  %p14033_p6 = por %p14032_p12, %p14031_p2 }
 0x1df   : > { %v12559_v18 = vld [vmem:[%s14713_s3 + $0xa28] ss:$48 sps:$4 sm:$0xff]   ;;  %v12583_v42 = vld [vmem:[%s14713_s3 + $0x70] ss:$48 sps:$4 sm:$0xff]   ;;  %v12591_v43 = vld [vmem:[%s14713_s3 + $0x1c] ss:$48 sps:$4 sm:$0xff]  }
 0x1e0   : > { %3342 = vmatpush1.bf16.msra.mxu0 %v12434_v48  ;;  %3448 = vmatpush1.bf16.msra.mxu1 %v12447_v53  ;;  %v12508_v48 = vld [vmem:[%s14713_s3 + $0x7e0] ss:$48 sps:$4 sm:$0xff]   ;;  %v943_v44 = vld [vmem:[#allocation28 + $0x50] sm:$0xff]  ;;  %p14027_p13 = pneg %p14026_p11 }
 0x1e1   : > { %3343 = vmatprep.subr.bf16.mxu0 %v12436_v49  ;;  %3449 = vmatprep.subr.bf16.mxu1 %v12450_v55  ;;  %v12516_v49 = vld [vmem:[%s14713_s3 + $0x844] ss:$48 sps:$4 sm:$0xff]  }
 0x1e2   : > { %v940_v53 = vld [vmem:[#allocation28 + $0x38] sm:$0xff]  ;;  %p14034_p3 = pnand %p14033_p6, %p14027_p13 }
 0x1e4   : > { %3344 = vmatpush1.bf16.msra.mxu0 %v12440_v52  ;;  %3450 = vmatpush1.bf16.msra.mxu1 %v12453_v58  ;;  %v936_v52 = vld [vmem:[#allocation28 + $0x18] sm:$0xff]  ;;  %v12531_v58 = vld [vmem:[%s14713_s3 + $0x84c] ss:$48 sps:$4 sm:$0xff]  }
 0x1e5   : > { %3345 = vmatprep.subr.bf16.mxu0 %v12442_v54  ;;  %3451 = vmatprep.subr.bf16.mxu1 %v12456_v59  ;;  %v12514_v54 = vld [vmem:[%s14713_s3 + $0x840] ss:$48 sps:$4 sm:$0xff]   ;;  %v14873_v55 = vpack.c.bf16 %v940_v53, %v936_v52  ;;  %v12594_v53 = vld [vmem:[%s14713_s3 + $0x134] ss:$48 sps:$4 sm:$0xff]  }
 0x1e6   : > { %v12520_v59 = vld [vmem:[%s14713_s3 + $0x8a0] ss:$48 sps:$4 sm:$0xff]  }
 0x1e7   : > { %v12586_v52 = vld [vmem:[%s14713_s3 + $0xd0] ss:$48 sps:$4 sm:$0xff]  }
 0x1e8   : > { %3346 = vmatpush1.bf16.msra.mxu0 %v12446_v56  ;;  %3452 = vmatpush1.bf16.msra.mxu1 %v12459_v1  ;;  %v12522_v56 = vld [vmem:[%s14713_s3 + $0x8a4] ss:$48 sps:$4 sm:$0xff]  }
 0x1e9   : > { %3347 = vmatprep.subr.bf16.mxu0 %v12448_v57  ;;  %3453 = vmatprep.subr.bf16.mxu1 %v12462_v2  ;;  %v12523_v57 = vld [vmem:[%s14713_s3 + $0x7e8] ss:$48 sps:$4 sm:$0xff]   ;;  %v12534_v1 = vld [vmem:[%s14713_s3 + $0x964] ss:$48 sps:$4 sm:$0xff]  }
 0x1ea   : > { %v12535_v2 = vld [vmem:[%s14713_s3 + $0x8a8] ss:$48 sps:$4 sm:$0xff]  }
 0x1ec   : > { %3348 = vmatpush1.bf16.msra.mxu0 %v12452_v63  ;;  %3454 = vmatpush1.bf16.msra.mxu1 %v12465_v5  ;;  %v12537_v63 = vld [vmem:[%s14713_s3 + $0x8ac] ss:$48 sps:$4 sm:$0xff]   ;;  %v12540_v5 = vld [vmem:[%s14713_s3 + $0x9c4] ss:$48 sps:$4 sm:$0xff]  }
 0x1ed   : > { %3349 = vmatprep.subr.bf16.mxu0 %v12454_v0  ;;  %3455 = vmatprep.subr.bf16.mxu1 %v12468_v6  ;;  %v12526_v0 = vld [vmem:[%s14713_s3 + $0x900] ss:$48 sps:$4 sm:$0xff]   ;;  %v12541_v6 = vld [vmem:[%s14713_s3 + $0x908] ss:$48 sps:$4 sm:$0xff]  }
 0x1f0   : > { %3350 = vmatpush1.bf16.msra.mxu0 %v12458_v3  ;;  %3456 = vmatpush1.bf16.msra.mxu1 %v12471_v9  ;;  %v12543_v3 = vld [vmem:[%s14713_s3 + $0x90c] ss:$48 sps:$4 sm:$0xff]   ;;  %v12546_v9 = vld [vmem:[%s14713_s3 + $0xa24] ss:$48 sps:$4 sm:$0xff]  }
 0x1f1   : > { %3351 = vmatprep.subr.bf16.mxu0 %v12460_v4  ;;  %3457 = vmatprep.subr.bf16.mxu1 %v12474_v10  ;;  %v12532_v4 = vld [vmem:[%s14713_s3 + $0x960] ss:$48 sps:$4 sm:$0xff]   ;;  %v12547_v10 = vld [vmem:[%s14713_s3 + $0x968] ss:$48 sps:$4 sm:$0xff]  }
 0x1f4   : > { %3352 = vmatpush1.bf16.msra.mxu0 %v12464_v7  ;;  %3458 = vmatpush1.bf16.msra.mxu1 %v12477_v13  ;;  %v12549_v7 = vld [vmem:[%s14713_s3 + $0x96c] ss:$48 sps:$4 sm:$0xff]   ;;  %v12552_v13 = vld [vmem:[%s14713_s3 + $0xa84] ss:$48 sps:$4 sm:$0xff]  }
 0x1f5   : > { %3353 = vmatprep.subr.bf16.mxu0 %v12466_v8  ;;  %3459 = vmatprep.subr.bf16.mxu1 %v12481_v14  ;;  %v12538_v8 = vld [vmem:[%s14713_s3 + $0x9c0] ss:$48 sps:$4 sm:$0xff]   ;;  %v12553_v14 = vld [vmem:[%s14713_s3 + $0x9c8] ss:$48 sps:$4 sm:$0xff]  }
 0x1f8   : > { %3354 = vmatpush1.bf16.msra.mxu0 %v12470_v11  ;;  %3460 = vmatpush1.bf16.msra.mxu1 %v12483_v19  ;;  %v12555_v11 = vld [vmem:[%s14713_s3 + $0x9cc] ss:$48 sps:$4 sm:$0xff]  }
 0x1f9   : > { %3355 = vmatprep.subr.bf16.mxu0 %v12472_v12  ;;  %3461 = vmatprep.subr.bf16.mxu1 %v12487_v20  ;;  %v12544_v12 = vld [vmem:[%s14713_s3 + $0xa20] ss:$48 sps:$4 sm:$0xff]   ;;  %v12567_v19 = vld [vmem:[%s14713_s3 + $0xa8c] ss:$48 sps:$4 sm:$0xff]  }
 0x1fa   : > { %v12556_v20 = vld [vmem:[%s14713_s3 + $0xae0] ss:$48 sps:$4 sm:$0xff]  }
 0x1fc   : > { %3356 = vmatpush1.bf16.msra.mxu0 %v12476_v15  ;;  %3462 = vmatpush1.bf16.msra.mxu1 %v12489_v24  ;;  %v12561_v15 = vld [vmem:[%s14713_s3 + $0xa2c] ss:$48 sps:$4 sm:$0xff]  }
 0x1fd   : > { %3378 = vmatprep.subr.bf16.mxu0 %v12480_v16  ;;  %3484 = vmatprep.subr.bf16.mxu1 %v12495_v25  ;;  %v12550_v16 = vld [vmem:[%s14713_s3 + $0xa80] ss:$48 sps:$4 sm:$0xff]   ;;  %v12573_v24 = vld [vmem:[%s14713_s3 + $0xaec] ss:$48 sps:$4 sm:$0xff]  }
 0x1fe   : > { %v12562_v25 = vld [vmem:[%s14713_s3 + $0xb40] ss:$48 sps:$4 sm:$0xff]  }
 0x1ff   : > { %3358 = vmatmul.mubr.bf16.vlgmr.msra.gmra.mrb[0].mxu0 %v14837_v22  ;;  %3464 = vmatmul.mubr.bf16.vlgmr.msra.gmra.mrb[0].mxu1 %v14837_v22 }
 0x200   : > { %3379 = vmatpush1.bf16.msra.mxu0 %v12478_v21  ;;  %3485 = vmatpush1.bf16.msra.mxu1 %v12493_v28  ;;  %v12564_v21 = vld [vmem:[%s14713_s3 + $0xb44] ss:$48 sps:$4 sm:$0xff]   ;;  %v12576_v28 = vld [vmem:[%s14713_s3 + $0xb4c] ss:$48 sps:$4 sm:$0xff]  }
 0x201   : > { %3380 = vmatprep.subr.bf16.mxu0 %v12486_v23  ;;  %3486 = vmatprep.subr.bf16.mxu1 %v12501_v29  ;;  %v12565_v23 = vld [vmem:[%s14713_s3 + $0xa88] ss:$48 sps:$4 sm:$0xff]   ;;  %v12568_v29 = vld [vmem:[%s14713_s3 + $0xba0] ss:$48 sps:$4 sm:$0xff]  }
 0x202   : > { %3367 = vmatprep.mubr.bf16.mxu0 %v14860_v46  ;;  %3473 = vmatprep.mubr.bf16.mxu1 %v14860_v46 }
 0x204   : > { %3381 = vmatpush1.bf16.msra.mxu0 %v12484_v26  ;;  %3487 = vmatpush1.bf16.msra.mxu1 %v12499_v32  ;;  %v12570_v26 = vld [vmem:[%s14713_s3 + $0xba4] ss:$48 sps:$4 sm:$0xff]   ;;  %v12574_v32 = vld [vmem:[%s14713_s3 + $0xb48] ss:$48 sps:$4 sm:$0xff]  }
 0x205   : > { %3382 = vmatprep.subr.bf16.mxu0 %v12492_v27  ;;  %3488 = vmatprep.subr.bf16.mxu1 %v12507_v33  ;;  %v12571_v27 = vld [vmem:[%s14713_s3 + $0xae8] ss:$48 sps:$4 sm:$0xff]   ;;  %v12579_v33 = vld [vmem:[%s14713_s3 + $0x14] ss:$48 sps:$4 sm:$0xff]  }
 0x207   : > { %3368 = vmatmul.mubr.bf16.gmra.mrb[4].mxu0 %v14862_v47  ;;  %3474 = vmatmul.mubr.bf16.gmra.mrb[4].mxu1 %v14862_v47 }
 0x208   : > { %3383 = vmatpush1.bf16.msra.mxu0 %v12490_v30  ;;  %3489 = vmatpush1.bf16.msra.mxu1 %v12505_v36  ;;  %v935_v30 = vld [vmem:[#allocation28 + $0x10] sm:$0xff]  ;;  %v948_v36 = vld [vmem:[#allocation28 + $0x78] sm:$0xff] }
 0x209   : > { %3384 = vmatprep.subr.bf16.mxu0 %v12498_v31  ;;  %3490 = vmatprep.subr.bf16.mxu1 %v12513_v37  ;;  %v939_v31 = vld [vmem:[#allocation28 + $0x30] sm:$0xff] }
 0x20a   : > { %3410 = vmatprep.mubr.bf16.mxu0 %v14873_v55  ;;  %3516 = vmatprep.mubr.bf16.mxu1 %v14873_v55  ;;  %v14916_v37 = vpack.c.bf16 %v939_v31, %v935_v30  ;;  %v12657_v30 = vld [vmem:[%s14713_s3 + $0x43c] ss:$48 sps:$4 sm:$0xff]   ;;  %v12646_v31 = vld [vmem:[%s14713_s3 + $0x490] ss:$48 sps:$4 sm:$0xff]  }
 0x20c   : > { %3385 = vmatpush1.bf16.msra.mxu0 %v12496_v34  ;;  %3491 = vmatpush1.bf16.msra.mxu1 %v12511_v40  ;;  %v12582_v34 = vld [vmem:[%s14713_s3 + $0xbac] ss:$48 sps:$4 sm:$0xff]   ;;  %v12585_v40 = vld [vmem:[%s14713_s3 + $0x74] ss:$48 sps:$4 sm:$0xff]  }
 0x20d   : > { %3386 = vmatprep.subr.bf16.mxu0 %v12504_v35  ;;  %3492 = vmatprep.subr.bf16.mxu1 %v12519_v45  ;;  %v944_v35 = vld [vmem:[#allocation28 + $0x58] sm:$0xff]  ;;  %v947_v45 = vld [vmem:[#allocation28 + $0x70] sm:$0xff] }
 0x20e   : > { %v14921_v41 = vpack.c.bf16 %v948_v36, %v944_v35  ;;  %v12652_v35 = vld [vmem:[%s14713_s3 + $0x4f0] ss:$48 sps:$4 sm:$0xff]   ;;  %v12660_v36 = vld [vmem:[%s14713_s3 + $0x554] ss:$48 sps:$4 sm:$0xff]  }
 0x210   : > { %3387 = vmatpush1.bf16.msra.mxu0 %v12502_v38  ;;  %3493 = vmatpush1.bf16.msra.mxu1 %v12517_v50  ;;  %v12577_v38 = vld [vmem:[%s14713_s3 + $0x10] ss:$48 sps:$4 sm:$0xff]   ;;  %v12597_v50 = vld [vmem:[%s14713_s3 + $0x7c] ss:$48 sps:$4 sm:$0xff]  }
 0x211   : > { %3388 = vmatprep.subr.bf16.mxu0 %v12510_v39  ;;  %3494 = vmatprep.subr.bf16.mxu1 %v12525_v51  ;;  %v12580_v39 = vld [vmem:[%s14713_s3 + $0xba8] ss:$48 sps:$4 sm:$0xff]   ;;  %v14930_v51 = vpack.c.bf16 %v947_v45, %v943_v44  ;;  %v12675_v44 = vld [vmem:[%s14713_s3 + $0x55c] ss:$48 sps:$4 sm:$0xff]   ;;  %v12664_v45 = vld [vmem:[%s14713_s3 + $0x5b0] ss:$48 sps:$4 sm:$0xff]  }
 0x214   : > { %3389 = vmatpush1.bf16.msra.mxu0 %v12508_v48  ;;  %3495 = vmatpush1.bf16.msra.mxu1 %v12523_v57  ;;  %v12588_v48 = vld [vmem:[%s14713_s3 + $0xd4] ss:$48 sps:$4 sm:$0xff]   ;;  %v12592_v57 = vld [vmem:[%s14713_s3 + $0x130] ss:$48 sps:$4 sm:$0xff]  }
 0x215   : > { %3390 = vmatprep.subr.bf16.mxu0 %v12516_v49  ;;  %3496 = vmatprep.subr.bf16.mxu1 %v12531_v58  ;;  %v12589_v49 = vld [vmem:[%s14713_s3 + $0x18] ss:$48 sps:$4 sm:$0xff]   ;;  %v12600_v58 = vld [vmem:[%s14713_s3 + $0x194] ss:$48 sps:$4 sm:$0xff]  }
 0x218   : > { %3391 = vmatpush1.bf16.msra.mxu0 %v12514_v54  ;;  %3497 = vmatpush1.bf16.msra.mxu1 %v12529_v60  ;;  %v12595_v54 = vld [vmem:[%s14713_s3 + $0x78] ss:$48 sps:$4 sm:$0xff]   ;;  %v12609_v60 = vld [vmem:[%s14713_s3 + $0x13c] ss:$48 sps:$4 sm:$0xff]  }
 0x219   : > { %3392 = vmatprep.subr.bf16.mxu0 %v12522_v56  ;;  %3498 = vmatprep.subr.bf16.mxu1 %v12537_v63  ;;  %v12603_v56 = vld [vmem:[%s14713_s3 + $0xdc] ss:$48 sps:$4 sm:$0xff]   ;;  %v12606_v63 = vld [vmem:[%s14713_s3 + $0x1f4] ss:$48 sps:$4 sm:$0xff]  }
 0x21c   : > { %3393 = vmatpush1.bf16.msra.mxu0 %v12520_v59  ;;  %3499 = vmatpush1.bf16.msra.mxu1 %v12535_v2  ;;  %v12601_v59 = vld [vmem:[%s14713_s3 + $0xd8] ss:$48 sps:$4 sm:$0xff]   ;;  %v12604_v2 = vld [vmem:[%s14713_s3 + $0x1f0] ss:$48 sps:$4 sm:$0xff]  }
 0x21d   : > { %3394 = vmatprep.subr.bf16.mxu0 %v12528_v61  ;;  %3500 = vmatprep.subr.bf16.mxu1 %v12543_v3  ;;  %v12598_v61 = vld [vmem:[%s14713_s3 + $0x190] ss:$48 sps:$4 sm:$0xff]   ;;  %v12612_v3 = vld [vmem:[%s14713_s3 + $0x254] ss:$48 sps:$4 sm:$0xff]  }
 0x220   : > { %3395 = vmatpush1.bf16.msra.mxu0 %v12526_v0  ;;  %3501 = vmatpush1.bf16.msra.mxu1 %v12541_v6  ;;  %v12607_v0 = vld [vmem:[%s14713_s3 + $0x138] ss:$48 sps:$4 sm:$0xff]   ;;  %v12610_v6 = vld [vmem:[%s14713_s3 + $0x250] ss:$48 sps:$4 sm:$0xff]  }
 0x221   : > { %3396 = vmatprep.subr.bf16.mxu0 %v12534_v1  ;;  %3502 = vmatprep.subr.bf16.mxu1 %v12549_v7  ;;  %v12615_v1 = vld [vmem:[%s14713_s3 + $0x19c] ss:$48 sps:$4 sm:$0xff]   ;;  %v12618_v7 = vld [vmem:[%s14713_s3 + $0x2b4] ss:$48 sps:$4 sm:$0xff]  }
 0x224   : > { %3397 = vmatpush1.bf16.msra.mxu0 %v12532_v4  ;;  %3503 = vmatpush1.bf16.msra.mxu1 %v12547_v10  ;;  %v12613_v4 = vld [vmem:[%s14713_s3 + $0x198] ss:$48 sps:$4 sm:$0xff]   ;;  %v12616_v10 = vld [vmem:[%s14713_s3 + $0x2b0] ss:$48 sps:$4 sm:$0xff]  }
 0x225   : > { %3398 = vmatprep.subr.bf16.mxu0 %v12540_v5  ;;  %3504 = vmatprep.subr.bf16.mxu1 %v12555_v11  ;;  %v12621_v5 = vld [vmem:[%s14713_s3 + $0x1fc] ss:$48 sps:$4 sm:$0xff]   ;;  %v12624_v11 = vld [vmem:[%s14713_s3 + $0x314] ss:$48 sps:$4 sm:$0xff]  }
 0x228   : > { %3399 = vmatpush1.bf16.msra.mxu0 %v12538_v8  ;;  %3505 = vmatpush1.bf16.msra.mxu1 %v12553_v14  ;;  %v12619_v8 = vld [vmem:[%s14713_s3 + $0x1f8] ss:$48 sps:$4 sm:$0xff]   ;;  %v12622_v14 = vld [vmem:[%s14713_s3 + $0x310] ss:$48 sps:$4 sm:$0xff]  }
 0x229   : > { %3400 = vmatprep.subr.bf16.mxu0 %v12546_v9  ;;  %3506 = vmatprep.subr.bf16.mxu1 %v12561_v15  ;;  %v12627_v9 = vld [vmem:[%s14713_s3 + $0x25c] ss:$48 sps:$4 sm:$0xff]   ;;  %v12630_v15 = vld [vmem:[%s14713_s3 + $0x374] ss:$48 sps:$4 sm:$0xff]  }
 0x22c   : > { %3401 = vmatpush1.bf16.msra.mxu0 %v12544_v12  ;;  %3507 = vmatpush1.bf16.msra.mxu1 %v12559_v18  ;;  %v12625_v12 = vld [vmem:[%s14713_s3 + $0x258] ss:$48 sps:$4 sm:$0xff]   ;;  %v12628_v18 = vld [vmem:[%s14713_s3 + $0x370] ss:$48 sps:$4 sm:$0xff]  }
 0x22d   : > { %3402 = vmatprep.subr.bf16.mxu0 %v12552_v13  ;;  %3508 = vmatprep.subr.bf16.mxu1 %v12567_v19  ;;  %v12633_v13 = vld [vmem:[%s14713_s3 + $0x2bc] ss:$48 sps:$4 sm:$0xff]   ;;  %v12636_v19 = vld [vmem:[%s14713_s3 + $0x3d4] ss:$48 sps:$4 sm:$0xff]  }
 0x230   : > { %3403 = vmatpush1.bf16.msra.mxu0 %v12550_v16  ;;  %3509 = vmatpush1.bf16.msra.mxu1 %v12565_v23  ;;  %v12631_v16 = vld [vmem:[%s14713_s3 + $0x2b8] ss:$48 sps:$4 sm:$0xff]   ;;  %v12634_v23 = vld [vmem:[%s14713_s3 + $0x3d0] ss:$48 sps:$4 sm:$0xff]  }
 0x231   : > { %3404 = vmatprep.subr.bf16.mxu0 %v12558_v17  ;;  %3510 = vmatprep.subr.bf16.mxu1 %v12573_v24  ;;  %v12639_v17 = vld [vmem:[%s14713_s3 + $0x31c] ss:$48 sps:$4 sm:$0xff]   ;;  %v12642_v24 = vld [vmem:[%s14713_s3 + $0x434] ss:$48 sps:$4 sm:$0xff]  }
 0x234   : > { %3405 = vmatpush1.bf16.msra.mxu0 %v12556_v20  ;;  %3511 = vmatpush1.bf16.msra.mxu1 %v12571_v27  ;;  %v12637_v20 = vld [vmem:[%s14713_s3 + $0x318] ss:$48 sps:$4 sm:$0xff]   ;;  %v12640_v27 = vld [vmem:[%s14713_s3 + $0x430] ss:$48 sps:$4 sm:$0xff]  }
 0x235   : > { %3406 = vmatprep.subr.bf16.mxu0 %v12564_v21  ;;  %3512 = vmatprep.subr.bf16.mxu1 %v12576_v28  ;;  %v12645_v21 = vld [vmem:[%s14713_s3 + $0x37c] ss:$48 sps:$4 sm:$0xff]   ;;  %v12648_v28 = vld [vmem:[%s14713_s3 + $0x494] ss:$48 sps:$4 sm:$0xff]  }
 0x238   : > { %3407 = vmatpush1.bf16.msra.mxu0 %v12562_v25  ;;  %3513 = vmatpush1.bf16.msra.mxu1 %v12574_v32  ;;  %v12643_v25 = vld [vmem:[%s14713_s3 + $0x378] ss:$48 sps:$4 sm:$0xff]   ;;  %v12654_v32 = vld [vmem:[%s14713_s3 + $0x4f4] ss:$48 sps:$4 sm:$0xff]  }
 0x239   : > { %3408 = vmatprep.subr.bf16.mxu0 %v12570_v26  ;;  %3514 = vmatprep.subr.bf16.mxu1 %v12582_v34  ;;  %v12651_v26 = vld [vmem:[%s14713_s3 + $0x3dc] ss:$48 sps:$4 sm:$0xff]  }
 0x23a   : > { %v12663_v34 = vld [vmem:[%s14713_s3 + $0x49c] ss:$48 sps:$4 sm:$0xff]  }
 0x23c   : > { %3409 = vmatpush1.bf16.msra.mxu0 %v12568_v29  ;;  %3515 = vmatpush1.bf16.msra.mxu1 %v12580_v39  ;;  %v12649_v29 = vld [vmem:[%s14713_s3 + $0x3d8] ss:$48 sps:$4 sm:$0xff]   ;;  %v12669_v39 = vld [vmem:[%s14713_s3 + $0x4fc] ss:$48 sps:$4 sm:$0xff]  }
 0x23d   : > { %3537 = vmatprep.subr.bf16.mxu0 %v12579_v33  ;;  %3643 = vmatprep.subr.bf16.mxu1 %v12591_v43  ;;  %v12655_v33 = vld [vmem:[%s14713_s3 + $0x438] ss:$48 sps:$4 sm:$0xff]  }
 0x23e   : > { %v12667_v43 = vld [vmem:[%s14713_s3 + $0x4f8] ss:$48 sps:$4 sm:$0xff]  }
 0x23f   : > { %3411 = vmatmul.mubr.bf16.vlgmr.msra.gmra.mrb[0].mxu0 %v14916_v37  ;;  %3517 = vmatmul.mubr.bf16.vlgmr.msra.gmra.mrb[0].mxu1 %v14916_v37 }
 0x240   : > { %3538 = vmatpush1.bf16.msra.mxu0 %v12577_v38  ;;  %3420 = vmatprep.mubr.bf16.mxu0 %v14921_v41  ;;  %v12661_v38 = vld [vmem:[%s14713_s3 + $0x498] ss:$48 sps:$4 sm:$0xff]  }
 0x241   : > { %3539 = vmatprep.subr.bf16.mxu0 %v12585_v40  ;;  %3644 = vmatpush1.bf16.msra.mxu1 %v12589_v49  ;;  %v12658_v40 = vld [vmem:[%s14713_s3 + $0x550] ss:$48 sps:$4 sm:$0xff]   ;;  %v12673_v49 = vld [vmem:[%s14713_s3 + $0x558] ss:$48 sps:$4 sm:$0xff]  }
 0x242   : > { %3645 = vmatprep.subr.bf16.mxu1 %v12597_v50  ;;  %3526 = vmatprep.mubr.bf16.mxu1 %v14921_v41  ;;  %v12681_v50 = vld [vmem:[%s14713_s3 + $0x5bc] ss:$48 sps:$4 sm:$0xff]  }
 0x244   : > { %3540 = vmatpush1.bf16.msra.mxu0 %v12583_v42  ;;  %v12666_v42 = vld [vmem:[%s14713_s3 + $0x5b4] ss:$48 sps:$4 sm:$0xff]  }
 0x245   : > { %3541 = vmatprep.subr.bf16.mxu0 %v12588_v48  ;;  %3646 = vmatpush1.bf16.msra.mxu1 %v12595_v54  ;;  %v12672_v48 = vld [vmem:[%s14713_s3 + $0x614] ss:$48 sps:$4 sm:$0xff]   ;;  %v12679_v54 = vld [vmem:[%s14713_s3 + $0x5b8] ss:$48 sps:$4 sm:$0xff]  }
 0x246   : > { %3647 = vmatprep.subr.bf16.mxu1 %v12603_v56  ;;  %v12687_v56 = vld [vmem:[%s14713_s3 + $0x61c] ss:$48 sps:$4 sm:$0xff]  }
 0x247   : > { %3421 = vmatmul.mubr.bf16.gmra.mrb[4].mxu0 %v14930_v51  ;;  %3527 = vmatmul.mubr.bf16.gmra.mrb[4].mxu1 %v14930_v51 }
 0x248   : > { %3542 = vmatpush1.bf16.msra.mxu0 %v12586_v52  ;;  %3569 = vmatprep.mubr.bf16.mxu0 %v14812_v62  ;;  %v12670_v52 = vld [vmem:[%s14713_s3 + $0x610] ss:$48 sps:$4 sm:$0xff]  }
 0x249   : > { %3543 = vmatprep.subr.bf16.mxu0 %v12594_v53  ;;  %3648 = vmatpush1.bf16.msra.mxu1 %v12601_v59  ;;  %v12678_v53 = vld [vmem:[%s14713_s3 + $0x674] ss:$48 sps:$4 sm:$0xff]   ;;  %v12685_v59 = vld [vmem:[%s14713_s3 + $0x618] ss:$48 sps:$4 sm:$0xff]  }
 0x24a   : > { %3649 = vmatprep.subr.bf16.mxu1 %v12609_v60  ;;  %3675 = vmatprep.mubr.bf16.mxu1 %v14812_v62  ;;  %v12693_v60 = vld [vmem:[%s14713_s3 + $0x67c] ss:$48 sps:$4 sm:$0xff]  }
 0x24c   : > { %3544 = vmatpush1.bf16.msra.mxu0 %v12592_v57  ;;  %v12676_v57 = vld [vmem:[%s14713_s3 + $0x670] ss:$48 sps:$4 sm:$0xff]  }
 0x24d   : > { %3545 = vmatprep.subr.bf16.mxu0 %v12600_v58  ;;  %3650 = vmatpush1.bf16.msra.mxu1 %v12607_v0  ;;  %v12684_v58 = vld [vmem:[%s14713_s3 + $0x6d4] ss:$48 sps:$4 sm:$0xff]   ;;  %v12691_v0 = vld [vmem:[%s14713_s3 + $0x678] ss:$48 sps:$4 sm:$0xff]  }
 0x24e   : > { %3651 = vmatprep.subr.bf16.mxu1 %v12615_v1  ;;  %v12699_v1 = vld [vmem:[%s14713_s3 + $0x6dc] ss:$48 sps:$4 sm:$0xff]  }
 0x250   : > { %3546 = vmatpush1.bf16.msra.mxu0 %v12598_v61  ;;  %v12682_v61 = vld [vmem:[%s14713_s3 + $0x6d0] ss:$48 sps:$4 sm:$0xff]  }
 0x251   : > { %3547 = vmatprep.subr.bf16.mxu0 %v12606_v63  ;;  %3652 = vmatpush1.bf16.msra.mxu1 %v12613_v4  ;;  %v12690_v63 = vld [vmem:[%s14713_s3 + $0x734] ss:$48 sps:$4 sm:$0xff]   ;;  %v12697_v4 = vld [vmem:[%s14713_s3 + $0x6d8] ss:$48 sps:$4 sm:$0xff]  }
 0x252   : > { %3653 = vmatprep.subr.bf16.mxu1 %v12621_v5  ;;  %v12705_v5 = vld [vmem:[%s14713_s3 + $0x73c] ss:$48 sps:$4 sm:$0xff]  }
 0x254   : > { %3548 = vmatpush1.bf16.msra.mxu0 %v12604_v2  ;;  %v12688_v2 = vld [vmem:[%s14713_s3 + $0x730] ss:$48 sps:$4 sm:$0xff]  }
 0x255   : > { %3549 = vmatprep.subr.bf16.mxu0 %v12612_v3  ;;  %3654 = vmatpush1.bf16.msra.mxu1 %v12619_v8  ;;  %v12696_v3 = vld [vmem:[%s14713_s3 + $0x794] ss:$48 sps:$4 sm:$0xff]   ;;  %v12703_v8 = vld [vmem:[%s14713_s3 + $0x738] ss:$48 sps:$4 sm:$0xff]  }
 0x256   : > { %3655 = vmatprep.subr.bf16.mxu1 %v12627_v9  ;;  %v12711_v9 = vld [vmem:[%s14713_s3 + $0x79c] ss:$48 sps:$4 sm:$0xff]  }
 0x258   : > { %3550 = vmatpush1.bf16.msra.mxu0 %v12610_v6  ;;  %v12694_v6 = vld [vmem:[%s14713_s3 + $0x790] ss:$48 sps:$4 sm:$0xff]  }
 0x259   : > { %3551 = vmatprep.subr.bf16.mxu0 %v12618_v7  ;;  %3656 = vmatpush1.bf16.msra.mxu1 %v12625_v12  ;;  %v12702_v7 = vld [vmem:[%s14713_s3 + $0x7f4] ss:$48 sps:$4 sm:$0xff]   ;;  %v12709_v12 = vld [vmem:[%s14713_s3 + $0x798] ss:$48 sps:$4 sm:$0xff]  }
 0x25a   : > { %3657 = vmatprep.subr.bf16.mxu1 %v12633_v13  ;;  %v12717_v13 = vld [vmem:[%s14713_s3 + $0x7fc] ss:$48 sps:$4 sm:$0xff]  }
 0x25c   : > { %3552 = vmatpush1.bf16.msra.mxu0 %v12616_v10  ;;  %v12700_v10 = vld [vmem:[%s14713_s3 + $0x7f0] ss:$48 sps:$4 sm:$0xff]  }
 0x25d   : > { %3553 = vmatprep.subr.bf16.mxu0 %v12624_v11  ;;  %3658 = vmatpush1.bf16.msra.mxu1 %v12631_v16  ;;  %v12708_v11 = vld [vmem:[%s14713_s3 + $0x854] ss:$48 sps:$4 sm:$0xff]   ;;  %v12715_v16 = vld [vmem:[%s14713_s3 + $0x7f8] ss:$48 sps:$4 sm:$0xff]  }
 0x25e   : > { %3659 = vmatprep.subr.bf16.mxu1 %v12639_v17  ;;  %v12723_v17 = vld [vmem:[%s14713_s3 + $0x85c] ss:$48 sps:$4 sm:$0xff]  }
 0x260   : > { %3554 = vmatpush1.bf16.msra.mxu0 %v12622_v14  ;;  %v12706_v14 = vld [vmem:[%s14713_s3 + $0x850] ss:$48 sps:$4 sm:$0xff]  }
 0x261   : > { %3555 = vmatprep.subr.bf16.mxu0 %v12630_v15  ;;  %3660 = vmatpush1.bf16.msra.mxu1 %v12637_v20  ;;  %v12714_v15 = vld [vmem:[%s14713_s3 + $0x8b4] ss:$48 sps:$4 sm:$0xff]   ;;  %v12721_v20 = vld [vmem:[%s14713_s3 + $0x858] ss:$48 sps:$4 sm:$0xff]  }
 0x262   : > { %3661 = vmatprep.subr.bf16.mxu1 %v12645_v21  ;;  %v12729_v21 = vld [vmem:[%s14713_s3 + $0x8bc] ss:$48 sps:$4 sm:$0xff]  }
 0x264   : > { %3556 = vmatpush1.bf16.msra.mxu0 %v12628_v18  ;;  %v12712_v18 = vld [vmem:[%s14713_s3 + $0x8b0] ss:$48 sps:$4 sm:$0xff]  }
 0x265   : > { %3557 = vmatprep.subr.bf16.mxu0 %v12636_v19  ;;  %3662 = vmatpush1.bf16.msra.mxu1 %v12643_v25  ;;  %v12720_v19 = vld [vmem:[%s14713_s3 + $0x914] ss:$48 sps:$4 sm:$0xff]   ;;  %v12727_v25 = vld [vmem:[%s14713_s3 + $0x8b8] ss:$48 sps:$4 sm:$0xff]  }
 0x266   : > { %3663 = vmatprep.subr.bf16.mxu1 %v12651_v26  ;;  %v12735_v26 = vld [vmem:[%s14713_s3 + $0x91c] ss:$48 sps:$4 sm:$0xff]  }
 0x268   : > { %3558 = vmatpush1.bf16.msra.mxu0 %v12634_v23  ;;  %v12718_v23 = vld [vmem:[%s14713_s3 + $0x910] ss:$48 sps:$4 sm:$0xff]  }
 0x269   : > { %3559 = vmatprep.subr.bf16.mxu0 %v12642_v24  ;;  %3664 = vmatpush1.bf16.msra.mxu1 %v12649_v29  ;;  %v12726_v24 = vld [vmem:[%s14713_s3 + $0x974] ss:$48 sps:$4 sm:$0xff]   ;;  %v12733_v29 = vld [vmem:[%s14713_s3 + $0x918] ss:$48 sps:$4 sm:$0xff]  }
 0x26a   : > { %3665 = vmatprep.subr.bf16.mxu1 %v12657_v30  ;;  %v12741_v30 = vld [vmem:[%s14713_s3 + $0x97c] ss:$48 sps:$4 sm:$0xff]  }
 0x26c   : > { %3560 = vmatpush1.bf16.msra.mxu0 %v12640_v27  ;;  %v12724_v27 = vld [vmem:[%s14713_s3 + $0x970] ss:$48 sps:$4 sm:$0xff]  }
 0x26d   : > { %3561 = vmatprep.subr.bf16.mxu0 %v12648_v28  ;;  %3666 = vmatpush1.bf16.msra.mxu1 %v12655_v33  ;;  %v12732_v28 = vld [vmem:[%s14713_s3 + $0x9d4] ss:$48 sps:$4 sm:$0xff]   ;;  %v12739_v33 = vld [vmem:[%s14713_s3 + $0x978] ss:$48 sps:$4 sm:$0xff]  }
 0x26e   : > { %3667 = vmatprep.subr.bf16.mxu1 %v12663_v34  ;;  %v12747_v34 = vld [vmem:[%s14713_s3 + $0x9dc] ss:$48 sps:$4 sm:$0xff]  }
 0x270   : > { %3562 = vmatpush1.bf16.msra.mxu0 %v12646_v31  ;;  %v12730_v31 = vld [vmem:[%s14713_s3 + $0x9d0] ss:$48 sps:$4 sm:$0xff]  }
 0x271   : > { %3563 = vmatprep.subr.bf16.mxu0 %v12654_v32  ;;  %3668 = vmatpush1.bf16.msra.mxu1 %v12661_v38  ;;  %v12738_v32 = vld [vmem:[%s14713_s3 + $0xa34] ss:$48 sps:$4 sm:$0xff]   ;;  %v12745_v38 = vld [vmem:[%s14713_s3 + $0x9d8] ss:$48 sps:$4 sm:$0xff]  }
 0x272   : > { %3669 = vmatprep.subr.bf16.mxu1 %v12669_v39  ;;  %v12753_v39 = vld [vmem:[%s14713_s3 + $0xa3c] ss:$48 sps:$4 sm:$0xff]  }
 0x274   : > { %3564 = vmatpush1.bf16.msra.mxu0 %v12652_v35  ;;  %v12736_v35 = vld [vmem:[%s14713_s3 + $0xa30] ss:$48 sps:$4 sm:$0xff]  }
 0x275   : > { %3565 = vmatprep.subr.bf16.mxu0 %v12660_v36  ;;  %3670 = vmatpush1.bf16.msra.mxu1 %v12667_v43  ;;  %v12744_v36 = vld [vmem:[%s14713_s3 + $0xa94] ss:$48 sps:$4 sm:$0xff]   ;;  %v12751_v43 = vld [vmem:[%s14713_s3 + $0xa38] ss:$48 sps:$4 sm:$0xff]  }
 0x276   : > { %3671 = vmatprep.subr.bf16.mxu1 %v12675_v44  ;;  %v12759_v44 = vld [vmem:[%s14713_s3 + $0xa9c] ss:$48 sps:$4 sm:$0xff]  }
 0x278   : > { %3566 = vmatpush1.bf16.msra.mxu0 %v12658_v40  ;;  %v12742_v40 = vld [vmem:[%s14713_s3 + $0xa90] ss:$48 sps:$4 sm:$0xff]  }
 0x279   : > { %3567 = vmatprep.subr.bf16.mxu0 %v12666_v42  ;;  %3672 = vmatpush1.bf16.msra.mxu1 %v12673_v49  ;;  %v12750_v42 = vld [vmem:[%s14713_s3 + $0xaf4] ss:$48 sps:$4 sm:$0xff]   ;;  %v12757_v49 = vld [vmem:[%s14713_s3 + $0xa98] ss:$48 sps:$4 sm:$0xff]  }
 0x27a   : > { %3673 = vmatprep.subr.bf16.mxu1 %v12681_v50  ;;  %v12765_v50 = vld [vmem:[%s14713_s3 + $0xafc] ss:$48 sps:$4 sm:$0xff]  }
 0x27c   : > { %3568 = vmatpush1.bf16.msra.mxu0 %v12664_v45  ;;  %v12748_v45 = vld [vmem:[%s14713_s3 + $0xaf0] ss:$48 sps:$4 sm:$0xff]  }
 0x27d   : > { %3590 = vmatprep.subr.bf16.mxu0 %v12672_v48  ;;  %3674 = vmatpush1.bf16.msra.mxu1 %v12679_v54  ;;  %v12756_v48 = vld [vmem:[%s14713_s3 + $0xb54] ss:$48 sps:$4 sm:$0xff]   ;;  %v12763_v54 = vld [vmem:[%s14713_s3 + $0xaf8] ss:$48 sps:$4 sm:$0xff]  }
 0x27e   : > { %3696 = vmatprep.subr.bf16.mxu1 %v12687_v56  ;;  %v12768_v56 = vld [vmem:[%s14713_s3 + $0xb5c] ss:$48 sps:$4 sm:$0xff]  }
 0x27f   : > { %3570 = vmatmul.mubr.bf16.vlgmr.msra.gmra.mrb[8].mxu0 %v14837_v22 }
 0x280   : > { %3591 = vmatpush1.bf16.msra.mxu0 %v12670_v52  ;;  %3579 = vmatprep.mubr.bf16.mxu0 %v14860_v46  ;;  %v12754_v52 = vld [vmem:[%s14713_s3 + $0xb50] ss:$48 sps:$4 sm:$0xff]  }
 0x281   : > { %3592 = vmatprep.subr.bf16.mxu0 %v12678_v53  ;;  %3676 = vmatmul.mubr.bf16.vlgmr.msra.gmra.mrb[8].mxu1 %v14837_v22  ;;  %v12762_v53 = vld [vmem:[%s14713_s3 + $0xbb4] ss:$48 sps:$4 sm:$0xff]  }
 0x282   : > { %3697 = vmatpush1.bf16.msra.mxu1 %v12685_v59  ;;  %3685 = vmatprep.mubr.bf16.mxu1 %v14860_v46  ;;  %v12771_v59 = vld [vmem:[%s14713_s3 + $0xbbc] ss:$48 sps:$4 sm:$0xff]  }
 0x283   : > { %3698 = vmatprep.subr.bf16.mxu1 %v12693_v60  ;;  %v12777_v60 = vld [vmem:[%s14713_s3 + $0x24] ss:$48 sps:$4 sm:$0xff]  }
 0x284   : > { %3593 = vmatpush1.bf16.msra.mxu0 %v12676_v57  ;;  %v12760_v57 = vld [vmem:[%s14713_s3 + $0xbb0] ss:$48 sps:$4 sm:$0xff]  }
 0x285   : > { %3594 = vmatprep.subr.bf16.mxu0 %v12684_v58  ;;  %v12766_v58 = vld [vmem:[%s14713_s3 + $0xb58] ss:$48 sps:$4 sm:$0xff]  }
 0x286   : > { %3699 = vmatpush1.bf16.msra.mxu1 %v12691_v0  ;;  %v12775_v0 = vld [vmem:[%s14713_s3 + $0x20] ss:$48 sps:$4 sm:$0xff]  }
 0x287   : > { %3580 = vmatmul.mubr.bf16.gmra.mrb[12].mxu0 %v14862_v47  ;;  %3700 = vmatprep.subr.bf16.mxu1 %v12699_v1  ;;  %v12783_v1 = vld [vmem:[%s14713_s3 + $0x84] ss:$48 sps:$4 sm:$0xff]  }
 0x288   : > { %3595 = vmatpush1.bf16.msra.mxu0 %v12682_v61  ;;  %3622 = vmatprep.mubr.bf16.mxu0 %v14873_v55  ;;  %v12769_v61 = vld [vmem:[%s14713_s3 + $0xbb8] ss:$48 sps:$4 sm:$0xff]  }
 0x289   : > { %3596 = vmatprep.subr.bf16.mxu0 %v12690_v63  ;;  %3686 = vmatmul.mubr.bf16.gmra.mrb[12].mxu1 %v14862_v47  ;;  %v12774_v63 = vld [vmem:[%s14713_s3 + $0x2c] ss:$48 sps:$4 sm:$0xff]  }
 0x28a   : > { %3701 = vmatpush1.bf16.msra.mxu1 %v12697_v4  ;;  %3728 = vmatprep.mubr.bf16.mxu1 %v14873_v55  ;;  %v12781_v4 = vld [vmem:[%s14713_s3 + $0x80] ss:$48 sps:$4 sm:$0xff]  }
 0x28b   : > { %3702 = vmatprep.subr.bf16.mxu1 %v12705_v5  ;;  %v12778_v5 = vld [vmem:[%s14713_s3 + $0x88] ss:$48 sps:$4 sm:$0xff]  }
 0x28c   : > { %3597 = vmatpush1.bf16.msra.mxu0 %v12688_v2  ;;  %v12772_v2 = vld [vmem:[%s14713_s3 + $0x28] ss:$48 sps:$4 sm:$0xff]  }
 0x28d   : > { %3598 = vmatprep.subr.bf16.mxu0 %v12696_v3  ;;  %v12780_v3 = vld [vmem:[%s14713_s3 + $0x8c] ss:$48 sps:$4 sm:$0xff]  }
 0x28e   : > { %3703 = vmatpush1.bf16.msra.mxu1 %v12703_v8  ;;  %v12787_v8 = vld [vmem:[%s14713_s3 + $0xe0] ss:$48 sps:$4 sm:$0xff]  }
 0x28f   : > { %3704 = vmatprep.subr.bf16.mxu1 %v12711_v9  ;;  %v12795_v9 = vld [vmem:[%s14713_s3 + $0x144] ss:$48 sps:$4 sm:$0xff]  }
 0x290   : > { %3599 = vmatpush1.bf16.msra.mxu0 %v12694_v6  ;;  %v12789_v6 = vld [vmem:[%s14713_s3 + $0xe4] ss:$48 sps:$4 sm:$0xff]  }
 0x291   : > { %3600 = vmatprep.subr.bf16.mxu0 %v12702_v7  ;;  %v12786_v7 = vld [vmem:[%s14713_s3 + $0xec] ss:$48 sps:$4 sm:$0xff]  }
 0x292   : > { %3705 = vmatpush1.bf16.msra.mxu1 %v12709_v12  ;;  %v12793_v12 = vld [vmem:[%s14713_s3 + $0x140] ss:$48 sps:$4 sm:$0xff]  }
 0x293   : > { %3706 = vmatprep.subr.bf16.mxu1 %v12717_v13  ;;  %v12801_v13 = vld [vmem:[%s14713_s3 + $0x1a4] ss:$48 sps:$4 sm:$0xff]  }
 0x294   : > { %3601 = vmatpush1.bf16.msra.mxu0 %v12700_v10  ;;  %v12784_v10 = vld [vmem:[%s14713_s3 + $0xe8] ss:$48 sps:$4 sm:$0xff]  }
 0x295   : > { %3602 = vmatprep.subr.bf16.mxu0 %v12708_v11  ;;  %v12792_v11 = vld [vmem:[%s14713_s3 + $0x14c] ss:$48 sps:$4 sm:$0xff]  }
 0x296   : > { %3707 = vmatpush1.bf16.msra.mxu1 %v12715_v16  ;;  %v12799_v16 = vld [vmem:[%s14713_s3 + $0x1a0] ss:$48 sps:$4 sm:$0xff]  }
 0x297   : > { %3708 = vmatprep.subr.bf16.mxu1 %v12723_v17  ;;  %v12807_v17 = vld [vmem:[%s14713_s3 + $0x204] ss:$48 sps:$4 sm:$0xff]  }
 0x298   : > { %3603 = vmatpush1.bf16.msra.mxu0 %v12706_v14  ;;  %v12790_v14 = vld [vmem:[%s14713_s3 + $0x148] ss:$48 sps:$4 sm:$0xff]  }
 0x299   : > { %3604 = vmatprep.subr.bf16.mxu0 %v12714_v15  ;;  %v12798_v15 = vld [vmem:[%s14713_s3 + $0x1ac] ss:$48 sps:$4 sm:$0xff]  }
 0x29a   : > { %3709 = vmatpush1.bf16.msra.mxu1 %v12721_v20  ;;  %v12805_v20 = vld [vmem:[%s14713_s3 + $0x200] ss:$48 sps:$4 sm:$0xff]  }
 0x29b   : > { %3710 = vmatprep.subr.bf16.mxu1 %v12729_v21  ;;  %v12813_v21 = vld [vmem:[%s14713_s3 + $0x264] ss:$48 sps:$4 sm:$0xff]  }
 0x29c   : > { %3605 = vmatpush1.bf16.msra.mxu0 %v12712_v18  ;;  %v12796_v18 = vld [vmem:[%s14713_s3 + $0x1a8] ss:$48 sps:$4 sm:$0xff]  }
 0x29d   : > { %3606 = vmatprep.subr.bf16.mxu0 %v12720_v19  ;;  %v12804_v19 = vld [vmem:[%s14713_s3 + $0x20c] ss:$48 sps:$4 sm:$0xff]  }
 0x29e   : > { %3711 = vmatpush1.bf16.msra.mxu1 %v12727_v25  ;;  %v12819_v25 = vld [vmem:[%s14713_s3 + $0x2c4] ss:$48 sps:$4 sm:$0xff]  }
 0x29f   : > { %3712 = vmatprep.subr.bf16.mxu1 %v12735_v26  ;;  %v12808_v26 = vld [vmem:[%s14713_s3 + $0x268] ss:$48 sps:$4 sm:$0xff]  }
 0x2a0   : > { %3607 = vmatpush1.bf16.msra.mxu0 %v12718_v23  ;;  %v12802_v23 = vld [vmem:[%s14713_s3 + $0x208] ss:$48 sps:$4 sm:$0xff]  }
 0x2a1   : > { %3608 = vmatprep.subr.bf16.mxu0 %v12726_v24  ;;  %v12810_v24 = vld [vmem:[%s14713_s3 + $0x26c] ss:$48 sps:$4 sm:$0xff]  }
 0x2a2   : > { %3713 = vmatpush1.bf16.msra.mxu1 %v12733_v29  ;;  %v12825_v29 = vld [vmem:[%s14713_s3 + $0x324] ss:$48 sps:$4 sm:$0xff]  }
 0x2a3   : > { %3714 = vmatprep.subr.bf16.mxu1 %v12741_v30  ;;  %v12814_v30 = vld [vmem:[%s14713_s3 + $0x2c8] ss:$48 sps:$4 sm:$0xff]  }
 0x2a4   : > { %3609 = vmatpush1.bf16.msra.mxu0 %v12724_v27  ;;  %v12816_v27 = vld [vmem:[%s14713_s3 + $0x2cc] ss:$48 sps:$4 sm:$0xff]  }
 0x2a5   : > { %3610 = vmatprep.subr.bf16.mxu0 %v12732_v28  ;;  %v12817_v28 = vld [vmem:[%s14713_s3 + $0x2c0] ss:$48 sps:$4 sm:$0xff]  }
 0x2a6   : > { %3715 = vmatpush1.bf16.msra.mxu1 %v12739_v33  ;;  %v12831_v33 = vld [vmem:[%s14713_s3 + $0x384] ss:$48 sps:$4 sm:$0xff]  }
 0x2a7   : > { %3716 = vmatprep.subr.bf16.mxu1 %v12747_v34  ;;  %v12820_v34 = vld [vmem:[%s14713_s3 + $0x328] ss:$48 sps:$4 sm:$0xff]  }
 0x2a8   : > { %3611 = vmatpush1.bf16.msra.mxu0 %v12730_v31  ;;  %v12822_v31 = vld [vmem:[%s14713_s3 + $0x32c] ss:$48 sps:$4 sm:$0xff]  }
 0x2a9   : > { %3612 = vmatprep.subr.bf16.mxu0 %v12738_v32  ;;  %v12823_v32 = vld [vmem:[%s14713_s3 + $0x320] ss:$48 sps:$4 sm:$0xff]  }
 0x2aa   : > { %3717 = vmatpush1.bf16.msra.mxu1 %v12745_v38  ;;  %v12837_v38 = vld [vmem:[%s14713_s3 + $0x3e4] ss:$48 sps:$4 sm:$0xff]  }
 0x2ab   : > { %3718 = vmatprep.subr.bf16.mxu1 %v12753_v39  ;;  %v12826_v39 = vld [vmem:[%s14713_s3 + $0x388] ss:$48 sps:$4 sm:$0xff]  }
 0x2ac   : > { %3613 = vmatpush1.bf16.msra.mxu0 %v12736_v35  ;;  %v12828_v35 = vld [vmem:[%s14713_s3 + $0x38c] ss:$48 sps:$4 sm:$0xff]  }
 0x2ad   : > { %3614 = vmatprep.subr.bf16.mxu0 %v12744_v36  ;;  %v12829_v36 = vld [vmem:[%s14713_s3 + $0x380] ss:$48 sps:$4 sm:$0xff]  }
 0x2ae   : > { %3719 = vmatpush1.bf16.msra.mxu1 %v12751_v43  ;;  %v12843_v43 = vld [vmem:[%s14713_s3 + $0x444] ss:$48 sps:$4 sm:$0xff]  }
 0x2af   : > { %3720 = vmatprep.subr.bf16.mxu1 %v12759_v44  ;;  %v12832_v44 = vld [vmem:[%s14713_s3 + $0x3e8] ss:$48 sps:$4 sm:$0xff]  }
 0x2b0   : > { %3615 = vmatpush1.bf16.msra.mxu0 %v12742_v40  ;;  %v12834_v40 = vld [vmem:[%s14713_s3 + $0x3ec] ss:$48 sps:$4 sm:$0xff]  }
 0x2b1   : > { %3616 = vmatprep.subr.bf16.mxu0 %v12750_v42  ;;  %v12835_v42 = vld [vmem:[%s14713_s3 + $0x3e0] ss:$48 sps:$4 sm:$0xff]  }
 0x2b2   : > { %3721 = vmatpush1.bf16.msra.mxu1 %v12757_v49  ;;  %v12849_v49 = vld [vmem:[%s14713_s3 + $0x4a4] ss:$48 sps:$4 sm:$0xff]  }
 0x2b3   : > { %3722 = vmatprep.subr.bf16.mxu1 %v12765_v50  ;;  %v12838_v50 = vld [vmem:[%s14713_s3 + $0x448] ss:$48 sps:$4 sm:$0xff]  }
 0x2b4   : > { %3617 = vmatpush1.bf16.msra.mxu0 %v12748_v45  ;;  %v12840_v45 = vld [vmem:[%s14713_s3 + $0x44c] ss:$48 sps:$4 sm:$0xff]  }
 0x2b5   : > { %3618 = vmatprep.subr.bf16.mxu0 %v12756_v48  ;;  %v12841_v48 = vld [vmem:[%s14713_s3 + $0x440] ss:$48 sps:$4 sm:$0xff]  }
 0x2b6   : > { %3723 = vmatpush1.bf16.msra.mxu1 %v12763_v54  ;;  %v12855_v54 = vld [vmem:[%s14713_s3 + $0x504] ss:$48 sps:$4 sm:$0xff]  }
 0x2b7   : > { %3724 = vmatprep.subr.bf16.mxu1 %v12768_v56  ;;  %v12844_v56 = vld [vmem:[%s14713_s3 + $0x4a8] ss:$48 sps:$4 sm:$0xff]  }
 0x2b8   : > { %3619 = vmatpush1.bf16.msra.mxu0 %v12754_v52  ;;  %v12846_v52 = vld [vmem:[%s14713_s3 + $0x4ac] ss:$48 sps:$4 sm:$0xff]  }
 0x2b9   : > { %3620 = vmatprep.subr.bf16.mxu0 %v12762_v53  ;;  %v12847_v53 = vld [vmem:[%s14713_s3 + $0x4a0] ss:$48 sps:$4 sm:$0xff]  }
 0x2ba   : > { %3725 = vmatpush1.bf16.msra.mxu1 %v12766_v58  ;;  %v12853_v58 = vld [vmem:[%s14713_s3 + $0x500] ss:$48 sps:$4 sm:$0xff]  }
 0x2bb   : > { %3726 = vmatprep.subr.bf16.mxu1 %v12771_v59  ;;  %v12861_v59 = vld [vmem:[%s14713_s3 + $0x564] ss:$48 sps:$4 sm:$0xff]  }
 0x2bc   : > { %3621 = vmatpush1.bf16.msra.mxu0 %v12760_v57  ;;  %v12852_v57 = vld [vmem:[%s14713_s3 + $0x50c] ss:$48 sps:$4 sm:$0xff]  }
 0x2bd   : > { %3749 = vmatprep.subr.bf16.mxu0 %v12777_v60  ;;  %v12850_v60 = vld [vmem:[%s14713_s3 + $0x508] ss:$48 sps:$4 sm:$0xff]  }
 0x2be   : > { %3727 = vmatpush1.bf16.msra.mxu1 %v12769_v61  ;;  %v12858_v61 = vld [vmem:[%s14713_s3 + $0x56c] ss:$48 sps:$4 sm:$0xff]  }
 0x2bf   : > { %3623 = vmatmul.mubr.bf16.vlgmr.msra.gmra.mrb[8].mxu0 %v14916_v37  ;;  %3855 = vmatprep.subr.bf16.mxu1 %v12774_v63  ;;  %v12859_v63 = vld [vmem:[%s14713_s3 + $0x560] ss:$48 sps:$4 sm:$0xff]  }
 0x2c0   : > { %3632 = vmatprep.mubr.bf16.mxu0 %v14921_v41  ;;  %3750 = vmatpush1.bf16.msra.mxu0 %v12775_v0  ;;  %v12867_v0 = vld [vmem:[%s14713_s3 + $0x5c4] ss:$48 sps:$4 sm:$0xff]  }
 0x2c1   : > { %3751 = vmatprep.subr.bf16.mxu0 %v12783_v1  ;;  %3729 = vmatmul.mubr.bf16.vlgmr.msra.gmra.mrb[8].mxu1 %v14916_v37  ;;  %v12856_v1 = vld [vmem:[%s14713_s3 + $0x568] ss:$48 sps:$4 sm:$0xff]  }
 0x2c2   : > { %3856 = vmatpush1.bf16.msra.mxu1 %v12772_v2  ;;  %3738 = vmatprep.mubr.bf16.mxu1 %v14921_v41  ;;  %v12864_v2 = vld [vmem:[%s14713_s3 + $0x5cc] ss:$48 sps:$4 sm:$0xff]  }
 0x2c3   : > { %3857 = vmatprep.subr.bf16.mxu1 %v12780_v3  ;;  %v12865_v3 = vld [vmem:[%s14713_s3 + $0x5c0] ss:$48 sps:$4 sm:$0xff]  }
 0x2c4   : > { %3752 = vmatpush1.bf16.msra.mxu0 %v12781_v4  ;;  %v12873_v4 = vld [vmem:[%s14713_s3 + $0x624] ss:$48 sps:$4 sm:$0xff]  }
 0x2c5   : > { %3753 = vmatprep.subr.bf16.mxu0 %v12789_v6  ;;  %v12870_v6 = vld [vmem:[%s14713_s3 + $0x62c] ss:$48 sps:$4 sm:$0xff]  }
 0x2c6   : > { %3858 = vmatpush1.bf16.msra.mxu1 %v12778_v5  ;;  %v12862_v5 = vld [vmem:[%s14713_s3 + $0x5c8] ss:$48 sps:$4 sm:$0xff]  }
 0x2c7   : > { %3633 = vmatmul.mubr.bf16.gmra.mrb[12].mxu0 %v14930_v51  ;;  %3859 = vmatprep.subr.bf16.mxu1 %v12786_v7  ;;  %v12871_v7 = vld [vmem:[%s14713_s3 + $0x620] ss:$48 sps:$4 sm:$0xff]  }
 0x2c8   : > { %3781 = vmatprep.mubr.bf16.mxu0 %v14812_v62  ;;  %3754 = vmatpush1.bf16.msra.mxu0 %v12787_v8  ;;  %v12879_v8 = vld [vmem:[%s14713_s3 + $0x684] ss:$48 sps:$4 sm:$0xff]  }
 0x2c9   : > { %3755 = vmatprep.subr.bf16.mxu0 %v12795_v9  ;;  %3739 = vmatmul.mubr.bf16.gmra.mrb[12].mxu1 %v14930_v51  ;;  %v12868_v9 = vld [vmem:[%s14713_s3 + $0x628] ss:$48 sps:$4 sm:$0xff]  }
 0x2ca   : > { %3860 = vmatpush1.bf16.msra.mxu1 %v12784_v10  ;;  %3887 = vmatprep.mubr.bf16.mxu1 %v14812_v62  ;;  %v12811_v62 = vld [vmem:[%s14713_s3 + $0x260] ss:$48 sps:$4 sm:$0xff]   ;;  %v12876_v10 = vld [vmem:[%s14713_s3 + $0x68c] ss:$48 sps:$4 sm:$0xff]  }
 0x2cb   : > { %3861 = vmatprep.subr.bf16.mxu1 %v12792_v11  ;;  %v12877_v11 = vld [vmem:[%s14713_s3 + $0x680] ss:$48 sps:$4 sm:$0xff]  }
 0x2cc   : > { %3756 = vmatpush1.bf16.msra.mxu0 %v12793_v12  ;;  %v12885_v12 = vld [vmem:[%s14713_s3 + $0x6e4] ss:$48 sps:$4 sm:$0xff]  }
 0x2cd   : > { %3757 = vmatprep.subr.bf16.mxu0 %v12801_v13  ;;  %v12874_v13 = vld [vmem:[%s14713_s3 + $0x688] ss:$48 sps:$4 sm:$0xff]  }
 0x2ce   : > { %3862 = vmatpush1.bf16.msra.mxu1 %v12790_v14  ;;  %v12882_v14 = vld [vmem:[%s14713_s3 + $0x6ec] ss:$48 sps:$4 sm:$0xff]  }
 0x2cf   : > { %3863 = vmatprep.subr.bf16.mxu1 %v12798_v15  ;;  %v12883_v15 = vld [vmem:[%s14713_s3 + $0x6e0] ss:$48 sps:$4 sm:$0xff]  }
 0x2d0   : > { %3758 = vmatpush1.bf16.msra.mxu0 %v12799_v16  ;;  %v12891_v16 = vld [vmem:[%s14713_s3 + $0x744] ss:$48 sps:$4 sm:$0xff]  }
 0x2d1   : > { %3759 = vmatprep.subr.bf16.mxu0 %v12807_v17  ;;  %v1345_v17 = vlaneseq }
 0x2d2   : > { %3864 = vmatpush1.bf16.msra.mxu1 %v12796_v18  ;;  %v12880_v18 = vld [vmem:[%s14713_s3 + $0x6e8] ss:$48 sps:$4 sm:$0xff]  }
 0x2d3   : > { %3865 = vmatprep.subr.bf16.mxu1 %v12804_v19  ;;  %v12888_v19 = vld [vmem:[%s14713_s3 + $0x74c] ss:$48 sps:$4 sm:$0xff]  }
 0x2d4   : > { %3760 = vmatpush1.bf16.msra.mxu0 %v12805_v20  ;;  %v12889_v20 = vld [vmem:[%s14713_s3 + $0x740] ss:$48 sps:$4 sm:$0xff]  }
 0x2d5   : > { %3761 = vmatprep.subr.bf16.mxu0 %v12813_v21  ;;  %v15159_v21 = vshrl.u32 %v1345_v17, 7 }
 0x2d6   : > { %3866 = vmatpush1.bf16.msra.mxu1 %v12802_v23  ;;  %v12894_v23 = vld [vmem:[%s14713_s3 + $0x7ac] ss:$48 sps:$4 sm:$0xff]  }
 0x2d7   : > { %3867 = vmatprep.subr.bf16.mxu1 %v12810_v24  ;;  %v12895_v24 = vld [vmem:[%s14713_s3 + $0x7a0] ss:$48 sps:$4 sm:$0xff]  }
 0x2d8   : > { %3762 = vmatpush1.bf16.msra.mxu0 %v12811_v62  ;;  %v15167_v62 = vld [vmem:[%s14721_s25] sm:$0xff] }
 0x2d9   : > { %3763 = vmatprep.subr.bf16.mxu0 %v12819_v25  ;;  %v12903_v25 = vld [vmem:[%s14713_s3 + $0x804] ss:$48 sps:$4 sm:$0xff]  }
 0x2da   : > { %3868 = vmatpush1.bf16.msra.mxu1 %v12808_v26  ;;  %v15172_v26 = vsub.s32 0, %v15159_v21 }
 0x2db   : > { %3869 = vmatprep.subr.bf16.mxu1 %v12816_v27  ;;  %v15175_v27 = vsub.s32 1, %v15159_v21 }
 0x2dc   : > { %3764 = vmatpush1.bf16.msra.mxu0 %v12817_v28  ;;  %v12892_v28 = vld [vmem:[%s14713_s3 + $0x7a8] ss:$48 sps:$4 sm:$0xff]  }
 0x2dd   : > { %3765 = vmatprep.subr.bf16.mxu0 %v12825_v29  ;;  %v12900_v29 = vld [vmem:[%s14713_s3 + $0x80c] ss:$48 sps:$4 sm:$0xff]  }
 0x2de   : > { %3870 = vmatpush1.bf16.msra.mxu1 %v12814_v30  ;;  %v12901_v30 = vld [vmem:[%s14713_s3 + $0x800] ss:$48 sps:$4 sm:$0xff]  }
 0x2df   : > { %3871 = vmatprep.subr.bf16.mxu1 %v12822_v31  ;;  %v12909_v31 = vld [vmem:[%s14713_s3 + $0x864] ss:$48 sps:$4 sm:$0xff]  }
 0x2e0   : > { %3766 = vmatpush1.bf16.msra.mxu0 %v12823_v32  ;;  %v1348_v32 = vrot.slane %v15167_v62, %v15172_v26 }
 0x2e1   : > { %3767 = vmatprep.subr.bf16.mxu0 %v12831_v33 }
 0x2e2   : > { %3872 = vmatpush1.bf16.msra.mxu1 %v12820_v34  ;;  %v1352_v34 = vrot.slane %v15167_v62, %v15175_v27 }
 0x2e3   : > { %3873 = vmatprep.subr.bf16.mxu1 %v12828_v35  ;;  %v12898_v35 = vld [vmem:[%s14713_s3 + $0x808] ss:$48 sps:$4 sm:$0xff]  }
 0x2e4   : > { %3768 = vmatpush1.bf16.msra.mxu0 %v12829_v36 }
 0x2e5   : > { %3769 = vmatprep.subr.bf16.mxu0 %v12837_v38 }
 0x2e6   : > { %3874 = vmatpush1.bf16.msra.mxu1 %v12826_v39  ;;  %v12906_v39 = vld [vmem:[%s14713_s3 + $0x86c] ss:$48 sps:$4 sm:$0xff]  }
 0x2e7   : > { %3875 = vmatprep.subr.bf16.mxu1 %v12834_v40  ;;  %v12907_v40 = vld [vmem:[%s14713_s3 + $0x860] ss:$48 sps:$4 sm:$0xff]  }
 0x2e8   : > { %3770 = vmatpush1.bf16.msra.mxu0 %v12835_v42 }
 0x2e9   : > { %3771 = vmatprep.subr.bf16.mxu0 %v12843_v43 }
 0x2ea   : > { %3876 = vmatpush1.bf16.msra.mxu1 %v12832_v44  ;;  %v12915_v44 = vld [vmem:[%s14713_s3 + $0x8c4] ss:$48 sps:$4 sm:$0xff]  }
 0x2eb   : > { %3877 = vmatprep.subr.bf16.mxu1 %v12840_v45 }
 0x2ec   : > { %3772 = vmatpush1.bf16.msra.mxu0 %v12841_v48 }
 0x2ed   : > { %3773 = vmatprep.subr.bf16.mxu0 %v12849_v49 }
 0x2ee   : > { %3878 = vmatpush1.bf16.msra.mxu1 %v12838_v50 }
 0x2ef   : > { %3879 = vmatprep.subr.bf16.mxu1 %v12846_v52 }
 0x2f0   : > { %3774 = vmatpush1.bf16.msra.mxu0 %v12847_v53 }
 0x2f1   : > { %3775 = vmatprep.subr.bf16.mxu0 %v12855_v54  ;;  %v12904_v54 = vld [vmem:[%s14713_s3 + $0x868] ss:$48 sps:$4 sm:$0xff]  }
 0x2f2   : > { %3880 = vmatpush1.bf16.msra.mxu1 %v12844_v56 }
 0x2f3   : > { %3881 = vmatprep.subr.bf16.mxu1 %v12852_v57 }
 0x2f4   : > { %3776 = vmatpush1.bf16.msra.mxu0 %v12853_v58 }
 0x2f5   : > { %3777 = vmatprep.subr.bf16.mxu0 %v12861_v59  ;;  %v12912_v59 = vld [vmem:[%s14713_s3 + $0x8cc] ss:$48 sps:$4 sm:$0xff]  }
 0x2f6   : > { %3882 = vmatpush1.bf16.msra.mxu1 %v12850_v60  ;;  %v12913_v60 = vld [vmem:[%s14713_s3 + $0x8c0] ss:$48 sps:$4 sm:$0xff]  }
 0x2f7   : > { %3883 = vmatprep.subr.bf16.mxu1 %v12858_v61 }
 0x2f8   : > { %3778 = vmatpush1.bf16.msra.mxu0 %v12859_v63 }
 0x2f9   : > { %3779 = vmatprep.subr.bf16.mxu0 %v12867_v0 }
 0x2fa   : > { %3884 = vmatpush1.bf16.msra.mxu1 %v12856_v1  ;;  %v12921_v1 = vld [vmem:[%s14713_s3 + $0x924] ss:$48 sps:$4 sm:$0xff]  }
 0x2fb   : > { %3885 = vmatprep.subr.bf16.mxu1 %v12864_v2 }
 0x2fc   : > { %3780 = vmatpush1.bf16.msra.mxu0 %v12865_v3 }
 0x2fd   : > { %3802 = vmatprep.subr.bf16.mxu0 %v12873_v4 }
 0x2fe   : > { %3886 = vmatpush1.bf16.msra.mxu1 %v12862_v5 }
 0x2ff   : > { %3782 = vmatmul.mubr.bf16.vlgmr.msra.gmra.mrb[16].mxu0 %v14837_v22  ;;  %3908 = vmatprep.subr.bf16.mxu1 %v12870_v6  ;;  %v12910_v6 = vld [vmem:[%s14713_s3 + $0x8c8] ss:$48 sps:$4 sm:$0xff]  }
 0x300   : > { %3803 = vmatpush1.bf16.msra.mxu0 %v12871_v7  ;;  %3791 = vmatprep.mubr.bf16.mxu0 %v14860_v46 }
 0x301   : > { %3804 = vmatprep.subr.bf16.mxu0 %v12879_v8  ;;  %3888 = vmatmul.mubr.bf16.vlgmr.msra.gmra.mrb[16].mxu1 %v14837_v22  ;;  %v12897_v22 = vld [vmem:[%s14713_s3 + $0x7a4] ss:$48 sps:$4 sm:$0xff]  }
 0x302   : > { %3909 = vmatpush1.bf16.msra.mxu1 %v12868_v9  ;;  %3897 = vmatprep.mubr.bf16.mxu1 %v14860_v46  ;;  %v12886_v46 = vld [vmem:[%s14713_s3 + $0x748] ss:$48 sps:$4 sm:$0xff]   ;;  %v12918_v9 = vld [vmem:[%s14713_s3 + $0x92c] ss:$48 sps:$4 sm:$0xff]  }
 0x303   : > { %3910 = vmatprep.subr.bf16.mxu1 %v12876_v10  ;;  %v12919_v10 = vld [vmem:[%s14713_s3 + $0x920] ss:$48 sps:$4 sm:$0xff]  }
 0x304   : > { %3805 = vmatpush1.bf16.msra.mxu0 %v12877_v11 }
 0x305   : > { %3806 = vmatprep.subr.bf16.mxu0 %v12885_v12 }
 0x306   : > { %3911 = vmatpush1.bf16.msra.mxu1 %v12874_v13  ;;  %v12927_v13 = vld [vmem:[%s14713_s3 + $0x984] ss:$48 sps:$4 sm:$0xff]  }
 0x307   : > { %3792 = vmatmul.mubr.bf16.gmra.mrb[20].mxu0 %v14862_v47  ;;  %3912 = vmatprep.subr.bf16.mxu1 %v12882_v14 }
 0x308   : > { %3807 = vmatpush1.bf16.msra.mxu0 %v12883_v15  ;;  %3834 = vmatprep.mubr.bf16.mxu0 %v14873_v55 }
 0x309   : > { %3808 = vmatprep.subr.bf16.mxu0 %v12891_v16  ;;  %3898 = vmatmul.mubr.bf16.gmra.mrb[20].mxu1 %v14862_v47  ;;  %v15179_v47 = vsub.s32 2, %v15159_v21 }
 0x30a   : > { %3913 = vmatpush1.bf16.msra.mxu1 %v12880_v18  ;;  %3940 = vmatprep.mubr.bf16.mxu1 %v14873_v55  ;;  %v15184_v55 = vsub.s32 3, %v15159_v21 }
 0x30b   : > { %3914 = vmatprep.subr.bf16.mxu1 %v12888_v19  ;;  %v15194_v38 = vrot.slane %v15167_v62, %v15179_v47  ;;  %v12916_v19 = vld [vmem:[%s14713_s3 + $0x928] ss:$48 sps:$4 sm:$0xff]  }
 0x30c   : > { %3809 = vmatpush1.bf16.msra.mxu0 %v12889_v20  ;;  %v15200_v43 = vrot.slane %v15167_v62, %v15184_v55 }
 0x30d   : > { %3810 = vmatprep.subr.bf16.mxu0 %v12897_v22 }
 0x30e   : > { %3915 = vmatpush1.bf16.msra.mxu1 %v12886_v46  ;;  %v12924_v46 = vld [vmem:[%s14713_s3 + $0x98c] ss:$48 sps:$4 sm:$0xff]  }
 0x30f   : > { %3916 = vmatprep.subr.bf16.mxu1 %v12894_v23  ;;  %v12925_v23 = vld [vmem:[%s14713_s3 + $0x980] ss:$48 sps:$4 sm:$0xff]  }
 0x310   : > { %3811 = vmatpush1.bf16.msra.mxu0 %v12895_v24 }
 0x311   : > { %3812 = vmatprep.subr.bf16.mxu0 %v12903_v25 }
 0x312   : > { %v3412_v33 = vpop.f32.mrb[0].mxu0  ;;  %3917 = vmatpush1.bf16.msra.mxu1 %v12892_v28  ;;  %v3518_v53 = vpop.f32.mrb[0].mxu1 }
 0x313   : > { %v3414_v36 = vpop.f32.mrb[1].mxu0  ;;  %v15203_v45 = vadd.f32 %v3412_v33, %v1348_v32  ;;  %3918 = vmatprep.subr.bf16.mxu1 %v12900_v29  ;;  %v15215_v57 = vadd.f32 %v3518_v53, %v15194_v38  ;;  %v3520_v58 = vpop.f32.mrb[1].mxu1  ;;  %v12933_v29 = vld [vmem:[%s14713_s3 + $0x9e4] ss:$48 sps:$4 sm:$0xff]  }
 0x314   : > { %v3416_v42 = vpop.f32.mrb[2].mxu0  ;;  %3813 = vmatpush1.bf16.msra.mxu0 %v12901_v30  ;;  %v15207_v50 = vadd.f32 %v3414_v36, %v1352_v34  ;;  %v15222_v63 = vadd.f32 %v3520_v58, %v15200_v43  ;;  %v3522_v0 = vpop.f32.mrb[2].mxu1  ;;  %v12930_v36 = vld [vmem:[%s14713_s3 + $0x9ec] ss:$48 sps:$4 sm:$0xff]   ;;  %v12945_v53 = vld [vmem:[%s14713_s3 + $0xaa4] ss:$48 sps:$4 sm:$0xff]  }
 0x315   : > { %v15205_v48 = vadd.f32 %v3416_v42, %v1348_v32  ;;  %v3418_v49 = vpop.f32.mrb[3].mxu0  ;;  %3814 = vmatprep.subr.bf16.mxu0 %v12909_v31  ;;  %v15226_v2 = vadd.f32 %v3522_v0, %v15194_v38  ;;  %v3524_v3 = vpop.f32.mrb[3].mxu1  ;;  %v12939_v42 = vld [vmem:[%s14713_s3 + $0xa44] ss:$48 sps:$4 sm:$0xff]   ;;  %v12942_v58 = vld [vmem:[%s14713_s3 + $0xaac] ss:$48 sps:$4 sm:$0xff]  }
 0x316   : > { %v15209_v52 = vadd.f32 %v3418_v49, %v1352_v34  ;;  %3919 = vmatpush1.bf16.msra.mxu1 %v12898_v35  ;;  %v15229_v5 = vadd.f32 %v3524_v3, %v15200_v43  ;;  %v12937_v49 = vld [vmem:[%s14713_s3 + $0xa40] ss:$48 sps:$4 sm:$0xff]   ;;  %v12940_v0 = vld [vmem:[%s14713_s3 + $0xaa8] ss:$48 sps:$4 sm:$0xff]  }
 0x317   : > { %v3961_v56 = vpack.c.bf16 %v15205_v48, %v15203_v45  ;;  %3920 = vmatprep.subr.bf16.mxu1 %v12906_v39  ;;  %v3963_v8 = vpack.c.bf16 %v15226_v2, %v15215_v57  ;;  %v12931_v39 = vld [vmem:[%s14713_s3 + $0x9e0] ss:$48 sps:$4 sm:$0xff]  }
 0x318   : > { %v3962_v61 = vpack.c.bf16 %v15209_v52, %v15207_v50  ;;  %3815 = vmatpush1.bf16.msra.mxu0 %v12907_v40  ;;  %v3964_v12 = vpack.c.bf16 %v15229_v5, %v15222_v63  ;;  %v12949_v3 = vld [vmem:[%s14713_s3 + $0xb00] ss:$48 sps:$4 sm:$0xff]   ;;  %v1342_v50 = vld [vmem:[%s14721_s25 + $0x8] sm:$0xf] }
 0x319   : > { %3816 = vmatprep.subr.bf16.mxu0 %v12915_v44  ;;  %v12928_v44 = vld [vmem:[%s14713_s3 + $0x9e8] ss:$48 sps:$4 sm:$0xff]   ;;  %v1380_v52 = vrot.slane %v1342_v50, %v15172_v26  ;;  %v1388_v57 = vrot.slane %v1342_v50, %v15179_v47  ;;  %v1392_v63 = vrot.slane %v1342_v50, %v15184_v55 }
 0x31a   : > { %v3422_v4 = vpop.f32.mrb[4].mxu0  ;;  %3921 = vmatpush1.bf16.msra.mxu1 %v12904_v54  ;;  %v3528_v20 = vpop.f32.mrb[4].mxu1  ;;  %v12934_v54 = vld [vmem:[%s14713_s3 + $0xa48] ss:$48 sps:$4 sm:$0xff]  }
 0x31b   : > { %v3424_v7 = vpop.f32.mrb[5].mxu0  ;;  %v15239_v14 = vadd.f32 %v3422_v4, %v1348_v32  ;;  %3922 = vmatprep.subr.bf16.mxu1 %v12912_v59  ;;  %v15253_v24 = vadd.f32 %v3528_v20, %v15194_v38  ;;  %v3530_v25 = vpop.f32.mrb[5].mxu1  ;;  %v12943_v59 = vld [vmem:[%s14713_s3 + $0xaa0] ss:$48 sps:$4 sm:$0xff]   ;;  %v12957_v4 = vld [vmem:[%s14713_s3 + $0xb64] ss:$48 sps:$4 sm:$0xff]  }
 0x31c   : > { %v3426_v11 = vpop.f32.mrb[6].mxu0  ;;  %3817 = vmatpush1.bf16.msra.mxu0 %v12913_v60  ;;  %v15243_v17 = vadd.f32 %v3424_v7, %v1352_v34  ;;  %v15259_v30 = vadd.f32 %v3530_v25, %v15200_v43  ;;  %v3532_v31 = vpop.f32.mrb[6].mxu1  ;;  %v12951_v60 = vld [vmem:[%s14713_s3 + $0xb04] ss:$48 sps:$4 sm:$0xff]   ;;  %v12954_v7 = vld [vmem:[%s14713_s3 + $0xb6c] ss:$48 sps:$4 sm:$0xff]  }
 0x31d   : > { %v15241_v15 = vadd.f32 %v3426_v11, %v1348_v32  ;;  %v3428_v16 = vpop.f32.mrb[7].mxu0  ;;  %3818 = vmatprep.subr.bf16.mxu0 %v12921_v1  ;;  %v15262_v32 = vadd.f32 %v3532_v31, %v15194_v38  ;;  %v3534_v33 = vpop.f32.mrb[7].mxu1  ;;  %v12948_v1 = vld [vmem:[%s14713_s3 + $0xb0c] ss:$48 sps:$4 sm:$0xff]   ;;  %v12952_v11 = vld [vmem:[%s14713_s3 + $0xb68] ss:$48 sps:$4 sm:$0xff]  }
 0x31e   : > { %v15245_v18 = vadd.f32 %v3428_v16, %v1352_v34  ;;  %3923 = vmatpush1.bf16.msra.mxu1 %v12910_v6  ;;  %v12922_v34 = vld [vmem:[%s14713_s3 + $0x988] ss:$48 sps:$4 sm:$0xff]   ;;  %v15266_v35 = vadd.f32 %v3534_v33, %v15200_v43  ;;  %v12936_v43 = vld [vmem:[%s14713_s3 + $0xa4c] ss:$48 sps:$4 sm:$0xff]   ;;  %v12961_v16 = vld [vmem:[%s14713_s3 + $0xbc0] ss:$48 sps:$4 sm:$0xff]  }
 0x31f   : > { %v3973_v22 = vpack.c.bf16 %v15241_v15, %v15239_v14  ;;  %3924 = vmatprep.subr.bf16.mxu1 %v12918_v9  ;;  %v3975_v40 = vpack.c.bf16 %v15262_v32, %v15253_v24  ;;  %v12946_v6 = vld [vmem:[%s14713_s3 + $0xb08] ss:$48 sps:$4 sm:$0xff]   ;;  %v12955_v9 = vld [vmem:[%s14713_s3 + $0xb60] ss:$48 sps:$4 sm:$0xff]   ;;  %v14149_v20 = vmov 0.0   ;;  %v1371_v25 = vsub.s32 6, %v15159_v21 }
 0x320   : > { %v3974_v28 = vpack.c.bf16 %v15245_v18, %v15243_v17  ;;  %3819 = vmatpush1.bf16.msra.mxu0 %v12919_v10  ;;  %v3976_v38 = vpack.c.bf16 %v15266_v35, %v15259_v30  ;;  %v12963_v10 = vld [vmem:[%s14713_s3 + $0xbc4] ss:$48 sps:$4 sm:$0xff]  }
 0x321   : > { %3820 = vmatprep.subr.bf16.mxu0 %v12927_v13  ;;  %v12960_v13 = vld [vmem:[%s14713_s3 + $0xbcc] ss:$48 sps:$4 sm:$0xff]   ;;  %v1372_v33 = vrot.slane %v15167_v62, %v1371_v25 }
 0x322   : > { %3925 = vmatpush1.bf16.msra.mxu1 %v12916_v19  ;;  %v12958_v19 = vld [vmem:[%s14713_s3 + $0xbc8] ss:$48 sps:$4 sm:$0xff]  }
 0x323   : > { %3926 = vmatprep.subr.bf16.mxu1 %v12924_v46  ;;  %v1363_v46 = vsub.s32 4, %v15159_v21 }
 0x324   : > { %3821 = vmatpush1.bf16.msra.mxu0 %v12925_v23  ;;  %v1367_v23 = vsub.s32 5, %v15159_v21 }
 0x325   : > { %3822 = vmatprep.subr.bf16.mxu0 %v12933_v29 }
 0x326   : > { %3927 = vmatpush1.bf16.msra.mxu1 %v12922_v34 }
 0x327   : > { %3928 = vmatprep.subr.bf16.mxu1 %v12930_v36 }
 0x328   : > { %3823 = vmatpush1.bf16.msra.mxu0 %v12931_v39 }
 0x329   : > { %3824 = vmatprep.subr.bf16.mxu0 %v12939_v42 }
 0x32a   : > { %3929 = vmatpush1.bf16.msra.mxu1 %v12928_v44 }
 0x32b   : > { %3930 = vmatprep.subr.bf16.mxu1 %v12936_v43 }
 0x32c   : > { %3825 = vmatpush1.bf16.msra.mxu0 %v12937_v49 }
 0x32d   : > { %3826 = vmatprep.subr.bf16.mxu0 %v12945_v53 }
 0x32e   : > { %3931 = vmatpush1.bf16.msra.mxu1 %v12934_v54 }
 0x32f   : > { %3932 = vmatprep.subr.bf16.mxu1 %v12942_v58 }
 0x330   : > { %3827 = vmatpush1.bf16.msra.mxu0 %v12943_v59 }
 0x331   : > { %3828 = vmatprep.subr.bf16.mxu0 %v12951_v60 }
 0x332   : > { %3933 = vmatpush1.bf16.msra.mxu1 %v12940_v0 }
 0x333   : > { %3934 = vmatprep.subr.bf16.mxu1 %v12948_v1 }
 0x334   : > { %3829 = vmatpush1.bf16.msra.mxu0 %v12949_v3 }
 0x335   : > { %3830 = vmatprep.subr.bf16.mxu0 %v12957_v4 }
 0x336   : > { %3935 = vmatpush1.bf16.msra.mxu1 %v12946_v6 }
 0x337   : > { %3936 = vmatprep.subr.bf16.mxu1 %v12954_v7 }
 0x338   : > { %3831 = vmatpush1.bf16.msra.mxu0 %v12955_v9 }
 0x339   : > { %3832 = vmatprep.subr.bf16.mxu0 %v12963_v10 }
 0x33a   : > { %3937 = vmatpush1.bf16.msra.mxu1 %v12952_v11 }
 0x33b   : > { %3938 = vmatprep.subr.bf16.mxu1 %v12960_v13 }
 0x33c   : > { %3833 = vmatpush1.bf16.msra.mxu0 %v12961_v16 }
 0x33d   : > { %11892 = vmatprep.subr.bf16.mxu0 %v14149_v20 }
 0x33e   : > { %3939 = vmatpush1.bf16.msra.mxu1 %v12958_v19 }
 0x33f   : > { %3835 = vmatmul.mubr.bf16.vlgmr.msra.gmra.mrb[16].mxu0 %v14916_v37  ;;  %11898 = vmatprep.subr.bf16.mxu1 %v14149_v20 }
 0x340   : > { %3844 = vmatprep.mubr.bf16.mxu0 %v14921_v41 }
 0x341   : > { %3941 = vmatmul.mubr.bf16.vlgmr.msra.gmra.mrb[16].mxu1 %v14916_v37  ;;  %v1375_v37 = vsub.s32 7, %v15159_v21 }
 0x342   : > { %3950 = vmatprep.mubr.bf16.mxu1 %v14921_v41  ;;  %v1364_v41 = vrot.slane %v15167_v62, %v1363_v46 }
 0x343   : > { %v1376_v36 = vrot.slane %v15167_v62, %v1375_v37 }
 0x347   : > { %3845 = vmatmul.mubr.bf16.gmra.mrb[20].mxu0 %v14930_v51 }
 0x348   : > { %11894 = vmatprep.mubr.msk.bf16.mxu0 %vm14150_vm0, %v14149_v20 }
 0x349   : > { %3951 = vmatmul.mubr.bf16.gmra.mrb[20].mxu1 %v14930_v51  ;;  %v1368_v51 = vrot.slane %v15167_v62, %v1367_v23 }
 0x34a   : > { %11900 = vmatprep.mubr.msk.bf16.mxu1 %vm14150_vm0, %v14149_v20 }
 0x392   : > { %v3624_v29 = vpop.f32.mrb[8].mxu0 }
 0x393   : > { %v3626_v31 = vpop.f32.mrb[9].mxu0  ;;  %v12004_v39 = vadd.f32 %v3624_v29, %v1364_v41 }
 0x394   : > { %v3628_v34 = vpop.f32.mrb[10].mxu0  ;;  %v12005_v43 = vadd.f32 %v3626_v31, %v1368_v51  ;;  %v3730_v53 = vpop.f32.mrb[8].mxu1 }
 0x395   : > { %v12006_v42 = vadd.f32 %v3628_v34, %v1364_v41  ;;  %v3630_v44 = vpop.f32.mrb[11].mxu0  ;;  %v12012_v58 = vadd.f32 %v3730_v53, %v1372_v33  ;;  %v3732_v59 = vpop.f32.mrb[9].mxu1 }
 0x396   : > { %v12007_v49 = vadd.f32 %v3630_v44, %v1368_v51  ;;  %v12013_v0 = vadd.f32 %v3732_v59, %v1376_v36  ;;  %v3734_v1 = vpop.f32.mrb[10].mxu1 }
 0x397   : > { %v3965_v54 = vpack.c.bf16 %v12006_v42, %v12004_v39  ;;  %v12014_v3 = vadd.f32 %v3734_v1, %v1372_v33  ;;  %v3736_v4 = vpop.f32.mrb[11].mxu1 }
 0x398   : > { %v3966_v60 = vpack.c.bf16 %v12007_v49, %v12005_v43  ;;  %v12015_v7 = vadd.f32 %v3736_v4, %v1376_v36 }
 0x399   : > { %11893 = vmatpush3.bf16.xpose.msra.mxu0 %v3965_v54  ;;  %v3967_v9 = vpack.c.bf16 %v12014_v3, %v12012_v58 }
 0x39a   : > { %v3634_v6 = vpop.f32.mrb[12].mxu0  ;;  %11899 = vmatpush3.bf16.xpose.msra.mxu1 %v3966_v60  ;;  %11904 = vmatprep.subr.bf16.mxu0 %v14149_v20  ;;  %v3968_v11 = vpack.c.bf16 %v12015_v7, %v12013_v0 }
 0x39b   : > { %v3636_v62 = vpop.f32.mrb[13].mxu0  ;;  %11910 = vmatprep.subr.bf16.mxu1 %v14149_v20  ;;  %v12008_v13 = vadd.f32 %v3634_v6, %v1364_v41 }
 0x39c   : > { %v3638_v10 = vpop.f32.mrb[14].mxu0  ;;  %v12009_v29 = vadd.f32 %v3636_v62, %v1368_v51  ;;  %v3740_v34 = vpop.f32.mrb[12].mxu1 }
 0x39d   : > { %v12010_v16 = vadd.f32 %v3638_v10, %v1364_v41  ;;  %v3640_v19 = vpop.f32.mrb[15].mxu0  ;;  %v12016_v42 = vadd.f32 %v3740_v34, %v1372_v33  ;;  %v3742_v44 = vpop.f32.mrb[13].mxu1 }
 0x39e   : > { %v12011_v31 = vadd.f32 %v3640_v19, %v1368_v51  ;;  %v12017_v49 = vadd.f32 %v3742_v44, %v1376_v36  ;;  %v3744_v53 = vpop.f32.mrb[14].mxu1 }
 0x39f   : > { %v3977_v39 = vpack.c.bf16 %v12010_v16, %v12008_v13  ;;  %v12018_v41 = vadd.f32 %v3744_v53, %v1372_v33  ;;  %v3746_v54 = vpop.f32.mrb[15].mxu1 }
 0x3a0   : > { %v3978_v43 = vpack.c.bf16 %v12011_v31, %v12009_v29  ;;  %11895 = vmatmul.mubr.bf16.vlgmr.msra.gmra.mrb[24].mxu0 %v3961_v56  ;;  %v12019_v51 = vadd.f32 %v3746_v54, %v1376_v36  ;;  %v1384_v56 = vrot.slane %v1342_v50, %v15175_v27 }
 0x3a1   : > { %11901 = vmatmul.mubr.bf16.vlgmr.msra.gmra.mrb[24].mxu1 %v3962_v61  ;;  %11905 = vmatpush3.bf16.xpose.msra.mxu0 %v3967_v9  ;;  %v3979_v45 = vpack.c.bf16 %v12018_v41, %v12016_v42 }
 0x3a2   : > { %11911 = vmatpush3.bf16.xpose.msra.mxu1 %v3968_v11  ;;  %11906 = vmatprep.mubr.msk.bf16.mxu0 %vm14150_vm0, %v14149_v20  ;;  %v3980_v48 = vpack.c.bf16 %v12019_v51, %v12017_v49 }
 0x3a3   : > { %11912 = vmatprep.mubr.msk.bf16.mxu1 %vm14150_vm0, %v14149_v20  ;;  %11916 = vmatprep.subr.bf16.mxu0 %v14149_v20 }
 0x3a4   : > { %11922 = vmatprep.subr.bf16.mxu1 %v14149_v20 }
 0x3a8   : > { %11907 = vmatmul.mubr.bf16.vlgmr.msra.gmra.mrb[28].mxu0 %v3963_v8 }
 0x3a9   : > { %11913 = vmatmul.mubr.bf16.vlgmr.msra.gmra.mrb[28].mxu1 %v3964_v12  ;;  %11917 = vmatpush3.bf16.xpose.msra.mxu0 %v3977_v39 }
 0x3aa   : > { %11923 = vmatpush3.bf16.xpose.msra.mxu1 %v3978_v43  ;;  %11918 = vmatprep.mubr.msk.bf16.mxu0 %vm14150_vm0, %v14149_v20 }
 0x3ab   : > { %11924 = vmatprep.mubr.msk.bf16.mxu1 %vm14150_vm0, %v14149_v20  ;;  %11928 = vmatprep.subr.bf16.mxu0 %v14149_v20 }
 0x3ac   : > { %11934 = vmatprep.subr.bf16.mxu1 %v14149_v20 }
 0x3b0   : > { %11919 = vmatmul.mubr.bf16.vlgmr.msra.gmra.mrb[32].mxu0 %v3973_v22 }
 0x3b1   : > { %11925 = vmatmul.mubr.bf16.vlgmr.msra.gmra.mrb[32].mxu1 %v3974_v28  ;;  %11929 = vmatpush3.bf16.xpose.msra.mxu0 %v3979_v45 }
 0x3b2   : > { %11935 = vmatpush3.bf16.xpose.msra.mxu1 %v3980_v48  ;;  %11930 = vmatprep.mubr.msk.bf16.mxu0 %vm14150_vm0, %v14149_v20 }
 0x3b3   : > { %11936 = vmatprep.mubr.msk.bf16.mxu1 %vm14150_vm0, %v14149_v20  ;;  %11940 = vmatprep.subr.bf16.mxu0 %v14149_v20 }
 0x3b4   : > { %11946 = vmatprep.subr.bf16.mxu1 %v14149_v20 }
 0x3b8   : > { %11931 = vmatmul.mubr.bf16.vlgmr.msra.gmra.mrb[36].mxu0 %v3975_v40 }
 0x3b9   : > { %11937 = vmatmul.mubr.bf16.vlgmr.msra.gmra.mrb[36].mxu1 %v3976_v38  ;;  %11942 = vmatprep.mubr.msk.bf16.mxu0 %vm14150_vm0, %v14149_v20 }
 0x3ba   : > { %11948 = vmatprep.mubr.msk.bf16.mxu1 %vm14150_vm0, %v14149_v20 }
 0x412   : > { %v3836_v61 = vpop.f32.mrb[16].mxu0 }
 0x413   : > { %v12020_v2 = vadd.f32 %v3836_v61, %v1380_v52  ;;  %v3838_v5 = vpop.f32.mrb[17].mxu0 }
 0x414   : > { %v12021_v8 = vadd.f32 %v3838_v5, %v1384_v56  ;;  %v3840_v12 = vpop.f32.mrb[18].mxu0  ;;  %v3942_v14 = vpop.f32.mrb[16].mxu1 }
 0x415   : > { %v12022_v15 = vadd.f32 %v3840_v12, %v1380_v52  ;;  %v3842_v17 = vpop.f32.mrb[19].mxu0  ;;  %v15376_v18 = vadd.f32 %v3942_v14, %v1388_v57  ;;  %v3944_v22 = vpop.f32.mrb[17].mxu1 }
 0x416   : > { %v12023_v24 = vadd.f32 %v3842_v17, %v1384_v56  ;;  %v15378_v28 = vadd.f32 %v3944_v22, %v1392_v63  ;;  %v3946_v30 = vpop.f32.mrb[18].mxu1 }
 0x417   : > { %v3969_v32 = vpack.c.bf16 %v12022_v15, %v12020_v2  ;;  %v15380_v35 = vadd.f32 %v3946_v30, %v1388_v57  ;;  %v3948_v40 = vpop.f32.mrb[19].mxu1 }
 0x418   : > { %v3970_v38 = vpack.c.bf16 %v12023_v24, %v12021_v8  ;;  %v15382_v33 = vadd.f32 %v3948_v40, %v1392_v63 }
 0x419   : > { %11941 = vmatpush3.bf16.msra.mxu0 %v3969_v32  ;;  %v3971_v36 = vpack.c.bf16 %v15380_v35, %v15376_v18 }
 0x41a   : > { %11947 = vmatpush3.bf16.msra.mxu1 %v3970_v38  ;;  %v3846_v58 = vpop.f32.mrb[20].mxu0  ;;  %11952 = vmatprep.subr.bf16.mxu0 %v14149_v20  ;;  %v3972_v59 = vpack.c.bf16 %v15382_v33, %v15378_v28 }
 0x41b   : > { %v15389_v60 = vadd.f32 %v3846_v58, %v1380_v52  ;;  %v3848_v0 = vpop.f32.mrb[21].mxu0  ;;  %11958 = vmatprep.subr.bf16.mxu1 %v14149_v20 }
 0x41c   : > { %v15392_v1 = vadd.f32 %v3848_v0, %v1384_v56  ;;  %v3850_v3 = vpop.f32.mrb[22].mxu0  ;;  %v3952_v4 = vpop.f32.mrb[20].mxu1 }
 0x41d   : > { %v15394_v6 = vadd.f32 %v3850_v3, %v1380_v52  ;;  %v3852_v7 = vpop.f32.mrb[23].mxu0  ;;  %v15396_v62 = vadd.f32 %v3952_v4, %v1388_v57  ;;  %v3954_v9 = vpop.f32.mrb[21].mxu1 }
 0x41e   : > { %v15398_v10 = vadd.f32 %v3852_v7, %v1384_v56  ;;  %v15400_v11 = vadd.f32 %v3954_v9, %v1392_v63  ;;  %v3956_v13 = vpop.f32.mrb[22].mxu1 }
 0x41f   : > { %v3981_v16 = vpack.c.bf16 %v15394_v6, %v15389_v60  ;;  %v15404_v19 = vadd.f32 %v3956_v13, %v1388_v57  ;;  %v3958_v29 = vpop.f32.mrb[23].mxu1  ;;  %v12966_v60 = vld [vmem:[%s14724_s11 + $0xc] ss:$16 sps:$4 sm:$0xff]   ;;  %v12969_v6 = vld [vmem:[%s14724_s11 + $0x4] ss:$16 sps:$4 sm:$0xff]  }
 0x420   : > { %v3982_v31 = vpack.c.bf16 %v15398_v10, %v15392_v1  ;;  %v15408_v34 = vadd.f32 %v3958_v29, %v1392_v63 }
 0x421   : > { %v3983_v39 = vpack.c.bf16 %v15404_v19, %v15396_v62 }
 0x422   : > { %v3984_v42 = vpack.c.bf16 %v15408_v34, %v15400_v11 }
 0x473   : > { %v4136_v44 = vpop.f32.mrb[24].mxu0 }
 0x474   : > { %v11896_v43 = vpop.f32.mrb[25].mxu0  ;;  %v4177_v49 = vpop.f32.mrb[24].mxu1  ;;  %v4431_v53 = vsel %vm4430_vm1, %v4136_v44, -inf }
 0x475   : > { %v11902_v41 = vpop.f32.mrb[25].mxu1  ;;  %4432 = vmax.xlane.f32.xlu1 %v4431_v53  ;;  %v4139_v54 = vpop.f32.mrb[26].mxu0  ;;  %v4437_v51 = vsel %vm4430_vm1, %v4177_v49, -inf }
 0x476   : > { %4438 = vmax.xlane.f32.xlu0 %v4437_v51  ;;  %v11897_v45 = vpop.f32.mrb[27].mxu0  ;;  %v4180_v48 = vpop.f32.mrb[26].mxu1  ;;  %v4434_v52 = vsel %vm4430_vm1, %v4139_v54, -inf }
 0x477   : > { %v11903_v50 = vpop.f32.mrb[27].mxu1  ;;  %v4440_v56 = vsel %vm4430_vm1, %v4180_v48, -inf }
 0x479   : > { %4435 = vmax.xlane.f32.xlu1 %v4434_v52 }
 0x47a   : > { %4441 = vmax.xlane.f32.xlu0 %v4440_v56 }
 0x47b   : > { %v15418_v57 = vpop.f32.mrb[28].mxu0 }
 0x47c   : > { %v11908_v61 = vpop.f32.mrb[29].mxu0  ;;  %v4259_v63 = vpop.f32.mrb[28].mxu1  ;;  %v4443_v22 = vsel %vm4430_vm1, %v15418_v57, -inf }
 0x47d   : > { %v15420_v2 = vpop.f32.mrb[30].mxu0  ;;  %v11914_v5 = vpop.f32.mrb[29].mxu1  ;;  %v4449_v8 = vsel %vm4430_vm1, %v4259_v63, -inf }
 0x47e   : > { %4450 = vmax.xlane.f32.xlu0 %v4449_v8  ;;  %v11909_v12 = vpop.f32.mrb[31].mxu0  ;;  %v4262_v14 = vpop.f32.mrb[30].mxu1  ;;  %v4446_v30 = vsel %vm4430_vm1, %v15420_v2, -inf }
 0x47f   : > { %v11915_v15 = vpop.f32.mrb[31].mxu1  ;;  %v4452_v17 = vsel %vm4430_vm1, %v4262_v14, -inf }
 0x480   : > { %4453 = vmax.xlane.f32.xlu1 %v4452_v17 }
 0x482   : > { %4444 = vmax.xlane.f32.xlu0 %v4443_v22 }
 0x483   : > { %v15426_v24 = vpop.f32.mrb[32].mxu0 }
 0x484   : > { %v15430_v32 = vpop.f32.mrb[32].mxu1  ;;  %4447 = vmax.xlane.f32.xlu1 %v4446_v30  ;;  %v11920_v40 = vpop.f32.mrb[33].mxu0  ;;  %v4455_v13 = vsel %vm4430_vm1, %v15426_v24, -inf }
 0x485   : > { %v15432_v38 = vpop.f32.mrb[34].mxu0  ;;  %v11926_v58 = vpop.f32.mrb[33].mxu1  ;;  %v4461_v0 = vsel %vm4430_vm1, %v15430_v32, -inf }
 0x486   : > { %v15436_v3 = vpop.f32.mrb[34].mxu1  ;;  %4462 = vmax.xlane.f32.xlu0 %v4461_v0  ;;  %v11921_v4 = vpop.f32.mrb[35].mxu0  ;;  %v4458_v43 = vsel %vm4430_vm1, %v15432_v38, -inf }
 0x487   : > { %v11927_v7 = vpop.f32.mrb[35].mxu1  ;;  %v4464_v9 = vsel %vm4430_vm1, %v15436_v3, -inf }
 0x488   : > { %4465 = vmax.xlane.f32.xlu1 %v4464_v9 }
 0x48a   : > { %4456 = vmax.xlane.f32.xlu0 %v4455_v13 }
 0x48b   : > { %v15442_v29 = vpop.f32.mrb[36].mxu0 }
 0x48c   : > { %v15446_v53 = vpop.f32.mrb[36].mxu1  ;;  %4459 = vmax.xlane.f32.xlu1 %v4458_v43  ;;  %v11932_v41 = vpop.f32.mrb[37].mxu0 }
 0x48d   : > { %v15448_v51 = vpop.f32.mrb[38].mxu0  ;;  %v11938_v45 = vpop.f32.mrb[37].mxu1 }
 0x48e   : > { %v11933_v50 = vpop.f32.mrb[39].mxu0  ;;  %v15450_v52 = vpop.f32.mrb[38].mxu1 }
 0x48f   : > { %v11939_v56 = vpop.f32.mrb[39].mxu1 }
 0x502   : > { %v4433_v61 = vpop.xlane.xlu1 %4432 }
 0x503   : > { %v4479_v5 = vsub.f32 %v4136_v44, %v4433_v61  ;;  %v4439_v8 = vpop.xlane.xlu0 %4438 }
 0x504   : > { %v4481_v12 = vsub.f32 %v4177_v49, %v4439_v8 }
 0x505   : > { %v4495_v15 = vmul.f32 1.442695, %v4479_v5 }
 0x506   : > { %v4499_v17 = vmul.f32 1.442695, %v4481_v12  ;;  %v4436_v22 = vpop.xlane.xlu1 %4435 }
 0x507   : > { %v4480_v30 = vsub.f32 %v4139_v54, %v4436_v22  ;;  %v4442_v40 = vpop.xlane.xlu0 %4441 }
 0x508   : > { %13540 = vpow2.f32 %v4499_v17  ;;  %v4482_v58 = vsub.f32 %v4180_v48, %v4442_v40 }
 0x509   : > { %13542 = vpow2.f32 %v4495_v15  ;;  %v4497_v0 = vmul.f32 1.442695, %v4480_v30 }
 0x50a   : > { %v4501_v4 = vmul.f32 1.442695, %v4482_v58 }
 0x50b   : > { %v4451_v7 = vpop.xlane.xlu0 %4450 }
 0x50c   : > { %13544 = vpow2.f32 %v4501_v4  ;;  %v4485_v13 = vsub.f32 %v4259_v63, %v4451_v7 }
 0x50d   : > { %v4454_v9 = vpop.xlane.xlu1 %4453  ;;  %13546 = vpow2.f32 %v4497_v0  ;;  %v4473_v0 = vsel %vm4430_vm1, %v15446_v53, -inf }
 0x50e   : > { %v4486_v41 = vsub.f32 %v4262_v14, %v4454_v9  ;;  %v4507_v49 = vmul.f32 1.442695, %v4485_v13 }
 0x50f   : > { %v4445_v43 = vpop.xlane.xlu0 %4444 }
 0x510   : > { %v4483_v50 = vsub.f32 %v15418_v57, %v4445_v43  ;;  %v4509_v61 = vmul.f32 1.442695, %v4486_v41  ;;  %13548 = vpow2.f32 %v4507_v49 }
 0x511   : > { %v4448_v44 = vpop.xlane.xlu1 %4447 }
 0x512   : > { %v15452_v45 = vpop.eup %13540  ;;  %v4484_v5 = vsub.f32 %v15420_v2, %v4448_v44  ;;  %v4503_v14 = vmul.f32 1.442695, %v4483_v50  ;;  %13550 = vpow2.f32 %v4509_v61 }
 0x513   : > { %v4463_v54 = vpop.xlane.xlu0 %4462  ;;  %v4533_v48 = vsel %vm4430_vm1, %v15452_v45, 0.0  ;;  %v15457_v56 = vpop.eup %13542 }
 0x514   : > { %4534 = vadd.xlane.f32.xlu0 %v4533_v48  ;;  %v4489_v12 = vsub.f32 %v15430_v32, %v4463_v54  ;;  %v4527_v57 = vsel %vm4430_vm1, %v15457_v56, 0.0  ;;  %v4505_v2 = vmul.f32 1.442695, %v4484_v5  ;;  %13552 = vpow2.f32 %v4503_v14 }
 0x515   : > { %v4466_v8 = vpop.xlane.xlu1 %4465 }
 0x516   : > { %v15460_v63 = vpop.eup %13544  ;;  %v4490_v30 = vsub.f32 %v15436_v3, %v4466_v8  ;;  %v4515_v40 = vmul.f32 1.442695, %v4489_v12  ;;  %13554 = vpow2.f32 %v4505_v2  ;;  %v4476_v3 = vsel %vm4430_vm1, %v15450_v52, -inf }
 0x517   : > { %v4457_v15 = vpop.xlane.xlu0 %4456  ;;  %v4536_v17 = vsel %vm4430_vm1, %v15460_v63, 0.0  ;;  %v15467_v22 = vpop.eup %13546 }
 0x518   : > { %4528 = vadd.xlane.f32.xlu0 %v4527_v57  ;;  %4537 = vadd.xlane.f32.xlu1 %v4536_v17  ;;  %v4487_v58 = vsub.f32 %v15426_v24, %v4457_v15  ;;  %v4530_v4 = vsel %vm4430_vm1, %v15467_v22, 0.0  ;;  %v4517_v7 = vmul.f32 1.442695, %v4490_v30  ;;  %13556 = vpow2.f32 %v4515_v40 }
 0x519   : > { %v4460_v32 = vpop.xlane.xlu1 %4459  ;;  %v4467_v24 = vsel %vm4430_vm1, %v15442_v29, -inf }
 0x51a   : > { %v4511_v9 = vmul.f32 1.442695, %v4487_v58  ;;  %v4488_v13 = vsub.f32 %v15432_v38, %v4460_v32  ;;  %v15480_v43 = vpop.eup %13548  ;;  %13558 = vpow2.f32 %v4517_v7  ;;  %v4470_v38 = vsel %vm4430_vm1, %v15448_v51, -inf }
 0x51b   : > { %v4545_v49 = vsel %vm4430_vm1, %v15480_v43, 0.0 }
 0x51c   : > { %4474 = vmax.xlane.f32.xlu0 %v4473_v0  ;;  %4531 = vadd.xlane.f32.xlu1 %v4530_v4  ;;  %13560 = vpow2.f32 %v4511_v9  ;;  %v4513_v41 = vmul.f32 1.442695, %v4488_v13  ;;  %v15482_v44 = vpop.eup %13550 }
 0x51d   : > { %v4548_v61 = vsel %vm4430_vm1, %v15482_v44, 0.0 }
 0x51e   : > { %v15488_v50 = vpop.eup %13552  ;;  %13562 = vpow2.f32 %v4513_v41 }
 0x51f   : > { %v4539_v48 = vsel %vm4430_vm1, %v15488_v50, 0.0 }
 0x520   : > { %4477 = vmax.xlane.f32.xlu1 %v4476_v3  ;;  %4468 = vmax.xlane.f32.xlu0 %v4467_v24  ;;  %v15490_v54 = vpop.eup %13554 }
 0x521   : > { %v4542_v12 = vsel %vm4430_vm1, %v15490_v54, 0.0 }
 0x522   : > { %v15496_v5 = vpop.eup %13556 }
 0x523   : > { %v4557_v14 = vsel %vm4430_vm1, %v15496_v5, 0.0 }
 0x524   : > { %4546 = vadd.xlane.f32.xlu0 %v4545_v49  ;;  %4471 = vmax.xlane.f32.xlu1 %v4470_v38  ;;  %v15498_v8 = vpop.eup %13558 }
 0x525   : > { %v4560_v17 = vsel %vm4430_vm1, %v15498_v8, 0.0 }
 0x526   : > { %v15504_v15 = vpop.eup %13560 }
 0x527   : > { %v4551_v57 = vsel %vm4430_vm1, %v15504_v15, 0.0 }
 0x528   : > { %4540 = vadd.xlane.f32.xlu0 %v4539_v48  ;;  %4549 = vadd.xlane.f32.xlu1 %v4548_v61  ;;  %v15510_v2 = vpop.eup %13562 }
 0x529   : > { %v4554_v30 = vsel %vm4430_vm1, %v15510_v2, 0.0 }
 0x52c   : > { %4558 = vadd.xlane.f32.xlu0 %v4557_v14  ;;  %4543 = vadd.xlane.f32.xlu1 %v4542_v12 }
 0x530   : > { %4552 = vadd.xlane.f32.xlu0 %v4551_v57  ;;  %4561 = vadd.xlane.f32.xlu1 %v4560_v17 }
 0x534   : > { %4555 = vadd.xlane.f32.xlu1 %v4554_v30 }
 0x5a1   : > { %v4535_v40 = vpop.xlane.xlu0 %4534 }
 0x5a2   : > { %13564 = vrcp.f32 %v4535_v40 }
 0x5a5   : > { %v4529_v58 = vpop.xlane.xlu0 %4528  ;;  %v4538_v32 = vpop.xlane.xlu1 %4537 }
 0x5a6   : > { %13566 = vrcp.f32 %v4538_v32 }
 0x5a7   : > { %13568 = vrcp.f32 %v4529_v58 }
 0x5a9   : > { %v4475_v0 = vpop.xlane.xlu0 %4474  ;;  %v4532_v4 = vpop.xlane.xlu1 %4531 }
 0x5aa   : > { %v4493_v7 = vsub.f32 %v15446_v53, %v4475_v0  ;;  %13570 = vrcp.f32 %v4532_v4 }
 0x5ac   : > { %v4523_v9 = vmul.f32 1.442695, %v4493_v7  ;;  %v13565_v49 = vpop.eup %13564 }
 0x5ad   : > { %v4478_v13 = vpop.xlane.xlu1 %4477  ;;  %v4469_v3 = vpop.xlane.xlu0 %4468  ;;  %v4593_v17 = vmul.f32 %v13565_v49, %v15452_v45 }
 0x5ae   : > { %13572 = vpow2.f32 %v4523_v9  ;;  %v4494_v24 = vsub.f32 %v15450_v52, %v4478_v13  ;;  %v4491_v41 = vsub.f32 %v15442_v29, %v4469_v3 }
 0x5b0   : > { %v4525_v38 = vmul.f32 1.442695, %v4494_v24  ;;  %v4519_v48 = vmul.f32 1.442695, %v4491_v41  ;;  %v13567_v61 = vpop.eup %13566 }
 0x5b1   : > { %v4547_v14 = vpop.xlane.xlu0 %4546  ;;  %v4472_v12 = vpop.xlane.xlu1 %4471  ;;  %v4594_v53 = vmul.f32 %v13567_v61, %v15460_v63 }
 0x5b2   : > { %v13569_v57 = vpop.eup %13568  ;;  %13574 = vpow2.f32 %v4525_v38  ;;  %v4492_v30 = vsub.f32 %v15448_v51, %v4472_v12 }
 0x5b3   : > { %13576 = vpow2.f32 %v4519_v48  ;;  %v4608_v52 = vpack.c.bf16 %v4594_v53, %v4593_v17  ;;  %v4591_v29 = vmul.f32 %v13569_v57, %v15457_v56 }
 0x5b4   : > { %v13571_v40 = vpop.eup %13570  ;;  %v4521_v58 = vmul.f32 1.442695, %v4492_v30  ;;  %13578 = vrcp.f32 %v4547_v14  ;;  %v12972_v30 = vld [vmem:[%s14724_s11 + $0x2c] ss:$16 sps:$4 sm:$0xff]  }
 0x5b5   : > { %v4592_v32 = vmul.f32 %v13571_v40, %v15467_v22  ;;  %v4541_v0 = vpop.xlane.xlu0 %4540  ;;  %v4550_v4 = vpop.xlane.xlu1 %4549  ;;  %11949 = vmatmul.mubr.msk.bf16.vlgmr.msra.gmra.mrb[40].mxu1 %vm4430_vm1, %v4608_v52 }
 0x5b6   : > { %13580 = vpow2.f32 %v4521_v58  ;;  %11959 = vmatpush3.bf16.msra.mxu1 %v3972_v59  ;;  %11960 = vmatprep.mubr.msk.bf16.mxu1 %vm14150_vm0, %v14149_v20 }
 0x5b7   : > { %v4607_v45 = vpack.c.bf16 %v4592_v32, %v4591_v29  ;;  %13582 = vrcp.f32 %v4550_v4  ;;  %11970 = vmatprep.subr.bf16.mxu1 %v14149_v20  ;;  %v12967_v29 = vld [vmem:[%s14724_s11] ss:$16 sps:$4 sm:$0xff]   ;;  %v12970_v32 = vld [vmem:[%s14724_s11 + $0x28] ss:$16 sps:$4 sm:$0xff]   ;;  %v12975_v4 = vld [vmem:[%s14724_s11 + $0x24] ss:$16 sps:$4 sm:$0xff]  }
 0x5b8   : > { %v15528_v51 = vpop.eup %13572  ;;  %13584 = vrcp.f32 %v4541_v0 }
 0x5b9   : > { %11943 = vmatmul.mubr.msk.bf16.vlgmr.msra.gmra.mrb[40].mxu0 %vm4430_vm1, %v4607_v45  ;;  %v4559_v56 = vpop.xlane.xlu0 %4558  ;;  %v4544_v63 = vpop.xlane.xlu1 %4543  ;;  %v4569_v22 = vsel %vm4430_vm1, %v15528_v51, 0.0  ;;  %v12978_v45 = vld [vmem:[%s14724_s11 + $0x4c] ss:$16 sps:$4 sm:$0xff]  }
 0x5ba   : > { %11953 = vmatpush3.bf16.msra.mxu0 %v3971_v36  ;;  %4570 = vadd.xlane.f32.xlu0 %v4569_v22  ;;  %13586 = vrcp.f32 %v4544_v63  ;;  %v12981_v63 = vld [vmem:[%s14724_s11 + $0x44] ss:$16 sps:$4 sm:$0xff]   ;;  %v12984_v22 = vld [vmem:[%s14724_s11 + $0x6c] ss:$16 sps:$4 sm:$0xff]  }
 0x5bb   : > { %11954 = vmatprep.mubr.msk.bf16.mxu0 %vm14150_vm0, %v14149_v20  ;;  %11964 = vmatprep.subr.bf16.mxu0 %v14149_v20  ;;  %13588 = vrcp.f32 %v4559_v56  ;;  %v12976_v56 = vld [vmem:[%s14724_s11 + $0x48] ss:$16 sps:$4 sm:$0xff]  }
 0x5bc   : > { %v15540_v28 = vpop.eup %13574 }
 0x5bd   : > { %v15542_v33 = vpop.eup %13576  ;;  %v4553_v59 = vpop.xlane.xlu0 %4552  ;;  %v4572_v9 = vsel %vm4430_vm1, %v15540_v28, 0.0 }
 0x5be   : > { %v4562_v7 = vpop.xlane.xlu1 %4561  ;;  %v4563_v18 = vsel %vm4430_vm1, %v15542_v33, 0.0  ;;  %4573 = vadd.xlane.f32.xlu1 %v4572_v9  ;;  %v13579_v35 = vpop.eup %13578  ;;  %v12985_v9 = vld [vmem:[%s14724_s11 + $0x60] ss:$16 sps:$4 sm:$0xff]  }
 0x5bf   : > { %13590 = vrcp.f32 %v4562_v7  ;;  %4564 = vadd.xlane.f32.xlu0 %v4563_v18  ;;  %v4597_v49 = vmul.f32 %v13579_v35, %v15480_v43  ;;  %v12990_v7 = vld [vmem:[%s14724_s11 + $0x8c] ss:$16 sps:$4 sm:$0xff]   ;;  %v12988_v18 = vld [vmem:[%s14724_s11 + $0x88] ss:$16 sps:$4 sm:$0xff]   ;;  %v12993_v35 = vld [vmem:[%s14724_s11 + $0x84] ss:$16 sps:$4 sm:$0xff]  }
 0x5c0   : > { %v13581_v36 = vpop.eup %13580  ;;  %13592 = vrcp.f32 %v4553_v59  ;;  %v12987_v59 = vld [vmem:[%s14724_s11 + $0x64] ss:$16 sps:$4 sm:$0xff]  }
 0x5c1   : > { %v4566_v3 = vsel %vm4430_vm1, %v13581_v36, 0.0  ;;  %v13583_v24 = vpop.eup %13582 }
 0x5c2   : > { %v4556_v13 = vpop.xlane.xlu1 %4555  ;;  %4567 = vadd.xlane.f32.xlu1 %v4566_v3  ;;  %v13585_v41 = vpop.eup %13584  ;;  %v4598_v38 = vmul.f32 %v13583_v24, %v15482_v44  ;;  %v12994_v3 = vld [vmem:[%s14724_s11 + $0xa8] ss:$16 sps:$4 sm:$0xff]   ;;  %v12999_v24 = vld [vmem:[%s14724_s11 + $0xa4] ss:$16 sps:$4 sm:$0xff]  }
 0x5c3   : > { %13594 = vrcp.f32 %v4556_v13  ;;  %v4595_v14 = vmul.f32 %v13585_v41, %v15488_v50  ;;  %v12991_v13 = vld [vmem:[%s14724_s11 + $0x80] ss:$16 sps:$4 sm:$0xff]   ;;  %v13002_v41 = vld [vmem:[%s14724_s11 + $0xcc] ss:$16 sps:$4 sm:$0xff]  }
 0x5c4   : > { %v13587_v48 = vpop.eup %13586  ;;  %v4610_v61 = vpack.c.bf16 %v4598_v38, %v4597_v49  ;;  %v12997_v49 = vld [vmem:[%s14724_s11 + $0xa0] ss:$16 sps:$4 sm:$0xff]   ;;  %v13000_v38 = vld [vmem:[%s14724_s11 + $0xc8] ss:$16 sps:$4 sm:$0xff]  }
 0x5c5   : > { %v4596_v12 = vmul.f32 %v13587_v48, %v15490_v54  ;;  %v13589_v57 = vpop.eup %13588  ;;  %v13005_v48 = vld [vmem:[%s14724_s11 + $0xc4] ss:$16 sps:$4 sm:$0xff]  }
 0x5c6   : > { %11961 = vmatmul.mubr.msk.bf16.vlgmr.msra.gmra.mrb[44].mxu1 %vm4430_vm1, %v4610_v61  ;;  %v4601_v53 = vmul.f32 %v13589_v57, %v15496_v5  ;;  %v13008_v61 = vld [vmem:[%s14724_s11 + $0xec] ss:$16 sps:$4 sm:$0xff]   ;;  %v13011_v57 = vld [vmem:[%s14724_s11 + $0xe4] ss:$16 sps:$4 sm:$0xff]  }
 0x5c7   : > { %11971 = vmatpush3.bf16.msra.mxu1 %v3982_v31  ;;  %v4609_v17 = vpack.c.bf16 %v4596_v12, %v4595_v14  ;;  %11972 = vmatprep.mubr.msk.bf16.mxu1 %vm14150_vm0, %v14149_v20  ;;  %v13003_v14 = vld [vmem:[%s14724_s11 + $0xc0] ss:$16 sps:$4 sm:$0xff]   ;;  %v13006_v12 = vld [vmem:[%s14724_s11 + $0xe8] ss:$16 sps:$4 sm:$0xff]  }
 0x5c8   : > { %11982 = vmatprep.subr.bf16.mxu1 %v14149_v20 }
 0x5c9   : > { %v13591_v43 = vpop.eup %13590  ;;  %11955 = vmatmul.mubr.msk.bf16.vlgmr.msra.gmra.mrb[44].mxu0 %vm4430_vm1, %v4609_v17  ;;  %v13014_v17 = vld [vmem:[%s14724_s11 + $0x10c] ss:$16 sps:$4 sm:$0xff]  }
 0x5ca   : > { %v13593_v44 = vpop.eup %13592  ;;  %v4602_v50 = vmul.f32 %v13591_v43, %v15498_v8  ;;  %11965 = vmatpush3.bf16.msra.mxu0 %v3981_v16  ;;  %11966 = vmatprep.mubr.msk.bf16.mxu0 %vm14150_vm0, %v14149_v20  ;;  %v13009_v43 = vld [vmem:[%s14724_s11 + $0xe0] ss:$16 sps:$4 sm:$0xff]  }
 0x5cb   : > { %11976 = vmatprep.subr.bf16.mxu0 %v14149_v20  ;;  %v4599_v31 = vmul.f32 %v13593_v44, %v15504_v15  ;;  %v12964_v15 = vld [vmem:[%s14724_s11 + $0x8] ss:$16 sps:$4 sm:$0xff]  }
 0x5cc   : > { %v4612_v10 = vpack.c.bf16 %v4602_v50, %v4601_v53  ;;  %v13012_v44 = vld [vmem:[%s14724_s11 + $0x108] ss:$16 sps:$4 sm:$0xff]   ;;  %v13017_v53 = vld [vmem:[%s14724_s11 + $0x104] ss:$16 sps:$4 sm:$0xff]   ;;  %v13020_v50 = vld [vmem:[%s14724_s11 + $0x12c] ss:$16 sps:$4 sm:$0xff]  }
 0x5cd   : > { %v13595_v1 = vpop.eup %13594 }
 0x5ce   : > { %v4600_v54 = vmul.f32 %v13595_v1, %v15510_v2  ;;  %11973 = vmatmul.mubr.msk.bf16.vlgmr.msra.gmra.mrb[48].mxu1 %vm4430_vm1, %v4612_v10  ;;  %v13015_v1 = vld [vmem:[%s14724_s11 + $0x100] ss:$16 sps:$4 sm:$0xff]   ;;  %v13018_v10 = vld [vmem:[%s14724_s11 + $0x128] ss:$16 sps:$4 sm:$0xff]  }
 0x5cf   : > { %11983 = vmatpush3.bf16.msra.mxu1 %v3984_v42  ;;  %11984 = vmatprep.mubr.msk.bf16.mxu1 %vm14150_vm0, %v14149_v20 }
 0x5d0   : > { %v4611_v5 = vpack.c.bf16 %v4600_v54, %v4599_v31  ;;  %5887 = vmatprep.subr.bf16.mxu1 %v12966_v60  ;;  %v13023_v31 = vld [vmem:[%s14724_s11 + $0x124] ss:$16 sps:$4 sm:$0xff]   ;;  %v13026_v54 = vld [vmem:[%s14724_s11 + $0x14c] ss:$16 sps:$4 sm:$0xff]   ;;  %v13024_v60 = vld [vmem:[%s14724_s11 + $0x148] ss:$16 sps:$4 sm:$0xff]  }
 0x5d2   : > { %11967 = vmatmul.mubr.msk.bf16.vlgmr.msra.gmra.mrb[48].mxu0 %vm4430_vm1, %v4611_v5  ;;  %v13021_v5 = vld [vmem:[%s14724_s11 + $0x120] ss:$16 sps:$4 sm:$0xff]  }
 0x5d3   : > { %11977 = vmatpush3.bf16.msra.mxu0 %v3983_v39  ;;  %11978 = vmatprep.mubr.msk.bf16.mxu0 %vm14150_vm0, %v14149_v20 }
 0x5d4   : > { %5781 = vmatprep.subr.bf16.mxu0 %v12969_v6  ;;  %v13029_v6 = vld [vmem:[%s14724_s11 + $0x144] ss:$16 sps:$4 sm:$0xff]  }
 0x647   : > { %v4571_v11 = vpop.xlane.xlu0 %4570 }
 0x648   : > { %13596 = vrcp.f32 %v4571_v11  ;;  %v13032_v11 = vld [vmem:[%s14724_s11 + $0x16c] ss:$16 sps:$4 sm:$0xff]  }
 0x64b   : > { %v4574_v16 = vpop.xlane.xlu1 %4573 }
 0x64c   : > { %v4565_v34 = vpop.xlane.xlu0 %4564  ;;  %13598 = vrcp.f32 %v4574_v16  ;;  %v13027_v16 = vld [vmem:[%s14724_s11 + $0x140] ss:$16 sps:$4 sm:$0xff]  }
 0x64d   : > { %13600 = vrcp.f32 %v4565_v34  ;;  %v13030_v34 = vld [vmem:[%s14724_s11 + $0x168] ss:$16 sps:$4 sm:$0xff]  }
 0x64f   : > { %v4568_v42 = vpop.xlane.xlu1 %4567 }
 0x650   : > { %13602 = vrcp.f32 %v4568_v42  ;;  %v13035_v42 = vld [vmem:[%s14724_s11 + $0x164] ss:$16 sps:$4 sm:$0xff]  }
 0x652   : > { %v13597_v62 = vpop.eup %13596 }
 0x653   : > { %v4605_v20 = vmul.f32 %v13597_v62, %v15528_v51  ;;  %v12973_v51 = vld [vmem:[%s14724_s11 + $0x20] ss:$16 sps:$4 sm:$0xff]   ;;  %v13038_v62 = vld [vmem:[%s14724_s11 + $0x18c] ss:$16 sps:$4 sm:$0xff]  }
 0x656   : > { %v13599_v19 = vpop.eup %13598 }
 0x657   : > { %v4606_v39 = vmul.f32 %v13599_v19, %v15540_v28  ;;  %v13601_v8 = vpop.eup %13600  ;;  %v12979_v28 = vld [vmem:[%s14724_s11 + $0x40] ss:$16 sps:$4 sm:$0xff]  }
 0x658   : > { %v4603_v58 = vmul.f32 %v13601_v8, %v15542_v33  ;;  %v12982_v33 = vld [vmem:[%s14724_s11 + $0x68] ss:$16 sps:$4 sm:$0xff]   ;;  %v13033_v19 = vld [vmem:[%s14724_s11 + $0x160] ss:$16 sps:$4 sm:$0xff]   ;;  %v13041_v8 = vld [vmem:[%s14724_s11 + $0x184] ss:$16 sps:$4 sm:$0xff]  }
 0x659   : > { %v4614_v2 = vpack.c.bf16 %v4606_v39, %v4605_v20  ;;  %v13036_v20 = vld [vmem:[%s14724_s11 + $0x188] ss:$16 sps:$4 sm:$0xff]  }
 0x65a   : > { %v13603_v40 = vpop.eup %13602 }
 0x65b   : > { %v4604_v52 = vmul.f32 %v13603_v40, %v13581_v36  ;;  %11985 = vmatmul.mubr.msk.bf16.vlgmr.msra.gmra.mrb[52].mxu1 %vm4430_vm1, %v4614_v2  ;;  %v12996_v36 = vld [vmem:[%s14724_s11 + $0xac] ss:$16 sps:$4 sm:$0xff]  }
 0x65c   : > { %5888 = vmatpush1.bf16.msra.mxu1 %v12964_v15  ;;  %v13044_v15 = vld [vmem:[%s14724_s11 + $0x1ac] ss:$16 sps:$4 sm:$0xff]  }
 0x65d   : > { %5889 = vmatprep.subr.bf16.mxu1 %v12972_v30  ;;  %v4613_v0 = vpack.c.bf16 %v4604_v52, %v4603_v58 }
 0x65f   : > { %11979 = vmatmul.mubr.msk.bf16.vlgmr.msra.gmra.mrb[52].mxu0 %vm4430_vm1, %v4613_v0 }
 0x660   : > { %5782 = vmatpush1.bf16.msra.mxu0 %v12967_v29  ;;  %5890 = vmatpush1.bf16.msra.mxu1 %v12970_v32  ;;  %v13039_v29 = vld [vmem:[%s14724_s11 + $0x180] ss:$16 sps:$4 sm:$0xff]   ;;  %v13042_v32 = vld [vmem:[%s14724_s11 + $0x1a8] ss:$16 sps:$4 sm:$0xff]  }
 0x661   : > { %5783 = vmatprep.subr.bf16.mxu0 %v12975_v4  ;;  %5891 = vmatprep.subr.bf16.mxu1 %v12978_v45  ;;  %v13047_v4 = vld [vmem:[%s14724_s11 + $0x1a4] ss:$16 sps:$4 sm:$0xff]   ;;  %v13050_v45 = vld [vmem:[%s14724_s11 + $0x1cc] ss:$16 sps:$4 sm:$0xff]  }
 0x664   : > { %5784 = vmatpush1.bf16.msra.mxu0 %v12973_v51  ;;  %5892 = vmatpush1.bf16.msra.mxu1 %v12976_v56 }
 0x665   : > { %5785 = vmatprep.subr.bf16.mxu0 %v12981_v63  ;;  %5893 = vmatprep.subr.bf16.mxu1 %v12984_v22  ;;  %v13045_v22 = vld [vmem:[%s14724_s11 + $0x1a0] ss:$16 sps:$4 sm:$0xff]  }
 0x668   : > { %5786 = vmatpush1.bf16.msra.mxu0 %v12979_v28  ;;  %5894 = vmatpush1.bf16.msra.mxu1 %v12982_v33  ;;  %v13048_v28 = vld [vmem:[%s14724_s11 + $0x1c8] ss:$16 sps:$4 sm:$0xff]   ;;  %v13053_v33 = vld [vmem:[%s14724_s11 + $0x1c4] ss:$16 sps:$4 sm:$0xff]  }
 0x669   : > { %5787 = vmatprep.subr.bf16.mxu0 %v12987_v59  ;;  %5895 = vmatprep.subr.bf16.mxu1 %v12990_v7  ;;  %v13056_v59 = vld [vmem:[%s14724_s11 + $0x1ec] ss:$16 sps:$4 sm:$0xff]   ;;  %v13051_v7 = vld [vmem:[%s14724_s11 + $0x1c0] ss:$16 sps:$4 sm:$0xff]  }
 0x66c   : > { %5788 = vmatpush1.bf16.msra.mxu0 %v12985_v9  ;;  %5896 = vmatpush1.bf16.msra.mxu1 %v12988_v18  ;;  %v13054_v9 = vld [vmem:[%s14724_s11 + $0x1e8] ss:$16 sps:$4 sm:$0xff]   ;;  %v13059_v18 = vld [vmem:[%s14724_s11 + $0x1e4] ss:$16 sps:$4 sm:$0xff]  }
 0x66d   : > { %5789 = vmatprep.subr.bf16.mxu0 %v12993_v35  ;;  %5897 = vmatprep.subr.bf16.mxu1 %v12996_v36  ;;  %v13062_v35 = vld [vmem:[%s14724_s11 + $0x20c] ss:$16 sps:$4 sm:$0xff]   ;;  %v13057_v36 = vld [vmem:[%s14724_s11 + $0x1e0] ss:$16 sps:$4 sm:$0xff]  }
 0x670   : > { %5790 = vmatpush1.bf16.msra.mxu0 %v12991_v13  ;;  %5898 = vmatpush1.bf16.msra.mxu1 %v12994_v3  ;;  %v13060_v13 = vld [vmem:[%s14724_s11 + $0x208] ss:$16 sps:$4 sm:$0xff]   ;;  %v13065_v3 = vld [vmem:[%s14724_s11 + $0x204] ss:$16 sps:$4 sm:$0xff]  }
 0x671   : > { %5791 = vmatprep.subr.bf16.mxu0 %v12999_v24  ;;  %5899 = vmatprep.subr.bf16.mxu1 %v13002_v41  ;;  %v13068_v24 = vld [vmem:[%s14724_s11 + $0x22c] ss:$16 sps:$4 sm:$0xff]  }
 0x674   : > { %5792 = vmatpush1.bf16.msra.mxu0 %v12997_v49  ;;  %5900 = vmatpush1.bf16.msra.mxu1 %v13000_v38 }
 0x675   : > { %5793 = vmatprep.subr.bf16.mxu0 %v13005_v48  ;;  %5901 = vmatprep.subr.bf16.mxu1 %v13008_v61  ;;  %v13063_v48 = vld [vmem:[%s14724_s11 + $0x200] ss:$16 sps:$4 sm:$0xff]   ;;  %v13066_v61 = vld [vmem:[%s14724_s11 + $0x228] ss:$16 sps:$4 sm:$0xff]  }
 0x678   : > { %5794 = vmatpush1.bf16.msra.mxu0 %v13003_v14  ;;  %5902 = vmatpush1.bf16.msra.mxu1 %v13006_v12 }
 0x679   : > { %5795 = vmatprep.subr.bf16.mxu0 %v13011_v57  ;;  %5903 = vmatprep.subr.bf16.mxu1 %v13014_v17  ;;  %v13071_v17 = vld [vmem:[%s14724_s11 + $0x224] ss:$16 sps:$4 sm:$0xff]  }
 0x67c   : > { %5796 = vmatpush1.bf16.msra.mxu0 %v13009_v43  ;;  %5904 = vmatpush1.bf16.msra.mxu1 %v13012_v44  ;;  %v13074_v43 = vld [vmem:[%s14724_s11 + $0x24c] ss:$16 sps:$4 sm:$0xff]  }
 0x67d   : > { %5797 = vmatprep.subr.bf16.mxu0 %v13017_v53  ;;  %5905 = vmatprep.subr.bf16.mxu1 %v13020_v50 }
 0x680   : > { %5798 = vmatpush1.bf16.msra.mxu0 %v13015_v1  ;;  %5906 = vmatpush1.bf16.msra.mxu1 %v13018_v10  ;;  %v13069_v10 = vld [vmem:[%s14724_s11 + $0x220] ss:$16 sps:$4 sm:$0xff]  }
 0x681   : > { %5799 = vmatprep.subr.bf16.mxu0 %v13023_v31  ;;  %5907 = vmatprep.subr.bf16.mxu1 %v13026_v54  ;;  %v13072_v31 = vld [vmem:[%s14724_s11 + $0x248] ss:$16 sps:$4 sm:$0xff]   ;;  %v13077_v54 = vld [vmem:[%s14724_s11 + $0x244] ss:$16 sps:$4 sm:$0xff]  }
 0x684   : > { %5800 = vmatpush1.bf16.msra.mxu0 %v13021_v5  ;;  %5908 = vmatpush1.bf16.msra.mxu1 %v13024_v60  ;;  %v13080_v5 = vld [vmem:[%s14724_s11 + $0x26c] ss:$16 sps:$4 sm:$0xff]  }
 0x685   : > { %5801 = vmatprep.subr.bf16.mxu0 %v13029_v6  ;;  %5909 = vmatprep.subr.bf16.mxu1 %v13032_v11 }
 0x688   : > { %5802 = vmatpush1.bf16.msra.mxu0 %v13027_v16  ;;  %5910 = vmatpush1.bf16.msra.mxu1 %v13030_v34  ;;  %v4696_v39 = vpop.f32.mrb[40].mxu1  ;;  %v13075_v16 = vld [vmem:[%s14724_s11 + $0x240] ss:$16 sps:$4 sm:$0xff]   ;;  %v13078_v34 = vld [vmem:[%s14724_s11 + $0x268] ss:$16 sps:$4 sm:$0xff]  }
 0x689   : > { %5803 = vmatprep.subr.bf16.mxu0 %v13035_v42  ;;  %5911 = vmatprep.subr.bf16.mxu1 %v13038_v62  ;;  %v11950_v2 = vpop.f32.mrb[41].mxu1 }
 0x68a   : > { %v4699_v30 = vpop.f32.mrb[42].mxu1 }
 0x68b   : > { %v4969_v40 = vpack.c.bf16 %v4699_v30, %v4696_v39  ;;  %v11951_v58 = vpop.f32.mrb[43].mxu1  ;;  %v13086_v39 = vld [vmem:[%s14724_s11 + $0x28c] ss:$16 sps:$4 sm:$0xff]  }
 0x68c   : > { %5804 = vmatpush1.bf16.msra.mxu0 %v13033_v19  ;;  %5912 = vmatpush1.bf16.msra.mxu1 %v13036_v20  ;;  %v4652_v52 = vpop.f32.mrb[40].mxu0  ;;  %v13083_v20 = vld [vmem:[%s14724_s11 + $0x264] ss:$16 sps:$4 sm:$0xff]   ;;  %v13084_v58 = vld [vmem:[%s14724_s11 + $0x288] ss:$16 sps:$4 sm:$0xff]  }
 0x68d   : > { %v11944_v0 = vpop.f32.mrb[41].mxu0  ;;  %5805 = vmatprep.subr.bf16.mxu0 %v13041_v8  ;;  %5913 = vmatprep.subr.bf16.mxu1 %v13044_v15 }
 0x68e   : > { %5813 = vmatprep.mubr.bf16.mxu0 %v4969_v40  ;;  %5919 = vmatprep.mubr.bf16.mxu1 %v4969_v40  ;;  %v4655_v51 = vpop.f32.mrb[42].mxu0  ;;  %v13081_v40 = vld [vmem:[%s14724_s11 + $0x260] ss:$16 sps:$4 sm:$0xff]   ;;  %v13090_v0 = vld [vmem:[%s14724_s11 + $0x2a8] ss:$16 sps:$4 sm:$0xff]  }
 0x68f   : > { %v4967_v56 = vpack.c.bf16 %v4655_v51, %v4652_v52  ;;  %v11945_v63 = vpop.f32.mrb[43].mxu0  ;;  %v13089_v52 = vld [vmem:[%s14724_s11 + $0x284] ss:$16 sps:$4 sm:$0xff]   ;;  %v13093_v51 = vld [vmem:[%s14724_s11 + $0x2a0] ss:$16 sps:$4 sm:$0xff]  }
 0x690   : > { %5806 = vmatpush1.bf16.msra.mxu0 %v13039_v29  ;;  %5914 = vmatpush1.bf16.msra.mxu1 %v13042_v32  ;;  %v13092_v29 = vld [vmem:[%s14724_s11 + $0x2ac] ss:$16 sps:$4 sm:$0xff]   ;;  %v13087_v32 = vld [vmem:[%s14724_s11 + $0x280] ss:$16 sps:$4 sm:$0xff]   ;;  %v13101_v63 = vld [vmem:[%s14724_s11 + $0x2c4] ss:$16 sps:$4 sm:$0xff]  }
 0x691   : > { %5807 = vmatprep.subr.bf16.mxu0 %v13047_v4  ;;  %5915 = vmatprep.subr.bf16.mxu1 %v13050_v45  ;;  %v13095_v4 = vld [vmem:[%s14724_s11 + $0x2a4] ss:$16 sps:$4 sm:$0xff]   ;;  %v13098_v45 = vld [vmem:[%s14724_s11 + $0x2cc] ss:$16 sps:$4 sm:$0xff]  }
 0x694   : > { %5808 = vmatpush1.bf16.msra.mxu0 %v13045_v22  ;;  %5916 = vmatpush1.bf16.msra.mxu1 %v13048_v28  ;;  %v13104_v22 = vld [vmem:[%s14724_s11 + $0x2ec] ss:$16 sps:$4 sm:$0xff]   ;;  %v13099_v28 = vld [vmem:[%s14724_s11 + $0x2c0] ss:$16 sps:$4 sm:$0xff]  }
 0x695   : > { %5809 = vmatprep.subr.bf16.mxu0 %v13053_v33  ;;  %5917 = vmatprep.subr.bf16.mxu1 %v13056_v59  ;;  %v13102_v33 = vld [vmem:[%s14724_s11 + $0x2e8] ss:$16 sps:$4 sm:$0xff]   ;;  %v13107_v59 = vld [vmem:[%s14724_s11 + $0x2e4] ss:$16 sps:$4 sm:$0xff]  }
 0x698   : > { %5810 = vmatpush1.bf16.msra.mxu0 %v13051_v7  ;;  %5918 = vmatpush1.bf16.msra.mxu1 %v13054_v9  ;;  %v13110_v7 = vld [vmem:[%s14724_s11 + $0x30c] ss:$16 sps:$4 sm:$0xff]   ;;  %v13105_v9 = vld [vmem:[%s14724_s11 + $0x2e0] ss:$16 sps:$4 sm:$0xff]  }
 0x699   : > { %5811 = vmatprep.subr.bf16.mxu0 %v13059_v18  ;;  %5940 = vmatprep.subr.bf16.mxu1 %v13062_v35  ;;  %v4784_v41 = vpop.f32.mrb[44].mxu1  ;;  %v13108_v18 = vld [vmem:[%s14724_s11 + $0x308] ss:$16 sps:$4 sm:$0xff]   ;;  %v13113_v35 = vld [vmem:[%s14724_s11 + $0x304] ss:$16 sps:$4 sm:$0xff]  }
 0x69a   : > { %v11962_v49 = vpop.f32.mrb[45].mxu1 }
 0x69b   : > { %5920 = vmatmul.mubr.bf16.vlgmr.msra.gmra.mrb[56].mxu1 %v4967_v56  ;;  %v4787_v38 = vpop.f32.mrb[46].mxu1  ;;  %v13117_v49 = vld [vmem:[%s14724_s11 + $0x320] ss:$16 sps:$4 sm:$0xff]  }
 0x69c   : > { %5812 = vmatpush1.bf16.msra.mxu0 %v13057_v36  ;;  %5941 = vmatpush1.bf16.msra.mxu1 %v13060_v13  ;;  %v4973_v14 = vpack.c.bf16 %v4787_v38, %v4784_v41  ;;  %v11963_v12 = vpop.f32.mrb[47].mxu1  ;;  %v4740_v57 = vpop.f32.mrb[44].mxu0  ;;  %v13116_v36 = vld [vmem:[%s14724_s11 + $0x32c] ss:$16 sps:$4 sm:$0xff]   ;;  %v13111_v13 = vld [vmem:[%s14724_s11 + $0x300] ss:$16 sps:$4 sm:$0xff]  }
 0x69d   : > { %5834 = vmatprep.subr.bf16.mxu0 %v13065_v3  ;;  %5942 = vmatprep.subr.bf16.mxu1 %v13068_v24  ;;  %v11956_v44 = vpop.f32.mrb[45].mxu0  ;;  %v13114_v3 = vld [vmem:[%s14724_s11 + $0x328] ss:$16 sps:$4 sm:$0xff]   ;;  %v13119_v24 = vld [vmem:[%s14724_s11 + $0x324] ss:$16 sps:$4 sm:$0xff]  }
 0x69e   : > { %v4743_v53 = vpop.f32.mrb[46].mxu0  ;;  %v13122_v41 = vld [vmem:[%s14724_s11 + $0x34c] ss:$16 sps:$4 sm:$0xff]   ;;  %v13120_v38 = vld [vmem:[%s14724_s11 + $0x348] ss:$16 sps:$4 sm:$0xff]  }
 0x69f   : > { %5814 = vmatmul.mubr.bf16.vlgmr.msra.gmra.mrb[56].mxu0 %v4967_v56  ;;  %v15660_v50 = vpack.c.bf16 %v4743_v53, %v4740_v57  ;;  %v11957_v1 = vpop.f32.mrb[47].mxu0  ;;  %v13096_v56 = vld [vmem:[%s14724_s11 + $0x2c8] ss:$16 sps:$4 sm:$0xff]   ;;  %v13131_v57 = vld [vmem:[%s14724_s11 + $0x364] ss:$16 sps:$4 sm:$0xff]  }
 0x6a0   : > { %5835 = vmatpush1.bf16.msra.mxu0 %v13063_v48  ;;  %5943 = vmatpush1.bf16.msra.mxu1 %v13066_v61  ;;  %v13125_v48 = vld [vmem:[%s14724_s11 + $0x344] ss:$16 sps:$4 sm:$0xff]   ;;  %v13128_v61 = vld [vmem:[%s14724_s11 + $0x36c] ss:$16 sps:$4 sm:$0xff]   ;;  %v13126_v12 = vld [vmem:[%s14724_s11 + $0x368] ss:$16 sps:$4 sm:$0xff]  }
 0x6a1   : > { %5836 = vmatprep.subr.bf16.mxu0 %v13071_v17  ;;  %5944 = vmatprep.subr.bf16.mxu1 %v13074_v43  ;;  %v4872_v60 = vpop.f32.mrb[48].mxu1  ;;  %v13134_v17 = vld [vmem:[%s14724_s11 + $0x38c] ss:$16 sps:$4 sm:$0xff]   ;;  %v13129_v43 = vld [vmem:[%s14724_s11 + $0x360] ss:$16 sps:$4 sm:$0xff]  }
 0x6a2   : > { %v11974_v6 = vpop.f32.mrb[49].mxu1  ;;  %v13132_v44 = vld [vmem:[%s14724_s11 + $0x388] ss:$16 sps:$4 sm:$0xff]   ;;  %v13137_v53 = vld [vmem:[%s14724_s11 + $0x384] ss:$16 sps:$4 sm:$0xff]  }
 0x6a3   : > { %v4875_v11 = vpop.f32.mrb[50].mxu1  ;;  %v13140_v1 = vld [vmem:[%s14724_s11 + $0x3ac] ss:$16 sps:$4 sm:$0xff]   ;;  %v13144_v6 = vld [vmem:[%s14724_s11 + $0x3c8] ss:$16 sps:$4 sm:$0xff]  }
 0x6a4   : > { %5837 = vmatpush1.bf16.msra.mxu0 %v13069_v10  ;;  %5945 = vmatpush1.bf16.msra.mxu1 %v13072_v31  ;;  %v4977_v42 = vpack.c.bf16 %v4875_v11, %v4872_v60  ;;  %v11975_v62 = vpop.f32.mrb[51].mxu1  ;;  %v13135_v10 = vld [vmem:[%s14724_s11 + $0x380] ss:$16 sps:$4 sm:$0xff]   ;;  %v13138_v31 = vld [vmem:[%s14724_s11 + $0x3a8] ss:$16 sps:$4 sm:$0xff]  }
 0x6a5   : > { %v4828_v19 = vpop.f32.mrb[48].mxu0  ;;  %5838 = vmatprep.subr.bf16.mxu0 %v13077_v54  ;;  %5946 = vmatprep.subr.bf16.mxu1 %v13080_v5  ;;  %v13143_v54 = vld [vmem:[%s14724_s11 + $0x3a4] ss:$16 sps:$4 sm:$0xff]   ;;  %v13146_v5 = vld [vmem:[%s14724_s11 + $0x3cc] ss:$16 sps:$4 sm:$0xff]  }
 0x6a6   : > { %v11968_v8 = vpop.f32.mrb[49].mxu0  ;;  %5823 = vmatprep.mubr.bf16.mxu0 %v4977_v42  ;;  %5929 = vmatprep.mubr.bf16.mxu1 %v4977_v42  ;;  %v13141_v60 = vld [vmem:[%s14724_s11 + $0x3a0] ss:$16 sps:$4 sm:$0xff]   ;;  %v13149_v11 = vld [vmem:[%s14724_s11 + $0x3c4] ss:$16 sps:$4 sm:$0xff]  }
 0x6a7   : > { %v4831_v15 = vpop.f32.mrb[50].mxu0  ;;  %v13150_v42 = vld [vmem:[%s14724_s11 + $0x3e8] ss:$16 sps:$4 sm:$0xff]   ;;  %v13155_v62 = vld [vmem:[%s14724_s11 + $0x3e4] ss:$16 sps:$4 sm:$0xff]  }
 0x6a8   : > { %v4975_v2 = vpack.c.bf16 %v4831_v15, %v4828_v19  ;;  %v11969_v30 = vpop.f32.mrb[51].mxu0  ;;  %5839 = vmatpush1.bf16.msra.mxu0 %v13075_v16  ;;  %5947 = vmatpush1.bf16.msra.mxu1 %v13078_v34  ;;  %v13152_v16 = vld [vmem:[%s14724_s11 + $0x3ec] ss:$16 sps:$4 sm:$0xff]   ;;  %v13147_v34 = vld [vmem:[%s14724_s11 + $0x3c0] ss:$16 sps:$4 sm:$0xff]  }
 0x6a9   : > { %5840 = vmatprep.subr.bf16.mxu0 %v13083_v20  ;;  %5948 = vmatprep.subr.bf16.mxu1 %v13086_v39  ;;  %v13153_v19 = vld [vmem:[%s14724_s11 + $0x3e0] ss:$16 sps:$4 sm:$0xff]  }
 0x6aa   : > { %5824 = vmatmul.mubr.bf16.gmra.mrb[60].mxu0 %v4975_v2  ;;  %5930 = vmatmul.mubr.bf16.gmra.mrb[60].mxu1 %v4975_v2 }
 0x6ab   : > { %5866 = vmatprep.mubr.bf16.mxu0 %v4973_v14  ;;  %5972 = vmatprep.mubr.bf16.mxu1 %v4973_v14  ;;  %v13123_v14 = vld [vmem:[%s14724_s11 + $0x340] ss:$16 sps:$4 sm:$0xff]  }
 0x6ac   : > { %5841 = vmatpush1.bf16.msra.mxu0 %v13081_v40  ;;  %5949 = vmatpush1.bf16.msra.mxu1 %v13084_v58 }
 0x6ad   : > { %5842 = vmatprep.subr.bf16.mxu0 %v13089_v52  ;;  %5950 = vmatprep.subr.bf16.mxu1 %v13092_v29 }
 0x6b0   : > { %5843 = vmatpush1.bf16.msra.mxu0 %v13087_v32  ;;  %5951 = vmatpush1.bf16.msra.mxu1 %v13090_v0  ;;  %v5119_v32 = vld [vmem:[%s729_s5] sm:$0xf] }
 0x6b1   : > { %5844 = vmatprep.subr.bf16.mxu0 %v13095_v4  ;;  %5952 = vmatprep.subr.bf16.mxu1 %v13098_v45  ;;  %v5132_v45 = vrot.slane %v5119_v32, %v15179_v47 }
 0x6b4   : > { %5845 = vmatpush1.bf16.msra.mxu0 %v13093_v51  ;;  %5953 = vmatpush1.bf16.msra.mxu1 %v13096_v56  ;;  %v5128_v56 = vrot.slane %v5119_v32, %v15175_v27 }
 0x6b5   : > { %5846 = vmatprep.subr.bf16.mxu0 %v13101_v63  ;;  %5954 = vmatprep.subr.bf16.mxu1 %v13104_v22  ;;  %v15726_v22 = vrot.slane %v5119_v32, %v15184_v55 }
 0x6b8   : > { %5847 = vmatpush1.bf16.msra.mxu0 %v13099_v28  ;;  %5955 = vmatpush1.bf16.msra.mxu1 %v13102_v33 }
 0x6b9   : > { %5848 = vmatprep.subr.bf16.mxu0 %v13107_v59  ;;  %5956 = vmatprep.subr.bf16.mxu1 %v13110_v7 }
 0x6bc   : > { %5849 = vmatpush1.bf16.msra.mxu0 %v13105_v9  ;;  %5957 = vmatpush1.bf16.msra.mxu1 %v13108_v18 }
 0x6bd   : > { %5850 = vmatprep.subr.bf16.mxu0 %v13113_v35  ;;  %5958 = vmatprep.subr.bf16.mxu1 %v13116_v36  ;;  %v13620_v35 = vld [vmem:[#allocation28] sm:$0xff] }
 0x6c0   : > { %5851 = vmatpush1.bf16.msra.mxu0 %v13111_v13  ;;  %5959 = vmatpush1.bf16.msra.mxu1 %v13114_v3 }
 0x6c1   : > { %5852 = vmatprep.subr.bf16.mxu0 %v13119_v24  ;;  %5960 = vmatprep.subr.bf16.mxu1 %v13122_v41 }
 0x6c4   : > { %5853 = vmatpush1.bf16.msra.mxu0 %v13117_v49  ;;  %5961 = vmatpush1.bf16.msra.mxu1 %v13120_v38  ;;  %v13621_v49 = vld [vmem:[#allocation28 + $0x8] sm:$0xff] }
 0x6c5   : > { %5854 = vmatprep.subr.bf16.mxu0 %v13125_v48  ;;  %5962 = vmatprep.subr.bf16.mxu1 %v13128_v61  ;;  %v13622_v61 = vld [vmem:[#allocation28 + $0x20] sm:$0xff] }
 0x6c8   : > { %5855 = vmatpush1.bf16.msra.mxu0 %v13123_v14  ;;  %5963 = vmatpush1.bf16.msra.mxu1 %v13126_v12  ;;  %v13623_v12 = vld [vmem:[#allocation28 + $0x10] sm:$0xff] }
 0x6c9   : > { %5856 = vmatprep.subr.bf16.mxu0 %v13131_v57  ;;  %5964 = vmatprep.subr.bf16.mxu1 %v13134_v17 }
 0x6cc   : > { %5857 = vmatpush1.bf16.msra.mxu0 %v13129_v43  ;;  %5965 = vmatpush1.bf16.msra.mxu1 %v13132_v44  ;;  %v13624_v44 = vld [vmem:[#allocation28 + $0x28] sm:$0xff] }
 0x6cd   : > { %5858 = vmatprep.subr.bf16.mxu0 %v13137_v53  ;;  %5966 = vmatprep.subr.bf16.mxu1 %v13140_v1  ;;  %v13625_v1 = vld [vmem:[#allocation28 + $0x18] sm:$0xff] }
 0x6d0   : > { %5859 = vmatpush1.bf16.msra.mxu0 %v13135_v10  ;;  %5967 = vmatpush1.bf16.msra.mxu1 %v13138_v31  ;;  %v13626_v31 = vld [vmem:[#allocation28 + $0x30] sm:$0xff] }
 0x6d1   : > { %5860 = vmatprep.subr.bf16.mxu0 %v13143_v54  ;;  %5968 = vmatprep.subr.bf16.mxu1 %v13146_v5 }
 0x6d4   : > { %5861 = vmatpush1.bf16.msra.mxu0 %v13141_v60  ;;  %5969 = vmatpush1.bf16.msra.mxu1 %v13144_v6  ;;  %v13627_v6 = vld [vmem:[#allocation28 + $0x38] sm:$0xff] }
 0x6d5   : > { %5862 = vmatprep.subr.bf16.mxu0 %v13149_v11  ;;  %5970 = vmatprep.subr.bf16.mxu1 %v13152_v16 }
 0x6d8   : > { %5863 = vmatpush1.bf16.msra.mxu0 %v13147_v34  ;;  %5971 = vmatpush1.bf16.msra.mxu1 %v13150_v42 }
 0x6d9   : > { %5864 = vmatprep.subr.bf16.mxu0 %v13155_v62 }
 0x6db   : > { %5973 = vmatmul.mubr.bf16.vlgmr.msra.gmra.mrb[56].mxu1 %v15660_v50 }
 0x6dc   : > { %5865 = vmatpush1.bf16.msra.mxu0 %v13153_v19 }
 0x6df   : > { %5867 = vmatmul.mubr.bf16.vlgmr.msra.gmra.mrb[56].mxu0 %v15660_v50  ;;  %v5124_v50 = vrot.slane %v5119_v32, %v15172_v26 }
 0x72e   : > { %v4960_v20 = vpop.f32.mrb[52].mxu1 }
 0x72f   : > { %v11986_v39 = vpop.f32.mrb[53].mxu1 }
 0x730   : > { %v4963_v8 = vpop.f32.mrb[54].mxu1 }
 0x731   : > { %v4981_v15 = vpack.c.bf16 %v4963_v8, %v4960_v20  ;;  %v11987_v2 = vpop.f32.mrb[55].mxu1 }
 0x732   : > { %v4916_v30 = vpop.f32.mrb[52].mxu0 }
 0x733   : > { %v11980_v40 = vpop.f32.mrb[53].mxu0  ;;  %5876 = vmatprep.mubr.bf16.mxu0 %v4981_v15  ;;  %5982 = vmatprep.mubr.bf16.mxu1 %v4981_v15 }
 0x734   : > { %v4919_v58 = vpop.f32.mrb[54].mxu0 }
 0x735   : > { %v4979_v52 = vpack.c.bf16 %v4919_v58, %v4916_v30  ;;  %v11981_v29 = vpop.f32.mrb[55].mxu0  ;;  %v13628_v58 = vld [vmem:[#allocation28 + $0x40] sm:$0xff] }
 0x737   : > { %5877 = vmatmul.mubr.bf16.gmra.mrb[60].mxu0 %v4979_v52  ;;  %5983 = vmatmul.mubr.bf16.gmra.mrb[60].mxu1 %v4979_v52 }
 0x7ae   : > { %v5974_v0 = vpop.f32.mrb[56].mxu1 }
 0x7af   : > { %v5976_v4 = vpop.f32.mrb[57].mxu1  ;;  %v12044_v7 = vadd.f32 %v5974_v0, %v5132_v45 }
 0x7b0   : > { %v5978_v51 = vpop.f32.mrb[58].mxu1  ;;  %v12045_v24 = vadd.f32 %v5976_v4, %v15726_v22  ;;  %v13629_v4 = vld [vmem:[#allocation28 + $0x48] sm:$0xff] }
 0x7b1   : > { %v5980_v63 = vpop.f32.mrb[59].mxu1  ;;  %v12046_v41 = vadd.f32 %v5978_v51, %v5132_v45  ;;  %v15735_v57 = vadd.f32 %v13623_v12, %v12044_v7 }
 0x7b2   : > { %v5868_v28 = vpop.f32.mrb[56].mxu0  ;;  %v12047_v17 = vadd.f32 %v5980_v63, %v15726_v22  ;;  %v15742_v10 = vadd.f32 %v13625_v1, %v12045_v24  ;;  %v13633_v24 = vld [vmem:[#allocation28 + $0x58] sm:$0xff]  ;;  %v6202_v1 = vld [vmem:[%s14750_s17 + $0x20] sm:$0xff] }
 0x7b3   : > { %v12036_v33 = vadd.f32 %v5868_v28, %v5124_v50  ;;  %v5870_v59 = vpop.f32.mrb[57].mxu0  ;;  %v15744_v54 = vadd.f32 %v13626_v31, %v12046_v41  ;;  %v6199_v31 = vld [vmem:[%s14750_s17 + $0x8] sm:$0xff] }
 0x7b4   : > { %v12037_v9 = vadd.f32 %v5870_v59, %v5128_v56  ;;  %v5872_v18 = vpop.f32.mrb[58].mxu0  ;;  %v15749_v11 = vadd.f32 %v13627_v6, %v12047_v17  ;;  %v13630_v59 = vld [vmem:[#allocation28 + $0x60] sm:$0xff]  ;;  %v6203_v6 = vld [vmem:[%s14750_s17 + $0x28] sm:$0xff] }
 0x7b5   : > { %v15728_v36 = vadd.f32 %v13620_v35, %v12036_v33  ;;  %v12038_v13 = vadd.f32 %v5872_v18, %v5124_v50  ;;  %v5874_v3 = vpop.f32.mrb[59].mxu0 }
 0x7b6   : > { %v15731_v38 = vadd.f32 %v13621_v49, %v12037_v9  ;;  %v12039_v48 = vadd.f32 %v5874_v3, %v5128_v56  ;;  %v13631_v9 = vld [vmem:[#allocation28 + $0x50] sm:$0xff] }
 0x7b7   : > { %v15733_v14 = vadd.f32 %v13622_v61, %v12038_v13  ;;  %v13632_v13 = vld [vmem:[#allocation28 + $0x68] sm:$0xff]  ;;  %v13635_v61 = vld [vmem:[#allocation28 + $0x78] sm:$0xff] }
 0x7b8   : > { %v6011_v43 = vadd.f32 %v15731_v38, %v15728_v36  ;;  %v15740_v53 = vadd.f32 %v13624_v44, %v12039_v48  ;;  %v6198_v44 = vld [vmem:[%s14750_s17] sm:$0xff] }
 0x7ba   : > { %v6016_v5 = vadd.f32 %v15740_v53, %v15733_v14  ;;  %v6012_v60 = vadd.f32 %v6011_v43, %v15735_v57 }
 0x7bc   : > { %v6013_v16 = vadd.f32 %v6012_v60, %v15742_v10  ;;  %v6017_v34 = vadd.f32 %v6016_v5, %v15744_v54  ;;  %v11334_v5 = vcombine.low %v6198_v44, %v6202_v1  ;;  %v11335_v60 = vcombine.high %v6198_v44, %v6202_v1  ;;  %v6242_v44 = vld [vmem:[%s14750_s17 + $0x160] sm:$0xff]  ;;  %v6239_v1 = vld [vmem:[%s14750_s17 + $0x148] sm:$0xff] }
 0x7be   : > { %6014 = vadd.xlane.f32.xlu0 %v6013_v16  ;;  %v6018_v42 = vadd.f32 %v6017_v34, %v15749_v11  ;;  %v6206_v16 = vld [vmem:[%s14750_s17 + $0x40] sm:$0xff]  ;;  %7776 = vmatprep.subr.bf16.mxu0 %v11335_v60 }
 0x7bf   : > { %v6210_v34 = vld [vmem:[%s14750_s17 + $0x60] sm:$0xff]  ;;  %7777 = vmatpush1.bf16.msra.mxu0 %v11334_v5 }
 0x7c0   : > { %6019 = vadd.xlane.f32.xlu1 %v6018_v42  ;;  %v11336_v42 = vcombine.low %v6199_v31, %v6203_v6 }
 0x80a   : > { %v5878_v62 = vpop.f32.mrb[60].mxu0  ;;  %v5984_v19 = vpop.f32.mrb[60].mxu1 }
 0x80b   : > { %v12040_v20 = vadd.f32 %v5878_v62, %v5124_v50  ;;  %v5880_v39 = vpop.f32.mrb[61].mxu0  ;;  %v5986_v8 = vpop.f32.mrb[61].mxu1  ;;  %v12048_v15 = vadd.f32 %v5984_v19, %v5132_v45  ;;  %v11337_v62 = vcombine.high %v6199_v31, %v6203_v6  ;;  %v11343_v19 = vcombine.high %v6206_v16, %v6210_v34  ;;  %v6243_v31 = vld [vmem:[%s14750_s17 + $0x168] sm:$0xff] }
 0x80c   : > { %v12041_v2 = vadd.f32 %v5880_v39, %v5128_v56  ;;  %v5882_v30 = vpop.f32.mrb[62].mxu0  ;;  %v5988_v40 = vpop.f32.mrb[62].mxu1  ;;  %v12049_v63 = vadd.f32 %v5986_v8, %v15726_v22  ;;  %v6211_v39 = vld [vmem:[%s14750_s17 + $0x68] sm:$0xff]  ;;  %v6214_v8 = vld [vmem:[%s14750_s17 + $0x80] sm:$0xff] }
 0x80d   : > { %v15754_v52 = vadd.f32 %v13628_v58, %v12040_v20  ;;  %v12042_v29 = vadd.f32 %v5882_v30, %v5124_v50  ;;  %v5884_v32 = vpop.f32.mrb[63].mxu0  ;;  %v5990_v0 = vpop.f32.mrb[63].mxu1  ;;  %v12050_v28 = vadd.f32 %v5988_v40, %v5132_v45  ;;  %v15761_v18 = vadd.f32 %v13631_v9, %v12048_v15  ;;  %v6207_v20 = vld [vmem:[%s14750_s17 + $0x48] sm:$0xff]  ;;  %7882 = vmatprep.subr.bf16.mxu1 %v11337_v62 }
 0x80e   : > { %v15756_v51 = vadd.f32 %v13629_v4, %v12041_v2  ;;  %v12043_v33 = vadd.f32 %v5884_v32, %v5128_v56  ;;  %v12051_v3 = vadd.f32 %v5990_v0, %v15726_v22  ;;  %v15768_v45 = vadd.f32 %v13633_v24, %v12049_v63  ;;  %v13634_v56 = vld [vmem:[#allocation28 + $0x70] sm:$0xff]  ;;  %v6218_v2 = vld [vmem:[%s14750_s17 + $0xa0] sm:$0xff]  ;;  %7883 = vmatpush1.bf16.msra.mxu1 %v11336_v42 }
 0x80f   : > { %v15759_v7 = vadd.f32 %v13630_v59, %v12042_v29  ;;  %v15770_v41 = vadd.f32 %v13634_v56, %v12050_v28  ;;  %v11345_v15 = vcombine.high %v6207_v20, %v6211_v39  ;;  %v6215_v30 = vld [vmem:[%s14750_s17 + $0x88] sm:$0xff]  ;;  %v11342_v58 = vcombine.low %v6206_v16, %v6210_v34  ;;  %7778 = vmatprep.subr.bf16.mxu0 %v11343_v19  ;;  %v6222_v4 = vld [vmem:[%s14750_s17 + $0xc0] sm:$0xff] }
 0x810   : > { %v6021_v35 = vadd.f32 %v15756_v51, %v15754_v52  ;;  %v15765_v50 = vadd.f32 %v13632_v13, %v12043_v33  ;;  %v15775_v12 = vadd.f32 %v13635_v61, %v12051_v3  ;;  %v6219_v40 = vld [vmem:[%s14750_s17 + $0xa8] sm:$0xff]  ;;  %v11344_v29 = vcombine.low %v6207_v20, %v6211_v39  ;;  %v6226_v63 = vld [vmem:[%s14750_s17 + $0xe0] sm:$0xff] }
 0x811   : > { %v11351_v32 = vcombine.high %v6214_v8, %v6218_v2  ;;  %7884 = vmatprep.subr.bf16.mxu1 %v11345_v15  ;;  %v11353_v0 = vcombine.high %v6215_v30, %v6219_v40  ;;  %v6223_v28 = vld [vmem:[%s14750_s17 + $0xc8] sm:$0xff]  ;;  %7779 = vmatpush1.bf16.msra.mxu0 %v11342_v58  ;;  %v11350_v59 = vcombine.low %v6214_v8, %v6218_v2  ;;  %v6230_v3 = vld [vmem:[%s14750_s17 + $0x100] sm:$0xff] }
 0x812   : > { %v6026_v49 = vadd.f32 %v15765_v50, %v15759_v7  ;;  %v6022_v48 = vadd.f32 %v6021_v35, %v15761_v18  ;;  %v6227_v33 = vld [vmem:[%s14750_s17 + $0xe8] sm:$0xff]  ;;  %7885 = vmatpush1.bf16.msra.mxu1 %v11344_v29  ;;  %v11352_v9 = vcombine.low %v6215_v30, %v6219_v40  ;;  %v11359_v35 = vcombine.high %v6222_v4, %v6226_v63  ;;  %v6234_v24 = vld [vmem:[%s14750_s17 + $0x120] sm:$0xff] }
 0x813   : > { %7780 = vmatprep.subr.bf16.mxu0 %v11351_v32  ;;  %7886 = vmatprep.subr.bf16.mxu1 %v11353_v0  ;;  %v11361_v13 = vcombine.high %v6223_v28, %v6227_v33  ;;  %v6231_v56 = vld [vmem:[%s14750_s17 + $0x108] sm:$0xff]  ;;  %v11360_v61 = vcombine.low %v6223_v28, %v6227_v33  ;;  %v11366_v5 = vcombine.low %v6230_v3, %v6234_v24  ;;  %v6246_v34 = vld [vmem:[%s14750_s17 + $0x180] sm:$0xff] }
 0x814   : > { %v6023_v22 = vadd.f32 %v6022_v48, %v15768_v45  ;;  %v6027_v17 = vadd.f32 %v6026_v49, %v15770_v41  ;;  %v6235_v49 = vld [vmem:[%s14750_s17 + $0x128] sm:$0xff]  ;;  %v11358_v48 = vcombine.low %v6222_v4, %v6226_v63  ;;  %v11377_v16 = vcombine.high %v6239_v1, %v6243_v31  ;;  %v6250_v42 = vld [vmem:[%s14750_s17 + $0x1a0] sm:$0xff] }
 0x815   : > { %7781 = vmatpush1.bf16.msra.mxu0 %v11350_v59  ;;  %v11368_v60 = vcombine.low %v6231_v56, %v6235_v49  ;;  %v6247_v62 = vld [vmem:[%s14750_s17 + $0x188] sm:$0xff]  ;;  %v11376_v39 = vcombine.low %v6239_v1, %v6243_v31  ;;  %v11383_v8 = vcombine.high %v6246_v34, %v6250_v42  ;;  %v6254_v2 = vld [vmem:[%s14750_s17 + $0x1c0] sm:$0xff]  ;;  %v11382_v29 = vcombine.low %v6246_v34, %v6250_v42 }
 0x816   : > { %6024 = vadd.xlane.f32.xlu0 %v6023_v22  ;;  %v6028_v43 = vadd.f32 %v6027_v17, %v15775_v12  ;;  %7887 = vmatpush1.bf16.msra.mxu1 %v11352_v9  ;;  %v11367_v22 = vcombine.high %v6230_v3, %v6234_v24  ;;  %v11369_v17 = vcombine.high %v6231_v56, %v6235_v49  ;;  %v6251_v19 = vld [vmem:[%s14750_s17 + $0x1a8] sm:$0xff]  ;;  %v6258_v30 = vld [vmem:[%s14750_s17 + $0x1e0] sm:$0xff] }
 0x817   : > { %7782 = vmatprep.subr.bf16.mxu0 %v11359_v35  ;;  %7888 = vmatprep.subr.bf16.mxu1 %v11361_v13  ;;  %v11385_v15 = vcombine.high %v6247_v62, %v6251_v19  ;;  %v6255_v40 = vld [vmem:[%s14750_s17 + $0x1c8] sm:$0xff]  ;;  %v11384_v0 = vcombine.low %v6247_v62, %v6251_v19  ;;  %v11391_v4 = vcombine.high %v6254_v2, %v6258_v30  ;;  %v6262_v63 = vld [vmem:[%s14750_s17 + $0x200] sm:$0xff] }
 0x818   : > { %6029 = vadd.xlane.f32.xlu1 %v6028_v43  ;;  %v6238_v43 = vld [vmem:[%s14750_s17 + $0x140] sm:$0xff]  ;;  %v6259_v58 = vld [vmem:[%s14750_s17 + $0x1e8] sm:$0xff]  ;;  %v11390_v3 = vcombine.low %v6254_v2, %v6258_v30 }
 0x819   : > { %7783 = vmatpush1.bf16.msra.mxu0 %v11358_v48  ;;  %v11375_v6 = vcombine.high %v6238_v43, %v6242_v44  ;;  %v11374_v20 = vcombine.low %v6238_v43, %v6242_v44  ;;  %v11393_v33 = vcombine.high %v6255_v40, %v6259_v58  ;;  %v6266_v59 = vld [vmem:[%s14750_s17 + $0x220] sm:$0xff]  ;;  %v6263_v9 = vld [vmem:[%s14750_s17 + $0x208] sm:$0xff]  ;;  %v11392_v24 = vcombine.low %v6255_v40, %v6259_v58 }
 0x81a   : > { %7889 = vmatpush1.bf16.msra.mxu1 %v11360_v61  ;;  %7784 = vmatprep.subr.bf16.mxu0 %v11367_v22  ;;  %v6267_v35 = vld [vmem:[%s14750_s17 + $0x228] sm:$0xff] }
 0x81b   : > { %7890 = vmatprep.subr.bf16.mxu1 %v11369_v17  ;;  %v11399_v17 = vcombine.high %v6262_v63, %v6266_v59  ;;  %v11401_v43 = vcombine.high %v6263_v9, %v6267_v35  ;;  %v6271_v31 = vld [vmem:[%s14750_s17 + $0x248] sm:$0xff]  ;;  %v11400_v62 = vcombine.low %v6263_v9, %v6267_v35  ;;  %v6286_v35 = vld [vmem:[%s14750_s17 + $0x2c0] sm:$0xff] }
 0x81d   : > { %7785 = vmatpush1.bf16.msra.mxu0 %v11366_v5  ;;  %v6275_v5 = vld [vmem:[%s14750_s17 + $0x268] sm:$0xff] }
 0x81e   : > { %7891 = vmatpush1.bf16.msra.mxu1 %v11368_v60  ;;  %7786 = vmatprep.subr.bf16.mxu0 %v11375_v6  ;;  %v11408_v58 = vcombine.low %v6271_v31, %v6275_v5 }
 0x81f   : > { %7892 = vmatprep.subr.bf16.mxu1 %v11377_v16 }
 0x821   : > { %7787 = vmatpush1.bf16.msra.mxu0 %v11374_v20  ;;  %v11409_v20 = vcombine.high %v6271_v31, %v6275_v5  ;;  %v6295_v31 = vld [vmem:[%s14750_s17 + $0x308] sm:$0xff] }
 0x822   : > { %7893 = vmatpush1.bf16.msra.mxu1 %v11376_v39  ;;  %7788 = vmatprep.subr.bf16.mxu0 %v11383_v8  ;;  %v6299_v5 = vld [vmem:[%s14750_s17 + $0x328] sm:$0xff] }
 0x823   : > { %7894 = vmatprep.subr.bf16.mxu1 %v11385_v15 }
 0x825   : > { %7789 = vmatpush1.bf16.msra.mxu0 %v11382_v29 }
 0x826   : > { %7895 = vmatpush1.bf16.msra.mxu1 %v11384_v0  ;;  %7790 = vmatprep.subr.bf16.mxu0 %v11391_v4  ;;  %v6282_v0 = vld [vmem:[%s14750_s17 + $0x2a0] sm:$0xff]  ;;  %v6279_v4 = vld [vmem:[%s14750_s17 + $0x288] sm:$0xff] }
 0x827   : > { %7896 = vmatprep.subr.bf16.mxu1 %v11393_v33 }
 0x829   : > { %7791 = vmatpush1.bf16.msra.mxu0 %v11390_v3  ;;  %v6287_v3 = vld [vmem:[%s14750_s17 + $0x2c8] sm:$0xff] }
 0x82a   : > { %7897 = vmatpush1.bf16.msra.mxu1 %v11392_v24  ;;  %7792 = vmatprep.subr.bf16.mxu0 %v11399_v17  ;;  %v6291_v17 = vld [vmem:[%s14750_s17 + $0x2e8] sm:$0xff] }
 0x82b   : > { %7898 = vmatprep.subr.bf16.mxu1 %v11401_v43  ;;  %v6294_v43 = vld [vmem:[%s14750_s17 + $0x300] sm:$0xff] }
 0x82e   : > { %7899 = vmatpush1.bf16.msra.mxu1 %v11400_v62 }
 0x82f   : > { %7900 = vmatprep.subr.bf16.mxu1 %v11409_v20 }
 0x832   : > { %7901 = vmatpush1.bf16.msra.mxu1 %v11408_v58 }
 0x84b   : > { %v6015_v32 = vpop.xlane.xlu0 %6014 }
 0x84c   : > { %v6032_v28 = vmul.f32 0.001953125, %v6015_v32  ;;  %v6278_v32 = vld [vmem:[%s14750_s17 + $0x280] sm:$0xff] }
 0x84d   : > { %v6020_v13 = vpop.xlane.xlu1 %6019  ;;  %v11414_v33 = vcombine.low %v6278_v32, %v6282_v0 }
 0x84e   : > { %v15817_v56 = vsub.f32 %v15728_v36, %v6032_v28  ;;  %v15820_v49 = vsub.f32 %v15731_v38, %v6032_v28  ;;  %v6033_v48 = vmul.f32 0.001953125, %v6020_v13  ;;  %v15823_v61 = vsub.f32 %v15735_v57, %v6032_v28  ;;  %v6270_v36 = vld [vmem:[%s14750_s17 + $0x240] sm:$0xff] }
 0x84f   : > { %v15826_v22 = vsub.f32 %v15742_v10, %v6032_v28  ;;  %v6274_v10 = vld [vmem:[%s14750_s17 + $0x260] sm:$0xff]  ;;  %v6283_v28 = vld [vmem:[%s14750_s17 + $0x2a8] sm:$0xff] }
 0x850   : > { %v15830_v44 = vsub.f32 %v15733_v14, %v6033_v48  ;;  %v15833_v38 = vsub.f32 %v15740_v53, %v6033_v48  ;;  %v6052_v1 = vmul.f32 %v15817_v56, %v15817_v56  ;;  %v6053_v57 = vmul.f32 %v15820_v49, %v15820_v49  ;;  %v6290_v13 = vld [vmem:[%s14750_s17 + $0x2e0] sm:$0xff] }
 0x851   : > { %v6054_v60 = vmul.f32 %v15823_v61, %v15823_v61  ;;  %v15845_v6 = vsub.f32 %v15744_v54, %v6033_v48  ;;  %v11398_v14 = vcombine.low %v6262_v63, %v6266_v59  ;;  %v15848_v53 = vsub.f32 %v15749_v11, %v6033_v48 }
 0x852   : > { %v6068_v16 = vadd.f32 %v6053_v57, %v6052_v1  ;;  %v6056_v34 = vmul.f32 %v15830_v44, %v15830_v44  ;;  %v6057_v42 = vmul.f32 %v15833_v38, %v15833_v38  ;;  %v11407_v19 = vcombine.high %v6270_v36, %v6274_v10 }
 0x853   : > { %v6055_v54 = vmul.f32 %v15826_v22, %v15826_v22  ;;  %v6058_v11 = vmul.f32 %v15845_v6, %v15845_v6  ;;  %v6059_v2 = vmul.f32 %v15848_v53, %v15848_v53  ;;  %7793 = vmatpush1.bf16.msra.mxu0 %v11398_v14  ;;  %v11406_v40 = vcombine.low %v6270_v36, %v6274_v10  ;;  %v6298_v36 = vld [vmem:[%s14750_s17 + $0x320] sm:$0xff] }
 0x854   : > { %v6069_v39 = vadd.f32 %v6068_v16, %v6054_v60  ;;  %v6073_v8 = vadd.f32 %v6057_v42, %v6056_v34  ;;  %7794 = vmatprep.subr.bf16.mxu0 %v11407_v19  ;;  %v11415_v63 = vcombine.high %v6278_v32, %v6282_v0  ;;  %v11416_v59 = vcombine.low %v6279_v4, %v6283_v28  ;;  %v6302_v60 = vld [vmem:[%s14750_s17 + $0x340] sm:$0xff]  ;;  %v6303_v34 = vld [vmem:[%s14750_s17 + $0x348] sm:$0xff] }
 0x855   : > { %v11417_v9 = vcombine.high %v6279_v4, %v6283_v28  ;;  %v11422_v24 = vcombine.low %v6286_v35, %v6290_v13  ;;  %v11423_v48 = vcombine.high %v6286_v35, %v6290_v13  ;;  %v11424_v1 = vcombine.low %v6287_v3, %v6291_v17  ;;  %v6306_v16 = vld [vmem:[%s14750_s17 + $0x360] sm:$0xff]  ;;  %v6307_v42 = vld [vmem:[%s14750_s17 + $0x368] sm:$0xff] }
 0x856   : > { %v6070_v15 = vadd.f32 %v6069_v39, %v6055_v54  ;;  %v6074_v30 = vadd.f32 %v6073_v8, %v6058_v11  ;;  %v11425_v57 = vcombine.high %v6287_v3, %v6291_v17  ;;  %v11431_v10 = vcombine.high %v6294_v43, %v6298_v36  ;;  %v6310_v39 = vld [vmem:[%s14750_s17 + $0x380] sm:$0xff]  ;;  %v6311_v8 = vld [vmem:[%s14750_s17 + $0x388] sm:$0xff] }
 0x857   : > { %7795 = vmatpush1.bf16.msra.mxu0 %v11406_v40  ;;  %7902 = vmatprep.subr.bf16.mxu1 %v11417_v9  ;;  %v11433_v14 = vcombine.high %v6295_v31, %v6299_v5  ;;  %v11430_v62 = vcombine.low %v6294_v43, %v6298_v36  ;;  %v11432_v19 = vcombine.low %v6295_v31, %v6299_v5  ;;  %v6314_v11 = vld [vmem:[%s14750_s17 + $0x3a0] sm:$0xff]  ;;  %v6319_v0 = vld [vmem:[%s14750_s17 + $0x3c8] sm:$0xff] }
 0x858   : > { %6071 = vadd.xlane.f32.xlu0 %v6070_v15  ;;  %v6075_v29 = vadd.f32 %v6074_v30, %v6059_v2  ;;  %7796 = vmatprep.subr.bf16.mxu0 %v11415_v63  ;;  %v11439_v20 = vcombine.high %v6302_v60, %v6306_v16  ;;  %v11441_v54 = vcombine.high %v6303_v34, %v6307_v42  ;;  %v6315_v15 = vld [vmem:[%s14750_s17 + $0x3a8] sm:$0xff]  ;;  %v6322_v32 = vld [vmem:[%s14750_s17 + $0x3e0] sm:$0xff] }
 0x859   : > { %7903 = vmatpush1.bf16.msra.mxu1 %v11416_v59  ;;  %v11438_v2 = vcombine.low %v6302_v60, %v6306_v16  ;;  %v11440_v30 = vcombine.low %v6303_v34, %v6307_v42  ;;  %v11447_v40 = vcombine.high %v6310_v39, %v6314_v11  ;;  %v11449_v58 = vcombine.high %v6311_v8, %v6315_v15  ;;  %v6323_v4 = vld [vmem:[%s14750_s17 + $0x3e8] sm:$0xff]  ;;  %v15885_v13 = vld [vmem:[%s14750_s17 + $0x400] sm:$0xff] }
 0x85a   : > { %6076 = vadd.xlane.f32.xlu1 %v6075_v29  ;;  %7904 = vmatprep.subr.bf16.mxu1 %v11425_v57  ;;  %v6318_v29 = vld [vmem:[%s14750_s17 + $0x3c0] sm:$0xff]  ;;  %v11446_v63 = vcombine.low %v6310_v39, %v6314_v11  ;;  %v11448_v28 = vcombine.low %v6311_v8, %v6315_v15  ;;  %v11457_v59 = vcombine.high %v6319_v0, %v6323_v4  ;;  %v15898_v43 = vld [vmem:[%s14750_s17 + $0x428] sm:$0xff] }
 0x85b   : > { %7797 = vmatpush1.bf16.msra.mxu0 %v11414_v33  ;;  %v11455_v33 = vcombine.high %v6318_v29, %v6322_v32  ;;  %v11454_v9 = vcombine.low %v6318_v29, %v6322_v32  ;;  %v11456_v35 = vcombine.low %v6319_v0, %v6323_v4  ;;  %v15888_v3 = vld [vmem:[%s14750_s17 + $0x420] sm:$0xff] }
 0x85c   : > { %7798 = vmatprep.subr.bf16.mxu0 %v11423_v48  ;;  %v11462_v48 = vcombine.low %v15885_v13, %v15888_v3  ;;  %v11463_v17 = vcombine.high %v15885_v13, %v15888_v3  ;;  %v6009_v4 = vld [vmem:[%s738_s23] sm:$0xf] }
 0x85d   : > { %7905 = vmatpush1.bf16.msra.mxu1 %v11424_v1 }
 0x85e   : > { %7906 = vmatprep.subr.bf16.mxu1 %v11433_v14 }
 0x85f   : > { %7799 = vmatpush1.bf16.msra.mxu0 %v11422_v24  ;;  %v15891_v24 = vld [vmem:[%s14750_s17 + $0x408] sm:$0xff] }
 0x860   : > { %7800 = vmatprep.subr.bf16.mxu0 %v11431_v10  ;;  %v11464_v36 = vcombine.low %v15891_v24, %v15898_v43  ;;  %v11465_v1 = vcombine.high %v15891_v24, %v15898_v43  ;;  %v6358_v43 = vld [vmem:[%s14750_s17 + $0x500] sm:$0xff] }
 0x861   : > { %7907 = vmatpush1.bf16.msra.mxu1 %v11432_v19 }
 0x862   : > { %7908 = vmatprep.subr.bf16.mxu1 %v11441_v54 }
 0x863   : > { %7801 = vmatpush1.bf16.msra.mxu0 %v11430_v62 }
 0x864   : > { %7802 = vmatprep.subr.bf16.mxu0 %v11439_v20 }
 0x865   : > { %7909 = vmatpush1.bf16.msra.mxu1 %v11440_v30 }
 0x866   : > { %7910 = vmatprep.subr.bf16.mxu1 %v11449_v58 }
 0x867   : > { %7803 = vmatpush1.bf16.msra.mxu0 %v11438_v2 }
 0x868   : > { %7804 = vmatprep.subr.bf16.mxu0 %v11447_v40 }
 0x869   : > { %7911 = vmatpush1.bf16.msra.mxu1 %v11448_v28  ;;  %v15949_v28 = vrot.slane %v6009_v4, %v15175_v27 }
 0x86a   : > { %7912 = vmatprep.subr.bf16.mxu1 %v11457_v59 }
 0x86b   : > { %7805 = vmatpush1.bf16.msra.mxu0 %v11446_v63  ;;  %v6010_v63 = vld [vmem:[%s747_s18] sm:$0xf] }
 0x86c   : > { %7806 = vmatprep.subr.bf16.mxu0 %v11455_v33  ;;  %v15952_v33 = vrot.slane %v6009_v4, %v15172_v26 }
 0x86d   : > { %7913 = vmatpush1.bf16.msra.mxu1 %v11456_v35  ;;  %v15958_v35 = vrot.slane %v6009_v4, %v15179_v47 }
 0x86e   : > { %7935 = vmatprep.subr.bf16.mxu1 %v11465_v1 }
 0x86f   : > { %7807 = vmatpush1.bf16.msra.mxu0 %v11454_v9  ;;  %v15955_v9 = vrot.slane %v6009_v4, %v15184_v55 }
 0x870   : > { %7829 = vmatprep.subr.bf16.mxu0 %v11463_v17 }
 0x8a3   : > { %v6025_v57 = vpop.xlane.xlu0 %6024 }
 0x8a4   : > { %v6034_v10 = vmul.f32 0.001953125, %v6025_v57 }
 0x8a5   : > { %v6030_v31 = vpop.xlane.xlu1 %6029 }
 0x8a6   : > { %v15905_v5 = vsub.f32 %v15754_v52, %v6034_v10  ;;  %v15908_v60 = vsub.f32 %v15756_v51, %v6034_v10  ;;  %v6035_v14 = vmul.f32 0.001953125, %v6030_v31  ;;  %v15911_v16 = vsub.f32 %v15761_v18, %v6034_v10 }
 0x8a7   : > { %v15914_v34 = vsub.f32 %v15768_v45, %v6034_v10 }
 0x8a8   : > { %v15917_v42 = vsub.f32 %v15759_v7, %v6035_v14  ;;  %v15920_v62 = vsub.f32 %v15765_v50, %v6035_v14  ;;  %v6060_v52 = vmul.f32 %v15905_v5, %v15905_v5  ;;  %v6061_v51 = vmul.f32 %v15908_v60, %v15908_v60 }
 0x8a9   : > { %v6062_v19 = vmul.f32 %v15911_v16, %v15911_v16  ;;  %v15929_v18 = vsub.f32 %v15770_v41, %v6035_v14  ;;  %v15932_v20 = vsub.f32 %v15775_v12, %v6035_v14  ;;  %v6063_v54 = vmul.f32 %v15914_v34, %v15914_v34 }
 0x8aa   : > { %v6078_v45 = vadd.f32 %v6061_v51, %v6060_v52  ;;  %v6064_v7 = vmul.f32 %v15917_v42, %v15917_v42  ;;  %v6065_v50 = vmul.f32 %v15920_v62, %v15920_v62  ;;  %v15965_v14 = vrot.slane %v6010_v63, %v15175_v27 }
 0x8ab   : > { %v6066_v11 = vmul.f32 %v15929_v18, %v15929_v18  ;;  %v6067_v12 = vmul.f32 %v15932_v20, %v15932_v20  ;;  %v15968_v52 = vrot.slane %v6010_v63, %v15172_v26  ;;  %v15971_v51 = vrot.slane %v6010_v63, %v15184_v55 }
 0x8ac   : > { %v6079_v39 = vadd.f32 %v6078_v45, %v6062_v19  ;;  %v6083_v41 = vadd.f32 %v6065_v50, %v6064_v7  ;;  %v15974_v19 = vrot.slane %v6010_v63, %v15179_v47 }
 0x8ae   : > { %v6080_v8 = vadd.f32 %v6079_v39, %v6063_v54  ;;  %v6084_v15 = vadd.f32 %v6083_v41, %v6066_v11  ;;  %v6334_v11 = vld [vmem:[%s14750_s17 + $0x440] sm:$0xff] }
 0x8b0   : > { %6081 = vadd.xlane.f32.xlu0 %v6080_v8  ;;  %v6085_v2 = vadd.f32 %v6084_v15, %v6067_v12 }
 0x8b2   : > { %6086 = vadd.xlane.f32.xlu1 %v6085_v2 }
 0x8e5   : > { %v6072_v30 = vpop.xlane.xlu0 %6071 }
 0x8e6   : > { %v6088_v40 = vmul.f32 0.001953125, %v6072_v30  ;;  %v6338_v30 = vld [vmem:[%s14750_s17 + $0x460] sm:$0xff] }
 0x8e7   : > { %v6077_v58 = vpop.xlane.xlu1 %6076  ;;  %v11471_v63 = vcombine.high %v6334_v11, %v6338_v30 }
 0x8e8   : > { %v6092_v29 = vadd.f32 1e-05, %v6088_v40  ;;  %v6089_v32 = vmul.f32 0.001953125, %v6077_v58  ;;  %v6335_v40 = vld [vmem:[%s14750_s17 + $0x448] sm:$0xff] }
 0x8e9   : > { %v6339_v58 = vld [vmem:[%s14750_s17 + $0x468] sm:$0xff] }
 0x8ea   : > { %13604 = vrsqrt.f32 %v6092_v29  ;;  %v6093_v0 = vadd.f32 1e-05, %v6089_v32 }
 0x8ec   : > { %13606 = vrsqrt.f32 %v6093_v0 }
 0x8f4   : > { %v13605_v59 = vpop.eup %13604 }
 0x8f5   : > { %v6101_v17 = vmul.f32 %v13605_v59, %v15820_v49  ;;  %v6100_v1 = vmul.f32 %v13605_v59, %v15817_v56  ;;  %v6103_v57 = vmul.f32 %v13605_v59, %v15826_v22  ;;  %v6102_v10 = vmul.f32 %v13605_v59, %v15823_v61 }
 0x8f6   : > { %v13607_v31 = vpop.eup %13606  ;;  %v11473_v59 = vcombine.high %v6335_v40, %v6339_v58 }
 0x8f7   : > { %v6105_v56 = vmul.f32 %v13607_v31, %v15833_v38  ;;  %v6138_v49 = vmul.f32 %v15949_v28, %v6101_v17  ;;  %v6104_v61 = vmul.f32 %v13607_v31, %v15830_v44  ;;  %v6137_v22 = vmul.f32 %v15952_v33, %v6100_v1  ;;  %v6342_v17 = vld [vmem:[%s14750_s17 + $0x480] sm:$0xff] }
 0x8f8   : > { %v6107_v45 = vmul.f32 %v13607_v31, %v15848_v53  ;;  %v6140_v7 = vmul.f32 %v15955_v9, %v6103_v57  ;;  %v6106_v50 = vmul.f32 %v13607_v31, %v15845_v6  ;;  %v6139_v54 = vmul.f32 %v15958_v35, %v6102_v10  ;;  %v6346_v1 = vld [vmem:[%s14750_s17 + $0x4a0] sm:$0xff]  ;;  %v6343_v57 = vld [vmem:[%s14750_s17 + $0x488] sm:$0xff] }
 0x8f9   : > { %v6142_v39 = vmul.f32 %v15949_v28, %v6105_v56  ;;  %v6141_v38 = vmul.f32 %v15952_v33, %v6104_v61  ;;  %v15996_v6 = vadd.f32 %v15965_v14, %v6138_v49  ;;  %v16002_v15 = vadd.f32 %v15968_v52, %v6137_v22  ;;  %v6347_v10 = vld [vmem:[%s14750_s17 + $0x4a8] sm:$0xff]  ;;  %v6350_v22 = vld [vmem:[%s14750_s17 + $0x4c0] sm:$0xff] }
 0x8fa   : > { %v6144_v44 = vmul.f32 %v15955_v9, %v6107_v45  ;;  %v15989_v41 = vadd.f32 %v15971_v51, %v6140_v7  ;;  %v6143_v53 = vmul.f32 %v15958_v35, %v6106_v50  ;;  %v15993_v8 = vadd.f32 %v15974_v19, %v6139_v54  ;;  %v6354_v45 = vld [vmem:[%s14750_s17 + $0x4e0] sm:$0xff]  ;;  %v6351_v7 = vld [vmem:[%s14750_s17 + $0x4c8] sm:$0xff] }
 0x8fb   : > { %v15999_v12 = vadd.f32 %v15965_v14, %v6142_v39  ;;  %v16005_v2 = vadd.f32 %v15968_v52, %v6141_v38  ;;  %v11470_v31 = vcombine.low %v6334_v11, %v6338_v30  ;;  %v11472_v56 = vcombine.low %v6335_v40, %v6339_v58  ;;  %v6355_v50 = vld [vmem:[%s14750_s17 + $0x4e8] sm:$0xff]  ;;  %v6366_v30 = vld [vmem:[%s14750_s17 + $0x540] sm:$0xff] }
 0x8fc   : > { %v16011_v29 = vadd.f32 %v15971_v51, %v6144_v44  ;;  %v16014_v32 = vadd.f32 %v15974_v19, %v6143_v53  ;;  %v11479_v49 = vcombine.high %v6342_v17, %v6346_v1  ;;  %v11481_v61 = vcombine.high %v6343_v57, %v6347_v10  ;;  %v6359_v54 = vld [vmem:[%s14750_s17 + $0x508] sm:$0xff]  ;;  %v6370_v40 = vld [vmem:[%s14750_s17 + $0x560] sm:$0xff] }
 0x8fd   : > { %v16018_v0 = vpack.c.bf16 %v15999_v12, %v15996_v6  ;;  %v16022_v4 = vpack.c.bf16 %v16005_v2, %v16002_v15  ;;  %v11478_v13 = vcombine.low %v6342_v17, %v6346_v1  ;;  %v11480_v3 = vcombine.low %v6343_v57, %v6347_v10  ;;  %v6363_v39 = vld [vmem:[%s14750_s17 + $0x528] sm:$0xff]  ;;  %v6374_v10 = vld [vmem:[%s14750_s17 + $0x580] sm:$0xff] }
 0x8fe   : > { %v11487_v24 = vcombine.high %v6350_v22, %v6354_v45  ;;  %v11486_v38 = vcombine.low %v6350_v22, %v6354_v45  ;;  %v11488_v11 = vcombine.low %v6351_v7, %v6355_v50  ;;  %v11497_v53 = vcombine.high %v6359_v54, %v6363_v39  ;;  %v6367_v58 = vld [vmem:[%s14750_s17 + $0x548] sm:$0xff] }
 0x8ff   : > { %7808 = vmatprep.mubr.bf16.mxu0 %v16018_v0  ;;  %7914 = vmatprep.mubr.bf16.mxu1 %v16018_v0  ;;  %v11496_v17 = vcombine.low %v6359_v54, %v6363_v39  ;;  %v11503_v1 = vcombine.high %v6366_v30, %v6370_v40  ;;  %v6390_v39 = vld [vmem:[%s14750_s17 + $0x600] sm:$0xff] }
 0x900   : > { %7809 = vmatmul.mubr.bf16.vlgmr.msra.gmra.mrb[64].mxu0 %v16022_v4  ;;  %7915 = vmatmul.mubr.bf16.vlgmr.msra.gmra.mrb[64].mxu1 %v16022_v4 }
 0x901   : > { %7830 = vmatpush1.bf16.msra.mxu0 %v11462_v48  ;;  %7936 = vmatpush1.bf16.msra.mxu1 %v11464_v36  ;;  %v11489_v48 = vcombine.high %v6351_v7, %v6355_v50  ;;  %v6362_v36 = vld [vmem:[%s14750_s17 + $0x520] sm:$0xff] }
 0x902   : > { %7831 = vmatprep.subr.bf16.mxu0 %v11471_v63  ;;  %7937 = vmatprep.subr.bf16.mxu1 %v11473_v59  ;;  %v11495_v44 = vcombine.high %v6358_v43, %v6362_v36  ;;  %v6371_v63 = vld [vmem:[%s14750_s17 + $0x568] sm:$0xff]  ;;  %v11494_v59 = vcombine.low %v6358_v43, %v6362_v36  ;;  %v6382_v50 = vld [vmem:[%s14750_s17 + $0x5c0] sm:$0xff] }
 0x903   : > { %v11505_v57 = vcombine.high %v6367_v58, %v6371_v63  ;;  %v11504_v22 = vcombine.low %v6367_v58, %v6371_v63  ;;  %v6398_v63 = vld [vmem:[%s14750_s17 + $0x640] sm:$0xff] }
 0x905   : > { %7832 = vmatpush1.bf16.msra.mxu0 %v11470_v31  ;;  %7938 = vmatpush1.bf16.msra.mxu1 %v11472_v56  ;;  %v6378_v31 = vld [vmem:[%s14750_s17 + $0x5a0] sm:$0xff]  ;;  %v6375_v56 = vld [vmem:[%s14750_s17 + $0x588] sm:$0xff] }
 0x906   : > { %7833 = vmatprep.subr.bf16.mxu0 %v11479_v49  ;;  %7939 = vmatprep.subr.bf16.mxu1 %v11481_v61  ;;  %v6379_v49 = vld [vmem:[%s14750_s17 + $0x5a8] sm:$0xff]  ;;  %v11502_v61 = vcombine.low %v6366_v30, %v6370_v40  ;;  %v11511_v45 = vcombine.high %v6374_v10, %v6378_v31 }
 0x907   : > { %v11513_v7 = vcombine.high %v6375_v56, %v6379_v49  ;;  %v11512_v43 = vcombine.low %v6375_v56, %v6379_v49  ;;  %v6406_v49 = vld [vmem:[%s14750_s17 + $0x680] sm:$0xff] }
 0x909   : > { %7834 = vmatpush1.bf16.msra.mxu0 %v11478_v13  ;;  %7940 = vmatpush1.bf16.msra.mxu1 %v11480_v3  ;;  %v6386_v13 = vld [vmem:[%s14750_s17 + $0x5e0] sm:$0xff]  ;;  %v6383_v3 = vld [vmem:[%s14750_s17 + $0x5c8] sm:$0xff] }
 0x90a   : > { %7835 = vmatprep.subr.bf16.mxu0 %v11487_v24  ;;  %7941 = vmatprep.subr.bf16.mxu1 %v11489_v48  ;;  %v6387_v24 = vld [vmem:[%s14750_s17 + $0x5e8] sm:$0xff]  ;;  %v11510_v48 = vcombine.low %v6374_v10, %v6378_v31  ;;  %v11519_v36 = vcombine.high %v6382_v50, %v6386_v13 }
 0x90b   : > { %v11521_v54 = vcombine.high %v6383_v3, %v6387_v24  ;;  %v11520_v30 = vcombine.low %v6383_v3, %v6387_v24  ;;  %v6414_v24 = vld [vmem:[%s14750_s17 + $0x6c0] sm:$0xff] }
 0x90d   : > { %7836 = vmatpush1.bf16.msra.mxu0 %v11486_v38  ;;  %7942 = vmatpush1.bf16.msra.mxu1 %v11488_v11  ;;  %v6394_v38 = vld [vmem:[%s14750_s17 + $0x620] sm:$0xff]  ;;  %v6391_v11 = vld [vmem:[%s14750_s17 + $0x608] sm:$0xff] }
 0x90e   : > { %7837 = vmatprep.subr.bf16.mxu0 %v11495_v44  ;;  %7943 = vmatprep.subr.bf16.mxu1 %v11497_v53  ;;  %v6395_v44 = vld [vmem:[%s14750_s17 + $0x628] sm:$0xff]  ;;  %v11518_v53 = vcombine.low %v6382_v50, %v6386_v13  ;;  %v11527_v40 = vcombine.high %v6390_v39, %v6394_v38 }
 0x90f   : > { %v11529_v58 = vcombine.high %v6391_v11, %v6395_v44  ;;  %v11528_v10 = vcombine.low %v6391_v11, %v6395_v44  ;;  %v6422_v44 = vld [vmem:[%s14750_s17 + $0x700] sm:$0xff] }
 0x911   : > { %7838 = vmatpush1.bf16.msra.mxu0 %v11494_v59  ;;  %7944 = vmatpush1.bf16.msra.mxu1 %v11496_v17  ;;  %v6402_v59 = vld [vmem:[%s14750_s17 + $0x660] sm:$0xff]  ;;  %v6399_v17 = vld [vmem:[%s14750_s17 + $0x648] sm:$0xff] }
 0x912   : > { %7839 = vmatprep.subr.bf16.mxu0 %v11503_v1  ;;  %7945 = vmatprep.subr.bf16.mxu1 %v11505_v57  ;;  %v6403_v1 = vld [vmem:[%s14750_s17 + $0x668] sm:$0xff]  ;;  %v11526_v57 = vcombine.low %v6390_v39, %v6394_v38  ;;  %v11535_v31 = vcombine.high %v6398_v63, %v6402_v59 }
 0x913   : > { %v11537_v56 = vcombine.high %v6399_v17, %v6403_v1  ;;  %v11536_v50 = vcombine.low %v6399_v17, %v6403_v1  ;;  %v6430_v1 = vld [vmem:[%s14750_s17 + $0x740] sm:$0xff] }
 0x915   : > { %7840 = vmatpush1.bf16.msra.mxu0 %v11502_v61  ;;  %7946 = vmatpush1.bf16.msra.mxu1 %v11504_v22  ;;  %v6410_v61 = vld [vmem:[%s14750_s17 + $0x6a0] sm:$0xff]  ;;  %v6407_v22 = vld [vmem:[%s14750_s17 + $0x688] sm:$0xff] }
 0x916   : > { %7841 = vmatprep.subr.bf16.mxu0 %v11511_v45  ;;  %7947 = vmatprep.subr.bf16.mxu1 %v11513_v7  ;;  %v6411_v45 = vld [vmem:[%s14750_s17 + $0x6a8] sm:$0xff]  ;;  %v11534_v7 = vcombine.low %v6398_v63, %v6402_v59  ;;  %v11543_v13 = vcombine.high %v6406_v49, %v6410_v61 }
 0x917   : > { %v11545_v3 = vcombine.high %v6407_v22, %v6411_v45  ;;  %v11544_v39 = vcombine.low %v6407_v22, %v6411_v45  ;;  %v6438_v45 = vld [vmem:[%s14750_s17 + $0x780] sm:$0xff] }
 0x919   : > { %7842 = vmatpush1.bf16.msra.mxu0 %v11510_v48  ;;  %7948 = vmatpush1.bf16.msra.mxu1 %v11512_v43  ;;  %v6418_v48 = vld [vmem:[%s14750_s17 + $0x6e0] sm:$0xff]  ;;  %v6415_v43 = vld [vmem:[%s14750_s17 + $0x6c8] sm:$0xff] }
 0x91a   : > { %7843 = vmatprep.subr.bf16.mxu0 %v11519_v36  ;;  %7949 = vmatprep.subr.bf16.mxu1 %v11521_v54  ;;  %v6419_v36 = vld [vmem:[%s14750_s17 + $0x6e8] sm:$0xff]  ;;  %v11542_v54 = vcombine.low %v6406_v49, %v6410_v61  ;;  %v11551_v38 = vcombine.high %v6414_v24, %v6418_v48 }
 0x91b   : > { %v11553_v11 = vcombine.high %v6415_v43, %v6419_v36  ;;  %v11552_v63 = vcombine.low %v6415_v43, %v6419_v36  ;;  %v6446_v36 = vld [vmem:[%s14750_s17 + $0x7c0] sm:$0xff] }
 0x91d   : > { %7844 = vmatpush1.bf16.msra.mxu0 %v11518_v53  ;;  %7950 = vmatpush1.bf16.msra.mxu1 %v11520_v30  ;;  %v6426_v53 = vld [vmem:[%s14750_s17 + $0x720] sm:$0xff]  ;;  %v6423_v30 = vld [vmem:[%s14750_s17 + $0x708] sm:$0xff] }
 0x91e   : > { %7845 = vmatprep.subr.bf16.mxu0 %v11527_v40  ;;  %7951 = vmatprep.subr.bf16.mxu1 %v11529_v58  ;;  %v6427_v40 = vld [vmem:[%s14750_s17 + $0x728] sm:$0xff]  ;;  %v11550_v58 = vcombine.low %v6414_v24, %v6418_v48  ;;  %v11559_v59 = vcombine.high %v6422_v44, %v6426_v53 }
 0x91f   : > { %v11561_v17 = vcombine.high %v6423_v30, %v6427_v40  ;;  %v11560_v49 = vcombine.low %v6423_v30, %v6427_v40  ;;  %v16091_v40 = vld [vmem:[%s14750_s17 + $0x10] sm:$0xff] }
 0x921   : > { %7846 = vmatpush1.bf16.msra.mxu0 %v11526_v57  ;;  %7952 = vmatpush1.bf16.msra.mxu1 %v11528_v10  ;;  %v6434_v57 = vld [vmem:[%s14750_s17 + $0x760] sm:$0xff]  ;;  %v6431_v10 = vld [vmem:[%s14750_s17 + $0x748] sm:$0xff] }
 0x922   : > { %7847 = vmatprep.subr.bf16.mxu0 %v11535_v31  ;;  %7953 = vmatprep.subr.bf16.mxu1 %v11537_v56  ;;  %v6435_v31 = vld [vmem:[%s14750_s17 + $0x768] sm:$0xff]  ;;  %v11558_v56 = vcombine.low %v6422_v44, %v6426_v53  ;;  %v11567_v61 = vcombine.high %v6430_v1, %v6434_v57 }
 0x923   : > { %v11569_v22 = vcombine.high %v6431_v10, %v6435_v31  ;;  %v11568_v24 = vcombine.low %v6431_v10, %v6435_v31 }
 0x925   : > { %7848 = vmatpush1.bf16.msra.mxu0 %v11534_v7  ;;  %7954 = vmatpush1.bf16.msra.mxu1 %v11536_v50  ;;  %v6442_v7 = vld [vmem:[%s14750_s17 + $0x7a0] sm:$0xff]  ;;  %v6439_v50 = vld [vmem:[%s14750_s17 + $0x788] sm:$0xff] }
 0x926   : > { %7849 = vmatprep.subr.bf16.mxu0 %v11543_v13  ;;  %7955 = vmatprep.subr.bf16.mxu1 %v11545_v3  ;;  %v6443_v13 = vld [vmem:[%s14750_s17 + $0x7a8] sm:$0xff]  ;;  %v11566_v3 = vcombine.low %v6430_v1, %v6434_v57  ;;  %v11575_v48 = vcombine.high %v6438_v45, %v6442_v7 }
 0x927   : > { %v11577_v43 = vcombine.high %v6439_v50, %v6443_v13  ;;  %v11576_v44 = vcombine.low %v6439_v50, %v6443_v13 }
 0x929   : > { %7850 = vmatpush1.bf16.msra.mxu0 %v11542_v54  ;;  %7956 = vmatpush1.bf16.msra.mxu1 %v11544_v39  ;;  %v6450_v54 = vld [vmem:[%s14750_s17 + $0x7e0] sm:$0xff]  ;;  %v6447_v39 = vld [vmem:[%s14750_s17 + $0x7c8] sm:$0xff] }
 0x92a   : > { %7851 = vmatprep.subr.bf16.mxu0 %v11551_v38  ;;  %7957 = vmatprep.subr.bf16.mxu1 %v11553_v11  ;;  %v6451_v38 = vld [vmem:[%s14750_s17 + $0x7e8] sm:$0xff]  ;;  %v11574_v11 = vcombine.low %v6438_v45, %v6442_v7  ;;  %v11583_v53 = vcombine.high %v6446_v36, %v6450_v54 }
 0x92b   : > { %v11585_v30 = vcombine.high %v6447_v39, %v6451_v38  ;;  %v11584_v1 = vcombine.low %v6447_v39, %v6451_v38 }
 0x92d   : > { %7852 = vmatpush1.bf16.msra.mxu0 %v11550_v58  ;;  %7958 = vmatpush1.bf16.msra.mxu1 %v11552_v63  ;;  %v16094_v58 = vld [vmem:[%s14750_s17 + $0x30] sm:$0xff]  ;;  %v16097_v63 = vld [vmem:[%s14750_s17 + $0x18] sm:$0xff] }
 0x92e   : > { %7853 = vmatprep.subr.bf16.mxu0 %v11559_v59  ;;  %7959 = vmatprep.subr.bf16.mxu1 %v11561_v17  ;;  %v16100_v59 = vld [vmem:[%s14750_s17 + $0x38] sm:$0xff]  ;;  %v11582_v17 = vcombine.low %v6446_v36, %v6450_v54  ;;  %v11339_v57 = vcombine.high %v16091_v40, %v16094_v58 }
 0x92f   : > { %v11341_v10 = vcombine.high %v16097_v63, %v16100_v59 }
 0x931   : > { %7854 = vmatpush1.bf16.msra.mxu0 %v11558_v56  ;;  %7960 = vmatpush1.bf16.msra.mxu1 %v11560_v49 }
 0x932   : > { %7855 = vmatprep.subr.bf16.mxu0 %v11567_v61  ;;  %7961 = vmatprep.subr.bf16.mxu1 %v11569_v22 }
 0x935   : > { %7856 = vmatpush1.bf16.msra.mxu0 %v11566_v3  ;;  %7962 = vmatpush1.bf16.msra.mxu1 %v11568_v24 }
 0x936   : > { %7857 = vmatprep.subr.bf16.mxu0 %v11575_v48  ;;  %7963 = vmatprep.subr.bf16.mxu1 %v11577_v43 }
 0x939   : > { %7858 = vmatpush1.bf16.msra.mxu0 %v11574_v11  ;;  %7964 = vmatpush1.bf16.msra.mxu1 %v11576_v44 }
 0x93a   : > { %7859 = vmatprep.subr.bf16.mxu0 %v11583_v53  ;;  %7965 = vmatprep.subr.bf16.mxu1 %v11585_v30 }
 0x93d   : > { %v6082_v31 = vpop.xlane.xlu0 %6081  ;;  %7860 = vmatpush1.bf16.msra.mxu0 %v11582_v17  ;;  %7966 = vmatpush1.bf16.msra.mxu1 %v11584_v1  ;;  %v6209_v17 = vld [vmem:[%s14750_s17 + $0x58] sm:$0xff] }
 0x93e   : > { %v6090_v56 = vmul.f32 0.001953125, %v6082_v31  ;;  %7988 = vmatprep.subr.bf16.mxu0 %v11339_v57  ;;  %8094 = vmatprep.subr.bf16.mxu1 %v11341_v10  ;;  %v6213_v1 = vld [vmem:[%s14750_s17 + $0x78] sm:$0xff]  ;;  %v11338_v57 = vcombine.low %v16091_v40, %v16094_v58  ;;  %v11340_v10 = vcombine.low %v16097_v63, %v16100_v59  ;;  %v16174_v31 = vpack.c.bf16 %v16014_v32, %v15993_v8 }
 0x93f   : > { %v6087_v49 = vpop.xlane.xlu1 %6086  ;;  %v11348_v63 = vcombine.low %v6209_v17, %v6213_v1 }
 0x940   : > { %v6094_v61 = vadd.f32 1e-05, %v6090_v56  ;;  %v6091_v22 = vmul.f32 0.001953125, %v6087_v49  ;;  %v6216_v56 = vld [vmem:[%s14750_s17 + $0x90] sm:$0xff] }
 0x942   : > { %13608 = vrsqrt.f32 %v6094_v61  ;;  %v6095_v45 = vadd.f32 1e-05, %v6091_v22  ;;  %v11349_v61 = vcombine.high %v6209_v17, %v6213_v1  ;;  %v6220_v22 = vld [vmem:[%s14750_s17 + $0xb0] sm:$0xff]  ;;  %v6241_v1 = vld [vmem:[%s14750_s17 + $0x158] sm:$0xff] }
 0x943   : > { %v11355_v59 = vcombine.high %v6216_v56, %v6220_v22  ;;  %v6244_v17 = vld [vmem:[%s14750_s17 + $0x170] sm:$0xff] }
 0x944   : > { %13610 = vrsqrt.f32 %v6095_v45  ;;  %v6217_v45 = vld [vmem:[%s14750_s17 + $0x98] sm:$0xff] }
 0x94c   : > { %v13609_v7 = vpop.eup %13608 }
 0x94d   : > { %v6109_v50 = vmul.f32 %v13609_v7, %v15908_v60  ;;  %v6108_v13 = vmul.f32 %v13609_v7, %v15905_v5  ;;  %v6111_v3 = vmul.f32 %v13609_v7, %v15914_v34  ;;  %v6110_v24 = vmul.f32 %v13609_v7, %v15911_v16  ;;  %v6221_v7 = vld [vmem:[%s14750_s17 + $0xb8] sm:$0xff] }
 0x94e   : > { %v13611_v48 = vpop.eup %13610 }
 0x94f   : > { %v6113_v43 = vmul.f32 %v13611_v48, %v15920_v62  ;;  %v6146_v36 = vmul.f32 %v15949_v28, %v6109_v50  ;;  %v6112_v54 = vmul.f32 %v13611_v48, %v15917_v42  ;;  %v6145_v39 = vmul.f32 %v15952_v33, %v6108_v13  ;;  %v6224_v13 = vld [vmem:[%s14750_s17 + $0xd0] sm:$0xff] }
 0x950   : > { %v6115_v38 = vmul.f32 %v13611_v48, %v15932_v20  ;;  %v6148_v11 = vmul.f32 %v15955_v9, %v6111_v3  ;;  %v6114_v60 = vmul.f32 %v13611_v48, %v15929_v18  ;;  %v6147_v5 = vmul.f32 %v15958_v35, %v6110_v24  ;;  %v6228_v3 = vld [vmem:[%s14750_s17 + $0xf0] sm:$0xff]  ;;  %v6225_v24 = vld [vmem:[%s14750_s17 + $0xd8] sm:$0xff] }
 0x951   : > { %v6150_v34 = vmul.f32 %v15949_v28, %v6113_v43  ;;  %v6149_v16 = vmul.f32 %v15952_v33, %v6112_v54  ;;  %v16129_v20 = vadd.f32 %v15965_v14, %v6146_v36  ;;  %v16135_v28 = vadd.f32 %v15968_v52, %v6145_v39  ;;  %v6229_v48 = vld [vmem:[%s14750_s17 + $0xf8] sm:$0xff]  ;;  %v6232_v39 = vld [vmem:[%s14750_s17 + $0x110] sm:$0xff] }
 0x952   : > { %v6152_v62 = vmul.f32 %v15955_v9, %v6115_v38  ;;  %v16122_v44 = vadd.f32 %v15971_v51, %v6148_v11  ;;  %v6151_v42 = vmul.f32 %v15958_v35, %v6114_v60  ;;  %v16126_v53 = vadd.f32 %v15974_v19, %v6147_v5  ;;  %v6236_v60 = vld [vmem:[%s14750_s17 + $0x130] sm:$0xff]  ;;  %v6233_v5 = vld [vmem:[%s14750_s17 + $0x118] sm:$0xff] }
 0x953   : > { %v16132_v18 = vadd.f32 %v15965_v14, %v6150_v34  ;;  %v16138_v33 = vadd.f32 %v15968_v52, %v6149_v16  ;;  %v16158_v52 = vpack.c.bf16 %v16011_v29, %v15989_v41  ;;  %v11357_v50 = vcombine.high %v6217_v45, %v6221_v7  ;;  %v6237_v34 = vld [vmem:[%s14750_s17 + $0x138] sm:$0xff] }
 0x954   : > { %v16141_v9 = vadd.f32 %v15971_v51, %v6152_v62  ;;  %v16144_v35 = vadd.f32 %v15974_v19, %v6151_v42  ;;  %v6208_v51 = vld [vmem:[%s14750_s17 + $0x50] sm:$0xff]  ;;  %v11354_v43 = vcombine.low %v6216_v56, %v6220_v22  ;;  %v11356_v36 = vcombine.low %v6217_v45, %v6221_v7  ;;  %v6249_v45 = vld [vmem:[%s14750_s17 + $0x198] sm:$0xff] }
 0x955   : > { %v16148_v30 = vpack.c.bf16 %v16132_v18, %v16129_v20  ;;  %v16152_v14 = vpack.c.bf16 %v16138_v33, %v16135_v28  ;;  %v6212_v19 = vld [vmem:[%s14750_s17 + $0x70] sm:$0xff]  ;;  %v11363_v38 = vcombine.high %v6224_v13, %v6228_v3  ;;  %v11365_v11 = vcombine.high %v6225_v24, %v6229_v48  ;;  %v6253_v7 = vld [vmem:[%s14750_s17 + $0x1b8] sm:$0xff] }
 0x956   : > { %v11347_v49 = vcombine.high %v6208_v51, %v6212_v19  ;;  %v16184_v40 = vpack.c.bf16 %v16141_v9, %v16122_v44  ;;  %v11346_v58 = vcombine.low %v6208_v51, %v6212_v19  ;;  %v16194_v54 = vpack.c.bf16 %v16144_v35, %v16126_v53  ;;  %v6240_v19 = vld [vmem:[%s14750_s17 + $0x150] sm:$0xff] }
 0x957   : > { %7818 = vmatprep.mubr.bf16.mxu0 %v16148_v30  ;;  %7924 = vmatprep.mubr.bf16.mxu1 %v16148_v30  ;;  %v11362_v16 = vcombine.low %v6224_v13, %v6228_v3  ;;  %v11364_v62 = vcombine.low %v6225_v24, %v6229_v48  ;;  %v11371_v42 = vcombine.high %v6232_v39, %v6236_v60  ;;  %v6252_v22 = vld [vmem:[%s14750_s17 + $0x1b0] sm:$0xff]  ;;  %v6257_v24 = vld [vmem:[%s14750_s17 + $0x1d8] sm:$0xff] }
 0x958   : > { %7819 = vmatmul.mubr.bf16.gmra.mrb[68].mxu0 %v16152_v14  ;;  %7925 = vmatmul.mubr.bf16.gmra.mrb[68].mxu1 %v16152_v14  ;;  %v11373_v51 = vcombine.high %v6233_v5, %v6237_v34  ;;  %v11372_v56 = vcombine.low %v6233_v5, %v6237_v34  ;;  %v6256_v13 = vld [vmem:[%s14750_s17 + $0x1d0] sm:$0xff]  ;;  %v6261_v48 = vld [vmem:[%s14750_s17 + $0x1f8] sm:$0xff] }
 0x959   : > { %7861 = vmatprep.mubr.bf16.mxu0 %v16158_v52  ;;  %7967 = vmatprep.mubr.bf16.mxu1 %v16158_v52  ;;  %v6260_v3 = vld [vmem:[%s14750_s17 + $0x1f0] sm:$0xff]  ;;  %v6265_v5 = vld [vmem:[%s14750_s17 + $0x218] sm:$0xff] }
 0x95a   : > { %v6269_v34 = vld [vmem:[%s14750_s17 + $0x238] sm:$0xff] }
 0x960   : > { %7862 = vmatmul.mubr.bf16.vlgmr.msra.gmra.mrb[64].mxu0 %v16174_v31  ;;  %7968 = vmatmul.mubr.bf16.vlgmr.msra.gmra.mrb[64].mxu1 %v16174_v31 }
 0x961   : > { %7989 = vmatpush1.bf16.msra.mxu0 %v11338_v57  ;;  %8095 = vmatpush1.bf16.msra.mxu1 %v11340_v10  ;;  %v6245_v57 = vld [vmem:[%s14750_s17 + $0x178] sm:$0xff]  ;;  %v11370_v10 = vcombine.low %v6232_v39, %v6236_v60  ;;  %v11395_v39 = vcombine.high %v6256_v13, %v6260_v3  ;;  %v6268_v60 = vld [vmem:[%s14750_s17 + $0x230] sm:$0xff] }
 0x962   : > { %7871 = vmatprep.mubr.bf16.mxu0 %v16184_v40  ;;  %7977 = vmatprep.mubr.bf16.mxu1 %v16184_v40 }
 0x963   : > { %7990 = vmatprep.subr.bf16.mxu0 %v11347_v49  ;;  %8096 = vmatprep.subr.bf16.mxu1 %v11349_v61  ;;  %v11381_v49 = vcombine.high %v6241_v1, %v6245_v57  ;;  %v6248_v61 = vld [vmem:[%s14750_s17 + $0x190] sm:$0xff] }
 0x965   : > { %7991 = vmatpush1.bf16.msra.mxu0 %v11346_v58  ;;  %8097 = vmatpush1.bf16.msra.mxu1 %v11348_v63  ;;  %v11378_v58 = vcombine.low %v6240_v19, %v6244_v17  ;;  %v11380_v63 = vcombine.low %v6241_v1, %v6245_v57  ;;  %v6273_v1 = vld [vmem:[%s14750_s17 + $0x258] sm:$0xff] }
 0x966   : > { %7992 = vmatprep.subr.bf16.mxu0 %v11355_v59  ;;  %8098 = vmatprep.subr.bf16.mxu1 %v11357_v50  ;;  %v11387_v59 = vcombine.high %v6248_v61, %v6252_v22  ;;  %v11389_v50 = vcombine.high %v6249_v45, %v6253_v7  ;;  %v6277_v57 = vld [vmem:[%s14750_s17 + $0x278] sm:$0xff] }
 0x968   : > { %7872 = vmatmul.mubr.bf16.gmra.mrb[68].mxu0 %v16194_v54  ;;  %7978 = vmatmul.mubr.bf16.gmra.mrb[68].mxu1 %v16194_v54 }
 0x969   : > { %7993 = vmatpush1.bf16.msra.mxu0 %v11354_v43  ;;  %8099 = vmatpush1.bf16.msra.mxu1 %v11356_v36  ;;  %v11386_v43 = vcombine.low %v6248_v61, %v6252_v22  ;;  %v11388_v36 = vcombine.low %v6249_v45, %v6253_v7  ;;  %v6280_v61 = vld [vmem:[%s14750_s17 + $0x290] sm:$0xff]  ;;  %v6281_v45 = vld [vmem:[%s14750_s17 + $0x298] sm:$0xff] }
 0x96a   : > { %8020 = vmatprep.mubr.bf16.mxu0 %v16018_v0  ;;  %8126 = vmatprep.mubr.bf16.mxu1 %v16018_v0  ;;  %v11379_v0 = vcombine.high %v6240_v19, %v6244_v17  ;;  %v6272_v19 = vld [vmem:[%s14750_s17 + $0x250] sm:$0xff]  ;;  %v6285_v7 = vld [vmem:[%s14750_s17 + $0x2b8] sm:$0xff] }
 0x96b   : > { %7994 = vmatprep.subr.bf16.mxu0 %v11363_v38  ;;  %8100 = vmatprep.subr.bf16.mxu1 %v11365_v11  ;;  %v11397_v38 = vcombine.high %v6257_v24, %v6261_v48  ;;  %v6264_v11 = vld [vmem:[%s14750_s17 + $0x210] sm:$0xff] }
 0x96c   : > { %v6276_v17 = vld [vmem:[%s14750_s17 + $0x270] sm:$0xff] }
 0x96d   : > { %7995 = vmatpush1.bf16.msra.mxu0 %v11362_v16  ;;  %8101 = vmatpush1.bf16.msra.mxu1 %v11364_v62  ;;  %v11394_v16 = vcombine.low %v6256_v13, %v6260_v3  ;;  %v11396_v62 = vcombine.low %v6257_v24, %v6261_v48  ;;  %v6284_v22 = vld [vmem:[%s14750_s17 + $0x2b0] sm:$0xff]  ;;  %v6289_v24 = vld [vmem:[%s14750_s17 + $0x2d8] sm:$0xff] }
 0x96e   : > { %7996 = vmatprep.subr.bf16.mxu0 %v11371_v42  ;;  %8102 = vmatprep.subr.bf16.mxu1 %v11373_v51  ;;  %v11403_v42 = vcombine.high %v6264_v11, %v6268_v60  ;;  %v11405_v51 = vcombine.high %v6265_v5, %v6269_v34  ;;  %v6288_v13 = vld [vmem:[%s14750_s17 + $0x2d0] sm:$0xff]  ;;  %v6293_v48 = vld [vmem:[%s14750_s17 + $0x2f8] sm:$0xff] }
 0x96f   : > { %v6292_v3 = vld [vmem:[%s14750_s17 + $0x2f0] sm:$0xff] }
 0x971   : > { %7997 = vmatpush1.bf16.msra.mxu0 %v11370_v10  ;;  %8103 = vmatpush1.bf16.msra.mxu1 %v11372_v56  ;;  %v11402_v10 = vcombine.low %v6264_v11, %v6268_v60  ;;  %v11404_v56 = vcombine.low %v6265_v5, %v6269_v34  ;;  %v6296_v11 = vld [vmem:[%s14750_s17 + $0x310] sm:$0xff]  ;;  %v6297_v5 = vld [vmem:[%s14750_s17 + $0x318] sm:$0xff] }
 0x972   : > { %7998 = vmatprep.subr.bf16.mxu0 %v11379_v0  ;;  %8104 = vmatprep.subr.bf16.mxu1 %v11381_v49  ;;  %v11411_v0 = vcombine.high %v6272_v19, %v6276_v17  ;;  %v11413_v49 = vcombine.high %v6273_v1, %v6277_v57  ;;  %v6300_v60 = vld [vmem:[%s14750_s17 + $0x330] sm:$0xff]  ;;  %v6301_v34 = vld [vmem:[%s14750_s17 + $0x338] sm:$0xff] }
 0x975   : > { %7999 = vmatpush1.bf16.msra.mxu0 %v11378_v58  ;;  %8105 = vmatpush1.bf16.msra.mxu1 %v11380_v63  ;;  %v11410_v58 = vcombine.low %v6272_v19, %v6276_v17  ;;  %v11412_v63 = vcombine.low %v6273_v1, %v6277_v57  ;;  %v6304_v19 = vld [vmem:[%s14750_s17 + $0x350] sm:$0xff]  ;;  %v6305_v1 = vld [vmem:[%s14750_s17 + $0x358] sm:$0xff] }
 0x976   : > { %8000 = vmatprep.subr.bf16.mxu0 %v11387_v59  ;;  %8106 = vmatprep.subr.bf16.mxu1 %v11389_v50  ;;  %v11419_v59 = vcombine.high %v6280_v61, %v6284_v22  ;;  %v11421_v50 = vcombine.high %v6281_v45, %v6285_v7  ;;  %v6308_v17 = vld [vmem:[%s14750_s17 + $0x370] sm:$0xff]  ;;  %v6309_v57 = vld [vmem:[%s14750_s17 + $0x378] sm:$0xff] }
 0x979   : > { %8001 = vmatpush1.bf16.msra.mxu0 %v11386_v43  ;;  %8107 = vmatpush1.bf16.msra.mxu1 %v11388_v36  ;;  %v11418_v43 = vcombine.low %v6280_v61, %v6284_v22  ;;  %v11420_v36 = vcombine.low %v6281_v45, %v6285_v7  ;;  %v6312_v61 = vld [vmem:[%s14750_s17 + $0x390] sm:$0xff]  ;;  %v6313_v45 = vld [vmem:[%s14750_s17 + $0x398] sm:$0xff] }
 0x97a   : > { %8002 = vmatprep.subr.bf16.mxu0 %v11395_v39  ;;  %8108 = vmatprep.subr.bf16.mxu1 %v11397_v38  ;;  %v11427_v39 = vcombine.high %v6288_v13, %v6292_v3  ;;  %v11429_v38 = vcombine.high %v6289_v24, %v6293_v48  ;;  %v6316_v22 = vld [vmem:[%s14750_s17 + $0x3b0] sm:$0xff]  ;;  %v6317_v7 = vld [vmem:[%s14750_s17 + $0x3b8] sm:$0xff] }
 0x97d   : > { %8003 = vmatpush1.bf16.msra.mxu0 %v11394_v16  ;;  %8109 = vmatpush1.bf16.msra.mxu1 %v11396_v62  ;;  %v11426_v16 = vcombine.low %v6288_v13, %v6292_v3  ;;  %v11428_v62 = vcombine.low %v6289_v24, %v6293_v48  ;;  %v6320_v13 = vld [vmem:[%s14750_s17 + $0x3d0] sm:$0xff]  ;;  %v6321_v24 = vld [vmem:[%s14750_s17 + $0x3d8] sm:$0xff] }
 0x97e   : > { %8004 = vmatprep.subr.bf16.mxu0 %v11403_v42  ;;  %8110 = vmatprep.subr.bf16.mxu1 %v11405_v51  ;;  %v11435_v42 = vcombine.high %v6296_v11, %v6300_v60  ;;  %v11437_v51 = vcombine.high %v6297_v5, %v6301_v34  ;;  %v6324_v3 = vld [vmem:[%s14750_s17 + $0x3f0] sm:$0xff]  ;;  %v6325_v48 = vld [vmem:[%s14750_s17 + $0x3f8] sm:$0xff] }
 0x981   : > { %8005 = vmatpush1.bf16.msra.mxu0 %v11402_v10  ;;  %8111 = vmatpush1.bf16.msra.mxu1 %v11404_v56  ;;  %v11434_v10 = vcombine.low %v6296_v11, %v6300_v60  ;;  %v11436_v56 = vcombine.low %v6297_v5, %v6301_v34  ;;  %v6328_v11 = vld [vmem:[%s14750_s17 + $0x410] sm:$0xff]  ;;  %v6329_v5 = vld [vmem:[%s14750_s17 + $0x418] sm:$0xff] }
 0x982   : > { %8006 = vmatprep.subr.bf16.mxu0 %v11411_v0  ;;  %8112 = vmatprep.subr.bf16.mxu1 %v11413_v49  ;;  %v11443_v0 = vcombine.high %v6304_v19, %v6308_v17  ;;  %v11445_v49 = vcombine.high %v6305_v1, %v6309_v57  ;;  %v6332_v60 = vld [vmem:[%s14750_s17 + $0x430] sm:$0xff]  ;;  %v6333_v34 = vld [vmem:[%s14750_s17 + $0x438] sm:$0xff] }
 0x985   : > { %8007 = vmatpush1.bf16.msra.mxu0 %v11410_v58  ;;  %8113 = vmatpush1.bf16.msra.mxu1 %v11412_v63  ;;  %v11442_v58 = vcombine.low %v6304_v19, %v6308_v17  ;;  %v11444_v63 = vcombine.low %v6305_v1, %v6309_v57  ;;  %v6336_v19 = vld [vmem:[%s14750_s17 + $0x450] sm:$0xff]  ;;  %v6337_v1 = vld [vmem:[%s14750_s17 + $0x458] sm:$0xff] }
 0x986   : > { %8008 = vmatprep.subr.bf16.mxu0 %v11419_v59  ;;  %8114 = vmatprep.subr.bf16.mxu1 %v11421_v50  ;;  %v11451_v59 = vcombine.high %v6312_v61, %v6316_v22  ;;  %v11453_v50 = vcombine.high %v6313_v45, %v6317_v7  ;;  %v6340_v17 = vld [vmem:[%s14750_s17 + $0x470] sm:$0xff]  ;;  %v6341_v57 = vld [vmem:[%s14750_s17 + $0x478] sm:$0xff] }
 0x989   : > { %8009 = vmatpush1.bf16.msra.mxu0 %v11418_v43  ;;  %8115 = vmatpush1.bf16.msra.mxu1 %v11420_v36  ;;  %v11450_v43 = vcombine.low %v6312_v61, %v6316_v22  ;;  %v11452_v36 = vcombine.low %v6313_v45, %v6317_v7  ;;  %v6344_v61 = vld [vmem:[%s14750_s17 + $0x490] sm:$0xff]  ;;  %v6345_v45 = vld [vmem:[%s14750_s17 + $0x498] sm:$0xff] }
 0x98a   : > { %8010 = vmatprep.subr.bf16.mxu0 %v11427_v39  ;;  %8116 = vmatprep.subr.bf16.mxu1 %v11429_v38  ;;  %v11459_v39 = vcombine.high %v6320_v13, %v6324_v3  ;;  %v11461_v38 = vcombine.high %v6321_v24, %v6325_v48  ;;  %v6348_v22 = vld [vmem:[%s14750_s17 + $0x4b0] sm:$0xff]  ;;  %v6349_v7 = vld [vmem:[%s14750_s17 + $0x4b8] sm:$0xff] }
 0x98d   : > { %8011 = vmatpush1.bf16.msra.mxu0 %v11426_v16  ;;  %8117 = vmatpush1.bf16.msra.mxu1 %v11428_v62  ;;  %v11458_v16 = vcombine.low %v6320_v13, %v6324_v3  ;;  %v11460_v62 = vcombine.low %v6321_v24, %v6325_v48  ;;  %v6352_v13 = vld [vmem:[%s14750_s17 + $0x4d0] sm:$0xff]  ;;  %v6353_v3 = vld [vmem:[%s14750_s17 + $0x4d8] sm:$0xff]  ;;  %v11482_v48 = vcombine.low %v6344_v61, %v6348_v22 }
 0x98e   : > { %8012 = vmatprep.subr.bf16.mxu0 %v11435_v42  ;;  %8118 = vmatprep.subr.bf16.mxu1 %v11437_v51  ;;  %v11467_v42 = vcombine.high %v6328_v11, %v6332_v60  ;;  %v11469_v51 = vcombine.high %v6329_v5, %v6333_v34  ;;  %v6357_v24 = vld [vmem:[%s14750_s17 + $0x4f8] sm:$0xff] }
 0x991   : > { %8013 = vmatpush1.bf16.msra.mxu0 %v11434_v10  ;;  %8119 = vmatpush1.bf16.msra.mxu1 %v11436_v56  ;;  %v11466_v10 = vcombine.low %v6328_v11, %v6332_v60  ;;  %v11468_v56 = vcombine.low %v6329_v5, %v6333_v34  ;;  %v6361_v11 = vld [vmem:[%s14750_s17 + $0x518] sm:$0xff]  ;;  %v11492_v34 = vcombine.low %v6353_v3, %v6357_v24 }
 0x992   : > { %8014 = vmatprep.subr.bf16.mxu0 %v11443_v0  ;;  %8120 = vmatprep.subr.bf16.mxu1 %v11445_v49  ;;  %v11475_v0 = vcombine.high %v6336_v19, %v6340_v17  ;;  %v11477_v49 = vcombine.high %v6337_v1, %v6341_v57  ;;  %v6365_v60 = vld [vmem:[%s14750_s17 + $0x538] sm:$0xff] }
 0x995   : > { %8015 = vmatpush1.bf16.msra.mxu0 %v11442_v58  ;;  %8121 = vmatpush1.bf16.msra.mxu1 %v11444_v63  ;;  %v11474_v58 = vcombine.low %v6336_v19, %v6340_v17  ;;  %v11476_v63 = vcombine.low %v6337_v1, %v6341_v57  ;;  %v6373_v19 = vld [vmem:[%s14750_s17 + $0x578] sm:$0xff]  ;;  %v11500_v1 = vcombine.low %v6361_v11, %v6365_v60 }
 0x996   : > { %8016 = vmatprep.subr.bf16.mxu0 %v11451_v59  ;;  %8122 = vmatprep.subr.bf16.mxu1 %v11453_v50  ;;  %v11483_v59 = vcombine.high %v6344_v61, %v6348_v22  ;;  %v11485_v50 = vcombine.high %v6345_v45, %v6349_v7 }
 0x999   : > { %8017 = vmatpush1.bf16.msra.mxu0 %v11450_v43  ;;  %8123 = vmatpush1.bf16.msra.mxu1 %v11452_v36  ;;  %v11484_v43 = vcombine.low %v6345_v45, %v6349_v7  ;;  %v11493_v36 = vcombine.high %v6353_v3, %v6357_v24 }
 0x99a   : > { %8018 = vmatprep.subr.bf16.mxu0 %v11459_v39  ;;  %8124 = vmatprep.subr.bf16.mxu1 %v11461_v38  ;;  %v6360_v39 = vld [vmem:[%s14750_s17 + $0x510] sm:$0xff] }
 0x99b   : > { %v6364_v38 = vld [vmem:[%s14750_s17 + $0x530] sm:$0xff] }
 0x99c   : > { %v11498_v17 = vcombine.low %v6360_v39, %v6364_v38 }
 0x99d   : > { %8019 = vmatpush1.bf16.msra.mxu0 %v11458_v16  ;;  %8125 = vmatpush1.bf16.msra.mxu1 %v11460_v62  ;;  %v11499_v16 = vcombine.high %v6360_v39, %v6364_v38  ;;  %v11501_v62 = vcombine.high %v6361_v11, %v6365_v60 }
 0x99e   : > { %8041 = vmatprep.subr.bf16.mxu0 %v11467_v42  ;;  %8147 = vmatprep.subr.bf16.mxu1 %v11469_v51  ;;  %v6372_v42 = vld [vmem:[%s14750_s17 + $0x570] sm:$0xff]  ;;  %v6369_v51 = vld [vmem:[%s14750_s17 + $0x558] sm:$0xff] }
 0x99f   : > { %v11509_v57 = vcombine.high %v6369_v51, %v6373_v19  ;;  %v11508_v22 = vcombine.low %v6369_v51, %v6373_v19 }
 0x9a0   : > { %8021 = vmatmul.mubr.bf16.vlgmr.msra.gmra.mrb[72].mxu0 %v16022_v4  ;;  %8127 = vmatmul.mubr.bf16.vlgmr.msra.gmra.mrb[72].mxu1 %v16022_v4  ;;  %v6356_v4 = vld [vmem:[%s14750_s17 + $0x4f0] sm:$0xff] }
 0x9a1   : > { %8030 = vmatprep.mubr.bf16.mxu0 %v16148_v30  ;;  %8042 = vmatpush1.bf16.msra.mxu0 %v11466_v10  ;;  %v11490_v5 = vcombine.low %v6352_v13, %v6356_v4  ;;  %v6376_v10 = vld [vmem:[%s14750_s17 + $0x590] sm:$0xff] }
 0x9a2   : > { %8136 = vmatprep.mubr.bf16.mxu1 %v16148_v30  ;;  %8148 = vmatpush1.bf16.msra.mxu1 %v11468_v56  ;;  %v11491_v30 = vcombine.high %v6352_v13, %v6356_v4  ;;  %v6380_v56 = vld [vmem:[%s14750_s17 + $0x5b0] sm:$0xff] }
 0x9a3   : > { %8043 = vmatprep.subr.bf16.mxu0 %v11475_v0  ;;  %8149 = vmatprep.subr.bf16.mxu1 %v11477_v49  ;;  %v6377_v0 = vld [vmem:[%s14750_s17 + $0x598] sm:$0xff]  ;;  %v11515_v45 = vcombine.high %v6376_v10, %v6380_v56  ;;  %v11514_v13 = vcombine.low %v6376_v10, %v6380_v56 }
 0x9a4   : > { %v6381_v49 = vld [vmem:[%s14750_s17 + $0x5b8] sm:$0xff] }
 0x9a5   : > { %8044 = vmatpush1.bf16.msra.mxu0 %v11474_v58  ;;  %v11517_v7 = vcombine.high %v6377_v0, %v6381_v49  ;;  %v6384_v58 = vld [vmem:[%s14750_s17 + $0x5d0] sm:$0xff]  ;;  %v11516_v4 = vcombine.low %v6377_v0, %v6381_v49 }
 0x9a6   : > { %8150 = vmatpush1.bf16.msra.mxu1 %v11476_v63  ;;  %8045 = vmatprep.subr.bf16.mxu0 %v11483_v59  ;;  %v6388_v63 = vld [vmem:[%s14750_s17 + $0x5f0] sm:$0xff]  ;;  %v6385_v59 = vld [vmem:[%s14750_s17 + $0x5d8] sm:$0xff] }
 0x9a7   : > { %8151 = vmatprep.subr.bf16.mxu1 %v11485_v50  ;;  %v6389_v50 = vld [vmem:[%s14750_s17 + $0x5f8] sm:$0xff]  ;;  %v11523_v3 = vcombine.high %v6384_v58, %v6388_v63  ;;  %v11522_v39 = vcombine.low %v6384_v58, %v6388_v63 }
 0x9a8   : > { %8031 = vmatmul.mubr.bf16.gmra.mrb[76].mxu0 %v16152_v14  ;;  %8137 = vmatmul.mubr.bf16.gmra.mrb[76].mxu1 %v16152_v14  ;;  %v6368_v14 = vld [vmem:[%s14750_s17 + $0x550] sm:$0xff]  ;;  %v11525_v24 = vcombine.high %v6385_v59, %v6389_v50  ;;  %v11524_v38 = vcombine.low %v6385_v59, %v6389_v50 }
 0x9a9   : > { %8046 = vmatpush1.bf16.msra.mxu0 %v11482_v48  ;;  %8073 = vmatprep.mubr.bf16.mxu0 %v16158_v52  ;;  %v11506_v61 = vcombine.low %v6368_v14, %v6372_v42  ;;  %v6392_v48 = vld [vmem:[%s14750_s17 + $0x610] sm:$0xff] }
 0x9aa   : > { %8152 = vmatpush1.bf16.msra.mxu1 %v11484_v43  ;;  %8179 = vmatprep.mubr.bf16.mxu1 %v16158_v52  ;;  %v11507_v52 = vcombine.high %v6368_v14, %v6372_v42  ;;  %v6396_v43 = vld [vmem:[%s14750_s17 + $0x630] sm:$0xff] }
 0x9ab   : > { %8047 = vmatprep.subr.bf16.mxu0 %v11491_v30  ;;  %8153 = vmatprep.subr.bf16.mxu1 %v11493_v36  ;;  %v6393_v30 = vld [vmem:[%s14750_s17 + $0x618] sm:$0xff]  ;;  %v11531_v11 = vcombine.high %v6392_v48, %v6396_v43  ;;  %v11530_v14 = vcombine.low %v6392_v48, %v6396_v43 }
 0x9ac   : > { %v6397_v36 = vld [vmem:[%s14750_s17 + $0x638] sm:$0xff] }
 0x9ad   : > { %8048 = vmatpush1.bf16.msra.mxu0 %v11490_v5  ;;  %v11533_v60 = vcombine.high %v6393_v30, %v6397_v36  ;;  %v6400_v5 = vld [vmem:[%s14750_s17 + $0x650] sm:$0xff]  ;;  %v11532_v42 = vcombine.low %v6393_v30, %v6397_v36 }
 0x9ae   : > { %8154 = vmatpush1.bf16.msra.mxu1 %v11492_v34  ;;  %8049 = vmatprep.subr.bf16.mxu0 %v11499_v16  ;;  %v6404_v34 = vld [vmem:[%s14750_s17 + $0x670] sm:$0xff]  ;;  %v6401_v16 = vld [vmem:[%s14750_s17 + $0x658] sm:$0xff] }
 0x9af   : > { %8155 = vmatprep.subr.bf16.mxu1 %v11501_v62  ;;  %v6405_v62 = vld [vmem:[%s14750_s17 + $0x678] sm:$0xff]  ;;  %v11539_v51 = vcombine.high %v6400_v5, %v6404_v34  ;;  %v11538_v10 = vcombine.low %v6400_v5, %v6404_v34 }
 0x9b0   : > { %v11541_v19 = vcombine.high %v6401_v16, %v6405_v62  ;;  %v11540_v56 = vcombine.low %v6401_v16, %v6405_v62 }
 0x9b1   : > { %8050 = vmatpush1.bf16.msra.mxu0 %v11498_v17  ;;  %v6408_v17 = vld [vmem:[%s14750_s17 + $0x690] sm:$0xff] }
 0x9b2   : > { %8156 = vmatpush1.bf16.msra.mxu1 %v11500_v1  ;;  %8051 = vmatprep.subr.bf16.mxu0 %v11507_v52  ;;  %v6412_v1 = vld [vmem:[%s14750_s17 + $0x6b0] sm:$0xff]  ;;  %v6409_v52 = vld [vmem:[%s14750_s17 + $0x698] sm:$0xff] }
 0x9b3   : > { %8157 = vmatprep.subr.bf16.mxu1 %v11509_v57  ;;  %v6413_v57 = vld [vmem:[%s14750_s17 + $0x6b8] sm:$0xff]  ;;  %v11547_v0 = vcombine.high %v6408_v17, %v6412_v1  ;;  %v11546_v58 = vcombine.low %v6408_v17, %v6412_v1 }
 0x9b4   : > { %v11549_v49 = vcombine.high %v6409_v52, %v6413_v57  ;;  %v11548_v63 = vcombine.low %v6409_v52, %v6413_v57 }
 0x9b5   : > { %8052 = vmatpush1.bf16.msra.mxu0 %v11506_v61  ;;  %v6416_v61 = vld [vmem:[%s14750_s17 + $0x6d0] sm:$0xff] }
 0x9b6   : > { %8158 = vmatpush1.bf16.msra.mxu1 %v11508_v22  ;;  %8053 = vmatprep.subr.bf16.mxu0 %v11515_v45  ;;  %v6420_v22 = vld [vmem:[%s14750_s17 + $0x6f0] sm:$0xff]  ;;  %v6417_v45 = vld [vmem:[%s14750_s17 + $0x6d8] sm:$0xff] }
 0x9b7   : > { %8159 = vmatprep.subr.bf16.mxu1 %v11517_v7  ;;  %v6421_v7 = vld [vmem:[%s14750_s17 + $0x6f8] sm:$0xff]  ;;  %v11555_v59 = vcombine.high %v6416_v61, %v6420_v22  ;;  %v11554_v48 = vcombine.low %v6416_v61, %v6420_v22 }
 0x9b8   : > { %v11557_v50 = vcombine.high %v6417_v45, %v6421_v7  ;;  %v11556_v43 = vcombine.low %v6417_v45, %v6421_v7 }
 0x9b9   : > { %8054 = vmatpush1.bf16.msra.mxu0 %v11514_v13  ;;  %v6424_v13 = vld [vmem:[%s14750_s17 + $0x710] sm:$0xff] }
 0x9ba   : > { %8160 = vmatpush1.bf16.msra.mxu1 %v11516_v4  ;;  %8055 = vmatprep.subr.bf16.mxu0 %v11523_v3  ;;  %v6428_v4 = vld [vmem:[%s14750_s17 + $0x730] sm:$0xff]  ;;  %v6425_v3 = vld [vmem:[%s14750_s17 + $0x718] sm:$0xff] }
 0x9bb   : > { %8161 = vmatprep.subr.bf16.mxu1 %v11525_v24  ;;  %v6429_v24 = vld [vmem:[%s14750_s17 + $0x738] sm:$0xff]  ;;  %v11563_v30 = vcombine.high %v6424_v13, %v6428_v4  ;;  %v11562_v5 = vcombine.low %v6424_v13, %v6428_v4  ;;  %v13156_v13 = vld [vmem:[%s14760_s30] ss:$16 sps:$4 sm:$0xff]  }
 0x9bc   : > { %v11565_v36 = vcombine.high %v6425_v3, %v6429_v24  ;;  %v11564_v34 = vcombine.low %v6425_v3, %v6429_v24  ;;  %v13159_v4 = vld [vmem:[%s14760_s30 + $0x8] ss:$16 sps:$4 sm:$0xff]   ;;  %v13164_v3 = vld [vmem:[%s14760_s30 + $0x24] ss:$16 sps:$4 sm:$0xff]   ;;  %v13167_v24 = vld [vmem:[%s14760_s30 + $0x2c] ss:$16 sps:$4 sm:$0xff]  }
 0x9bd   : > { %8056 = vmatpush1.bf16.msra.mxu0 %v11522_v39  ;;  %v6432_v39 = vld [vmem:[%s14750_s17 + $0x750] sm:$0xff] }
 0x9be   : > { %8162 = vmatpush1.bf16.msra.mxu1 %v11524_v38  ;;  %8057 = vmatprep.subr.bf16.mxu0 %v11531_v11  ;;  %v6436_v38 = vld [vmem:[%s14750_s17 + $0x770] sm:$0xff]  ;;  %v6433_v11 = vld [vmem:[%s14750_s17 + $0x758] sm:$0xff] }
 0x9bf   : > { %8163 = vmatprep.subr.bf16.mxu1 %v11533_v60  ;;  %v6437_v60 = vld [vmem:[%s14750_s17 + $0x778] sm:$0xff]  ;;  %v11571_v16 = vcombine.high %v6432_v39, %v6436_v38  ;;  %v11570_v17 = vcombine.low %v6432_v39, %v6436_v38  ;;  %v13168_v39 = vld [vmem:[%s14760_s30 + $0x40] ss:$16 sps:$4 sm:$0xff]  }
 0x9c0   : > { %v11573_v62 = vcombine.high %v6433_v11, %v6437_v60  ;;  %v11572_v1 = vcombine.low %v6433_v11, %v6437_v60  ;;  %v13179_v38 = vld [vmem:[%s14760_s30 + $0x6c] ss:$16 sps:$4 sm:$0xff]   ;;  %v13174_v11 = vld [vmem:[%s14760_s30 + $0x60] ss:$16 sps:$4 sm:$0xff]   ;;  %v13177_v60 = vld [vmem:[%s14760_s30 + $0x68] ss:$16 sps:$4 sm:$0xff]  }
 0x9c1   : > { %8058 = vmatpush1.bf16.msra.mxu0 %v11530_v14  ;;  %v6440_v14 = vld [vmem:[%s14750_s17 + $0x790] sm:$0xff] }
 0x9c2   : > { %8164 = vmatpush1.bf16.msra.mxu1 %v11532_v42  ;;  %8059 = vmatprep.subr.bf16.mxu0 %v11539_v51  ;;  %v6444_v42 = vld [vmem:[%s14750_s17 + $0x7b0] sm:$0xff]  ;;  %v6441_v51 = vld [vmem:[%s14750_s17 + $0x798] sm:$0xff] }
 0x9c3   : > { %8165 = vmatprep.subr.bf16.mxu1 %v11541_v19  ;;  %v6445_v19 = vld [vmem:[%s14750_s17 + $0x7b8] sm:$0xff]  ;;  %v11579_v52 = vcombine.high %v6440_v14, %v6444_v42  ;;  %v11578_v61 = vcombine.low %v6440_v14, %v6444_v42  ;;  %v13186_v42 = vld [vmem:[%s14760_s30 + $0xa0] ss:$16 sps:$4 sm:$0xff]  }
 0x9c4   : > { %v11581_v57 = vcombine.high %v6441_v51, %v6445_v19  ;;  %v11580_v22 = vcombine.low %v6441_v51, %v6445_v19  ;;  %v13191_v14 = vld [vmem:[%s14760_s30 + $0xac] ss:$16 sps:$4 sm:$0xff]   ;;  %v13189_v51 = vld [vmem:[%s14760_s30 + $0xa8] ss:$16 sps:$4 sm:$0xff]   ;;  %v13194_v19 = vld [vmem:[%s14760_s30 + $0xc4] ss:$16 sps:$4 sm:$0xff]  }
 0x9c5   : > { %8060 = vmatpush1.bf16.msra.mxu0 %v11538_v10  ;;  %v6448_v10 = vld [vmem:[%s14750_s17 + $0x7d0] sm:$0xff] }
 0x9c6   : > { %8166 = vmatpush1.bf16.msra.mxu1 %v11540_v56  ;;  %8061 = vmatprep.subr.bf16.mxu0 %v11547_v0  ;;  %v6452_v56 = vld [vmem:[%s14750_s17 + $0x7f0] sm:$0xff]  ;;  %v6449_v0 = vld [vmem:[%s14750_s17 + $0x7d8] sm:$0xff] }
 0x9c7   : > { %8167 = vmatprep.subr.bf16.mxu1 %v11549_v49  ;;  %v6453_v49 = vld [vmem:[%s14750_s17 + $0x7f8] sm:$0xff]  ;;  %v11587_v45 = vcombine.high %v6448_v10, %v6452_v56 }
 0x9c8   : > { %v11589_v7 = vcombine.high %v6449_v0, %v6453_v49 }
 0x9c9   : > { %8062 = vmatpush1.bf16.msra.mxu0 %v11546_v58  ;;  %v11586_v58 = vcombine.low %v6448_v10, %v6452_v56  ;;  %v13203_v10 = vld [vmem:[%s14760_s30 + $0xec] ss:$16 sps:$4 sm:$0xff]   ;;  %v13198_v56 = vld [vmem:[%s14760_s30 + $0xe0] ss:$16 sps:$4 sm:$0xff]  }
 0x9ca   : > { %8168 = vmatpush1.bf16.msra.mxu1 %v11548_v63  ;;  %8063 = vmatprep.subr.bf16.mxu0 %v11555_v59  ;;  %v11588_v63 = vcombine.low %v6449_v0, %v6453_v49  ;;  %v13158_v59 = vld [vmem:[%s14760_s30 + $0x4] ss:$16 sps:$4 sm:$0xff]   ;;  %v13201_v0 = vld [vmem:[%s14760_s30 + $0xe8] ss:$16 sps:$4 sm:$0xff]  }
 0x9cb   : > { %8169 = vmatprep.subr.bf16.mxu1 %v11557_v50  ;;  %v13161_v50 = vld [vmem:[%s14760_s30 + $0xc] ss:$16 sps:$4 sm:$0xff]   ;;  %v13206_v49 = vld [vmem:[%s14760_s30 + $0x104] ss:$16 sps:$4 sm:$0xff]  }
 0x9cd   : > { %8064 = vmatpush1.bf16.msra.mxu0 %v11554_v48  ;;  %v13162_v48 = vld [vmem:[%s14760_s30 + $0x20] ss:$16 sps:$4 sm:$0xff]  }
 0x9ce   : > { %8170 = vmatpush1.bf16.msra.mxu1 %v11556_v43  ;;  %8065 = vmatprep.subr.bf16.mxu0 %v11563_v30  ;;  %v13165_v43 = vld [vmem:[%s14760_s30 + $0x28] ss:$16 sps:$4 sm:$0xff]   ;;  %v13170_v30 = vld [vmem:[%s14760_s30 + $0x44] ss:$16 sps:$4 sm:$0xff]  }
 0x9cf   : > { %8171 = vmatprep.subr.bf16.mxu1 %v11565_v36  ;;  %v13173_v36 = vld [vmem:[%s14760_s30 + $0x4c] ss:$16 sps:$4 sm:$0xff]  }
 0x9d1   : > { %8066 = vmatpush1.bf16.msra.mxu0 %v11562_v5  ;;  %v13182_v5 = vld [vmem:[%s14760_s30 + $0x84] ss:$16 sps:$4 sm:$0xff]  }
 0x9d2   : > { %8172 = vmatpush1.bf16.msra.mxu1 %v11564_v34  ;;  %8067 = vmatprep.subr.bf16.mxu0 %v11571_v16  ;;  %v13185_v34 = vld [vmem:[%s14760_s30 + $0x8c] ss:$16 sps:$4 sm:$0xff]   ;;  %v13180_v16 = vld [vmem:[%s14760_s30 + $0x80] ss:$16 sps:$4 sm:$0xff]  }
 0x9d3   : > { %8173 = vmatprep.subr.bf16.mxu1 %v11573_v62  ;;  %v13183_v62 = vld [vmem:[%s14760_s30 + $0x88] ss:$16 sps:$4 sm:$0xff]  }
 0x9d5   : > { %8068 = vmatpush1.bf16.msra.mxu0 %v11570_v17  ;;  %v13197_v17 = vld [vmem:[%s14760_s30 + $0xcc] ss:$16 sps:$4 sm:$0xff]  }
 0x9d6   : > { %8174 = vmatpush1.bf16.msra.mxu1 %v11572_v1  ;;  %8069 = vmatprep.subr.bf16.mxu0 %v11579_v52  ;;  %v13192_v1 = vld [vmem:[%s14760_s30 + $0xc0] ss:$16 sps:$4 sm:$0xff]   ;;  %v13195_v52 = vld [vmem:[%s14760_s30 + $0xc8] ss:$16 sps:$4 sm:$0xff]  }
 0x9d7   : > { %8175 = vmatprep.subr.bf16.mxu1 %v11581_v57  ;;  %v13200_v57 = vld [vmem:[%s14760_s30 + $0xe4] ss:$16 sps:$4 sm:$0xff]  }
 0x9d9   : > { %8070 = vmatpush1.bf16.msra.mxu0 %v11578_v61  ;;  %v13209_v61 = vld [vmem:[%s14760_s30 + $0x10c] ss:$16 sps:$4 sm:$0xff]  }
 0x9da   : > { %8176 = vmatpush1.bf16.msra.mxu1 %v11580_v22  ;;  %8071 = vmatprep.subr.bf16.mxu0 %v11587_v45  ;;  %v13204_v22 = vld [vmem:[%s14760_s30 + $0x100] ss:$16 sps:$4 sm:$0xff]   ;;  %v13207_v45 = vld [vmem:[%s14760_s30 + $0x108] ss:$16 sps:$4 sm:$0xff]  }
 0x9db   : > { %8177 = vmatprep.subr.bf16.mxu1 %v11589_v7  ;;  %v13212_v7 = vld [vmem:[%s14760_s30 + $0x124] ss:$16 sps:$4 sm:$0xff]  }
 0x9dd   : > { %8072 = vmatpush1.bf16.msra.mxu0 %v11586_v58  ;;  %v13215_v58 = vld [vmem:[%s14760_s30 + $0x12c] ss:$16 sps:$4 sm:$0xff]  }
 0x9de   : > { %8178 = vmatpush1.bf16.msra.mxu1 %v11588_v63  ;;  %9806 = vmatprep.subr.bf16.mxu0 %v13158_v59  ;;  %v13210_v63 = vld [vmem:[%s14760_s30 + $0x120] ss:$16 sps:$4 sm:$0xff]   ;;  %v13213_v59 = vld [vmem:[%s14760_s30 + $0x128] ss:$16 sps:$4 sm:$0xff]  }
 0x9df   : > { %10018 = vmatprep.subr.bf16.mxu1 %v13161_v50  ;;  %v13218_v50 = vld [vmem:[%s14760_s30 + $0x144] ss:$16 sps:$4 sm:$0xff]  }
 0x9e0   : > { %8074 = vmatmul.mubr.bf16.vlgmr.msra.gmra.mrb[72].mxu0 %v16174_v31 }
 0x9e1   : > { %8180 = vmatmul.mubr.bf16.vlgmr.msra.gmra.mrb[72].mxu1 %v16174_v31  ;;  %8083 = vmatprep.mubr.bf16.mxu0 %v16184_v40  ;;  %v13171_v31 = vld [vmem:[%s14760_s30 + $0x48] ss:$16 sps:$4 sm:$0xff]  }
 0x9e2   : > { %8189 = vmatprep.mubr.bf16.mxu1 %v16184_v40  ;;  %9807 = vmatpush1.bf16.msra.mxu0 %v13156_v13  ;;  %v13176_v40 = vld [vmem:[%s14760_s30 + $0x64] ss:$16 sps:$4 sm:$0xff]   ;;  %v13221_v13 = vld [vmem:[%s14760_s30 + $0x14c] ss:$16 sps:$4 sm:$0xff]  }
 0x9e3   : > { %10019 = vmatpush1.bf16.msra.mxu1 %v13159_v4  ;;  %9808 = vmatprep.subr.bf16.mxu0 %v13164_v3  ;;  %v13216_v4 = vld [vmem:[%s14760_s30 + $0x140] ss:$16 sps:$4 sm:$0xff]   ;;  %v13219_v3 = vld [vmem:[%s14760_s30 + $0x148] ss:$16 sps:$4 sm:$0xff]  }
 0x9e4   : > { %10020 = vmatprep.subr.bf16.mxu1 %v13167_v24  ;;  %v13224_v24 = vld [vmem:[%s14760_s30 + $0x164] ss:$16 sps:$4 sm:$0xff]  }
 0x9e6   : > { %9809 = vmatpush1.bf16.msra.mxu0 %v13162_v48  ;;  %v13227_v48 = vld [vmem:[%s14760_s30 + $0x16c] ss:$16 sps:$4 sm:$0xff]  }
 0x9e7   : > { %10021 = vmatpush1.bf16.msra.mxu1 %v13165_v43  ;;  %9810 = vmatprep.subr.bf16.mxu0 %v13170_v30  ;;  %v13222_v43 = vld [vmem:[%s14760_s30 + $0x160] ss:$16 sps:$4 sm:$0xff]   ;;  %v13225_v30 = vld [vmem:[%s14760_s30 + $0x168] ss:$16 sps:$4 sm:$0xff]  }
 0x9e8   : > { %8084 = vmatmul.mubr.bf16.gmra.mrb[76].mxu0 %v16194_v54  ;;  %10022 = vmatprep.subr.bf16.mxu1 %v13173_v36  ;;  %v13230_v36 = vld [vmem:[%s14760_s30 + $0x184] ss:$16 sps:$4 sm:$0xff]  }
 0x9e9   : > { %8190 = vmatmul.mubr.bf16.gmra.mrb[76].mxu1 %v16194_v54  ;;  %v13188_v54 = vld [vmem:[%s14760_s30 + $0xa4] ss:$16 sps:$4 sm:$0xff]  }
 0x9ea   : > { %9811 = vmatpush1.bf16.msra.mxu0 %v13168_v39  ;;  %v13233_v39 = vld [vmem:[%s14760_s30 + $0x18c] ss:$16 sps:$4 sm:$0xff]  }
 0x9eb   : > { %10023 = vmatpush1.bf16.msra.mxu1 %v13171_v31  ;;  %9812 = vmatprep.subr.bf16.mxu0 %v13176_v40  ;;  %v13228_v31 = vld [vmem:[%s14760_s30 + $0x180] ss:$16 sps:$4 sm:$0xff]   ;;  %v13231_v40 = vld [vmem:[%s14760_s30 + $0x188] ss:$16 sps:$4 sm:$0xff]  }
 0x9ec   : > { %10024 = vmatprep.subr.bf16.mxu1 %v13179_v38  ;;  %v13236_v38 = vld [vmem:[%s14760_s30 + $0x1a4] ss:$16 sps:$4 sm:$0xff]  }
 0x9ee   : > { %9813 = vmatpush1.bf16.msra.mxu0 %v13174_v11  ;;  %v13239_v11 = vld [vmem:[%s14760_s30 + $0x1ac] ss:$16 sps:$4 sm:$0xff]  }
 0x9ef   : > { %10025 = vmatpush1.bf16.msra.mxu1 %v13177_v60  ;;  %9814 = vmatprep.subr.bf16.mxu0 %v13182_v5  ;;  %v13234_v60 = vld [vmem:[%s14760_s30 + $0x1a0] ss:$16 sps:$4 sm:$0xff]   ;;  %v13237_v5 = vld [vmem:[%s14760_s30 + $0x1a8] ss:$16 sps:$4 sm:$0xff]  }
 0x9f0   : > { %10026 = vmatprep.subr.bf16.mxu1 %v13185_v34  ;;  %v13242_v34 = vld [vmem:[%s14760_s30 + $0x1c4] ss:$16 sps:$4 sm:$0xff]  }
 0x9f2   : > { %9815 = vmatpush1.bf16.msra.mxu0 %v13180_v16  ;;  %v13245_v16 = vld [vmem:[%s14760_s30 + $0x1cc] ss:$16 sps:$4 sm:$0xff]  }
 0x9f3   : > { %10027 = vmatpush1.bf16.msra.mxu1 %v13183_v62  ;;  %9816 = vmatprep.subr.bf16.mxu0 %v13188_v54  ;;  %v13240_v62 = vld [vmem:[%s14760_s30 + $0x1c0] ss:$16 sps:$4 sm:$0xff]   ;;  %v13243_v54 = vld [vmem:[%s14760_s30 + $0x1c8] ss:$16 sps:$4 sm:$0xff]  }
 0x9f4   : > { %10028 = vmatprep.subr.bf16.mxu1 %v13191_v14  ;;  %v13248_v14 = vld [vmem:[%s14760_s30 + $0x1e4] ss:$16 sps:$4 sm:$0xff]  }
 0x9f6   : > { %9817 = vmatpush1.bf16.msra.mxu0 %v13186_v42  ;;  %v13251_v42 = vld [vmem:[%s14760_s30 + $0x1ec] ss:$16 sps:$4 sm:$0xff]  }
 0x9f7   : > { %10029 = vmatpush1.bf16.msra.mxu1 %v13189_v51  ;;  %9818 = vmatprep.subr.bf16.mxu0 %v13194_v19  ;;  %v13246_v51 = vld [vmem:[%s14760_s30 + $0x1e0] ss:$16 sps:$4 sm:$0xff]   ;;  %v13249_v19 = vld [vmem:[%s14760_s30 + $0x1e8] ss:$16 sps:$4 sm:$0xff]  }
 0x9f8   : > { %10030 = vmatprep.subr.bf16.mxu1 %v13197_v17  ;;  %v13254_v17 = vld [vmem:[%s14760_s30 + $0x204] ss:$16 sps:$4 sm:$0xff]  }
 0x9fa   : > { %9819 = vmatpush1.bf16.msra.mxu0 %v13192_v1  ;;  %v13257_v1 = vld [vmem:[%s14760_s30 + $0x20c] ss:$16 sps:$4 sm:$0xff]  }
 0x9fb   : > { %10031 = vmatpush1.bf16.msra.mxu1 %v13195_v52  ;;  %9820 = vmatprep.subr.bf16.mxu0 %v13200_v57  ;;  %v16393_v52 = vld [vmem:[%s14757_s1] sm:$0xff] }
 0x9fc   : > { %10032 = vmatprep.subr.bf16.mxu1 %v13203_v10  ;;  %v6459_v57 = vrot.slane %v16393_v52, %v15172_v26  ;;  %v6467_v10 = vrot.slane %v16393_v52, %v15179_v47 }
 0x9fe   : > { %9821 = vmatpush1.bf16.msra.mxu0 %v13198_v56  ;;  %v6463_v56 = vrot.slane %v16393_v52, %v15175_v27 }
 0x9ff   : > { %10033 = vmatpush1.bf16.msra.mxu1 %v13201_v0  ;;  %9822 = vmatprep.subr.bf16.mxu0 %v13206_v49  ;;  %v6471_v0 = vrot.slane %v16393_v52, %v15184_v55 }
 0xa00   : > { %10034 = vmatprep.subr.bf16.mxu1 %v13209_v61 }
 0xa02   : > { %9823 = vmatpush1.bf16.msra.mxu0 %v13204_v22 }
 0xa03   : > { %10035 = vmatpush1.bf16.msra.mxu1 %v13207_v45  ;;  %9824 = vmatprep.subr.bf16.mxu0 %v13212_v7 }
 0xa04   : > { %10036 = vmatprep.subr.bf16.mxu1 %v13215_v58 }
 0xa06   : > { %9825 = vmatpush1.bf16.msra.mxu0 %v13210_v63 }
 0xa07   : > { %10037 = vmatpush1.bf16.msra.mxu1 %v13213_v59  ;;  %9826 = vmatprep.subr.bf16.mxu0 %v13218_v50 }
 0xa08   : > { %10038 = vmatprep.subr.bf16.mxu1 %v13221_v13 }
 0xa0a   : > { %9827 = vmatpush1.bf16.msra.mxu0 %v13216_v4 }
 0xa0b   : > { %10039 = vmatpush1.bf16.msra.mxu1 %v13219_v3  ;;  %9828 = vmatprep.subr.bf16.mxu0 %v13224_v24 }
 0xa0c   : > { %10040 = vmatprep.subr.bf16.mxu1 %v13227_v48 }
 0xa0e   : > { %9829 = vmatpush1.bf16.msra.mxu0 %v13222_v43 }
 0xa0f   : > { %10041 = vmatpush1.bf16.msra.mxu1 %v13225_v30  ;;  %9830 = vmatprep.subr.bf16.mxu0 %v13230_v36 }
 0xa10   : > { %10042 = vmatprep.subr.bf16.mxu1 %v13233_v39 }
 0xa12   : > { %9831 = vmatpush1.bf16.msra.mxu0 %v13228_v31 }
 0xa13   : > { %10043 = vmatpush1.bf16.msra.mxu1 %v13231_v40  ;;  %9832 = vmatprep.subr.bf16.mxu0 %v13236_v38 }
 0xa14   : > { %10044 = vmatprep.subr.bf16.mxu1 %v13239_v11 }
 0xa16   : > { %9833 = vmatpush1.bf16.msra.mxu0 %v13234_v60 }
 0xa17   : > { %10045 = vmatpush1.bf16.msra.mxu1 %v13237_v5  ;;  %9834 = vmatprep.subr.bf16.mxu0 %v13242_v34 }
 0xa18   : > { %10046 = vmatprep.subr.bf16.mxu1 %v13245_v16 }
 0xa1a   : > { %9835 = vmatpush1.bf16.msra.mxu0 %v13240_v62 }
 0xa1b   : > { %10047 = vmatpush1.bf16.msra.mxu1 %v13243_v54  ;;  %9836 = vmatprep.subr.bf16.mxu0 %v13248_v14 }
 0xa1c   : > { %10048 = vmatprep.subr.bf16.mxu1 %v13251_v42 }
 0xa1e   : > { %9837 = vmatpush1.bf16.msra.mxu0 %v13246_v51  ;;  %v13252_v51 = vld [vmem:[%s14760_s30 + $0x200] ss:$16 sps:$4 sm:$0xff]  }
 0xa1f   : > { %10049 = vmatpush1.bf16.msra.mxu1 %v13249_v19  ;;  %9859 = vmatprep.subr.bf16.mxu0 %v13254_v17  ;;  %v13255_v19 = vld [vmem:[%s14760_s30 + $0x208] ss:$16 sps:$4 sm:$0xff]  }
 0xa20   : > { %10071 = vmatprep.subr.bf16.mxu1 %v13257_v1 }
 0xa33   : > { %v7863_v49 = vpop.f32.mrb[64].mxu0  ;;  %v7969_v61 = vpop.f32.mrb[64].mxu1 }
 0xa34   : > { %v12052_v22 = vadd.f32 %v7863_v49, %v6459_v57  ;;  %v12060_v45 = vadd.f32 %v7969_v61, %v6467_v10  ;;  %v7865_v7 = vpop.f32.mrb[65].mxu0  ;;  %v7971_v58 = vpop.f32.mrb[65].mxu1 }
 0xa35   : > { %v12053_v63 = vadd.f32 %v7865_v7, %v6463_v56  ;;  %v12061_v59 = vadd.f32 %v7971_v58, %v6471_v0  ;;  %v7867_v50 = vpop.f32.mrb[66].mxu0  ;;  %v7973_v13 = vpop.f32.mrb[66].mxu1 }
 0xa36   : > { %v12054_v4 = vadd.f32 %v7867_v50, %v6459_v57  ;;  %v12062_v3 = vadd.f32 %v7973_v13, %v6467_v10  ;;  %v7869_v24 = vpop.f32.mrb[67].mxu0  ;;  %v7975_v48 = vpop.f32.mrb[67].mxu1  ;;  %v8200_v36 = vmax.f32 %v12052_v22, 0.0  ;;  %v8202_v39 = vmax.f32 %v12060_v45, 0.0  ;;  %v13260_v22 = vld [vmem:[%s14760_s30 + $0x224] ss:$16 sps:$4 sm:$0xff]  }
 0xa37   : > { %v12055_v43 = vadd.f32 %v7869_v24, %v6463_v56  ;;  %v12063_v30 = vadd.f32 %v7975_v48, %v6471_v0  ;;  %v8201_v38 = vmax.f32 %v12053_v63, 0.0  ;;  %v8203_v11 = vmax.f32 %v12061_v59, 0.0  ;;  %v13263_v45 = vld [vmem:[%s14760_s30 + $0x22c] ss:$16 sps:$4 sm:$0xff]  }
 0xa38   : > { %v8208_v31 = vmax.f32 %v12054_v4, 0.0  ;;  %v8210_v40 = vmax.f32 %v12062_v3, 0.0 }
 0xa39   : > { %v8209_v60 = vmax.f32 %v12055_v43, 0.0  ;;  %v8211_v5 = vmax.f32 %v12063_v30, 0.0  ;;  %v13258_v43 = vld [vmem:[%s14760_s30 + $0x220] ss:$16 sps:$4 sm:$0xff]   ;;  %v13261_v30 = vld [vmem:[%s14760_s30 + $0x228] ss:$16 sps:$4 sm:$0xff]  }
 0xa3a   : > { %v8232_v34 = vpack.c.bf16 %v8208_v31, %v8200_v36  ;;  %v16403_v16 = vpack.c.bf16 %v8210_v40, %v8202_v39  ;;  %v13266_v36 = vld [vmem:[%s14760_s30 + $0x244] ss:$16 sps:$4 sm:$0xff]  }
 0xa3b   : > { %v8233_v62 = vpack.c.bf16 %v8209_v60, %v8201_v38  ;;  %v8235_v54 = vpack.c.bf16 %v8211_v5, %v8203_v11  ;;  %v7873_v14 = vpop.f32.mrb[68].mxu0  ;;  %v7979_v42 = vpop.f32.mrb[68].mxu1 }
 0xa3c   : > { %v12056_v17 = vadd.f32 %v7873_v14, %v6459_v57  ;;  %v12064_v1 = vadd.f32 %v7979_v42, %v6467_v10  ;;  %v7875_v49 = vpop.f32.mrb[69].mxu0  ;;  %v7981_v61 = vpop.f32.mrb[69].mxu1  ;;  %v13264_v14 = vld [vmem:[%s14760_s30 + $0x240] ss:$16 sps:$4 sm:$0xff]   ;;  %v13267_v42 = vld [vmem:[%s14760_s30 + $0x248] ss:$16 sps:$4 sm:$0xff]  }
 0xa3d   : > { %v12057_v7 = vadd.f32 %v7875_v49, %v6463_v56  ;;  %v12065_v58 = vadd.f32 %v7981_v61, %v6471_v0  ;;  %v7877_v63 = vpop.f32.mrb[70].mxu0  ;;  %v7983_v59 = vpop.f32.mrb[70].mxu1  ;;  %9838 = vmatprep.mubr.bf16.mxu0 %v8233_v62  ;;  %10050 = vmatprep.mubr.bf16.mxu1 %v8233_v62  ;;  %v13278_v49 = vld [vmem:[%s14760_s30 + $0x284] ss:$16 sps:$4 sm:$0xff]   ;;  %v13281_v61 = vld [vmem:[%s14760_s30 + $0x28c] ss:$16 sps:$4 sm:$0xff]  }
 0xa3e   : > { %v12058_v50 = vadd.f32 %v7877_v63, %v6459_v57  ;;  %v12066_v13 = vadd.f32 %v7983_v59, %v6467_v10  ;;  %v7879_v4 = vpop.f32.mrb[71].mxu0  ;;  %v7985_v3 = vpop.f32.mrb[71].mxu1  ;;  %9839 = vmatmul.mubr.bf16.vlgmr.msra.gmra.mrb[80].mxu0 %v8232_v34  ;;  %10051 = vmatmul.mubr.bf16.vlgmr.msra.gmra.mrb[80].mxu1 %v8232_v34  ;;  %v8216_v39 = vmax.f32 %v12056_v17, 0.0  ;;  %v8218_v31 = vmax.f32 %v12064_v1, 0.0  ;;  %v13269_v57 = vld [vmem:[%s14760_s30 + $0x24c] ss:$16 sps:$4 sm:$0xff]  }
 0xa3f   : > { %v12059_v24 = vadd.f32 %v7879_v4, %v6463_v56  ;;  %v12067_v48 = vadd.f32 %v7985_v3, %v6471_v0  ;;  %9860 = vmatpush1.bf16.msra.mxu0 %v13252_v51  ;;  %10072 = vmatpush1.bf16.msra.mxu1 %v13255_v19  ;;  %v8217_v10 = vmax.f32 %v12057_v7, 0.0  ;;  %v8219_v11 = vmax.f32 %v12065_v58, 0.0  ;;  %v13272_v51 = vld [vmem:[%s14760_s30 + $0x264] ss:$16 sps:$4 sm:$0xff]   ;;  %v13275_v19 = vld [vmem:[%s14760_s30 + $0x26c] ss:$16 sps:$4 sm:$0xff]  }
 0xa40   : > { %v8224_v40 = vmax.f32 %v12058_v50, 0.0  ;;  %v8226_v38 = vmax.f32 %v12066_v13, 0.0  ;;  %9861 = vmatprep.subr.bf16.mxu0 %v13260_v22  ;;  %10073 = vmatprep.subr.bf16.mxu1 %v13263_v45  ;;  %v13270_v17 = vld [vmem:[%s14760_s30 + $0x260] ss:$16 sps:$4 sm:$0xff]   ;;  %v13273_v1 = vld [vmem:[%s14760_s30 + $0x268] ss:$16 sps:$4 sm:$0xff]  }
 0xa41   : > { %v8225_v56 = vmax.f32 %v12059_v24, 0.0  ;;  %v8227_v0 = vmax.f32 %v12067_v48, 0.0  ;;  %v13276_v22 = vld [vmem:[%s14760_s30 + $0x280] ss:$16 sps:$4 sm:$0xff]   ;;  %v13279_v45 = vld [vmem:[%s14760_s30 + $0x288] ss:$16 sps:$4 sm:$0xff]  }
 0xa42   : > { %v8240_v60 = vpack.c.bf16 %v8224_v40, %v8216_v39  ;;  %v16413_v5 = vpack.c.bf16 %v8226_v38, %v8218_v31  ;;  %v13284_v7 = vld [vmem:[%s14760_s30 + $0x2a4] ss:$16 sps:$4 sm:$0xff]   ;;  %v13287_v58 = vld [vmem:[%s14760_s30 + $0x2ac] ss:$16 sps:$4 sm:$0xff]   ;;  %v13285_v63 = vld [vmem:[%s14760_s30 + $0x2a8] ss:$16 sps:$4 sm:$0xff]  }
 0xa43   : > { %v8241_v34 = vpack.c.bf16 %v8225_v56, %v8217_v10  ;;  %v16415_v62 = vpack.c.bf16 %v8227_v0, %v8219_v11  ;;  %9862 = vmatpush1.bf16.msra.mxu0 %v13258_v43  ;;  %10074 = vmatpush1.bf16.msra.mxu1 %v13261_v30  ;;  %v13290_v59 = vld [vmem:[%s14760_s30 + $0x2c4] ss:$16 sps:$4 sm:$0xff]   ;;  %v13293_v50 = vld [vmem:[%s14760_s30 + $0x2cc] ss:$16 sps:$4 sm:$0xff]   ;;  %v13288_v13 = vld [vmem:[%s14760_s30 + $0x2c0] ss:$16 sps:$4 sm:$0xff]  }
 0xa44   : > { %9863 = vmatprep.subr.bf16.mxu0 %v13266_v36  ;;  %10075 = vmatprep.subr.bf16.mxu1 %v13269_v57  ;;  %v13291_v4 = vld [vmem:[%s14760_s30 + $0x2c8] ss:$16 sps:$4 sm:$0xff]   ;;  %v13296_v3 = vld [vmem:[%s14760_s30 + $0x2e4] ss:$16 sps:$4 sm:$0xff]   ;;  %v13299_v24 = vld [vmem:[%s14760_s30 + $0x2ec] ss:$16 sps:$4 sm:$0xff]  }
 0xa45   : > { %9848 = vmatprep.mubr.bf16.mxu0 %v8241_v34  ;;  %10060 = vmatprep.mubr.bf16.mxu1 %v8241_v34  ;;  %v13294_v48 = vld [vmem:[%s14760_s30 + $0x2e0] ss:$16 sps:$4 sm:$0xff]   ;;  %v13297_v43 = vld [vmem:[%s14760_s30 + $0x2e8] ss:$16 sps:$4 sm:$0xff]   ;;  %v13302_v30 = vld [vmem:[%s14760_s30 + $0x304] ss:$16 sps:$4 sm:$0xff]  }
 0xa46   : > { %9849 = vmatmul.mubr.bf16.gmra.mrb[84].mxu0 %v8240_v60  ;;  %10061 = vmatmul.mubr.bf16.gmra.mrb[84].mxu1 %v8240_v60  ;;  %v13305_v36 = vld [vmem:[%s14760_s30 + $0x30c] ss:$16 sps:$4 sm:$0xff]   ;;  %v13300_v39 = vld [vmem:[%s14760_s30 + $0x300] ss:$16 sps:$4 sm:$0xff]   ;;  %v13303_v31 = vld [vmem:[%s14760_s30 + $0x308] ss:$16 sps:$4 sm:$0xff]  }
 0xa47   : > { %9864 = vmatpush1.bf16.msra.mxu0 %v13264_v14  ;;  %10076 = vmatpush1.bf16.msra.mxu1 %v13267_v42  ;;  %v13308_v40 = vld [vmem:[%s14760_s30 + $0x324] ss:$16 sps:$4 sm:$0xff]   ;;  %v13311_v38 = vld [vmem:[%s14760_s30 + $0x32c] ss:$16 sps:$4 sm:$0xff]   ;;  %v13306_v57 = vld [vmem:[%s14760_s30 + $0x320] ss:$16 sps:$4 sm:$0xff]  }
 0xa48   : > { %9891 = vmatprep.mubr.bf16.mxu0 %v8235_v54  ;;  %10103 = vmatprep.mubr.bf16.mxu1 %v8235_v54  ;;  %v13282_v54 = vld [vmem:[%s14760_s30 + $0x2a0] ss:$16 sps:$4 sm:$0xff]   ;;  %v13309_v10 = vld [vmem:[%s14760_s30 + $0x328] ss:$16 sps:$4 sm:$0xff]   ;;  %v13314_v11 = vld [vmem:[%s14760_s30 + $0x344] ss:$16 sps:$4 sm:$0xff]  }
 0xa49   : > { %9865 = vmatprep.subr.bf16.mxu0 %v13272_v51  ;;  %10077 = vmatprep.subr.bf16.mxu1 %v13275_v19  ;;  %v13317_v56 = vld [vmem:[%s14760_s30 + $0x34c] ss:$16 sps:$4 sm:$0xff]   ;;  %v13312_v0 = vld [vmem:[%s14760_s30 + $0x340] ss:$16 sps:$4 sm:$0xff]   ;;  %v13315_v60 = vld [vmem:[%s14760_s30 + $0x348] ss:$16 sps:$4 sm:$0xff]  }
 0xa4a   : > { %v13320_v34 = vld [vmem:[%s14760_s30 + $0x364] ss:$16 sps:$4 sm:$0xff]   ;;  %v13323_v14 = vld [vmem:[%s14760_s30 + $0x36c] ss:$16 sps:$4 sm:$0xff]   ;;  %v13318_v42 = vld [vmem:[%s14760_s30 + $0x360] ss:$16 sps:$4 sm:$0xff]  }
 0xa4b   : > { %9866 = vmatpush1.bf16.msra.mxu0 %v13270_v17  ;;  %10078 = vmatpush1.bf16.msra.mxu1 %v13273_v1  ;;  %v13321_v51 = vld [vmem:[%s14760_s30 + $0x368] ss:$16 sps:$4 sm:$0xff]   ;;  %v13326_v19 = vld [vmem:[%s14760_s30 + $0x384] ss:$16 sps:$4 sm:$0xff]   ;;  %v13329_v17 = vld [vmem:[%s14760_s30 + $0x38c] ss:$16 sps:$4 sm:$0xff]  }
 0xa4c   : > { %9867 = vmatprep.subr.bf16.mxu0 %v13278_v49  ;;  %10079 = vmatprep.subr.bf16.mxu1 %v13281_v61  ;;  %v13324_v1 = vld [vmem:[%s14760_s30 + $0x380] ss:$16 sps:$4 sm:$0xff]   ;;  %v13327_v49 = vld [vmem:[%s14760_s30 + $0x388] ss:$16 sps:$4 sm:$0xff]   ;;  %v13332_v61 = vld [vmem:[%s14760_s30 + $0x3a4] ss:$16 sps:$4 sm:$0xff]  }
 0xa4f   : > { %9868 = vmatpush1.bf16.msra.mxu0 %v13276_v22  ;;  %10080 = vmatpush1.bf16.msra.mxu1 %v13279_v45  ;;  %v13335_v22 = vld [vmem:[%s14760_s30 + $0x3ac] ss:$16 sps:$4 sm:$0xff]   ;;  %v13330_v45 = vld [vmem:[%s14760_s30 + $0x3a0] ss:$16 sps:$4 sm:$0xff]  }
 0xa50   : > { %9869 = vmatprep.subr.bf16.mxu0 %v13284_v7  ;;  %10081 = vmatprep.subr.bf16.mxu1 %v13287_v58  ;;  %v13333_v7 = vld [vmem:[%s14760_s30 + $0x3a8] ss:$16 sps:$4 sm:$0xff]   ;;  %v13338_v58 = vld [vmem:[%s14760_s30 + $0x3c4] ss:$16 sps:$4 sm:$0xff]  }
 0xa53   : > { %9870 = vmatpush1.bf16.msra.mxu0 %v13282_v54  ;;  %10082 = vmatpush1.bf16.msra.mxu1 %v13285_v63  ;;  %v13341_v54 = vld [vmem:[%s14760_s30 + $0x3cc] ss:$16 sps:$4 sm:$0xff]   ;;  %v13336_v63 = vld [vmem:[%s14760_s30 + $0x3c0] ss:$16 sps:$4 sm:$0xff]  }
 0xa54   : > { %9871 = vmatprep.subr.bf16.mxu0 %v13290_v59  ;;  %10083 = vmatprep.subr.bf16.mxu1 %v13293_v50  ;;  %v13339_v59 = vld [vmem:[%s14760_s30 + $0x3c8] ss:$16 sps:$4 sm:$0xff]   ;;  %v13344_v50 = vld [vmem:[%s14760_s30 + $0x3e4] ss:$16 sps:$4 sm:$0xff]  }
 0xa57   : > { %9872 = vmatpush1.bf16.msra.mxu0 %v13288_v13  ;;  %10084 = vmatpush1.bf16.msra.mxu1 %v13291_v4  ;;  %v13347_v13 = vld [vmem:[%s14760_s30 + $0x3ec] ss:$16 sps:$4 sm:$0xff]   ;;  %v13342_v4 = vld [vmem:[%s14760_s30 + $0x3e0] ss:$16 sps:$4 sm:$0xff]  }
 0xa58   : > { %9873 = vmatprep.subr.bf16.mxu0 %v13296_v3  ;;  %10085 = vmatprep.subr.bf16.mxu1 %v13299_v24  ;;  %v13345_v3 = vld [vmem:[%s14760_s30 + $0x3e8] ss:$16 sps:$4 sm:$0xff]   ;;  %v13350_v24 = vld [vmem:[%s14760_s30 + $0x404] ss:$16 sps:$4 sm:$0xff]  }
 0xa5b   : > { %9874 = vmatpush1.bf16.msra.mxu0 %v13294_v48  ;;  %10086 = vmatpush1.bf16.msra.mxu1 %v13297_v43  ;;  %v13353_v48 = vld [vmem:[%s14760_s30 + $0x40c] ss:$16 sps:$4 sm:$0xff]   ;;  %v13348_v43 = vld [vmem:[%s14760_s30 + $0x400] ss:$16 sps:$4 sm:$0xff]  }
 0xa5c   : > { %9875 = vmatprep.subr.bf16.mxu0 %v13302_v30  ;;  %10087 = vmatprep.subr.bf16.mxu1 %v13305_v36  ;;  %v13351_v30 = vld [vmem:[%s14760_s30 + $0x408] ss:$16 sps:$4 sm:$0xff]   ;;  %v13356_v36 = vld [vmem:[%s14760_s30 + $0x424] ss:$16 sps:$4 sm:$0xff]  }
 0xa5f   : > { %9876 = vmatpush1.bf16.msra.mxu0 %v13300_v39  ;;  %10088 = vmatpush1.bf16.msra.mxu1 %v13303_v31  ;;  %v13359_v39 = vld [vmem:[%s14760_s30 + $0x42c] ss:$16 sps:$4 sm:$0xff]   ;;  %v13354_v31 = vld [vmem:[%s14760_s30 + $0x420] ss:$16 sps:$4 sm:$0xff]  }
 0xa60   : > { %9877 = vmatprep.subr.bf16.mxu0 %v13308_v40  ;;  %10089 = vmatprep.subr.bf16.mxu1 %v13311_v38  ;;  %v13357_v40 = vld [vmem:[%s14760_s30 + $0x428] ss:$16 sps:$4 sm:$0xff]   ;;  %v13362_v38 = vld [vmem:[%s14760_s30 + $0x444] ss:$16 sps:$4 sm:$0xff]  }
 0xa63   : > { %9878 = vmatpush1.bf16.msra.mxu0 %v13306_v57  ;;  %10090 = vmatpush1.bf16.msra.mxu1 %v13309_v10  ;;  %v13365_v57 = vld [vmem:[%s14760_s30 + $0x44c] ss:$16 sps:$4 sm:$0xff]   ;;  %v13360_v10 = vld [vmem:[%s14760_s30 + $0x440] ss:$16 sps:$4 sm:$0xff]  }
 0xa64   : > { %9879 = vmatprep.subr.bf16.mxu0 %v13314_v11  ;;  %10091 = vmatprep.subr.bf16.mxu1 %v13317_v56  ;;  %v13368_v11 = vld [vmem:[%s14760_s30 + $0x464] ss:$16 sps:$4 sm:$0xff]   ;;  %v13366_v56 = vld [vmem:[%s14760_s30 + $0x460] ss:$16 sps:$4 sm:$0xff]  }
 0xa67   : > { %9880 = vmatpush1.bf16.msra.mxu0 %v13312_v0  ;;  %10092 = vmatpush1.bf16.msra.mxu1 %v13315_v60  ;;  %v13369_v0 = vld [vmem:[%s14760_s30 + $0x468] ss:$16 sps:$4 sm:$0xff]   ;;  %v13374_v60 = vld [vmem:[%s14760_s30 + $0x484] ss:$16 sps:$4 sm:$0xff]  }
 0xa68   : > { %9881 = vmatprep.subr.bf16.mxu0 %v13320_v34  ;;  %10093 = vmatprep.subr.bf16.mxu1 %v13323_v14  ;;  %v13377_v34 = vld [vmem:[%s14760_s30 + $0x48c] ss:$16 sps:$4 sm:$0xff]   ;;  %v13372_v14 = vld [vmem:[%s14760_s30 + $0x480] ss:$16 sps:$4 sm:$0xff]  }
 0xa6b   : > { %9882 = vmatpush1.bf16.msra.mxu0 %v13318_v42  ;;  %10094 = vmatpush1.bf16.msra.mxu1 %v13321_v51  ;;  %v13375_v42 = vld [vmem:[%s14760_s30 + $0x488] ss:$16 sps:$4 sm:$0xff]   ;;  %v13383_v51 = vld [vmem:[%s14760_s30 + $0x4ac] ss:$16 sps:$4 sm:$0xff]  }
 0xa6c   : > { %9883 = vmatprep.subr.bf16.mxu0 %v13326_v19  ;;  %10095 = vmatprep.subr.bf16.mxu1 %v13329_v17  ;;  %v13378_v19 = vld [vmem:[%s14760_s30 + $0x4a0] ss:$16 sps:$4 sm:$0xff]   ;;  %v13381_v17 = vld [vmem:[%s14760_s30 + $0x4a8] ss:$16 sps:$4 sm:$0xff]  }
 0xa6f   : > { %9884 = vmatpush1.bf16.msra.mxu0 %v13324_v1  ;;  %10096 = vmatpush1.bf16.msra.mxu1 %v13327_v49  ;;  %v13386_v1 = vld [vmem:[%s14760_s30 + $0x4c4] ss:$16 sps:$4 sm:$0xff]   ;;  %v13389_v49 = vld [vmem:[%s14760_s30 + $0x4cc] ss:$16 sps:$4 sm:$0xff]  }
 0xa70   : > { %9885 = vmatprep.subr.bf16.mxu0 %v13332_v61  ;;  %10097 = vmatprep.subr.bf16.mxu1 %v13335_v22  ;;  %v13384_v61 = vld [vmem:[%s14760_s30 + $0x4c0] ss:$16 sps:$4 sm:$0xff]   ;;  %v13387_v22 = vld [vmem:[%s14760_s30 + $0x4c8] ss:$16 sps:$4 sm:$0xff]  }
 0xa73   : > { %9886 = vmatpush1.bf16.msra.mxu0 %v13330_v45  ;;  %10098 = vmatpush1.bf16.msra.mxu1 %v13333_v7  ;;  %v13392_v45 = vld [vmem:[%s14760_s30 + $0x4e4] ss:$16 sps:$4 sm:$0xff]   ;;  %v13395_v7 = vld [vmem:[%s14760_s30 + $0x4ec] ss:$16 sps:$4 sm:$0xff]  }
 0xa74   : > { %9887 = vmatprep.subr.bf16.mxu0 %v13338_v58  ;;  %10099 = vmatprep.subr.bf16.mxu1 %v13341_v54  ;;  %v13390_v58 = vld [vmem:[%s14760_s30 + $0x4e0] ss:$16 sps:$4 sm:$0xff]   ;;  %v13393_v54 = vld [vmem:[%s14760_s30 + $0x4e8] ss:$16 sps:$4 sm:$0xff]  }
 0xa77   : > { %9888 = vmatpush1.bf16.msra.mxu0 %v13336_v63  ;;  %10100 = vmatpush1.bf16.msra.mxu1 %v13339_v59  ;;  %v13398_v63 = vld [vmem:[%s14760_s30 + $0x504] ss:$16 sps:$4 sm:$0xff]   ;;  %v13401_v59 = vld [vmem:[%s14760_s30 + $0x50c] ss:$16 sps:$4 sm:$0xff]  }
 0xa78   : > { %9889 = vmatprep.subr.bf16.mxu0 %v13344_v50  ;;  %10101 = vmatprep.subr.bf16.mxu1 %v13347_v13  ;;  %v13396_v50 = vld [vmem:[%s14760_s30 + $0x500] ss:$16 sps:$4 sm:$0xff]   ;;  %v13399_v13 = vld [vmem:[%s14760_s30 + $0x508] ss:$16 sps:$4 sm:$0xff]  }
 0xa7b   : > { %9890 = vmatpush1.bf16.msra.mxu0 %v13342_v4  ;;  %10102 = vmatpush1.bf16.msra.mxu1 %v13345_v3  ;;  %v13404_v4 = vld [vmem:[%s14760_s30 + $0x524] ss:$16 sps:$4 sm:$0xff]   ;;  %v13407_v3 = vld [vmem:[%s14760_s30 + $0x52c] ss:$16 sps:$4 sm:$0xff]  }
 0xa7c   : > { %9912 = vmatprep.subr.bf16.mxu0 %v13350_v24  ;;  %10124 = vmatprep.subr.bf16.mxu1 %v13353_v48  ;;  %v13402_v24 = vld [vmem:[%s14760_s30 + $0x520] ss:$16 sps:$4 sm:$0xff]   ;;  %v13405_v48 = vld [vmem:[%s14760_s30 + $0x528] ss:$16 sps:$4 sm:$0xff]  }
 0xa7e   : > { %9892 = vmatmul.mubr.bf16.vlgmr.msra.gmra.mrb[80].mxu0 %v16403_v16  ;;  %10104 = vmatmul.mubr.bf16.vlgmr.msra.gmra.mrb[80].mxu1 %v16403_v16  ;;  %v13363_v16 = vld [vmem:[%s14760_s30 + $0x448] ss:$16 sps:$4 sm:$0xff]  }
 0xa7f   : > { %9901 = vmatprep.mubr.bf16.mxu0 %v16415_v62  ;;  %9913 = vmatpush1.bf16.msra.mxu0 %v13348_v43  ;;  %v13410_v43 = vld [vmem:[%s14760_s30 + $0x544] ss:$16 sps:$4 sm:$0xff]  }
 0xa80   : > { %10113 = vmatprep.mubr.bf16.mxu1 %v16415_v62  ;;  %10125 = vmatpush1.bf16.msra.mxu1 %v13351_v30  ;;  %v13371_v62 = vld [vmem:[%s14760_s30 + $0x46c] ss:$16 sps:$4 sm:$0xff]  }
 0xa81   : > { %9914 = vmatprep.subr.bf16.mxu0 %v13356_v36  ;;  %10126 = vmatprep.subr.bf16.mxu1 %v13359_v39  ;;  %v13413_v30 = vld [vmem:[%s14760_s30 + $0x54c] ss:$16 sps:$4 sm:$0xff]   ;;  %v13408_v36 = vld [vmem:[%s14760_s30 + $0x540] ss:$16 sps:$4 sm:$0xff]   ;;  %v13411_v39 = vld [vmem:[%s14760_s30 + $0x548] ss:$16 sps:$4 sm:$0xff]  }
 0xa83   : > { %9915 = vmatpush1.bf16.msra.mxu0 %v13354_v31  ;;  %v13416_v31 = vld [vmem:[%s14760_s30 + $0x564] ss:$16 sps:$4 sm:$0xff]  }
 0xa84   : > { %10127 = vmatpush1.bf16.msra.mxu1 %v13357_v40  ;;  %9916 = vmatprep.subr.bf16.mxu0 %v13362_v38  ;;  %v13419_v40 = vld [vmem:[%s14760_s30 + $0x56c] ss:$16 sps:$4 sm:$0xff]   ;;  %v13414_v38 = vld [vmem:[%s14760_s30 + $0x560] ss:$16 sps:$4 sm:$0xff]  }
 0xa85   : > { %10128 = vmatprep.subr.bf16.mxu1 %v13365_v57  ;;  %v13417_v57 = vld [vmem:[%s14760_s30 + $0x568] ss:$16 sps:$4 sm:$0xff]  }
 0xa86   : > { %9902 = vmatmul.mubr.bf16.gmra.mrb[84].mxu0 %v16413_v5  ;;  %10114 = vmatmul.mubr.bf16.gmra.mrb[84].mxu1 %v16413_v5  ;;  %v13380_v5 = vld [vmem:[%s14760_s30 + $0x4a4] ss:$16 sps:$4 sm:$0xff]  }
 0xa87   : > { %9917 = vmatpush1.bf16.msra.mxu0 %v13360_v10  ;;  %v13422_v10 = vld [vmem:[%s14760_s30 + $0x584] ss:$16 sps:$4 sm:$0xff]  }
 0xa88   : > { %10129 = vmatpush1.bf16.msra.mxu1 %v13363_v16  ;;  %9918 = vmatprep.subr.bf16.mxu0 %v13368_v11  ;;  %v13425_v16 = vld [vmem:[%s14760_s30 + $0x58c] ss:$16 sps:$4 sm:$0xff]   ;;  %v13420_v11 = vld [vmem:[%s14760_s30 + $0x580] ss:$16 sps:$4 sm:$0xff]  }
 0xa89   : > { %10130 = vmatprep.subr.bf16.mxu1 %v13371_v62  ;;  %v13423_v62 = vld [vmem:[%s14760_s30 + $0x588] ss:$16 sps:$4 sm:$0xff]  }
 0xa8b   : > { %9919 = vmatpush1.bf16.msra.mxu0 %v13366_v56  ;;  %v13428_v56 = vld [vmem:[%s14760_s30 + $0x5a4] ss:$16 sps:$4 sm:$0xff]  }
 0xa8c   : > { %10131 = vmatpush1.bf16.msra.mxu1 %v13369_v0  ;;  %9920 = vmatprep.subr.bf16.mxu0 %v13374_v60  ;;  %v13431_v0 = vld [vmem:[%s14760_s30 + $0x5ac] ss:$16 sps:$4 sm:$0xff]   ;;  %v13426_v60 = vld [vmem:[%s14760_s30 + $0x5a0] ss:$16 sps:$4 sm:$0xff]  }
 0xa8d   : > { %10132 = vmatprep.subr.bf16.mxu1 %v13377_v34  ;;  %v13429_v34 = vld [vmem:[%s14760_s30 + $0x5a8] ss:$16 sps:$4 sm:$0xff]  }
 0xa8f   : > { %9921 = vmatpush1.bf16.msra.mxu0 %v13372_v14  ;;  %v16536_v14 = vrot.slane %v16393_v52, %v1363_v46 }
 0xa90   : > { %10133 = vmatpush1.bf16.msra.mxu1 %v13375_v42  ;;  %9922 = vmatprep.subr.bf16.mxu0 %v13380_v5  ;;  %v13434_v42 = vld [vmem:[%s14760_s30 + $0x5c4] ss:$16 sps:$4 sm:$0xff]   ;;  %v16542_v5 = vrot.slane %v16393_v52, %v1371_v25 }
 0xa91   : > { %10134 = vmatprep.subr.bf16.mxu1 %v13383_v51  ;;  %v16547_v51 = vrot.slane %v16393_v52, %v1367_v23  ;;  %v13440_v23 = vld [vmem:[%s14760_s30 + $0x5e4] ss:$16 sps:$4 sm:$0xff]  }
 0xa93   : > { %9923 = vmatpush1.bf16.msra.mxu0 %v13378_v19  ;;  %v13437_v19 = vld [vmem:[%s14760_s30 + $0x5cc] ss:$16 sps:$4 sm:$0xff]  }
 0xa94   : > { %10135 = vmatpush1.bf16.msra.mxu1 %v13381_v17  ;;  %9924 = vmatprep.subr.bf16.mxu0 %v13386_v1  ;;  %v16553_v17 = vrot.slane %v16393_v52, %v1375_v37  ;;  %v13432_v1 = vld [vmem:[%s14760_s30 + $0x5c0] ss:$16 sps:$4 sm:$0xff]   ;;  %v13443_v52 = vld [vmem:[%s14760_s30 + $0x5ec] ss:$16 sps:$4 sm:$0xff]  }
 0xa95   : > { %10136 = vmatprep.subr.bf16.mxu1 %v13389_v49 }
 0xa97   : > { %9925 = vmatpush1.bf16.msra.mxu0 %v13384_v61 }
 0xa98   : > { %10137 = vmatpush1.bf16.msra.mxu1 %v13387_v22  ;;  %9926 = vmatprep.subr.bf16.mxu0 %v13392_v45  ;;  %v13435_v22 = vld [vmem:[%s14760_s30 + $0x5c8] ss:$16 sps:$4 sm:$0xff]  }
 0xa99   : > { %10138 = vmatprep.subr.bf16.mxu1 %v13395_v7 }
 0xa9b   : > { %9927 = vmatpush1.bf16.msra.mxu0 %v13390_v58 }
 0xa9c   : > { %10139 = vmatpush1.bf16.msra.mxu1 %v13393_v54  ;;  %9928 = vmatprep.subr.bf16.mxu0 %v13398_v63 }
 0xa9d   : > { %10140 = vmatprep.subr.bf16.mxu1 %v13401_v59 }
 0xa9f   : > { %9929 = vmatpush1.bf16.msra.mxu0 %v13396_v50 }
 0xaa0   : > { %10141 = vmatpush1.bf16.msra.mxu1 %v13399_v13  ;;  %9930 = vmatprep.subr.bf16.mxu0 %v13404_v4 }
 0xaa1   : > { %10142 = vmatprep.subr.bf16.mxu1 %v13407_v3  ;;  %v13438_v3 = vld [vmem:[%s14760_s30 + $0x5e0] ss:$16 sps:$4 sm:$0xff]  }
 0xaa3   : > { %9931 = vmatpush1.bf16.msra.mxu0 %v13402_v24 }
 0xaa4   : > { %10143 = vmatpush1.bf16.msra.mxu1 %v13405_v48  ;;  %9932 = vmatprep.subr.bf16.mxu0 %v13410_v43 }
 0xaa5   : > { %10144 = vmatprep.subr.bf16.mxu1 %v13413_v30  ;;  %v13441_v30 = vld [vmem:[%s14760_s30 + $0x5e8] ss:$16 sps:$4 sm:$0xff]  }
 0xaa7   : > { %9933 = vmatpush1.bf16.msra.mxu0 %v13408_v36  ;;  %v13446_v36 = vld [vmem:[%s14760_s30 + $0x604] ss:$16 sps:$4 sm:$0xff]  }
 0xaa8   : > { %10145 = vmatpush1.bf16.msra.mxu1 %v13411_v39  ;;  %9934 = vmatprep.subr.bf16.mxu0 %v13416_v31 }
 0xaa9   : > { %10146 = vmatprep.subr.bf16.mxu1 %v13419_v40 }
 0xaab   : > { %9935 = vmatpush1.bf16.msra.mxu0 %v13414_v38 }
 0xaac   : > { %10147 = vmatpush1.bf16.msra.mxu1 %v13417_v57  ;;  %9936 = vmatprep.subr.bf16.mxu0 %v13422_v10 }
 0xaad   : > { %10148 = vmatprep.subr.bf16.mxu1 %v13425_v16 }
 0xaaf   : > { %9937 = vmatpush1.bf16.msra.mxu0 %v13420_v11  ;;  %v13449_v11 = vld [vmem:[%s14760_s30 + $0x60c] ss:$16 sps:$4 sm:$0xff]  }
 0xab0   : > { %10149 = vmatpush1.bf16.msra.mxu1 %v13423_v62  ;;  %9938 = vmatprep.subr.bf16.mxu0 %v13428_v56 }
 0xab1   : > { %10150 = vmatprep.subr.bf16.mxu1 %v13431_v0 }
 0xab3   : > { %v8075_v46 = vpop.f32.mrb[72].mxu0  ;;  %9939 = vmatpush1.bf16.msra.mxu0 %v13426_v60  ;;  %v13444_v60 = vld [vmem:[%s14760_s30 + $0x600] ss:$16 sps:$4 sm:$0xff]  }
 0xab4   : > { %v12068_v49 = vadd.f32 %v8075_v46, %v16536_v14  ;;  %v8181_v61 = vpop.f32.mrb[72].mxu1  ;;  %10151 = vmatpush1.bf16.msra.mxu1 %v13429_v34  ;;  %v8077_v25 = vpop.f32.mrb[73].mxu0  ;;  %9940 = vmatprep.subr.bf16.mxu0 %v13434_v42 }
 0xab5   : > { %v12076_v45 = vadd.f32 %v8181_v61, %v16542_v5  ;;  %v12069_v21 = vadd.f32 %v8077_v25, %v16547_v51  ;;  %v8183_v7 = vpop.f32.mrb[73].mxu1  ;;  %v8079_v37 = vpop.f32.mrb[74].mxu0  ;;  %10152 = vmatprep.subr.bf16.mxu1 %v13437_v19 }
 0xab6   : > { %v12077_v58 = vadd.f32 %v8183_v7, %v16553_v17  ;;  %v12070_v54 = vadd.f32 %v8079_v37, %v16536_v14  ;;  %v8185_v63 = vpop.f32.mrb[74].mxu1  ;;  %v8081_v59 = vpop.f32.mrb[75].mxu0  ;;  %v8204_v24 = vmax.f32 %v12068_v49, 0.0  ;;  %v13452_v49 = vld [vmem:[%s14760_s30 + $0x624] ss:$16 sps:$4 sm:$0xff]  }
 0xab7   : > { %v12078_v50 = vadd.f32 %v8185_v63, %v16542_v5  ;;  %v12071_v13 = vadd.f32 %v8081_v59, %v16547_v51  ;;  %v8187_v4 = vpop.f32.mrb[75].mxu1  ;;  %9941 = vmatpush1.bf16.msra.mxu0 %v13432_v1  ;;  %v8206_v39 = vmax.f32 %v12076_v45, 0.0  ;;  %v8205_v31 = vmax.f32 %v12069_v21, 0.0  ;;  %v13447_v1 = vld [vmem:[%s14760_s30 + $0x608] ss:$16 sps:$4 sm:$0xff]  }
 0xab8   : > { %v8212_v48 = vmax.f32 %v12070_v54, 0.0  ;;  %v12079_v43 = vadd.f32 %v8187_v4, %v16553_v17  ;;  %10153 = vmatpush1.bf16.msra.mxu1 %v13435_v22  ;;  %9942 = vmatprep.subr.bf16.mxu0 %v13440_v23  ;;  %v8207_v57 = vmax.f32 %v12077_v58, 0.0  ;;  %v13455_v45 = vld [vmem:[%s14760_s30 + $0x62c] ss:$16 sps:$4 sm:$0xff]   ;;  %v13450_v59 = vld [vmem:[%s14760_s30 + $0x620] ss:$16 sps:$4 sm:$0xff]  }
 0xab9   : > { %v8214_v40 = vmax.f32 %v12078_v50, 0.0  ;;  %v8213_v38 = vmax.f32 %v12071_v13, 0.0  ;;  %10154 = vmatprep.subr.bf16.mxu1 %v13443_v52 }
 0xaba   : > { %v8236_v10 = vpack.c.bf16 %v8212_v48, %v8204_v24  ;;  %v8215_v16 = vmax.f32 %v12079_v43, 0.0 }
 0xabb   : > { %v16571_v62 = vpack.c.bf16 %v8214_v40, %v8206_v39  ;;  %v8237_v56 = vpack.c.bf16 %v8213_v38, %v8205_v31  ;;  %v8085_v0 = vpop.f32.mrb[76].mxu0  ;;  %9943 = vmatpush1.bf16.msra.mxu0 %v13438_v3  ;;  %v13458_v3 = vld [vmem:[%s14760_s30 + $0x644] ss:$16 sps:$4 sm:$0xff]   ;;  %v13461_v39 = vld [vmem:[%s14760_s30 + $0x64c] ss:$16 sps:$4 sm:$0xff]  }
 0xabc   : > { %v16574_v34 = vpack.c.bf16 %v8215_v16, %v8207_v57  ;;  %v12072_v42 = vadd.f32 %v8085_v0, %v16536_v14  ;;  %v8191_v19 = vpop.f32.mrb[76].mxu1  ;;  %10155 = vmatpush1.bf16.msra.mxu1 %v13441_v30  ;;  %v8087_v46 = vpop.f32.mrb[77].mxu0  ;;  %9965 = vmatprep.subr.bf16.mxu0 %v13446_v36  ;;  %v13456_v40 = vld [vmem:[%s14760_s30 + $0x640] ss:$16 sps:$4 sm:$0xff]   ;;  %v13459_v57 = vld [vmem:[%s14760_s30 + $0x648] ss:$16 sps:$4 sm:$0xff]  }
 0xabd   : > { %v12080_v61 = vadd.f32 %v8191_v19, %v16542_v5  ;;  %v12073_v25 = vadd.f32 %v8087_v46, %v16547_v51  ;;  %v8193_v22 = vpop.f32.mrb[77].mxu1  ;;  %v8089_v23 = vpop.f32.mrb[78].mxu0  ;;  %9944 = vmatprep.mubr.bf16.mxu0 %v8237_v56  ;;  %10156 = vmatprep.mubr.bf16.mxu1 %v8237_v56  ;;  %v13467_v16 = vld [vmem:[%s14760_s30 + $0x66c] ss:$16 sps:$4 sm:$0xff]   ;;  %v13465_v56 = vld [vmem:[%s14760_s30 + $0x668] ss:$16 sps:$4 sm:$0xff]  }
 0xabe   : > { %v12081_v21 = vadd.f32 %v8193_v22, %v16553_v17  ;;  %v12074_v7 = vadd.f32 %v8089_v23, %v16536_v14  ;;  %v8195_v37 = vpop.f32.mrb[78].mxu1  ;;  %v8091_v52 = vpop.f32.mrb[79].mxu0  ;;  %9945 = vmatmul.mubr.bf16.vlgmr.msra.gmra.mrb[80].mxu0 %v8236_v10  ;;  %10177 = vmatprep.subr.bf16.mxu1 %v13449_v11  ;;  %v8220_v50 = vmax.f32 %v12072_v42, 0.0  ;;  %v13453_v14 = vld [vmem:[%s14760_s30 + $0x628] ss:$16 sps:$4 sm:$0xff]  }
 0xabf   : > { %v12082_v58 = vadd.f32 %v8195_v37, %v16542_v5  ;;  %v12075_v54 = vadd.f32 %v8091_v52, %v16547_v51  ;;  %v8197_v63 = vpop.f32.mrb[79].mxu1  ;;  %10157 = vmatmul.mubr.bf16.vlgmr.msra.gmra.mrb[80].mxu1 %v8236_v10  ;;  %9966 = vmatpush1.bf16.msra.mxu0 %v13444_v60  ;;  %v8222_v24 = vmax.f32 %v12080_v61, 0.0  ;;  %v8221_v48 = vmax.f32 %v12073_v25, 0.0  ;;  %v13464_v10 = vld [vmem:[%s14760_s30 + $0x664] ss:$16 sps:$4 sm:$0xff]  }
 0xac0   : > { %v8228_v13 = vmax.f32 %v12074_v7, 0.0  ;;  %v12083_v4 = vadd.f32 %v8197_v63, %v16553_v17  ;;  %10178 = vmatpush1.bf16.msra.mxu1 %v13447_v1  ;;  %9967 = vmatprep.subr.bf16.mxu0 %v13452_v49  ;;  %v8223_v51 = vmax.f32 %v12081_v21, 0.0  ;;  %v13462_v11 = vld [vmem:[%s14760_s30 + $0x660] ss:$16 sps:$4 sm:$0xff]   ;;  %v13470_v0 = vld [vmem:[%s14760_s30 + $0x684] ss:$16 sps:$4 sm:$0xff]  }
 0xac1   : > { %v8230_v5 = vmax.f32 %v12082_v58, 0.0  ;;  %v8229_v43 = vmax.f32 %v12075_v54, 0.0  ;;  %10179 = vmatprep.subr.bf16.mxu1 %v13455_v45  ;;  %v13473_v60 = vld [vmem:[%s14760_s30 + $0x68c] ss:$16 sps:$4 sm:$0xff]   ;;  %v13468_v42 = vld [vmem:[%s14760_s30 + $0x680] ss:$16 sps:$4 sm:$0xff]  }
 0xac2   : > { %v8244_v30 = vpack.c.bf16 %v8228_v13, %v8220_v50  ;;  %v8231_v36 = vmax.f32 %v12083_v4, 0.0  ;;  %v13471_v19 = vld [vmem:[%s14760_s30 + $0x688] ss:$16 sps:$4 sm:$0xff]   ;;  %v13476_v46 = vld [vmem:[%s14760_s30 + $0x6a4] ss:$16 sps:$4 sm:$0xff]  }
 0xac3   : > { %v16591_v31 = vpack.c.bf16 %v8230_v5, %v8222_v24  ;;  %v8245_v17 = vpack.c.bf16 %v8229_v43, %v8221_v48  ;;  %9968 = vmatpush1.bf16.msra.mxu0 %v13450_v59  ;;  %v13479_v1 = vld [vmem:[%s14760_s30 + $0x6ac] ss:$16 sps:$4 sm:$0xff]   ;;  %v13477_v49 = vld [vmem:[%s14760_s30 + $0x6a8] ss:$16 sps:$4 sm:$0xff]   ;;  %v13482_v61 = vld [vmem:[%s14760_s30 + $0x6c4] ss:$16 sps:$4 sm:$0xff]  }
 0xac4   : > { %v16594_v38 = vpack.c.bf16 %v8231_v36, %v8223_v51  ;;  %10180 = vmatpush1.bf16.msra.mxu1 %v13453_v14  ;;  %9969 = vmatprep.subr.bf16.mxu0 %v13458_v3  ;;  %v13485_v25 = vld [vmem:[%s14760_s30 + $0x6cc] ss:$16 sps:$4 sm:$0xff]   ;;  %v13480_v22 = vld [vmem:[%s14760_s30 + $0x6c0] ss:$16 sps:$4 sm:$0xff]   ;;  %v13483_v23 = vld [vmem:[%s14760_s30 + $0x6c8] ss:$16 sps:$4 sm:$0xff]  }
 0xac5   : > { %9954 = vmatprep.mubr.bf16.mxu0 %v8245_v17  ;;  %10166 = vmatprep.mubr.bf16.mxu1 %v8245_v17  ;;  %v13488_v45 = vld [vmem:[%s14760_s30 + $0x6e4] ss:$16 sps:$4 sm:$0xff]   ;;  %v13491_v21 = vld [vmem:[%s14760_s30 + $0x6ec] ss:$16 sps:$4 sm:$0xff]   ;;  %v13486_v7 = vld [vmem:[%s14760_s30 + $0x6e0] ss:$16 sps:$4 sm:$0xff]  }
 0xac6   : > { %9955 = vmatmul.mubr.bf16.gmra.mrb[84].mxu0 %v8244_v30  ;;  %10181 = vmatprep.subr.bf16.mxu1 %v13461_v39  ;;  %v13489_v37 = vld [vmem:[%s14760_s30 + $0x6e8] ss:$16 sps:$4 sm:$0xff]   ;;  %v13494_v52 = vld [vmem:[%s14760_s30 + $0x704] ss:$16 sps:$4 sm:$0xff]   ;;  %v13497_v58 = vld [vmem:[%s14760_s30 + $0x70c] ss:$16 sps:$4 sm:$0xff]  }
 0xac7   : > { %10167 = vmatmul.mubr.bf16.gmra.mrb[84].mxu1 %v8244_v30  ;;  %9970 = vmatpush1.bf16.msra.mxu0 %v13456_v40  ;;  %v13492_v54 = vld [vmem:[%s14760_s30 + $0x700] ss:$16 sps:$4 sm:$0xff]   ;;  %v13495_v63 = vld [vmem:[%s14760_s30 + $0x708] ss:$16 sps:$4 sm:$0xff]   ;;  %v13500_v59 = vld [vmem:[%s14760_s30 + $0x724] ss:$16 sps:$4 sm:$0xff]  }
 0xac8   : > { %9997 = vmatprep.mubr.bf16.mxu0 %v16574_v34  ;;  %10182 = vmatpush1.bf16.msra.mxu1 %v13459_v57  ;;  %v13503_v50 = vld [vmem:[%s14760_s30 + $0x72c] ss:$16 sps:$4 sm:$0xff]   ;;  %v13498_v13 = vld [vmem:[%s14760_s30 + $0x720] ss:$16 sps:$4 sm:$0xff]   ;;  %v13501_v4 = vld [vmem:[%s14760_s30 + $0x728] ss:$16 sps:$4 sm:$0xff]  }
 0xac9   : > { %10209 = vmatprep.mubr.bf16.mxu1 %v16574_v34  ;;  %9971 = vmatprep.subr.bf16.mxu0 %v13464_v10  ;;  %v13474_v34 = vld [vmem:[%s14760_s30 + $0x6a0] ss:$16 sps:$4 sm:$0xff]   ;;  %v13506_v14 = vld [vmem:[%s14760_s30 + $0x744] ss:$16 sps:$4 sm:$0xff]   ;;  %v13509_v3 = vld [vmem:[%s14760_s30 + $0x74c] ss:$16 sps:$4 sm:$0xff]  }
 0xaca   : > { %10183 = vmatprep.subr.bf16.mxu1 %v13467_v16  ;;  %v13504_v24 = vld [vmem:[%s14760_s30 + $0x740] ss:$16 sps:$4 sm:$0xff]   ;;  %v13507_v48 = vld [vmem:[%s14760_s30 + $0x748] ss:$16 sps:$4 sm:$0xff]   ;;  %v13512_v5 = vld [vmem:[%s14760_s30 + $0x764] ss:$16 sps:$4 sm:$0xff]  }
 0xacb   : > { %9972 = vmatpush1.bf16.msra.mxu0 %v13462_v11  ;;  %v13515_v43 = vld [vmem:[%s14760_s30 + $0x76c] ss:$16 sps:$4 sm:$0xff]   ;;  %v13510_v51 = vld [vmem:[%s14760_s30 + $0x760] ss:$16 sps:$4 sm:$0xff]   ;;  %v13513_v30 = vld [vmem:[%s14760_s30 + $0x768] ss:$16 sps:$4 sm:$0xff]  }
 0xacc   : > { %10184 = vmatpush1.bf16.msra.mxu1 %v13465_v56  ;;  %9973 = vmatprep.subr.bf16.mxu0 %v13470_v0  ;;  %v13518_v36 = vld [vmem:[%s14760_s30 + $0x784] ss:$16 sps:$4 sm:$0xff]   ;;  %v13521_v39 = vld [vmem:[%s14760_s30 + $0x78c] ss:$16 sps:$4 sm:$0xff]   ;;  %v13516_v17 = vld [vmem:[%s14760_s30 + $0x780] ss:$16 sps:$4 sm:$0xff]  }
 0xacd   : > { %10185 = vmatprep.subr.bf16.mxu1 %v13473_v60  ;;  %v13519_v40 = vld [vmem:[%s14760_s30 + $0x788] ss:$16 sps:$4 sm:$0xff]   ;;  %v13524_v57 = vld [vmem:[%s14760_s30 + $0x7a4] ss:$16 sps:$4 sm:$0xff]   ;;  %v13527_v10 = vld [vmem:[%s14760_s30 + $0x7ac] ss:$16 sps:$4 sm:$0xff]  }
 0xace   : > { %v13522_v16 = vld [vmem:[%s14760_s30 + $0x7a0] ss:$16 sps:$4 sm:$0xff]   ;;  %v13525_v11 = vld [vmem:[%s14760_s30 + $0x7a8] ss:$16 sps:$4 sm:$0xff]   ;;  %v13530_v56 = vld [vmem:[%s14760_s30 + $0x7c4] ss:$16 sps:$4 sm:$0xff]  }
 0xacf   : > { %9974 = vmatpush1.bf16.msra.mxu0 %v13468_v42  ;;  %v13533_v0 = vld [vmem:[%s14760_s30 + $0x7cc] ss:$16 sps:$4 sm:$0xff]   ;;  %v13528_v60 = vld [vmem:[%s14760_s30 + $0x7c0] ss:$16 sps:$4 sm:$0xff]   ;;  %v13531_v42 = vld [vmem:[%s14760_s30 + $0x7c8] ss:$16 sps:$4 sm:$0xff]  }
 0xad0   : > { %10186 = vmatpush1.bf16.msra.mxu1 %v13471_v19  ;;  %9975 = vmatprep.subr.bf16.mxu0 %v13476_v46  ;;  %v13536_v19 = vld [vmem:[%s14760_s30 + $0x7e4] ss:$16 sps:$4 sm:$0xff]   ;;  %v13539_v46 = vld [vmem:[%s14760_s30 + $0x7ec] ss:$16 sps:$4 sm:$0xff]  }
 0xad1   : > { %10187 = vmatprep.subr.bf16.mxu1 %v13479_v1  ;;  %v13534_v1 = vld [vmem:[%s14760_s30 + $0x7e0] ss:$16 sps:$4 sm:$0xff]  }
 0xad3   : > { %9976 = vmatpush1.bf16.msra.mxu0 %v13474_v34  ;;  %v13537_v34 = vld [vmem:[%s14760_s30 + $0x7e8] ss:$16 sps:$4 sm:$0xff]  }
 0xad4   : > { %10188 = vmatpush1.bf16.msra.mxu1 %v13477_v49  ;;  %9977 = vmatprep.subr.bf16.mxu0 %v13482_v61  ;;  %v8504_v49 = vld [vmem:[%s801_s27] sm:$0xf] }
 0xad5   : > { %10189 = vmatprep.subr.bf16.mxu1 %v13485_v25  ;;  %v8509_v61 = vrot.slane %v8504_v49, %v15172_v26  ;;  %v8517_v25 = vrot.slane %v8504_v49, %v15179_v47 }
 0xad7   : > { %9978 = vmatpush1.bf16.msra.mxu0 %v13480_v22  ;;  %v8513_v22 = vrot.slane %v8504_v49, %v15175_v27 }
 0xad8   : > { %10190 = vmatpush1.bf16.msra.mxu1 %v13483_v23  ;;  %9979 = vmatprep.subr.bf16.mxu0 %v13488_v45  ;;  %v8521_v45 = vrot.slane %v8504_v49, %v15184_v55 }
 0xad9   : > { %10191 = vmatprep.subr.bf16.mxu1 %v13491_v21 }
 0xadb   : > { %9980 = vmatpush1.bf16.msra.mxu0 %v13486_v7 }
 0xadc   : > { %10192 = vmatpush1.bf16.msra.mxu1 %v13489_v37  ;;  %9981 = vmatprep.subr.bf16.mxu0 %v13494_v52 }
 0xadd   : > { %10193 = vmatprep.subr.bf16.mxu1 %v13497_v58 }
 0xadf   : > { %9982 = vmatpush1.bf16.msra.mxu0 %v13492_v54 }
 0xae0   : > { %10194 = vmatpush1.bf16.msra.mxu1 %v13495_v63  ;;  %9983 = vmatprep.subr.bf16.mxu0 %v13500_v59 }
 0xae1   : > { %10195 = vmatprep.subr.bf16.mxu1 %v13503_v50 }
 0xae3   : > { %9984 = vmatpush1.bf16.msra.mxu0 %v13498_v13 }
 0xae4   : > { %10196 = vmatpush1.bf16.msra.mxu1 %v13501_v4  ;;  %9985 = vmatprep.subr.bf16.mxu0 %v13506_v14 }
 0xae5   : > { %10197 = vmatprep.subr.bf16.mxu1 %v13509_v3 }
 0xae7   : > { %9986 = vmatpush1.bf16.msra.mxu0 %v13504_v24 }
 0xae8   : > { %10198 = vmatpush1.bf16.msra.mxu1 %v13507_v48  ;;  %9987 = vmatprep.subr.bf16.mxu0 %v13512_v5 }
 0xae9   : > { %10199 = vmatprep.subr.bf16.mxu1 %v13515_v43 }
 0xaeb   : > { %9988 = vmatpush1.bf16.msra.mxu0 %v13510_v51 }
 0xaec   : > { %10200 = vmatpush1.bf16.msra.mxu1 %v13513_v30  ;;  %9989 = vmatprep.subr.bf16.mxu0 %v13518_v36 }
 0xaed   : > { %10201 = vmatprep.subr.bf16.mxu1 %v13521_v39 }
 0xaef   : > { %9990 = vmatpush1.bf16.msra.mxu0 %v13516_v17 }
 0xaf0   : > { %10202 = vmatpush1.bf16.msra.mxu1 %v13519_v40  ;;  %9991 = vmatprep.subr.bf16.mxu0 %v13524_v57 }
 0xaf1   : > { %10203 = vmatprep.subr.bf16.mxu1 %v13527_v10 }
 0xaf3   : > { %9992 = vmatpush1.bf16.msra.mxu0 %v13522_v16 }
 0xaf4   : > { %10204 = vmatpush1.bf16.msra.mxu1 %v13525_v11  ;;  %9993 = vmatprep.subr.bf16.mxu0 %v13530_v56 }
 0xaf5   : > { %10205 = vmatprep.subr.bf16.mxu1 %v13533_v0 }
 0xaf7   : > { %9994 = vmatpush1.bf16.msra.mxu0 %v13528_v60 }
 0xaf8   : > { %10206 = vmatpush1.bf16.msra.mxu1 %v13531_v42  ;;  %9995 = vmatprep.subr.bf16.mxu0 %v13536_v19 }
 0xaf9   : > { %10207 = vmatprep.subr.bf16.mxu1 %v13539_v46 }
 0xafb   : > { %9996 = vmatpush1.bf16.msra.mxu0 %v13534_v1 }
 0xafc   : > { %10208 = vmatpush1.bf16.msra.mxu1 %v13537_v34 }
 0xafe   : > { %9998 = vmatmul.mubr.bf16.vlgmr.msra.gmra.mrb[80].mxu0 %v16571_v62 }
 0xaff   : > { %10210 = vmatmul.mubr.bf16.vlgmr.msra.gmra.mrb[80].mxu1 %v16571_v62  ;;  %10007 = vmatprep.mubr.bf16.mxu0 %v16594_v38 }
 0xb00   : > { %10219 = vmatprep.mubr.bf16.mxu1 %v16594_v38 }
 0xb06   : > { %10008 = vmatmul.mubr.bf16.gmra.mrb[84].mxu0 %v16591_v31 }
 0xb07   : > { %10220 = vmatmul.mubr.bf16.gmra.mrb[84].mxu1 %v16591_v31 }
 0xbd1   : > { %v9999_v23 = vpop.f32.mrb[80].mxu0 }
 0xbd2   : > { %v12084_v62 = vadd.f32 %v9999_v23, %v8509_v61  ;;  %v10211_v21 = vpop.f32.mrb[80].mxu1  ;;  %v10001_v7 = vpop.f32.mrb[81].mxu0 }
 0xbd3   : > { %v12092_v37 = vadd.f32 %v10211_v21, %v8517_v25  ;;  %v12085_v38 = vadd.f32 %v10001_v7, %v8513_v22  ;;  %v10213_v52 = vpop.f32.mrb[81].mxu1  ;;  %v10003_v58 = vpop.f32.mrb[82].mxu0 }
 0xbd4   : > { %v10230_v31 = vadd.f32 %v12084_v62, %v16002_v15  ;;  %v12086_v54 = vadd.f32 %v10003_v58, %v8509_v61  ;;  %v10215_v63 = vpop.f32.mrb[82].mxu1  ;;  %v10005_v59 = vpop.f32.mrb[83].mxu0  ;;  %v12093_v13 = vadd.f32 %v10213_v52, %v8521_v45 }
 0xbd5   : > { %v10231_v50 = vadd.f32 %v12085_v38, %v15996_v6  ;;  %v12094_v4 = vadd.f32 %v10215_v63, %v8517_v25  ;;  %v12087_v14 = vadd.f32 %v10005_v59, %v8513_v22  ;;  %v10217_v3 = vpop.f32.mrb[83].mxu1  ;;  %v10232_v48 = vadd.f32 %v12092_v37, %v15993_v8 }
 0xbd6   : > { %v10234_v24 = vadd.f32 %v12086_v54, %v16005_v2  ;;  %v12095_v51 = vadd.f32 %v10217_v3, %v8521_v45  ;;  %v10233_v30 = vadd.f32 %v12093_v13, %v15989_v41 }
 0xbd7   : > { %v10248_v5 = vadd.f32 %v10231_v50, %v10230_v31  ;;  %v10235_v43 = vadd.f32 %v12087_v14, %v15999_v12  ;;  %v10236_v15 = vadd.f32 %v12094_v4, %v16014_v32 }
 0xbd8   : > { %v10237_v0 = vadd.f32 %v12095_v51, %v16011_v29 }
 0xbd9   : > { %v10253_v36 = vadd.f32 %v10235_v43, %v10234_v24  ;;  %v10009_v39 = vpop.f32.mrb[84].mxu0  ;;  %v10249_v17 = vadd.f32 %v10248_v5, %v10232_v48 }
 0xbda   : > { %v12088_v6 = vadd.f32 %v10009_v39, %v8509_v61  ;;  %v10221_v40 = vpop.f32.mrb[84].mxu1  ;;  %v10011_v57 = vpop.f32.mrb[85].mxu0 }
 0xbdb   : > { %v12096_v10 = vadd.f32 %v10221_v40, %v8517_v25  ;;  %v12089_v16 = vadd.f32 %v10011_v57, %v8513_v22  ;;  %v10223_v11 = vpop.f32.mrb[85].mxu1  ;;  %v10013_v2 = vpop.f32.mrb[86].mxu0  ;;  %v10250_v56 = vadd.f32 %v10249_v17, %v10233_v30  ;;  %v10254_v8 = vadd.f32 %v10253_v36, %v10236_v15 }
 0xbdc   : > { %v10238_v12 = vadd.f32 %v12088_v6, %v16135_v28  ;;  %v12090_v60 = vadd.f32 %v10013_v2, %v8509_v61  ;;  %v10225_v41 = vpop.f32.mrb[86].mxu1  ;;  %v10015_v42 = vpop.f32.mrb[87].mxu0  ;;  %v12097_v19 = vadd.f32 %v10223_v11, %v8521_v45 }
 0xbdd   : > { %v10239_v32 = vadd.f32 %v12089_v16, %v16129_v20  ;;  %v12098_v46 = vadd.f32 %v10225_v41, %v8517_v25  ;;  %v12091_v1 = vadd.f32 %v10015_v42, %v8513_v22  ;;  %v10227_v34 = vpop.f32.mrb[87].mxu1  ;;  %10251 = vadd.xlane.f32.xlu0 %v10250_v56  ;;  %v10255_v23 = vadd.f32 %v10254_v8, %v10237_v0 }
 0xbde   : > { %v10242_v49 = vadd.f32 %v12090_v60, %v16138_v33  ;;  %v10240_v62 = vadd.f32 %v12096_v10, %v16126_v53  ;;  %v12099_v7 = vadd.f32 %v10227_v34, %v8521_v45  ;;  %v10241_v28 = vadd.f32 %v12097_v19, %v16122_v44 }
 0xbdf   : > { %v10258_v21 = vadd.f32 %v10239_v32, %v10238_v12  ;;  %v10243_v29 = vadd.f32 %v12091_v1, %v16132_v18  ;;  %10256 = vadd.xlane.f32.xlu1 %v10255_v23  ;;  %v10244_v61 = vadd.f32 %v12098_v46, %v16144_v35 }
 0xbe0   : > { %v10245_v25 = vadd.f32 %v12099_v7, %v16141_v9 }
 0xbe1   : > { %v10263_v20 = vadd.f32 %v10243_v29, %v10242_v49  ;;  %v10259_v37 = vadd.f32 %v10258_v21, %v10240_v62 }
 0xbe3   : > { %v10260_v22 = vadd.f32 %v10259_v37, %v10241_v28  ;;  %v10264_v38 = vadd.f32 %v10263_v20, %v10244_v61 }
 0xbe5   : > { %10261 = vadd.xlane.f32.xlu0 %v10260_v22  ;;  %v10265_v33 = vadd.f32 %v10264_v38, %v10245_v25 }
 0xbe7   : > { %10266 = vadd.xlane.f32.xlu1 %v10265_v33 }
 0xc6a   : > { %v10252_v52 = vpop.xlane.xlu0 %10251 }
 0xc6b   : > { %v10268_v53 = vmul.f32 0.001953125, %v10252_v52  ;;  %v10246_v52 = vld [vmem:[%s756_s24] sm:$0xf] }
 0xc6c   : > { %v10257_v45 = vpop.xlane.xlu1 %10256 }
 0xc6d   : > { %v16679_v58 = vsub.f32 %v10230_v31, %v10268_v53  ;;  %v16681_v18 = vsub.f32 %v10231_v50, %v10268_v53  ;;  %v16683_v54 = vsub.f32 %v10232_v48, %v10268_v53  ;;  %v10269_v44 = vmul.f32 0.001953125, %v10257_v45  ;;  %v10247_v45 = vld [vmem:[%s765_s8] sm:$0xf] }
 0xc6e   : > { %v16685_v35 = vsub.f32 %v10233_v30, %v10268_v53 }
 0xc6f   : > { %v10288_v9 = vmul.f32 %v16679_v58, %v16679_v58  ;;  %v10289_v63 = vmul.f32 %v16681_v18, %v16681_v18  ;;  %v16691_v59 = vsub.f32 %v10234_v24, %v10269_v44  ;;  %v16693_v13 = vsub.f32 %v10235_v43, %v10269_v44 }
 0xc70   : > { %v16695_v31 = vsub.f32 %v10236_v15, %v10269_v44  ;;  %v10290_v50 = vmul.f32 %v16683_v54, %v16683_v54  ;;  %v16699_v3 = vsub.f32 %v10237_v0, %v10269_v44  ;;  %v10291_v24 = vmul.f32 %v16685_v35, %v16685_v35 }
 0xc71   : > { %v10304_v4 = vadd.f32 %v10289_v63, %v10288_v9  ;;  %v10292_v48 = vmul.f32 %v16691_v59, %v16691_v59  ;;  %v10293_v5 = vmul.f32 %v16693_v13, %v16693_v13  ;;  %v16748_v63 = vrot.slane %v10246_v52, %v15172_v26 }
 0xc72   : > { %v10262_v14 = vpop.xlane.xlu0 %10261  ;;  %v10294_v15 = vmul.f32 %v16695_v31, %v16695_v31  ;;  %v10295_v57 = vmul.f32 %v16699_v3, %v16699_v3 }
 0xc73   : > { %v10270_v51 = vmul.f32 0.001953125, %v10262_v14  ;;  %v10305_v43 = vadd.f32 %v10304_v4, %v10290_v50  ;;  %v10309_v36 = vadd.f32 %v10293_v5, %v10292_v48  ;;  %v16751_v4 = vrot.slane %v10246_v52, %v15175_v27 }
 0xc74   : > { %v10267_v30 = vpop.xlane.xlu1 %10266  ;;  %v16754_v14 = vrot.slane %v10246_v52, %v15179_v47  ;;  %v16757_v48 = vrot.slane %v10246_v52, %v15184_v55  ;;  %v16760_v5 = vrot.slane %v10247_v45, %v15172_v26 }
 0xc75   : > { %v16709_v39 = vsub.f32 %v10238_v12, %v10270_v51  ;;  %v16711_v17 = vsub.f32 %v10239_v32, %v10270_v51  ;;  %v10271_v6 = vmul.f32 0.001953125, %v10267_v30  ;;  %v10306_v40 = vadd.f32 %v10305_v43, %v10291_v24 }
 0xc76   : > { %v10310_v10 = vadd.f32 %v10309_v36, %v10294_v15  ;;  %v16715_v16 = vsub.f32 %v10240_v62, %v10270_v51  ;;  %v16717_v11 = vsub.f32 %v10241_v28, %v10270_v51  ;;  %v16763_v24 = vrot.slane %v10247_v45, %v15175_v27 }
 0xc77   : > { %v16719_v2 = vsub.f32 %v10242_v49, %v10271_v6  ;;  %v16721_v56 = vsub.f32 %v10243_v29, %v10271_v6  ;;  %10307 = vadd.xlane.f32.xlu0 %v10306_v40  ;;  %v10296_v8 = vmul.f32 %v16709_v39, %v16709_v39  ;;  %v10297_v0 = vmul.f32 %v16711_v17, %v16711_v17 }
 0xc78   : > { %v10311_v12 = vadd.f32 %v10310_v10, %v10295_v57  ;;  %v10298_v60 = vmul.f32 %v16715_v16, %v16715_v16  ;;  %v16729_v41 = vsub.f32 %v10244_v61, %v10271_v6  ;;  %v16731_v32 = vsub.f32 %v10245_v25, %v10271_v6 }
 0xc79   : > { %v10314_v42 = vadd.f32 %v10297_v0, %v10296_v8  ;;  %v10300_v19 = vmul.f32 %v16719_v2, %v16719_v2  ;;  %v10301_v46 = vmul.f32 %v16721_v56, %v16721_v56  ;;  %v10299_v1 = vmul.f32 %v16717_v11, %v16717_v11 }
 0xc7a   : > { %10312 = vadd.xlane.f32.xlu1 %v10311_v12  ;;  %v10302_v49 = vmul.f32 %v16729_v41, %v16729_v41  ;;  %v10303_v21 = vmul.f32 %v16731_v32, %v16731_v32  ;;  %v16766_v43 = vrot.slane %v10247_v45, %v15179_v47  ;;  %v16769_v30 = vrot.slane %v10247_v45, %v15184_v55 }
 0xc7b   : > { %v10315_v34 = vadd.f32 %v10314_v42, %v10298_v60  ;;  %v10319_v23 = vadd.f32 %v10301_v46, %v10300_v19 }
 0xc7d   : > { %v10316_v62 = vadd.f32 %v10315_v34, %v10299_v1  ;;  %v10320_v29 = vadd.f32 %v10319_v23, %v10302_v49 }
 0xc7f   : > { %10317 = vadd.xlane.f32.xlu0 %v10316_v62  ;;  %v10321_v7 = vadd.f32 %v10320_v29, %v10303_v21 }
 0xc81   : > { %10322 = vadd.xlane.f32.xlu1 %v10321_v7 }
 0xd04   : > { %v10308_v28 = vpop.xlane.xlu0 %10307 }
 0xd05   : > { %v10324_v61 = vmul.f32 0.001953125, %v10308_v28 }
 0xd07   : > { %v10328_v20 = vadd.f32 1e-05, %v10324_v61  ;;  %v10313_v37 = vpop.xlane.xlu1 %10312 }
 0xd08   : > { %v10325_v25 = vmul.f32 0.001953125, %v10313_v37 }
 0xd09   : > { %13612 = vrsqrt.f32 %v10328_v20 }
 0xd0a   : > { %v10329_v22 = vadd.f32 1e-05, %v10325_v25 }
 0xd0c   : > { %13614 = vrsqrt.f32 %v10329_v22  ;;  %v10318_v38 = vpop.xlane.xlu0 %10317 }
 0xd0d   : > { %v10326_v33 = vmul.f32 0.001953125, %v10318_v38 }
 0xd0e   : > { %v10323_v53 = vpop.xlane.xlu1 %10322 }
 0xd0f   : > { %v10330_v44 = vadd.f32 1e-05, %v10326_v33  ;;  %v10327_v9 = vmul.f32 0.001953125, %v10323_v53 }
 0xd11   : > { %13616 = vrsqrt.f32 %v10330_v44  ;;  %v10331_v50 = vadd.f32 1e-05, %v10327_v9 }
 0xd13   : > { %v13613_v51 = vpop.eup %13612  ;;  %13618 = vrsqrt.f32 %v10331_v50 }
 0xd14   : > { %v10336_v15 = vmul.f32 %v13613_v51, %v16679_v58  ;;  %v10337_v36 = vmul.f32 %v13613_v51, %v16681_v18  ;;  %v10338_v6 = vmul.f32 %v13613_v51, %v16683_v54  ;;  %v10339_v26 = vmul.f32 %v13613_v51, %v16685_v35 }
 0xd16   : > { %v13615_v40 = vpop.eup %13614  ;;  %v10373_v57 = vmul.f32 %v16748_v63, %v10336_v15  ;;  %v10374_v27 = vmul.f32 %v16751_v4, %v10337_v36  ;;  %v10375_v47 = vmul.f32 %v16754_v14, %v10338_v6  ;;  %v10376_v10 = vmul.f32 %v16757_v48, %v10339_v26 }
 0xd17   : > { %v10340_v55 = vmul.f32 %v13615_v40, %v16691_v59  ;;  %v10341_v8 = vmul.f32 %v13615_v40, %v16693_v13  ;;  %v10342_v58 = vmul.f32 %v13615_v40, %v16695_v31  ;;  %v10343_v18 = vmul.f32 %v13615_v40, %v16699_v3 }
 0xd18   : > { %v10410_v54 = vadd.f32 %v16760_v5, %v10373_v57  ;;  %v10411_v35 = vadd.f32 %v16763_v24, %v10374_v27  ;;  %v10412_v0 = vadd.f32 %v16766_v43, %v10375_v47  ;;  %v10413_v12 = vadd.f32 %v16769_v30, %v10376_v10 }
 0xd19   : > { %v10377_v60 = vmul.f32 %v16748_v63, %v10340_v55  ;;  %v10378_v42 = vmul.f32 %v16751_v4, %v10341_v8  ;;  %v10379_v59 = vmul.f32 %v16754_v14, %v10342_v58  ;;  %v10380_v13 = vmul.f32 %v16757_v48, %v10343_v18 }
 0xd1a   : > { %10426 = vst [vmem:[#allocation28] sm:$0xff] %v10410_v54  ;;  %10427 = vst [vmem:[#allocation28 + $0x8] sm:$0xff] %v10411_v35 }
 0xd1b   : > { %10428 = vst [vmem:[#allocation28 + $0x10] sm:$0xff] %v10412_v0  ;;  %10429 = vst [vmem:[#allocation28 + $0x18] sm:$0xff] %v10413_v12  ;;  %v13617_v31 = vpop.eup %13616  ;;  %v10414_v3 = vadd.f32 %v16760_v5, %v10377_v60  ;;  %v10415_v19 = vadd.f32 %v16763_v24, %v10378_v42  ;;  %v10416_v46 = vadd.f32 %v16766_v43, %v10379_v59 }
 0xd1c   : > { %v10417_v1 = vadd.f32 %v16769_v30, %v10380_v13  ;;  %v10344_v34 = vmul.f32 %v13617_v31, %v16709_v39  ;;  %v10345_v49 = vmul.f32 %v13617_v31, %v16711_v17  ;;  %v10346_v23 = vmul.f32 %v13617_v31, %v16715_v16 }
 0xd1d   : > { %v10347_v62 = vmul.f32 %v13617_v31, %v16717_v11  ;;  %v13619_v21 = vpop.eup %13618  ;;  %10430 = vst [vmem:[#allocation28 + $0x20] sm:$0xff] %v10414_v3  ;;  %10431 = vst [vmem:[#allocation28 + $0x28] sm:$0xff] %v10415_v19 }
 0xd1e   : > { %10432 = vst [vmem:[#allocation28 + $0x30] sm:$0xff] %v10416_v46  ;;  %10433 = vst [vmem:[#allocation28 + $0x38] sm:$0xff] %v10417_v1  ;;  %v10381_v29 = vmul.f32 %v16748_v63, %v10344_v34  ;;  %v10382_v7 = vmul.f32 %v16751_v4, %v10345_v49  ;;  %v10383_v28 = vmul.f32 %v16754_v14, %v10346_v23 }
 0xd1f   : > { %v10384_v61 = vmul.f32 %v16757_v48, %v10347_v62  ;;  %v10348_v39 = vmul.f32 %v13619_v21, %v16719_v2  ;;  %v10349_v17 = vmul.f32 %v13619_v21, %v16721_v56  ;;  %v10350_v16 = vmul.f32 %v13619_v21, %v16729_v41 }
 0xd20   : > { %v10351_v11 = vmul.f32 %v13619_v21, %v16731_v32  ;;  %v10418_v20 = vadd.f32 %v16760_v5, %v10381_v29  ;;  %v10419_v37 = vadd.f32 %v16763_v24, %v10382_v7  ;;  %v10420_v25 = vadd.f32 %v16766_v43, %v10383_v28 }
 0xd21   : > { %v10421_v22 = vadd.f32 %v16769_v30, %v10384_v61  ;;  %v10385_v38 = vmul.f32 %v16748_v63, %v10348_v39  ;;  %v10386_v2 = vmul.f32 %v16751_v4, %v10349_v17  ;;  %v10387_v56 = vmul.f32 %v16754_v14, %v10350_v16 }
 0xd22   : > { %v10388_v41 = vmul.f32 %v16757_v48, %v10351_v11  ;;  %10434 = vst [vmem:[#allocation28 + $0x40] sm:$0xff] %v10418_v20  ;;  %10435 = vst [vmem:[#allocation28 + $0x48] sm:$0xff] %v10419_v37 }
 0xd23   : > { %10436 = vst [vmem:[#allocation28 + $0x50] sm:$0xff] %v10420_v25  ;;  %10437 = vst [vmem:[#allocation28 + $0x58] sm:$0xff] %v10421_v22  ;;  %v10422_v32 = vadd.f32 %v16760_v5, %v10385_v38  ;;  %v10423_v33 = vadd.f32 %v16763_v24, %v10386_v2  ;;  %v10424_v52 = vadd.f32 %v16766_v43, %v10387_v56 }
 0xd24   : > { %v10425_v53 = vadd.f32 %v16769_v30, %v10388_v41 }
 0xd25   : > { %10438 = vst [vmem:[#allocation28 + $0x60] sm:$0xff] %v10422_v32  ;;  %10439 = vst [vmem:[#allocation28 + $0x68] sm:$0xff] %v10423_v33 }
 0xd26   : > { %10440 = vst [vmem:[#allocation28 + $0x70] sm:$0xff] %v10424_v52  ;;  %10441 = vst [vmem:[#allocation28 + $0x78] sm:$0xff] %v10425_v53 }
 0xd27   : > { %14037 = shalt.err (!%p14034_p3)
}
 0xd28   : > { %s16963_s11 = sld [smem:[#allocation52_spill]] }
 0xd2e   : > { %s14038_s28 = scalar_lea.hbm %s16963_s11, 2048 }
 0xd2f   : > { %p14039_p8 = scmp.ne.s32.totalorder %s16963_s11, %s14038_s28  ;;  %p14044_p4 = scmp.lt.u32.totalorder %s14038_s28, %s16963_s11 }
 0xd31   : > { %p14040_p0 = pnand %p14039_p8, %p12326_p1 }
 0xd33   : > { %p14041_p7 = pneg %p14040_p0 }
 0xd35   : > { %p14046_p9 = pnand %p14044_p4, %p14041_p7 }
 0xd37   : > { %14049 = shalt.err (!%p14046_p9)
}
 0xd38   : > { %s14152_s21 = smov 512   ;;  %s14153_s8 = smov 32  }
 0xd39   : > { %12279 = dma.vmem_to_hbm [thread:$0]  (%p12326_p1), %s16816_s9, 2048, %s16963_s11, [#allocation9], %s14152_s21, %s14152_s21, %s14153_s8  }
 0xd3a   : > { %14103 = dma.done.wait (%p12326_p1), [#allocation9], 2048  }
 0xd3b   : > { %14105 = vsyncadd (%p12326_p1), [#allocation9], 4294965248 }
 0xd3c PF: > { %s16964_s10 = sld [smem:[#allocation39_spill]]  ;;  %s16965_s1 = sld [smem:[#allocation37_spill]] }
 0xd3d   : > { %s16966_s27 = sld [smem:[#allocation41_spill]]  ;;  %s16967_s22 = sld [smem:[#allocation40_spill]] }
 0xd3e   : > { %s16968_s25 = smov %s14112_s26  ;;  %s16970_s28 = smov %s14124_s29 }
 0xd42   : > { %s43_s30 = sadd.s32 1, %s16964_s10   ;;  %s16969_s26 = smov %s16965_s1 }
 0xd43   : > { %p40_p5 = scmp.ge.s32.totalorder %s43_s30, 4   ;;  %s16971_s29 = smov %s16967_s22 }
 0xd45   :  { %42 = sbr.rel (!%p40_p5) target bundleno = 27 (0x1b), region = 272 }
 0xd4c   :  { %10468 = vsyncpa [#allocation8], 1 }
 0xd4d   :  { %10470 = vsyncpa [#allocation8 + $0x1], 1 }
 0xd4e   :  { %10471 = vsyncpa [#allocation11], 1 }
 0xd4f   :  { %10473 = vsyncpa [#allocation11 + $0x1], 1 }
 0xd50   :  { %10474 = vsyncpa [#allocation14], 1 }
 0xd51   :  { %10476 = vsyncpa [#allocation14 + $0x1], 1 }
 0xd52   :  { %10477 = vsyncpa [#allocation17], 1 }
 0xd53   :  { %10479 = vsyncpa [#allocation17 + $0x1], 1 }
 0xd54   :  { %10480 = vsyncpa [#allocation20], 1 }
 0xd55   :  { %10482 = vsyncpa [#allocation20 + $0x1], 1 }
 0xd56   :  { %10483 = vsyncpa [#allocation23], 1 }
 0xd57   :  { %10485 = vsyncpa [#allocation23 + $0x1], 1 }
 0xd58   :  { %10486 = vsyncpa [#allocation26], 1 }
 0xd59   :  { %10488 = vsyncpa [#allocation26 + $0x1], 1 }
 0xd5a   :  { %10489 = vsyncpa [#allocation9], 1 }
 0xd5b   :  { %10491 = vsyncpa [#allocation9 + $0x1], 1 }

</bundles_post_ra>
